<compile_context>
chip_gen: v5e
topology: v5e:2x2
jax: 0.10.0
libtpu: 0.0.40
codegen_flags: <defaults>
</compile_context>

<pallas_src>
import functools

import jax
import jax.numpy as jnp
from jax import lax
from jax.experimental import pallas as pl
from jax.experimental.pallas import tpu as pltpu


# ----------------------------------------------------------------------------
# Fused Pallas kernel: entire MFF_Dilated forward for one batch element
# ----------------------------------------------------------------------------
def _mff_dilated_fused_kernel(
    x_ref,      # (1, H, W, Cin)  f32  one batch element (NHWC)
    w1_ref,     # (9*Cin, C)      bf16 conv1 weight, BN1 scale folded, taps flattened
    b1_ref,     # (1, C)          f32  BN1 bias
    w21_ref,    # (C, C)          bf16 conv2_1 (1x1)
    w22_ref,    # (9*C, C)        bf16 conv2_2
    w23a_ref,   # (9*C, C)        bf16 conv2_3[0]
    w23b_ref,   # (9*C, C)        bf16 conv2_3[1]
    w3_ref,     # (3, C, C)       bf16 conv3 split into per-branch slabs, BN3 folded
    b3_ref,     # (1, C)          f32  BN3 bias
    o_ref,      # (1, H*W, C)     f32  output (flattened spatial)
    xpad_ref,   # VMEM (Hp, Wp, Cin) f32  zero-padded input
    x1pad_ref,  # VMEM (Hp, Wp, C)   f32  zero-padded x1
    tpad_ref,   # VMEM (Hp, Wp, C)   f32  zero-padded conv2_3[0] output
    pin_ref,    # VMEM (H*W, 9*Cin)  f32  staged patches of the input
    pc_ref,     # VMEM (H*W, 9*C)    f32  staged patches of C-channel activations
    *, H, W, Cin, C, dilation,
):
    d = dilation
    pad = d  # same-size padding for the dilated 3x3 convs (k=3, padding=dilation)
    f32, bf16 = jnp.float32, jnp.bfloat16

    # Zero the padded scratches in VMEM (halos must be zero); interiors are
    # overwritten below.  This replaces the old wrapper-side jnp.pad HBM copies.
    xpad_ref[...] = jnp.zeros_like(xpad_ref)
    x1pad_ref[...] = jnp.zeros_like(x1pad_ref)
    tpad_ref[...] = jnp.zeros_like(tpad_ref)

    xpad_ref[pad:pad + H, pad:pad + W, :] = x_ref[0]

    def gather(src_ref, cin, dst_ref):
        """Stage the 9 dilated taps as one (H*W, 9*cin) MXU operand in VMEM."""
        for j, (ky, kx) in enumerate((a, b) for a in range(3) for b in range(3)):
            dst_ref[:, j * cin:(j + 1) * cin] = src_ref[
                ky * d:ky * d + H, kx * d:kx * d + W, :].reshape(H * W, cin)
        return dst_ref[...].astype(bf16)

    # conv1 (CBR): dilated 3x3 as a single K = 9*Cin contraction, bias + ReLU.
    x1 = jnp.maximum(
        jnp.dot(gather(xpad_ref, Cin, pin_ref), w1_ref[...],
                preferred_element_type=f32) + b1_ref[...], 0.0)      # (H*W, C) f32
    x1pad_ref[pad:pad + H, pad:pad + W, :] = x1.reshape(H, W, C)

    # conv2_1 (CR, 1x1).
    x2_1 = jnp.maximum(
        jnp.dot(x1.astype(bf16), w21_ref[...], preferred_element_type=f32), 0.0)

    # conv2_2 / conv2_3[0] (CR, dilated 3x3) share one gathered patch matrix,
    # so x1 is gathered exactly once for both branches.
    p1 = gather(x1pad_ref, C, pc_ref)
    x2_2 = jnp.maximum(jnp.dot(p1, w22_ref[...], preferred_element_type=f32), 0.0)
    t = jnp.maximum(jnp.dot(p1, w23a_ref[...], preferred_element_type=f32), 0.0)

    # conv2_3[1] (CR, dilated 3x3).
    tpad_ref[pad:pad + H, pad:pad + W, :] = t.reshape(H, W, C)
    x2_3 = jnp.maximum(
        jnp.dot(gather(tpad_ref, C, pc_ref), w23b_ref[...],
                preferred_element_type=f32), 0.0)

    # conv3 (CBR, 1x1 over the channel concat) done as three (C, C) slabs
    # applied to the branch outputs -> the 3C-wide concat never exists.
    acc = jnp.dot(x2_1.astype(bf16), w3_ref[0], preferred_element_type=f32)
    acc = acc + jnp.dot(x2_2.astype(bf16), w3_ref[1], preferred_element_type=f32)
    acc = acc + jnp.dot(x2_3.astype(bf16), w3_ref[2], preferred_element_type=f32)
    out = jnp.maximum(acc + b3_ref[...], 0.0) + x1                   # residual add
    o_ref[0] = out.astype(o_ref.dtype)


# ----------------------------------------------------------------------------
# Parameter preparation: fold BN (eval mode) into the weights, flatten the taps
# to (KH*KW*Cin, Cout), split conv3 into per-branch slabs, cast to bf16.
# The reference uses exactly these prepared weights so quantization matches.
# ----------------------------------------------------------------------------
def prepare_params(params):
    C = params["w1"].shape[-1]
    Cin = params["w1"].shape[2]
    bf16, f32 = jnp.bfloat16, jnp.float32
    s1 = params["bn1_scale"]
    s3 = params["bn3_scale"]
    return {
        "w1": (params["w1"] * s1).reshape(9 * Cin, C).astype(bf16),
        "b1": params["bn1_bias"].reshape(1, C).astype(f32),
        "w21": params["w2_1"].reshape(C, C).astype(bf16),
        "w22": params["w2_2"].reshape(9 * C, C).astype(bf16),
        "w23a": params["w2_3a"].reshape(9 * C, C).astype(bf16),
        "w23b": params["w2_3b"].reshape(9 * C, C).astype(bf16),
        "w3": (params["w3"] * s3).reshape(3, C, C).astype(bf16),
        "b3": params["bn3_bias"].reshape(1, C).astype(f32),
    }


# ----------------------------------------------------------------------------
# Wrapper: one pallas_call for the whole module (NCHW in / NCHW out)
# ----------------------------------------------------------------------------
def mff_dilated_forward(x_nchw, params, dilation=2):
    N, Cin, H, W = x_nchw.shape
    C = params["w1"].shape[-1]
    d = dilation
    pad = d                       # kernel_size=3, padding=dilation -> same size
    Hp, Wp = H + 2 * pad, W + 2 * pad

    prep = prepare_params(params)
    x = jnp.transpose(x_nchw, (0, 2, 3, 1)).astype(jnp.float32)   # NCHW -> NHWC

    kern = functools.partial(_mff_dilated_fused_kernel,
                             H=H, W=W, Cin=Cin, C=C, dilation=d)

    out_flat = pl.pallas_call(
        kern,
        grid=(N,),
        in_specs=[
            pl.BlockSpec((1, H, W, Cin), lambda n: (n, 0, 0, 0)),
            pl.BlockSpec((9 * Cin, C), lambda n: (0, 0)),
            pl.BlockSpec((1, C), lambda n: (0, 0)),
            pl.BlockSpec((C, C), lambda n: (0, 0)),
            pl.BlockSpec((9 * C, C), lambda n: (0, 0)),
            pl.BlockSpec((9 * C, C), lambda n: (0, 0)),
            pl.BlockSpec((9 * C, C), lambda n: (0, 0)),
            pl.BlockSpec((3, C, C), lambda n: (0, 0, 0)),
            pl.BlockSpec((1, C), lambda n: (0, 0)),
        ],
        out_specs=pl.BlockSpec((1, H * W, C), lambda n: (n, 0, 0)),
        out_shape=jax.ShapeDtypeStruct((N, H * W, C), jnp.float32),
        scratch_shapes=[
            pltpu.VMEM((Hp, Wp, Cin), jnp.float32),
            pltpu.VMEM((Hp, Wp, C), jnp.float32),
            pltpu.VMEM((Hp, Wp, C), jnp.float32),
            pltpu.VMEM((H * W, 9 * Cin), jnp.float32),
            pltpu.VMEM((H * W, 9 * C), jnp.float32),
        ],
        compiler_params=pltpu.CompilerParams(
            dimension_semantics=("parallel",)),
    )(x, prep["w1"], prep["b1"], prep["w21"], prep["w22"], prep["w23a"],
      prep["w23b"], prep["w3"], prep["b3"])

    out = out_flat.reshape(N, H, W, C)
    return jnp.transpose(out, (0, 3, 1, 2))                          # -> NCHW


# ----------------------------------------------------------------------------
# Synthetic parameters (deterministic)
# ----------------------------------------------------------------------------
def init_params(key, in_channels, out_channels):
    ks = jax.random.split(key, 6)

    def w(k, kh, kw, cin, cout):
        return jax.random.normal(k, (kh, kw, cin, cout), jnp.float32) * 0.1

    C = out_channels
    eps = 1e-5
    # BatchNorm2d defaults: gamma=1, beta=0, running_mean=0, running_var=1 (eval).
    bn_scale = jnp.ones((C,), jnp.float32) / jnp.sqrt(1.0 + eps)
    bn_bias = jnp.zeros((C,), jnp.float32)
    return {
        "w1": w(ks[0], 3, 3, in_channels, C),
        "bn1_scale": bn_scale, "bn1_bias": bn_bias,
        "w2_1": w(ks[1], 1, 1, C, C),
        "w2_2": w(ks[2], 3, 3, C, C),
        "w2_3a": w(ks[3], 3, 3, C, C),
        "w2_3b": w(ks[4], 3, 3, C, C),
        "w3": w(ks[5], 1, 1, 3 * C, C),
        "bn3_scale": bn_scale, "bn3_bias": bn_bias,
    }


# ----------------------------------------------------------------------------
# Pure-JAX reference with matching bf16-operand / f32-accumulate quantization
# ----------------------------------------------------------------------------
def mff_dilated_ref(x_nchw, params, dilation=2):
    prep = prepare_params(params)
    C = params["w1"].shape[-1]
    Cin = params["w1"].shape[2]
    x = jnp.transpose(x_nchw, (0, 2, 3, 1)).astype(jnp.float32)

    def conv(a, w_hwio, pad):
        return lax.conv_general_dilated(
            a.astype(jnp.bfloat16), w_hwio,
            window_strides=(1, 1), padding=[(pad, pad), (pad, pad)],
            rhs_dilation=(dilation, dilation),
            dimension_numbers=("NHWC", "HWIO", "NHWC"),
            preferred_element_type=jnp.float32)

    w1 = prep["w1"].reshape(3, 3, Cin, C)
    w21 = prep["w21"].reshape(1, 1, C, C)
    w22 = prep["w22"].reshape(3, 3, C, C)
    w23a = prep["w23a"].reshape(3, 3, C, C)
    w23b = prep["w23b"].reshape(3, 3, C, C)
    w3 = prep["w3"].reshape(1, 1, 3 * C, C)

    x1 = jnp.maximum(conv(x, w1, dilation) + prep["b1"][0], 0.0)
    x2_1 = jnp.maximum(conv(x1, w21, 0), 0.0)
    x2_2 = jnp.maximum(conv(x1, w22, dilation), 0.0)
    t = jnp.maximum(conv(x1, w23a, dilation), 0.0)
    x2_3 = jnp.maximum(conv(t, w23b, dilation), 0.0)
    x2 = jnp.concatenate([x2_1, x2_2, x2_3], axis=-1)
    x3 = jnp.maximum(conv(x2, w3, 0) + prep["b3"][0], 0.0)
    out = x3 + x1
    return jnp.transpose(out, (0, 3, 1, 2))


# ----------------------------------------------------------------------------
if __name__ == "__main__":
    key = jax.random.PRNGKey(0)
    kx, kp = jax.random.split(key)

    N, Cin, H, W = 2, 4, 16, 16
    Cout = 8
    x = jax.random.normal(kx, (N, Cin, H, W), jnp.float32)
    params = init_params(kp, Cin, Cout)

    out = jax.block_until_ready(mff_dilated_forward(x, params))
    ref = jax.block_until_ready(mff_dilated_ref(x, params))

    assert out.shape == (N, Cout, H, W), out.shape
    # bf16 operands / f32 accumulation in both paths -> small residual tolerance
    # for accumulation-order and rounding-boundary differences.
    assert jnp.allclose(out, ref, rtol=2e-2, atol=2e-2), float(
        jnp.max(jnp.abs(out - ref)))

    print("KERNEL_OK")
</pallas_src>

<mosaic_0001>
module attributes {stable_mosaic.version = 11 : i64} {
  func.func @_mff_dilated_fused_kernel(%arg0: i32, %arg1: memref<1x16x16x4xf32, #tpu.memory_space<vmem>>, %arg2: memref<36x8xbf16, #tpu.memory_space<vmem>>, %arg3: memref<1x8xf32, #tpu.memory_space<vmem>>, %arg4: memref<8x8xbf16, #tpu.memory_space<vmem>>, %arg5: memref<72x8xbf16, #tpu.memory_space<vmem>>, %arg6: memref<72x8xbf16, #tpu.memory_space<vmem>>, %arg7: memref<72x8xbf16, #tpu.memory_space<vmem>>, %arg8: memref<3x8x8xbf16, #tpu.memory_space<vmem>>, %arg9: memref<1x8xf32, #tpu.memory_space<vmem>>, %arg10: memref<1x256x8xf32, #tpu.memory_space<vmem>>, %arg11: memref<20x20x4xf32, #tpu.memory_space<vmem>>, %arg12: memref<20x20x8xf32, #tpu.memory_space<vmem>>, %arg13: memref<20x20x8xf32, #tpu.memory_space<vmem>>, %arg14: memref<256x36xf32, #tpu.memory_space<vmem>>, %arg15: memref<256x72xf32, #tpu.memory_space<vmem>>) attributes {dimension_semantics = [#tpu.dimension_semantics<parallel>], iteration_bounds = array<i64: 2>, scalar_prefetch = 0 : i64, scratch_operands = 5 : i64, tpu.core_type = #tpu.core_type<tc>, window_params = [{transform_indices = @transform_0, window_bounds = array<i64: 1, 16, 16, 4>}, {pipeline_mode = #tpu.pipeline_mode<synchronous>, transform_indices = @transform_1, window_bounds = array<i64: 36, 8>}, {pipeline_mode = #tpu.pipeline_mode<synchronous>, transform_indices = @transform_2, window_bounds = array<i64: 1, 8>}, {pipeline_mode = #tpu.pipeline_mode<synchronous>, transform_indices = @transform_3, window_bounds = array<i64: 8, 8>}, {pipeline_mode = #tpu.pipeline_mode<synchronous>, transform_indices = @transform_4, window_bounds = array<i64: 72, 8>}, {pipeline_mode = #tpu.pipeline_mode<synchronous>, transform_indices = @transform_5, window_bounds = array<i64: 72, 8>}, {pipeline_mode = #tpu.pipeline_mode<synchronous>, transform_indices = @transform_6, window_bounds = array<i64: 72, 8>}, {pipeline_mode = #tpu.pipeline_mode<synchronous>, transform_indices = @transform_7, window_bounds = array<i64: 3, 8, 8>}, {pipeline_mode = #tpu.pipeline_mode<synchronous>, transform_indices = @transform_8, window_bounds = array<i64: 1, 8>}, {transform_indices = @transform_9, window_bounds = array<i64: 1, 256, 8>}]} {
    %cst = arith.constant 0.000000e+00 : f32
    %0 = vector.broadcast %cst : f32 to vector<20x20x4xf32>
    %c0 = arith.constant 0 : index
    %c0_0 = arith.constant 0 : index
    %c0_1 = arith.constant 0 : index
    %1 = vector.load %arg11[%c0, %c0_0, %c0_1] : memref<20x20x4xf32, #tpu.memory_space<vmem>>, vector<20x20x4xf32>
    tpu.vector_store %arg11[%c0, %c0_0, %c0_1], %0 {strides = array<i32>} : memref<20x20x4xf32, #tpu.memory_space<vmem>>, vector<20x20x4xf32>,
    %cst_2 = arith.constant 0.000000e+00 : f32
    %2 = vector.broadcast %cst_2 : f32 to vector<20x20x8xf32>
    %c0_3 = arith.constant 0 : index
    %c0_4 = arith.constant 0 : index
    %c0_5 = arith.constant 0 : index
    %3 = vector.load %arg12[%c0_3, %c0_4, %c0_5] : memref<20x20x8xf32, #tpu.memory_space<vmem>>, vector<20x20x8xf32>
    tpu.vector_store %arg12[%c0_3, %c0_4, %c0_5], %2 {strides = array<i32>} : memref<20x20x8xf32, #tpu.memory_space<vmem>>, vector<20x20x8xf32>,
    %cst_6 = arith.constant 0.000000e+00 : f32
    %4 = vector.broadcast %cst_6 : f32 to vector<20x20x8xf32>
    %c0_7 = arith.constant 0 : index
    %c0_8 = arith.constant 0 : index
    %c0_9 = arith.constant 0 : index
    %5 = vector.load %arg13[%c0_7, %c0_8, %c0_9] : memref<20x20x8xf32, #tpu.memory_space<vmem>>, vector<20x20x8xf32>
    tpu.vector_store %arg13[%c0_7, %c0_8, %c0_9], %4 {strides = array<i32>} : memref<20x20x8xf32, #tpu.memory_space<vmem>>, vector<20x20x8xf32>,
    %c0_10 = arith.constant 0 : index
    %c0_11 = arith.constant 0 : index
    %c0_12 = arith.constant 0 : index
    %c0_13 = arith.constant 0 : index
    %6 = vector.load %arg1[%c0_10, %c0_11, %c0_12, %c0_13] : memref<1x16x16x4xf32, #tpu.memory_space<vmem>>, vector<1x16x16x4xf32>
    %7 = vector.shape_cast %6 : vector<1x16x16x4xf32> to vector<16x16x4xf32>
    %c2 = arith.constant 2 : index
    %c2_14 = arith.constant 2 : index
    %c0_15 = arith.constant 0 : index
    %8 = vector.load %arg11[%c2, %c2_14, %c0_15] : memref<20x20x4xf32, #tpu.memory_space<vmem>>, vector<16x16x4xf32>
    tpu.vector_store %arg11[%c2, %c2_14, %c0_15], %7 {strides = array<i32>} : memref<20x20x4xf32, #tpu.memory_space<vmem>>, vector<16x16x4xf32>,
    %c0_16 = arith.constant 0 : index
    %c0_17 = arith.constant 0 : index
    %c0_18 = arith.constant 0 : index
    %9 = vector.load %arg11[%c0_16, %c0_17, %c0_18] : memref<20x20x4xf32, #tpu.memory_space<vmem>>, vector<16x16x4xf32>
    %10 = vector.shape_cast %9 : vector<16x16x4xf32> to vector<256x4xf32>
    %c0_19 = arith.constant 0 : index
    %c0_20 = arith.constant 0 : index
    %11 = vector.load %arg14[%c0_19, %c0_20] : memref<256x36xf32, #tpu.memory_space<vmem>>, vector<256x4xf32>
    tpu.vector_store %arg14[%c0_19, %c0_20], %10 {strides = array<i32>} : memref<256x36xf32, #tpu.memory_space<vmem>>, vector<256x4xf32>,
    %c0_21 = arith.constant 0 : index
    %c2_22 = arith.constant 2 : index
    %c0_23 = arith.constant 0 : index
    %12 = vector.load %arg11[%c0_21, %c2_22, %c0_23] : memref<20x20x4xf32, #tpu.memory_space<vmem>>, vector<16x16x4xf32>
    %13 = vector.shape_cast %12 : vector<16x16x4xf32> to vector<256x4xf32>
    %c0_24 = arith.constant 0 : index
    %c4 = arith.constant 4 : index
    %14 = vector.load %arg14[%c0_24, %c4] : memref<256x36xf32, #tpu.memory_space<vmem>>, vector<256x4xf32>
    tpu.vector_store %arg14[%c0_24, %c4], %13 {strides = array<i32>} : memref<256x36xf32, #tpu.memory_space<vmem>>, vector<256x4xf32>,
    %c0_25 = arith.constant 0 : index
    %c4_26 = arith.constant 4 : index
    %c0_27 = arith.constant 0 : index
    %15 = vector.load %arg11[%c0_25, %c4_26, %c0_27] : memref<20x20x4xf32, #tpu.memory_space<vmem>>, vector<16x16x4xf32>
    %16 = vector.shape_cast %15 : vector<16x16x4xf32> to vector<256x4xf32>
    %c0_28 = arith.constant 0 : index
    %c8 = arith.constant 8 : index
    %17 = vector.load %arg14[%c0_28, %c8] : memref<256x36xf32, #tpu.memory_space<vmem>>, vector<256x4xf32>
    tpu.vector_store %arg14[%c0_28, %c8], %16 {strides = array<i32>} : memref<256x36xf32, #tpu.memory_space<vmem>>, vector<256x4xf32>,
    %c2_29 = arith.constant 2 : index
    %c0_30 = arith.constant 0 : index
    %c0_31 = arith.constant 0 : index
    %18 = vector.load %arg11[%c2_29, %c0_30, %c0_31] : memref<20x20x4xf32, #tpu.memory_space<vmem>>, vector<16x16x4xf32>
    %19 = vector.shape_cast %18 : vector<16x16x4xf32> to vector<256x4xf32>
    %c0_32 = arith.constant 0 : index
    %c12 = arith.constant 12 : index
    %20 = vector.load %arg14[%c0_32, %c12] : memref<256x36xf32, #tpu.memory_space<vmem>>, vector<256x4xf32>
    tpu.vector_store %arg14[%c0_32, %c12], %19 {strides = array<i32>} : memref<256x36xf32, #tpu.memory_space<vmem>>, vector<256x4xf32>,
    %c2_33 = arith.constant 2 : index
    %c2_34 = arith.constant 2 : index
    %c0_35 = arith.constant 0 : index
    %21 = vector.load %arg11[%c2_33, %c2_34, %c0_35] : memref<20x20x4xf32, #tpu.memory_space<vmem>>, vector<16x16x4xf32>
    %22 = vector.shape_cast %21 : vector<16x16x4xf32> to vector<256x4xf32>
    %c0_36 = arith.constant 0 : index
    %c16 = arith.constant 16 : index
    %23 = vector.load %arg14[%c0_36, %c16] : memref<256x36xf32, #tpu.memory_space<vmem>>, vector<256x4xf32>
    tpu.vector_store %arg14[%c0_36, %c16], %22 {strides = array<i32>} : memref<256x36xf32, #tpu.memory_space<vmem>>, vector<256x4xf32>,
    %c2_37 = arith.constant 2 : index
    %c4_38 = arith.constant 4 : index
    %c0_39 = arith.constant 0 : index
    %24 = vector.load %arg11[%c2_37, %c4_38, %c0_39] : memref<20x20x4xf32, #tpu.memory_space<vmem>>, vector<16x16x4xf32>
    %25 = vector.shape_cast %24 : vector<16x16x4xf32> to vector<256x4xf32>
    %c0_40 = arith.constant 0 : index
    %c20 = arith.constant 20 : index
    %26 = vector.load %arg14[%c0_40, %c20] : memref<256x36xf32, #tpu.memory_space<vmem>>, vector<256x4xf32>
    tpu.vector_store %arg14[%c0_40, %c20], %25 {strides = array<i32>} : memref<256x36xf32, #tpu.memory_space<vmem>>, vector<256x4xf32>,
    %c4_41 = arith.constant 4 : index
    %c0_42 = arith.constant 0 : index
    %c0_43 = arith.constant 0 : index
    %27 = vector.load %arg11[%c4_41, %c0_42, %c0_43] : memref<20x20x4xf32, #tpu.memory_space<vmem>>, vector<16x16x4xf32>
    %28 = vector.shape_cast %27 : vector<16x16x4xf32> to vector<256x4xf32>
    %c0_44 = arith.constant 0 : index
    %c24 = arith.constant 24 : index
    %29 = vector.load %arg14[%c0_44, %c24] : memref<256x36xf32, #tpu.memory_space<vmem>>, vector<256x4xf32>
    tpu.vector_store %arg14[%c0_44, %c24], %28 {strides = array<i32>} : memref<256x36xf32, #tpu.memory_space<vmem>>, vector<256x4xf32>,
    %c4_45 = arith.constant 4 : index
    %c2_46 = arith.constant 2 : index
    %c0_47 = arith.constant 0 : index
    %30 = vector.load %arg11[%c4_45, %c2_46, %c0_47] : memref<20x20x4xf32, #tpu.memory_space<vmem>>, vector<16x16x4xf32>
    %31 = vector.shape_cast %30 : vector<16x16x4xf32> to vector<256x4xf32>
    %c0_48 = arith.constant 0 : index
    %c28 = arith.constant 28 : index
    %32 = vector.load %arg14[%c0_48, %c28] : memref<256x36xf32, #tpu.memory_space<vmem>>, vector<256x4xf32>
    tpu.vector_store %arg14[%c0_48, %c28], %31 {strides = array<i32>} : memref<256x36xf32, #tpu.memory_space<vmem>>, vector<256x4xf32>,
    %c4_49 = arith.constant 4 : index
    %c4_50 = arith.constant 4 : index
    %c0_51 = arith.constant 0 : index
    %33 = vector.load %arg11[%c4_49, %c4_50, %c0_51] : memref<20x20x4xf32, #tpu.memory_space<vmem>>, vector<16x16x4xf32>
    %34 = vector.shape_cast %33 : vector<16x16x4xf32> to vector<256x4xf32>
    %c0_52 = arith.constant 0 : index
    %c32 = arith.constant 32 : index
    %35 = vector.load %arg14[%c0_52, %c32] : memref<256x36xf32, #tpu.memory_space<vmem>>, vector<256x4xf32>
    tpu.vector_store %arg14[%c0_52, %c32], %34 {strides = array<i32>} : memref<256x36xf32, #tpu.memory_space<vmem>>, vector<256x4xf32>,
    %c0_53 = arith.constant 0 : index
    %c0_54 = arith.constant 0 : index
    %36 = vector.load %arg14[%c0_53, %c0_54] : memref<256x36xf32, #tpu.memory_space<vmem>>, vector<256x36xf32>
    %37 = arith.truncf %36 : vector<256x36xf32> to vector<256x36xbf16>
    %c0_55 = arith.constant 0 : index
    %c0_56 = arith.constant 0 : index
    %38 = vector.load %arg2[%c0_55, %c0_56] : memref<36x8xbf16, #tpu.memory_space<vmem>>, vector<36x8xbf16>
    %cst_57 = arith.constant dense<0.000000e+00> : vector<256x8xf32>
    %39 = tpu.matmul %37, %38, %cst_57 {dimension_numbers = #tpu.dot_dimension_numbers<[1], [0], [0], [1], [0, 0, 1, 1], [], []>} : vector<256x36xbf16>, vector<36x8xbf16>, vector<256x8xf32> -> vector<256x8xf32>
    %c0_58 = arith.constant 0 : index
    %c0_59 = arith.constant 0 : index
    %40 = vector.load %arg3[%c0_58, %c0_59] : memref<1x8xf32, #tpu.memory_space<vmem>>, vector<1x8xf32>
    %41 = vector.broadcast %40 : vector<1x8xf32> to vector<256x8xf32>
    %42 = arith.addf %39, %41 : vector<256x8xf32>
    %cst_60 = arith.constant 0.000000e+00 : f32
    %43 = vector.broadcast %cst_60 : f32 to vector<256x8xf32>
    %44 = arith.maximumf %42, %43 : vector<256x8xf32>
    %45 = vector.shape_cast %44 : vector<256x8xf32> to vector<16x16x8xf32>
    %c2_61 = arith.constant 2 : index
    %c2_62 = arith.constant 2 : index
    %c0_63 = arith.constant 0 : index
    %46 = vector.load %arg12[%c2_61, %c2_62, %c0_63] : memref<20x20x8xf32, #tpu.memory_space<vmem>>, vector<16x16x8xf32>
    tpu.vector_store %arg12[%c2_61, %c2_62, %c0_63], %45 {strides = array<i32>} : memref<20x20x8xf32, #tpu.memory_space<vmem>>, vector<16x16x8xf32>,
    %47 = arith.truncf %44 : vector<256x8xf32> to vector<256x8xbf16>
    %c0_64 = arith.constant 0 : index
    %c0_65 = arith.constant 0 : index
    %48 = vector.load %arg4[%c0_64, %c0_65] : memref<8x8xbf16, #tpu.memory_space<vmem>>, vector<8x8xbf16>
    %cst_66 = arith.constant dense<0.000000e+00> : vector<256x8xf32>
    %49 = tpu.matmul %47, %48, %cst_66 {dimension_numbers = #tpu.dot_dimension_numbers<[1], [0], [0], [1], [0, 0, 1, 1], [], []>} : vector<256x8xbf16>, vector<8x8xbf16>, vector<256x8xf32> -> vector<256x8xf32>
    %cst_67 = arith.constant 0.000000e+00 : f32
    %50 = vector.broadcast %cst_67 : f32 to vector<256x8xf32>
    %51 = arith.maximumf %49, %50 : vector<256x8xf32>
    %c0_68 = arith.constant 0 : index
    %c0_69 = arith.constant 0 : index
    %c0_70 = arith.constant 0 : index
    %52 = vector.load %arg12[%c0_68, %c0_69, %c0_70] : memref<20x20x8xf32, #tpu.memory_space<vmem>>, vector<16x16x8xf32>
    %53 = vector.shape_cast %52 : vector<16x16x8xf32> to vector<256x8xf32>
    %c0_71 = arith.constant 0 : index
    %c0_72 = arith.constant 0 : index
    %54 = vector.load %arg15[%c0_71, %c0_72] : memref<256x72xf32, #tpu.memory_space<vmem>>, vector<256x8xf32>
    tpu.vector_store %arg15[%c0_71, %c0_72], %53 {strides = array<i32>} : memref<256x72xf32, #tpu.memory_space<vmem>>, vector<256x8xf32>,
    %c0_73 = arith.constant 0 : index
    %c2_74 = arith.constant 2 : index
    %c0_75 = arith.constant 0 : index
    %55 = vector.load %arg12[%c0_73, %c2_74, %c0_75] : memref<20x20x8xf32, #tpu.memory_space<vmem>>, vector<16x16x8xf32>
    %56 = vector.shape_cast %55 : vector<16x16x8xf32> to vector<256x8xf32>
    %c0_76 = arith.constant 0 : index
    %c8_77 = arith.constant 8 : index
    %57 = vector.load %arg15[%c0_76, %c8_77] : memref<256x72xf32, #tpu.memory_space<vmem>>, vector<256x8xf32>
    tpu.vector_store %arg15[%c0_76, %c8_77], %56 {strides = array<i32>} : memref<256x72xf32, #tpu.memory_space<vmem>>, vector<256x8xf32>,
    %c0_78 = arith.constant 0 : index
    %c4_79 = arith.constant 4 : index
    %c0_80 = arith.constant 0 : index
    %58 = vector.load %arg12[%c0_78, %c4_79, %c0_80] : memref<20x20x8xf32, #tpu.memory_space<vmem>>, vector<16x16x8xf32>
    %59 = vector.shape_cast %58 : vector<16x16x8xf32> to vector<256x8xf32>
    %c0_81 = arith.constant 0 : index
    %c16_82 = arith.constant 16 : index
    %60 = vector.load %arg15[%c0_81, %c16_82] : memref<256x72xf32, #tpu.memory_space<vmem>>, vector<256x8xf32>
    tpu.vector_store %arg15[%c0_81, %c16_82], %59 {strides = array<i32>} : memref<256x72xf32, #tpu.memory_space<vmem>>, vector<256x8xf32>,
    %c2_83 = arith.constant 2 : index
    %c0_84 = arith.constant 0 : index
    %c0_85 = arith.constant 0 : index
    %61 = vector.load %arg12[%c2_83, %c0_84, %c0_85] : memref<20x20x8xf32, #tpu.memory_space<vmem>>, vector<16x16x8xf32>
    %62 = vector.shape_cast %61 : vector<16x16x8xf32> to vector<256x8xf32>
    %c0_86 = arith.constant 0 : index
    %c24_87 = arith.constant 24 : index
    %63 = vector.load %arg15[%c0_86, %c24_87] : memref<256x72xf32, #tpu.memory_space<vmem>>, vector<256x8xf32>
    tpu.vector_store %arg15[%c0_86, %c24_87], %62 {strides = array<i32>} : memref<256x72xf32, #tpu.memory_space<vmem>>, vector<256x8xf32>,
    %c2_88 = arith.constant 2 : index
    %c2_89 = arith.constant 2 : index
    %c0_90 = arith.constant 0 : index
    %64 = vector.load %arg12[%c2_88, %c2_89, %c0_90] : memref<20x20x8xf32, #tpu.memory_space<vmem>>, vector<16x16x8xf32>
    %65 = vector.shape_cast %64 : vector<16x16x8xf32> to vector<256x8xf32>
    %c0_91 = arith.constant 0 : index
    %c32_92 = arith.constant 32 : index
    %66 = vector.load %arg15[%c0_91, %c32_92] : memref<256x72xf32, #tpu.memory_space<vmem>>, vector<256x8xf32>
    tpu.vector_store %arg15[%c0_91, %c32_92], %65 {strides = array<i32>} : memref<256x72xf32, #tpu.memory_space<vmem>>, vector<256x8xf32>,
    %c2_93 = arith.constant 2 : index
    %c4_94 = arith.constant 4 : index
    %c0_95 = arith.constant 0 : index
    %67 = vector.load %arg12[%c2_93, %c4_94, %c0_95] : memref<20x20x8xf32, #tpu.memory_space<vmem>>, vector<16x16x8xf32>
    %68 = vector.shape_cast %67 : vector<16x16x8xf32> to vector<256x8xf32>
    %c0_96 = arith.constant 0 : index
    %c40 = arith.constant 40 : index
    %69 = vector.load %arg15[%c0_96, %c40] : memref<256x72xf32, #tpu.memory_space<vmem>>, vector<256x8xf32>
    tpu.vector_store %arg15[%c0_96, %c40], %68 {strides = array<i32>} : memref<256x72xf32, #tpu.memory_space<vmem>>, vector<256x8xf32>,
    %c4_97 = arith.constant 4 : index
    %c0_98 = arith.constant 0 : index
    %c0_99 = arith.constant 0 : index
    %70 = vector.load %arg12[%c4_97, %c0_98, %c0_99] : memref<20x20x8xf32, #tpu.memory_space<vmem>>, vector<16x16x8xf32>
    %71 = vector.shape_cast %70 : vector<16x16x8xf32> to vector<256x8xf32>
    %c0_100 = arith.constant 0 : index
    %c48 = arith.constant 48 : index
    %72 = vector.load %arg15[%c0_100, %c48] : memref<256x72xf32, #tpu.memory_space<vmem>>, vector<256x8xf32>
    tpu.vector_store %arg15[%c0_100, %c48], %71 {strides = array<i32>} : memref<256x72xf32, #tpu.memory_space<vmem>>, vector<256x8xf32>,
    %c4_101 = arith.constant 4 : index
    %c2_102 = arith.constant 2 : index
    %c0_103 = arith.constant 0 : index
    %73 = vector.load %arg12[%c4_101, %c2_102, %c0_103] : memref<20x20x8xf32, #tpu.memory_space<vmem>>, vector<16x16x8xf32>
    %74 = vector.shape_cast %73 : vector<16x16x8xf32> to vector<256x8xf32>
    %c0_104 = arith.constant 0 : index
    %c56 = arith.constant 56 : index
    %75 = vector.load %arg15[%c0_104, %c56] : memref<256x72xf32, #tpu.memory_space<vmem>>, vector<256x8xf32>
    tpu.vector_store %arg15[%c0_104, %c56], %74 {strides = array<i32>} : memref<256x72xf32, #tpu.memory_space<vmem>>, vector<256x8xf32>,
    %c4_105 = arith.constant 4 : index
    %c4_106 = arith.constant 4 : index
    %c0_107 = arith.constant 0 : index
    %76 = vector.load %arg12[%c4_105, %c4_106, %c0_107] : memref<20x20x8xf32, #tpu.memory_space<vmem>>, vector<16x16x8xf32>
    %77 = vector.shape_cast %76 : vector<16x16x8xf32> to vector<256x8xf32>
    %c0_108 = arith.constant 0 : index
    %c64 = arith.constant 64 : index
    %78 = vector.load %arg15[%c0_108, %c64] : memref<256x72xf32, #tpu.memory_space<vmem>>, vector<256x8xf32>
    tpu.vector_store %arg15[%c0_108, %c64], %77 {strides = array<i32>} : memref<256x72xf32, #tpu.memory_space<vmem>>, vector<256x8xf32>,
    %c0_109 = arith.constant 0 : index
    %c0_110 = arith.constant 0 : index
    %79 = vector.load %arg15[%c0_109, %c0_110] : memref<256x72xf32, #tpu.memory_space<vmem>>, vector<256x72xf32>
    %80 = arith.truncf %79 : vector<256x72xf32> to vector<256x72xbf16>
    %c0_111 = arith.constant 0 : index
    %c0_112 = arith.constant 0 : index
    %81 = vector.load %arg5[%c0_111, %c0_112] : memref<72x8xbf16, #tpu.memory_space<vmem>>, vector<72x8xbf16>
    %cst_113 = arith.constant dense<0.000000e+00> : vector<256x8xf32>
    %82 = tpu.matmul %80, %81, %cst_113 {dimension_numbers = #tpu.dot_dimension_numbers<[1], [0], [0], [1], [0, 0, 1, 1], [], []>} : vector<256x72xbf16>, vector<72x8xbf16>, vector<256x8xf32> -> vector<256x8xf32>
    %cst_114 = arith.constant 0.000000e+00 : f32
    %83 = vector.broadcast %cst_114 : f32 to vector<256x8xf32>
    %84 = arith.maximumf %82, %83 : vector<256x8xf32>
    %c0_115 = arith.constant 0 : index
    %c0_116 = arith.constant 0 : index
    %85 = vector.load %arg6[%c0_115, %c0_116] : memref<72x8xbf16, #tpu.memory_space<vmem>>, vector<72x8xbf16>
    %cst_117 = arith.constant dense<0.000000e+00> : vector<256x8xf32>
    %86 = tpu.matmul %80, %85, %cst_117 {dimension_numbers = #tpu.dot_dimension_numbers<[1], [0], [0], [1], [0, 0, 1, 1], [], []>} : vector<256x72xbf16>, vector<72x8xbf16>, vector<256x8xf32> -> vector<256x8xf32>
    %cst_118 = arith.constant 0.000000e+00 : f32
    %87 = vector.broadcast %cst_118 : f32 to vector<256x8xf32>
    %88 = arith.maximumf %86, %87 : vector<256x8xf32>
    %89 = vector.shape_cast %88 : vector<256x8xf32> to vector<16x16x8xf32>
    %c2_119 = arith.constant 2 : index
    %c2_120 = arith.constant 2 : index
    %c0_121 = arith.constant 0 : index
    %90 = vector.load %arg13[%c2_119, %c2_120, %c0_121] : memref<20x20x8xf32, #tpu.memory_space<vmem>>, vector<16x16x8xf32>
    tpu.vector_store %arg13[%c2_119, %c2_120, %c0_121], %89 {strides = array<i32>} : memref<20x20x8xf32, #tpu.memory_space<vmem>>, vector<16x16x8xf32>,
    %c0_122 = arith.constant 0 : index
    %c0_123 = arith.constant 0 : index
    %c0_124 = arith.constant 0 : index
    %91 = vector.load %arg13[%c0_122, %c0_123, %c0_124] : memref<20x20x8xf32, #tpu.memory_space<vmem>>, vector<16x16x8xf32>
    %92 = vector.shape_cast %91 : vector<16x16x8xf32> to vector<256x8xf32>
    %c0_125 = arith.constant 0 : index
    %c0_126 = arith.constant 0 : index
    %93 = vector.load %arg15[%c0_125, %c0_126] : memref<256x72xf32, #tpu.memory_space<vmem>>, vector<256x8xf32>
    tpu.vector_store %arg15[%c0_125, %c0_126], %92 {strides = array<i32>} : memref<256x72xf32, #tpu.memory_space<vmem>>, vector<256x8xf32>,
    %c0_127 = arith.constant 0 : index
    %c2_128 = arith.constant 2 : index
    %c0_129 = arith.constant 0 : index
    %94 = vector.load %arg13[%c0_127, %c2_128, %c0_129] : memref<20x20x8xf32, #tpu.memory_space<vmem>>, vector<16x16x8xf32>
    %95 = vector.shape_cast %94 : vector<16x16x8xf32> to vector<256x8xf32>
    %c0_130 = arith.constant 0 : index
    %c8_131 = arith.constant 8 : index
    %96 = vector.load %arg15[%c0_130, %c8_131] : memref<256x72xf32, #tpu.memory_space<vmem>>, vector<256x8xf32>
    tpu.vector_store %arg15[%c0_130, %c8_131], %95 {strides = array<i32>} : memref<256x72xf32, #tpu.memory_space<vmem>>, vector<256x8xf32>,
    %c0_132 = arith.constant 0 : index
    %c4_133 = arith.constant 4 : index
    %c0_134 = arith.constant 0 : index
    %97 = vector.load %arg13[%c0_132, %c4_133, %c0_134] : memref<20x20x8xf32, #tpu.memory_space<vmem>>, vector<16x16x8xf32>
    %98 = vector.shape_cast %97 : vector<16x16x8xf32> to vector<256x8xf32>
    %c0_135 = arith.constant 0 : index
    %c16_136 = arith.constant 16 : index
    %99 = vector.load %arg15[%c0_135, %c16_136] : memref<256x72xf32, #tpu.memory_space<vmem>>, vector<256x8xf32>
    tpu.vector_store %arg15[%c0_135, %c16_136], %98 {strides = array<i32>} : memref<256x72xf32, #tpu.memory_space<vmem>>, vector<256x8xf32>,
    %c2_137 = arith.constant 2 : index
    %c0_138 = arith.constant 0 : index
    %c0_139 = arith.constant 0 : index
    %100 = vector.load %arg13[%c2_137, %c0_138, %c0_139] : memref<20x20x8xf32, #tpu.memory_space<vmem>>, vector<16x16x8xf32>
    %101 = vector.shape_cast %100 : vector<16x16x8xf32> to vector<256x8xf32>
    %c0_140 = arith.constant 0 : index
    %c24_141 = arith.constant 24 : index
    %102 = vector.load %arg15[%c0_140, %c24_141] : memref<256x72xf32, #tpu.memory_space<vmem>>, vector<256x8xf32>
    tpu.vector_store %arg15[%c0_140, %c24_141], %101 {strides = array<i32>} : memref<256x72xf32, #tpu.memory_space<vmem>>, vector<256x8xf32>,
    %c2_142 = arith.constant 2 : index
    %c2_143 = arith.constant 2 : index
    %c0_144 = arith.constant 0 : index
    %103 = vector.load %arg13[%c2_142, %c2_143, %c0_144] : memref<20x20x8xf32, #tpu.memory_space<vmem>>, vector<16x16x8xf32>
    %104 = vector.shape_cast %103 : vector<16x16x8xf32> to vector<256x8xf32>
    %c0_145 = arith.constant 0 : index
    %c32_146 = arith.constant 32 : index
    %105 = vector.load %arg15[%c0_145, %c32_146] : memref<256x72xf32, #tpu.memory_space<vmem>>, vector<256x8xf32>
    tpu.vector_store %arg15[%c0_145, %c32_146], %104 {strides = array<i32>} : memref<256x72xf32, #tpu.memory_space<vmem>>, vector<256x8xf32>,
    %c2_147 = arith.constant 2 : index
    %c4_148 = arith.constant 4 : index
    %c0_149 = arith.constant 0 : index
    %106 = vector.load %arg13[%c2_147, %c4_148, %c0_149] : memref<20x20x8xf32, #tpu.memory_space<vmem>>, vector<16x16x8xf32>
    %107 = vector.shape_cast %106 : vector<16x16x8xf32> to vector<256x8xf32>
    %c0_150 = arith.constant 0 : index
    %c40_151 = arith.constant 40 : index
    %108 = vector.load %arg15[%c0_150, %c40_151] : memref<256x72xf32, #tpu.memory_space<vmem>>, vector<256x8xf32>
    tpu.vector_store %arg15[%c0_150, %c40_151], %107 {strides = array<i32>} : memref<256x72xf32, #tpu.memory_space<vmem>>, vector<256x8xf32>,
    %c4_152 = arith.constant 4 : index
    %c0_153 = arith.constant 0 : index
    %c0_154 = arith.constant 0 : index
    %109 = vector.load %arg13[%c4_152, %c0_153, %c0_154] : memref<20x20x8xf32, #tpu.memory_space<vmem>>, vector<16x16x8xf32>
    %110 = vector.shape_cast %109 : vector<16x16x8xf32> to vector<256x8xf32>
    %c0_155 = arith.constant 0 : index
    %c48_156 = arith.constant 48 : index
    %111 = vector.load %arg15[%c0_155, %c48_156] : memref<256x72xf32, #tpu.memory_space<vmem>>, vector<256x8xf32>
    tpu.vector_store %arg15[%c0_155, %c48_156], %110 {strides = array<i32>} : memref<256x72xf32, #tpu.memory_space<vmem>>, vector<256x8xf32>,
    %c4_157 = arith.constant 4 : index
    %c2_158 = arith.constant 2 : index
    %c0_159 = arith.constant 0 : index
    %112 = vector.load %arg13[%c4_157, %c2_158, %c0_159] : memref<20x20x8xf32, #tpu.memory_space<vmem>>, vector<16x16x8xf32>
    %113 = vector.shape_cast %112 : vector<16x16x8xf32> to vector<256x8xf32>
    %c0_160 = arith.constant 0 : index
    %c56_161 = arith.constant 56 : index
    %114 = vector.load %arg15[%c0_160, %c56_161] : memref<256x72xf32, #tpu.memory_space<vmem>>, vector<256x8xf32>
    tpu.vector_store %arg15[%c0_160, %c56_161], %113 {strides = array<i32>} : memref<256x72xf32, #tpu.memory_space<vmem>>, vector<256x8xf32>,
    %c4_162 = arith.constant 4 : index
    %c4_163 = arith.constant 4 : index
    %c0_164 = arith.constant 0 : index
    %115 = vector.load %arg13[%c4_162, %c4_163, %c0_164] : memref<20x20x8xf32, #tpu.memory_space<vmem>>, vector<16x16x8xf32>
    %116 = vector.shape_cast %115 : vector<16x16x8xf32> to vector<256x8xf32>
    %c0_165 = arith.constant 0 : index
    %c64_166 = arith.constant 64 : index
    %117 = vector.load %arg15[%c0_165, %c64_166] : memref<256x72xf32, #tpu.memory_space<vmem>>, vector<256x8xf32>
    tpu.vector_store %arg15[%c0_165, %c64_166], %116 {strides = array<i32>} : memref<256x72xf32, #tpu.memory_space<vmem>>, vector<256x8xf32>,
    %c0_167 = arith.constant 0 : index
    %c0_168 = arith.constant 0 : index
    %118 = vector.load %arg15[%c0_167, %c0_168] : memref<256x72xf32, #tpu.memory_space<vmem>>, vector<256x72xf32>
    %119 = arith.truncf %118 : vector<256x72xf32> to vector<256x72xbf16>
    %c0_169 = arith.constant 0 : index
    %c0_170 = arith.constant 0 : index
    %120 = vector.load %arg7[%c0_169, %c0_170] : memref<72x8xbf16, #tpu.memory_space<vmem>>, vector<72x8xbf16>
    %cst_171 = arith.constant dense<0.000000e+00> : vector<256x8xf32>
    %121 = tpu.matmul %119, %120, %cst_171 {dimension_numbers = #tpu.dot_dimension_numbers<[1], [0], [0], [1], [0, 0, 1, 1], [], []>} : vector<256x72xbf16>, vector<72x8xbf16>, vector<256x8xf32> -> vector<256x8xf32>
    %cst_172 = arith.constant 0.000000e+00 : f32
    %122 = vector.broadcast %cst_172 : f32 to vector<256x8xf32>
    %123 = arith.maximumf %121, %122 : vector<256x8xf32>
    %124 = arith.truncf %51 : vector<256x8xf32> to vector<256x8xbf16>
    %c0_173 = arith.constant 0 : index
    %c0_174 = arith.constant 0 : index
    %c0_175 = arith.constant 0 : index
    %125 = vector.load %arg8[%c0_173, %c0_174, %c0_175] : memref<3x8x8xbf16, #tpu.memory_space<vmem>>, vector<1x8x8xbf16>
    %126 = vector.shape_cast %125 : vector<1x8x8xbf16> to vector<8x8xbf16>
    %cst_176 = arith.constant dense<0.000000e+00> : vector<256x8xf32>
    %127 = tpu.matmul %124, %126, %cst_176 {dimension_numbers = #tpu.dot_dimension_numbers<[1], [0], [0], [1], [0, 0, 1, 1], [], []>} : vector<256x8xbf16>, vector<8x8xbf16>, vector<256x8xf32> -> vector<256x8xf32>
    %128 = arith.truncf %84 : vector<256x8xf32> to vector<256x8xbf16>
    %c1 = arith.constant 1 : index
    %c0_177 = arith.constant 0 : index
    %c0_178 = arith.constant 0 : index
    %129 = vector.load %arg8[%c1, %c0_177, %c0_178] : memref<3x8x8xbf16, #tpu.memory_space<vmem>>, vector<1x8x8xbf16>
    %130 = vector.shape_cast %129 : vector<1x8x8xbf16> to vector<8x8xbf16>
    %cst_179 = arith.constant dense<0.000000e+00> : vector<256x8xf32>
    %131 = tpu.matmul %128, %130, %cst_179 {dimension_numbers = #tpu.dot_dimension_numbers<[1], [0], [0], [1], [0, 0, 1, 1], [], []>} : vector<256x8xbf16>, vector<8x8xbf16>, vector<256x8xf32> -> vector<256x8xf32>
    %132 = arith.addf %127, %131 : vector<256x8xf32>
    %133 = arith.truncf %123 : vector<256x8xf32> to vector<256x8xbf16>
    %c2_180 = arith.constant 2 : index
    %c0_181 = arith.constant 0 : index
    %c0_182 = arith.constant 0 : index
    %134 = vector.load %arg8[%c2_180, %c0_181, %c0_182] : memref<3x8x8xbf16, #tpu.memory_space<vmem>>, vector<1x8x8xbf16>
    %135 = vector.shape_cast %134 : vector<1x8x8xbf16> to vector<8x8xbf16>
    %cst_183 = arith.constant dense<0.000000e+00> : vector<256x8xf32>
    %136 = tpu.matmul %133, %135, %cst_183 {dimension_numbers = #tpu.dot_dimension_numbers<[1], [0], [0], [1], [0, 0, 1, 1], [], []>} : vector<256x8xbf16>, vector<8x8xbf16>, vector<256x8xf32> -> vector<256x8xf32>
    %137 = arith.addf %132, %136 : vector<256x8xf32>
    %c0_184 = arith.constant 0 : index
    %c0_185 = arith.constant 0 : index
    %138 = vector.load %arg9[%c0_184, %c0_185] : memref<1x8xf32, #tpu.memory_space<vmem>>, vector<1x8xf32>
    %139 = vector.broadcast %138 : vector<1x8xf32> to vector<256x8xf32>
    %140 = arith.addf %137, %139 : vector<256x8xf32>
    %cst_186 = arith.constant 0.000000e+00 : f32
    %141 = vector.broadcast %cst_186 : f32 to vector<256x8xf32>
    %142 = arith.maximumf %140, %141 : vector<256x8xf32>
    %143 = arith.addf %142, %44 : vector<256x8xf32>
    %c0_187 = arith.constant 0 : index
    %c0_188 = arith.constant 0 : index
    %c0_189 = arith.constant 0 : index
    %144 = vector.load %arg10[%c0_187, %c0_188, %c0_189] : memref<1x256x8xf32, #tpu.memory_space<vmem>>, vector<1x256x8xf32>
    %145 = vector.shape_cast %144 : vector<1x256x8xf32> to vector<256x8xf32>
    %146 = vector.shape_cast %143 : vector<256x8xf32> to vector<1x256x8xf32>
    tpu.vector_store %arg10[%c0_187, %c0_188, %c0_189], %146 {strides = array<i32>} : memref<1x256x8xf32, #tpu.memory_space<vmem>>, vector<1x256x8xf32>,
    return
  }
  func.func @transform_0(%arg0: i32) -> (i32, i32, i32, i32) {
    %c0_i32 = arith.constant 0 : i32
    %c0_i32_0 = arith.constant 0 : i32
    %c0_i32_1 = arith.constant 0 : i32
    %c0_i32_2 = arith.constant 0 : i32
    return %arg0, %c0_i32, %c0_i32_0, %c0_i32_1 : i32, i32, i32, i32
  }
  func.func @transform_1(%arg0: i32) -> (i32, i32) {
    %c0_i32 = arith.constant 0 : i32
    %c0_i32_0 = arith.constant 0 : i32
    %c0_i32_1 = arith.constant 0 : i32
    return %c0_i32, %c0_i32_0 : i32, i32
  }
  func.func @transform_2(%arg0: i32) -> (i32, i32) {
    %c0_i32 = arith.constant 0 : i32
    %c0_i32_0 = arith.constant 0 : i32
    %c0_i32_1 = arith.constant 0 : i32
    return %c0_i32, %c0_i32_0 : i32, i32
  }
  func.func @transform_3(%arg0: i32) -> (i32, i32) {
    %c0_i32 = arith.constant 0 : i32
    %c0_i32_0 = arith.constant 0 : i32
    %c0_i32_1 = arith.constant 0 : i32
    return %c0_i32, %c0_i32_0 : i32, i32
  }
  func.func @transform_4(%arg0: i32) -> (i32, i32) {
    %c0_i32 = arith.constant 0 : i32
    %c0_i32_0 = arith.constant 0 : i32
    %c0_i32_1 = arith.constant 0 : i32
    return %c0_i32, %c0_i32_0 : i32, i32
  }
  func.func @transform_5(%arg0: i32) -> (i32, i32) {
    %c0_i32 = arith.constant 0 : i32
    %c0_i32_0 = arith.constant 0 : i32
    %c0_i32_1 = arith.constant 0 : i32
    return %c0_i32, %c0_i32_0 : i32, i32
  }
  func.func @transform_6(%arg0: i32) -> (i32, i32) {
    %c0_i32 = arith.constant 0 : i32
    %c0_i32_0 = arith.constant 0 : i32
    %c0_i32_1 = arith.constant 0 : i32
    return %c0_i32, %c0_i32_0 : i32, i32
  }
  func.func @transform_7(%arg0: i32) -> (i32, i32, i32) {
    %c0_i32 = arith.constant 0 : i32
    %c0_i32_0 = arith.constant 0 : i32
    %c0_i32_1 = arith.constant 0 : i32
    %c0_i32_2 = arith.constant 0 : i32
    return %c0_i32, %c0_i32_0, %c0_i32_1 : i32, i32, i32
  }
  func.func @transform_8(%arg0: i32) -> (i32, i32) {
    %c0_i32 = arith.constant 0 : i32
    %c0_i32_0 = arith.constant 0 : i32
    %c0_i32_1 = arith.constant 0 : i32
    return %c0_i32, %c0_i32_0 : i32, i32
  }
  func.func @transform_9(%arg0: i32) -> (i32, i32, i32) {
    %c0_i32 = arith.constant 0 : i32
    %c0_i32_0 = arith.constant 0 : i32
    %c0_i32_1 = arith.constant 0 : i32
    return %arg0, %c0_i32, %c0_i32_0 : i32, i32, i32
  }
}

</mosaic_0001>

<bundles_post_ra>
// kernel: tpu_custom_call.1
= control target key start
LH: loop header
LB: loop body
LE: loop exit
PB: predicated region body
PF: predicated region fallthrough
CT: control target
= control target key end

     0   :  { %s7580_s30 = smov 0   ;;  %s11494_s0 = inlined_call_operand.vmem [shape: f32[2,16,16,4], index: 0, kind: input, shape index: {}]   ;;  %s11495_s1 = inlined_call_operand.vmem [shape: bf16[36,8], index: 1, kind: input, shape index: {}]   ;;  %s11496_s2 = inlined_call_operand.vmem [shape: f32[1,8], index: 2, kind: input, shape index: {}]   ;;  %s11497_s3 = inlined_call_operand.vmem [shape: bf16[8,8], index: 3, kind: input, shape index: {}]   ;;  %s11498_s4 = inlined_call_operand.vmem [shape: bf16[72,8], index: 4, kind: input, shape index: {}]   ;;  %s11499_s5 = inlined_call_operand.vmem [shape: bf16[72,8], index: 5, kind: input, shape index: {}]   ;;  %s11500_s6 = inlined_call_operand.vmem [shape: bf16[72,8], index: 6, kind: input, shape index: {}]   ;;  %s11501_s7 = inlined_call_operand.vmem [shape: bf16[3,8,8], index: 7, kind: input, shape index: {}]   ;;  %s11502_s8 = inlined_call_operand.vmem [shape: f32[1,8], index: 8, kind: input, shape index: {}]   ;;  %s11503_s9 = inlined_call_operand.vmem [shape: f32[2,256,8], index: 9, kind: output, shape index: {}]  }
   0x1 LB: > { %s7269_s10 = sadd.s32 4294967295, %s7515_s30   ;;  %p7273_p0 = scmp.ge.s32.totalorder %s7515_s30, 1  ;;  %s7515_s30 = sphi %s7580_s30, %s19_s30  }
   0x2   : > { %p287_p1 = scmp.lt.s32.totalorder %s7515_s30, 3 }
   0x4   : > { %p288_p2 = pnand %p7273_p0, %p287_p1 }
   0x6   : > { %291 = sbr.rel (%p288_p2) target bundleno = 3167 (0xc5f), region = 56 }
   0xb   : > { %vm334_vm0 = vcmask 31744   ;;  %v11504_v0 = vmov 0.0   ;;  %s7518_s11 = smov 4   ;;  %vm337_vm1 = vcmask 27648   ;;  %p323_p3 = scmp.lt.s32.totalorder %s7269_s10, 1  ;;  %vm807_vm2 = vcmask 64544  }
   0xc   : > { %335 = vst.msk [vmem:[#allocation2] sm:$0xff] %vm334_vm0, %v11504_v0  ;;  %s7519_s16 = smov 8   ;;  %s7520_s17 = smov 12   ;;  %vm1000_vm3 = vcmask 97344   ;;  %vm1193_vm4 = vcmask 130144   ;;  %vm1386_vm5 = vcmask 162944  }
   0xd   : > { %336 = vst.msk [vmem:[#allocation2 + $0x8] sm:$0xff] %vm334_vm0, %v11504_v0  ;;  %s11693_s10 = smov (!%p323_p3, %s7269_s10), 1  ;;  %s7521_s18 = smov 16   ;;  %vm1579_vm6 = vcmask 195744   ;;  %vm1773_vm7 = vcmask 228544   ;;  %vm1966_vm8 = vcmask 261344  }
   0xe   : > { %339 = vst.msk [vmem:[#allocation2 + $0x18] sm:$0xff] %vm334_vm0, %v11504_v0  ;;  %s7466_s12 = sshll.u32 %s11693_s10, 8  ;;  %s7522_s19 = smov 20   ;;  %vm2313_vm9 = vcmask 1041408   ;;  %vm2159_vm10 = vcmask 294144   ;;  %vm2264_vm11 = vcmask 293888  }
   0xf   : > { %340 = vst.msk [vmem:[#allocation2 + $0x20] sm:$0xff] %vm334_vm0, %v11504_v0  ;;  %s7714_s15 = scalar_lea.vmem %s11494_s0, %s7466_s12  ;;  %s7523_s20 = smov 24   ;;  %vm396_vm12 = vcmask 64512   ;;  %vm399_vm13 = vcmask 60416   ;;  %vm2536_vm14 = vcmask 1043456   ;;  %vm2885_vm15 = vcmask 130112  }
  0x10   : > { %342 = vst.msk [vmem:[#allocation2 + $0x30] sm:$0xff] %vm334_vm0, %v11504_v0  ;;  %v520_v5 = vld [vmem:[%s7714_s15 + $0x10] sm:$0xff]  ;;  %v523_v6 = vld [vmem:[%s7714_s15 + $0x28] sm:$0xff]  ;;  %v521_v7 = vld [vmem:[%s7714_s15 + $0x18] sm:$0xff]  ;;  %s7524_s21 = smov 28   ;;  %s7525_s22 = smov 32  }
  0x11   : > { %343 = vst.msk [vmem:[#allocation2 + $0x38] sm:$0xff] %vm334_vm0, %v11504_v0  ;;  %v526_v8 = vld [vmem:[%s7714_s15 + $0x40] sm:$0xff]  ;;  %v524_v10 = vld [vmem:[%s7714_s15 + $0x30] sm:$0xff]  ;;  %v529_v11 = vld [vmem:[%s7714_s15 + $0x58] sm:$0xff]  ;;  %s7528_s23 = smov 56   ;;  %s7529_s24 = smov 64  }
  0x12   : > { %345 = vst.msk [vmem:[#allocation2 + $0x48] sm:$0xff] %vm334_vm0, %v11504_v0  ;;  %v518_v9 = vld [vmem:[%s7714_s15] sm:$0xff]  ;;  %v519_v12 = vld [vmem:[%s7714_s15 + $0x8] sm:$0xff]  ;;  %v532_v14 = vld [vmem:[%s7714_s15 + $0x70] sm:$0xff] }
  0x13   : > { %346 = vst.msk [vmem:[#allocation2 + $0x50] sm:$0xff] %vm334_vm0, %v11504_v0  ;;  %v527_v13 = vld [vmem:[%s7714_s15 + $0x48] sm:$0xff]  ;;  %v522_v16 = vld [vmem:[%s7714_s15 + $0x20] sm:$0xff]  ;;  %v525_v20 = vld [vmem:[%s7714_s15 + $0x38] sm:$0xff] }
  0x14   : > { %v647_v1 = vld [vmem:[#allocation2 + $0x2] sm:$0xff]  ;;  %348 = vst.msk [vmem:[#allocation2 + $0x60] sm:$0xff] %vm334_vm0, %v11504_v0  ;;  %v533_v24 = vld [vmem:[%s7714_s15 + $0x78] sm:$0xff]  ;;  %v528_v26 = vld [vmem:[%s7714_s15 + $0x50] sm:$0xff] }
  0x15   : > { %711 = vrot.lane.b32.xlu0 %v647_v1, %s7518_s11  ;;  %349 = vst.msk [vmem:[#allocation2 + $0x68] sm:$0xff] %vm334_vm0, %v11504_v0  ;;  %v530_v17 = vld [vmem:[%s7714_s15 + $0x60] sm:$0xff]  ;;  %v535_v19 = vld [vmem:[%s7714_s15 + $0x88] sm:$0xff]  ;;  %v536_v30 = vld [vmem:[%s7714_s15 + $0x90] sm:$0xff] }
  0x16   : > { %351 = vst.msk [vmem:[#allocation2 + $0x78] sm:$0xff] %vm334_vm0, %v11504_v0  ;;  %v649_v2 = vld [vmem:[#allocation2 + $0x1a] sm:$0xff]  ;;  %v531_v32 = vld [vmem:[%s7714_s15 + $0x68] sm:$0xff]  ;;  %v544_v37 = vld [vmem:[%s7714_s15 + $0xd0] sm:$0xff] }
  0x17   : > { %352 = vst.msk [vmem:[#allocation2 + $0x80] sm:$0xff] %vm334_vm0, %v11504_v0  ;;  %715 = vrot.lane.b32.xlu1 %v649_v2, %s7518_s11  ;;  %v538_v25 = vld [vmem:[%s7714_s15 + $0xa0] sm:$0xff]  ;;  %v541_v31 = vld [vmem:[%s7714_s15 + $0xb8] sm:$0xff]  ;;  %v539_v36 = vld [vmem:[%s7714_s15 + $0xa8] sm:$0xff] }
  0x18   : > { %354 = vst.msk [vmem:[#allocation2 + $0x90] sm:$0xff] %vm334_vm0, %v11504_v0  ;;  %v534_v38 = vld [vmem:[%s7714_s15 + $0x80] sm:$0xff]  ;;  %v537_v43 = vld [vmem:[%s7714_s15 + $0x98] sm:$0xff]  ;;  %v540_v48 = vld [vmem:[%s7714_s15 + $0xb0] sm:$0xff] }
  0x19   : > { %355 = vst.msk [vmem:[#allocation2 + $0x98] sm:$0xff] %vm334_vm0, %v11504_v0  ;;  %v542_v42 = vld [vmem:[%s7714_s15 + $0xc0] sm:$0xff]  ;;  %v545_v47 = vld [vmem:[%s7714_s15 + $0xd8] sm:$0xff]  ;;  %v543_v52 = vld [vmem:[%s7714_s15 + $0xc8] sm:$0xff] }
  0x1a   : > { %357 = vst.msk [vmem:[#allocation2 + $0xa8] sm:$0xff] %vm334_vm0, %v11504_v0  ;;  %v583_v60 = vld [vmem:[#allocation2] sm:$0xff]  ;;  %v584_v1 = vld [vmem:[#allocation2 + $0x8] sm:$0xff] }
  0x1b   : > { %358 = vst.msk [vmem:[#allocation2 + $0xb0] sm:$0xff] %vm334_vm0, %v11504_v0  ;;  %v842_v63 = vld [vmem:[#allocation2 + $0x1c] sm:$0xff] }
  0x1c   : > { %360 = vst.msk [vmem:[#allocation2 + $0xc0] sm:$0xff] %vm334_vm0, %v11504_v0 }
  0x1d   : > { %361 = vst.msk [vmem:[#allocation2 + $0xc8] sm:$0xff] %vm334_vm0, %v11504_v0 }
  0x1e   : > { %363 = vst.msk [vmem:[#allocation2 + $0xd8] sm:$0xff] %vm334_vm0, %v11504_v0 }
  0x1f   : > { %364 = vst.msk [vmem:[#allocation2 + $0xe0] sm:$0xff] %vm334_vm0, %v11504_v0 }
  0x20   : > { %366 = vst.msk [vmem:[#allocation2 + $0xf0] sm:$0xff] %vm334_vm0, %v11504_v0 }
  0x21   : > { %367 = vst.msk [vmem:[#allocation2 + $0xf8] sm:$0xff] %vm334_vm0, %v11504_v0 }
  0x22   : > { %369 = vst.msk [vmem:[#allocation2 + $0x108] sm:$0xff] %vm334_vm0, %v11504_v0 }
  0x23   : > { %370 = vst.msk [vmem:[#allocation2 + $0x110] sm:$0xff] %vm334_vm0, %v11504_v0 }
  0x24   : > { %372 = vst.msk [vmem:[#allocation2 + $0x120] sm:$0xff] %vm334_vm0, %v11504_v0 }
  0x25   : > { %373 = vst.msk [vmem:[#allocation2 + $0x128] sm:$0xff] %vm334_vm0, %v11504_v0 }
  0x26   : > { %375 = vst.msk [vmem:[#allocation2 + $0x138] sm:$0xff] %vm334_vm0, %v11504_v0 }
  0x27   : > { %376 = vst.msk [vmem:[#allocation2 + $0x140] sm:$0xff] %vm334_vm0, %v11504_v0 }
  0x28   : > { %378 = vst.msk [vmem:[#allocation2 + $0x150] sm:$0xff] %vm334_vm0, %v11504_v0 }
  0x29   : > { %379 = vst.msk [vmem:[#allocation2 + $0x158] sm:$0xff] %vm334_vm0, %v11504_v0 }
  0x2a   : > { %381 = vst.msk [vmem:[#allocation2 + $0x168] sm:$0xff] %vm334_vm0, %v11504_v0 }
  0x2b   : > { %382 = vst.msk [vmem:[#allocation2 + $0x170] sm:$0xff] %vm334_vm0, %v11504_v0 }
  0x2c   : > { %384 = vst.msk [vmem:[#allocation2 + $0x180] sm:$0xff] %vm334_vm0, %v11504_v0 }
  0x2d   : > { %385 = vst.msk [vmem:[#allocation2 + $0x188] sm:$0xff] %vm334_vm0, %v11504_v0 }
  0x2e   : > { %387 = vst.msk [vmem:[#allocation2 + $0x198] sm:$0xff] %vm334_vm0, %v11504_v0 }
  0x2f   : > { %388 = vst.msk [vmem:[#allocation2 + $0x1a0] sm:$0xff] %vm334_vm0, %v11504_v0 }
  0x30   : > { %390 = vst.msk [vmem:[#allocation2 + $0x1b0] sm:$0xff] %vm334_vm0, %v11504_v0 }
  0x31   : > { %391 = vst.msk [vmem:[#allocation2 + $0x1b8] sm:$0xff] %vm334_vm0, %v11504_v0 }
  0x32   : > { %393 = vst.msk [vmem:[#allocation2 + $0x1c8] sm:$0xff] %vm334_vm0, %v11504_v0 }
  0x33   : > { %394 = vst.msk [vmem:[#allocation2 + $0x1d0] sm:$0xff] %vm334_vm0, %v11504_v0 }
  0x34   : > { %338 = vst.msk [vmem:[#allocation2 + $0x10] sm:$0xf] %vm337_vm1, %v11504_v0 }
  0x35   : > { %341 = vst.msk [vmem:[#allocation2 + $0x28] sm:$0xf] %vm337_vm1, %v11504_v0 }
  0x36   : > { %344 = vst.msk [vmem:[#allocation2 + $0x40] sm:$0xf] %vm337_vm1, %v11504_v0 }
  0x37   : > { %347 = vst.msk [vmem:[#allocation2 + $0x58] sm:$0xf] %vm337_vm1, %v11504_v0 }
  0x38   : > { %350 = vst.msk [vmem:[#allocation2 + $0x70] sm:$0xf] %vm337_vm1, %v11504_v0 }
  0x39   : > { %353 = vst.msk [vmem:[#allocation2 + $0x88] sm:$0xf] %vm337_vm1, %v11504_v0 }
  0x3a   : > { %356 = vst.msk [vmem:[#allocation2 + $0xa0] sm:$0xf] %vm337_vm1, %v11504_v0 }
  0x3b   : > { %v648_v3 = vld [vmem:[#allocation2 + $0xa] sm:$0xff]  ;;  %359 = vst.msk [vmem:[#allocation2 + $0xb8] sm:$0xf] %vm337_vm1, %v11504_v0 }
  0x3c   : > { %713 = vrot.lane.b32.xlu0 %v648_v3, %s7518_s11  ;;  %362 = vst.msk [vmem:[#allocation2 + $0xd0] sm:$0xf] %vm337_vm1, %v11504_v0  ;;  %v650_v4 = vld [vmem:[#allocation2 + $0x22] sm:$0xff]  ;;  %v841_v62 = vld [vmem:[#allocation2 + $0xc] sm:$0xff] }
  0x3d   : > { %365 = vst.msk [vmem:[#allocation2 + $0xe8] sm:$0xf] %vm337_vm1, %v11504_v0  ;;  %717 = vrot.lane.b32.xlu1 %v650_v4, %s7518_s11 }
  0x3e   : > { %368 = vst.msk [vmem:[#allocation2 + $0x100] sm:$0xf] %vm337_vm1, %v11504_v0 }
  0x3f   : > { %371 = vst.msk [vmem:[#allocation2 + $0x118] sm:$0xf] %vm337_vm1, %v11504_v0 }
  0x40   : > { %374 = vst.msk [vmem:[#allocation2 + $0x130] sm:$0xf] %vm337_vm1, %v11504_v0 }
  0x41   : > { %377 = vst.msk [vmem:[#allocation2 + $0x148] sm:$0xf] %vm337_vm1, %v11504_v0 }
  0x42   : > { %380 = vst.msk [vmem:[#allocation2 + $0x160] sm:$0xf] %vm337_vm1, %v11504_v0 }
  0x43   : > { %383 = vst.msk [vmem:[#allocation2 + $0x178] sm:$0xf] %vm337_vm1, %v11504_v0 }
  0x44   : > { %386 = vst.msk [vmem:[#allocation2 + $0x190] sm:$0xf] %vm337_vm1, %v11504_v0 }
  0x45   : > { %389 = vst.msk [vmem:[#allocation2 + $0x1a8] sm:$0xf] %vm337_vm1, %v11504_v0 }
  0x46   : > { %392 = vst.msk [vmem:[#allocation2 + $0x1c0] sm:$0xf] %vm337_vm1, %v11504_v0 }
  0x47   : > { %395 = vst.msk [vmem:[#allocation2 + $0x1d8] sm:$0xf] %vm337_vm1, %v11504_v0  ;;  %vm3271_vm1 = vcmask 261312  }
  0x48   : > { %553 = vst.msk [vmem:[#allocation2 + $0x4a] sm:$0xff] %vm334_vm0, %v520_v5 }
  0x49   : > { %556 = vst.msk [vmem:[#allocation2 + $0x6a] sm:$0xff] %vm334_vm0, %v523_v6 }
  0x4a   : > { %554 = vst.msk [vmem:[#allocation2 + $0x52] sm:$0xff] %vm334_vm0, %v521_v7  ;;  %v585_v7 = vld [vmem:[#allocation2 + $0x18] sm:$0xff] }
  0x4b   : > { %559 = vst.msk [vmem:[#allocation2 + $0x92] sm:$0xff] %vm334_vm0, %v526_v8  ;;  %v840_v8 = vld [vmem:[#allocation2 + $0x4] sm:$0xff] }
  0x4c   : > { %551 = vst.msk [vmem:[#allocation2 + $0x32] sm:$0xff] %vm334_vm0, %v518_v9 }
  0x4d   : > { %557 = vst.msk [vmem:[#allocation2 + $0x7a] sm:$0xff] %vm334_vm0, %v524_v10 }
  0x4e   : > { %562 = vst.msk [vmem:[#allocation2 + $0xb2] sm:$0xff] %vm334_vm0, %v529_v11 }
  0x4f   : > { %v7743_v15 = vld [vmem:[#allocation2 + $0x4a] sm:$0xff]  ;;  %552 = vst.msk [vmem:[#allocation2 + $0x3a] sm:$0xff] %vm334_vm0, %v519_v12 }
  0x50   : > { %723 = vrot.lane.b32.xlu0 %v7743_v15, %s7518_s11  ;;  %560 = vst.msk [vmem:[#allocation2 + $0x9a] sm:$0xff] %vm334_vm0, %v527_v13  ;;  %v7765_v22 = vld [vmem:[#allocation2 + $0x6a] sm:$0xff]  ;;  %v586_v13 = vld [vmem:[#allocation2 + $0x20] sm:$0xff] }
  0x51   : > { %v7751_v18 = vld [vmem:[#allocation2 + $0x52] sm:$0xff]  ;;  %565 = vst.msk [vmem:[#allocation2 + $0xda] sm:$0xff] %vm334_vm0, %v532_v14  ;;  %v7910_v9 = vld [vmem:[#allocation2 + $0x48] sm:$0xff] }
  0x52   : > { %725 = vrot.lane.b32.xlu1 %v7751_v18, %s7518_s11  ;;  %555 = vst.msk [vmem:[#allocation2 + $0x62] sm:$0xff] %vm334_vm0, %v522_v16  ;;  %v7784_v28 = vld [vmem:[#allocation2 + $0x92] sm:$0xff]  ;;  %v843_v16 = vld [vmem:[#allocation2 + $0x24] sm:$0xff] }
  0x53   : > { %v7759_v21 = vld [vmem:[#allocation2 + $0x32] sm:$0xff]  ;;  %563 = vst.msk [vmem:[#allocation2 + $0xc2] sm:$0xff] %vm334_vm0, %v530_v17 }
  0x54   : > { %719 = vrot.lane.b32.xlu2 %v7759_v21, %s7518_s11  ;;  %568 = vst.msk [vmem:[#allocation2 + $0xfa] sm:$0xff] %vm334_vm0, %v535_v19  ;;  %v7768_v23 = vld [vmem:[#allocation2 + $0x7a] sm:$0xff]  ;;  %v7893_v2 = vld [vmem:[#allocation2 + $0x30] sm:$0xff] }
  0x55   : > { %558 = vst.msk [vmem:[#allocation2 + $0x82] sm:$0xff] %vm334_vm0, %v525_v20  ;;  %v7802_v34 = vld [vmem:[#allocation2 + $0xb2] sm:$0xff] }
  0x56   : > { %566 = vst.msk [vmem:[#allocation2 + $0xe2] sm:$0xff] %vm334_vm0, %v533_v24  ;;  %v7776_v27 = vld [vmem:[#allocation2 + $0x3a] sm:$0xff] }
  0x57   : > { %571 = vst.msk [vmem:[#allocation2 + $0x122] sm:$0xff] %vm334_vm0, %v538_v25  ;;  %v7786_v29 = vld [vmem:[#allocation2 + $0x9a] sm:$0xff] }
  0x58   : > { %729 = vrot.lane.b32.xlu0 %v7765_v22, %s7518_s11  ;;  %561 = vst.msk [vmem:[#allocation2 + $0xaa] sm:$0xff] %vm334_vm0, %v528_v26  ;;  %v7820_v40 = vld [vmem:[#allocation2 + $0xda] sm:$0xff] }
  0x59   : > { %569 = vst.msk [vmem:[#allocation2 + $0x10a] sm:$0xff] %vm334_vm0, %v536_v30  ;;  %v7794_v33 = vld [vmem:[#allocation2 + $0x62] sm:$0xff]  ;;  %v7903_v4 = vld [vmem:[#allocation2 + $0x34] sm:$0xff] }
  0x5a   : > { %731 = vrot.lane.b32.xlu1 %v7768_v23, %s7518_s11  ;;  %574 = vst.msk [vmem:[#allocation2 + $0x142] sm:$0xff] %vm334_vm0, %v541_v31  ;;  %v7804_v35 = vld [vmem:[#allocation2 + $0xc2] sm:$0xff]  ;;  %v7912_v10 = vld [vmem:[#allocation2 + $0x38] sm:$0xff]  ;;  %v7948_v30 = vld [vmem:[#allocation2 + $0x50] sm:$0xff] }
  0x5b   : > { %564 = vst.msk [vmem:[#allocation2 + $0xca] sm:$0xff] %vm334_vm0, %v531_v32  ;;  %v7836_v45 = vld [vmem:[#allocation2 + $0xfa] sm:$0xff]  ;;  %v7924_v12 = vld [vmem:[#allocation2 + $0x64] sm:$0xff]  ;;  %v7950_v31 = vld [vmem:[#allocation2 + $0x90] sm:$0xff] }
  0x5c   : > { %721 = vrot.lane.b32.xlu2 %v7776_v27, %s7518_s11  ;;  %572 = vst.msk [vmem:[#allocation2 + $0x12a] sm:$0xff] %vm334_vm0, %v539_v36  ;;  %v7812_v39 = vld [vmem:[#allocation2 + $0x82] sm:$0xff]  ;;  %v7922_v11 = vld [vmem:[#allocation2 + $0x54] sm:$0xff]  ;;  %v7952_v32 = vld [vmem:[#allocation2 + $0x4c] sm:$0xff] }
  0x5d   : > { %577 = vst.msk [vmem:[#allocation2 + $0x16a] sm:$0xff] %vm334_vm0, %v544_v37  ;;  %v7822_v41 = vld [vmem:[#allocation2 + $0xe2] sm:$0xff] }
  0x5e   : > { %567 = vst.msk [vmem:[#allocation2 + $0xf2] sm:$0xff] %vm334_vm0, %v534_v38  ;;  %v7852_v50 = vld [vmem:[#allocation2 + $0x122] sm:$0xff] }
  0x5f   : > { %575 = vst.msk [vmem:[#allocation2 + $0x152] sm:$0xff] %vm334_vm0, %v542_v42  ;;  %v7829_v44 = vld [vmem:[#allocation2 + $0xaa] sm:$0xff]  ;;  %v7905_v5 = vld [vmem:[#allocation2 + $0x3c] sm:$0xff] }
  0x60   : > { %735 = vrot.lane.b32.xlu0 %v7784_v28, %s7518_s11  ;;  %570 = vst.msk [vmem:[#allocation2 + $0x112] sm:$0xff] %vm334_vm0, %v537_v43  ;;  %v7838_v46 = vld [vmem:[#allocation2 + $0x10a] sm:$0xff]  ;;  %v7931_v17 = vld [vmem:[#allocation2 + $0x60] sm:$0xff]  ;;  %v7974_v43 = vld [vmem:[#allocation2 + $0x78] sm:$0xff] }
  0x61   : > { %578 = vst.msk [vmem:[#allocation2 + $0x172] sm:$0xff] %vm334_vm0, %v545_v47  ;;  %v7866_v54 = vld [vmem:[#allocation2 + $0x142] sm:$0xff]  ;;  %v7970_v42 = vld [vmem:[#allocation2 + $0xac] sm:$0xff] }
  0x62   : > { %737 = vrot.lane.b32.xlu1 %v7786_v29, %s7518_s11  ;;  %v7845_v49 = vld [vmem:[#allocation2 + $0xca] sm:$0xff]  ;;  %573 = vst.msk [vmem:[#allocation2 + $0x13a] sm:$0xff] %vm334_vm0, %v540_v48  ;;  %v7940_v19 = vld [vmem:[#allocation2 + $0x7c] sm:$0xff] }
  0x63   : > { %v7854_v51 = vld [vmem:[#allocation2 + $0x12a] sm:$0xff]  ;;  %576 = vst.msk [vmem:[#allocation2 + $0x15a] sm:$0xff] %vm334_vm0, %v543_v52  ;;  %v7955_v36 = vld [vmem:[#allocation2 + $0x80] sm:$0xff] }
  0x64   : > { %727 = vrot.lane.b32.xlu2 %v7794_v33, %s7518_s11  ;;  %v7878_v57 = vld [vmem:[#allocation2 + $0x16a] sm:$0xff]  ;;  %615 = vst.msk [vmem:[#allocation5] sm:$0xff] %vm334_vm0, %v583_v60  ;;  %v7967_v37 = vld [vmem:[#allocation2 + $0x9c] sm:$0xff] }
  0x65   : > { %v7860_v53 = vld [vmem:[#allocation2 + $0xf2] sm:$0xff]  ;;  %616 = vst.msk [vmem:[#allocation5 + $0x8] sm:$0xff] %vm334_vm0, %v584_v1  ;;  %v7928_v14 = vld [vmem:[#allocation2 + $0x68] sm:$0xff] }
  0x66   : > { %v7868_v55 = vld [vmem:[#allocation2 + $0x152] sm:$0xff]  ;;  %619 = vst.msk [vmem:[#allocation5 + $0x20] sm:$0xff] %vm334_vm0, %v7893_v2  ;;  %v7943_v25 = vld [vmem:[#allocation2 + $0x84] sm:$0xff] }
  0x67   : > { %v7872_v56 = vld [vmem:[#allocation2 + $0x112] sm:$0xff]  ;;  %11565 = vst [vmem:[#allocation7_spill] sm:$0xff] %v7903_v4  ;;  %v7982_v52 = vld [vmem:[#allocation2 + $0xa8] sm:$0xff] }
  0x68   : > { %741 = vrot.lane.b32.xlu0 %v7802_v34, %s7518_s11  ;;  %v7880_v58 = vld [vmem:[#allocation2 + $0x172] sm:$0xff]  ;;  %617 = vst.msk [vmem:[#allocation5 + $0x10] sm:$0xff] %vm334_vm0, %v585_v7  ;;  %v8007_v7 = vld [vmem:[#allocation2 + $0xc8] sm:$0xff] }
  0x69   : > { %v7884_v61 = vld [vmem:[#allocation2 + $0x13a] sm:$0xff]  ;;  %621 = vst.msk [vmem:[#allocation5 + $0x30] sm:$0xff] %vm334_vm0, %v7910_v9  ;;  %v7976_v47 = vld [vmem:[#allocation2 + $0xb0] sm:$0xff] }
  0x6a   : > { %743 = vrot.lane.b32.xlu1 %v7804_v35, %s7518_s11  ;;  %v7895_v3 = vld [vmem:[#allocation2 + $0x15a] sm:$0xff]  ;;  %620 = vst.msk [vmem:[#allocation5 + $0x28] sm:$0xff] %vm334_vm0, %v7912_v10  ;;  %v7978_v48 = vld [vmem:[#allocation2 + $0x6c] sm:$0xff] }
  0x6b   : > { %11566 = vst [vmem:[#allocation8_spill] sm:$0xff] %v7922_v11  ;;  %v8001_v1 = vld [vmem:[#allocation2 + $0xd8] sm:$0xff]  ;;  %v8045_v0 = vld [vmem:[#allocation2 + $0x10c] sm:$0xff] }
  0x6c   : > { %733 = vrot.lane.b32.xlu2 %v7812_v39, %s7518_s11  ;;  %618 = vst.msk [vmem:[#allocation5 + $0x18] sm:$0xff] %vm334_vm0, %v586_v13 }
  0x6d   : > { %624 = vst.msk [vmem:[#allocation5 + $0x48] sm:$0xff] %vm334_vm0, %v7928_v14 }
  0x6e   : > { %623 = vst.msk [vmem:[#allocation5 + $0x40] sm:$0xff] %vm334_vm0, %v7931_v17 }
  0x6f   : > { %11567 = vst [vmem:[#allocation9_spill] sm:$0xff] %v7940_v19 }
  0x70   : > { %747 = vrot.lane.b32.xlu0 %v7820_v40, %s7518_s11  ;;  %11568 = vst [vmem:[#allocation10_spill] sm:$0xff] %v7943_v25 }
  0x71   : > { %622 = vst.msk [vmem:[#allocation5 + $0x38] sm:$0xff] %vm334_vm0, %v7948_v30 }
  0x72   : > { %749 = vrot.lane.b32.xlu1 %v7822_v41, %s7518_s11  ;;  %627 = vst.msk [vmem:[#allocation5 + $0x60] sm:$0xff] %vm334_vm0, %v7950_v31 }
  0x73   : > { %626 = vst.msk [vmem:[#allocation5 + $0x58] sm:$0xff] %vm334_vm0, %v7955_v36 }
  0x74   : > { %739 = vrot.lane.b32.xlu2 %v7829_v44, %s7518_s11  ;;  %11569 = vst [vmem:[#allocation11_spill] sm:$0xff] %v7967_v37 }
  0x75   : > { %11570 = vst [vmem:[#allocation12_spill] sm:$0xff] %v7970_v42 }
  0x76   : > { %11571 = vst [vmem:[#allocation13_spill] sm:$0xff] %v7978_v48 }
  0x77   : > { %625 = vst.msk [vmem:[#allocation5 + $0x50] sm:$0xff] %vm334_vm0, %v7974_v43 }
  0x78   : > { %753 = vrot.lane.b32.xlu0 %v7836_v45, %s7518_s11  ;;  %630 = vst.msk [vmem:[#allocation5 + $0x78] sm:$0xff] %vm334_vm0, %v7976_v47 }
  0x79   : > { %629 = vst.msk [vmem:[#allocation5 + $0x70] sm:$0xff] %vm334_vm0, %v7982_v52 }
  0x7a   : > { %755 = vrot.lane.b32.xlu1 %v7838_v46, %s7518_s11  ;;  %633 = vst.msk [vmem:[#allocation5 + $0x90] sm:$0xff] %vm334_vm0, %v8001_v1 }
  0x7b   : > { %632 = vst.msk [vmem:[#allocation5 + $0x88] sm:$0xff] %vm334_vm0, %v8007_v7 }
  0x7c   : > { %745 = vrot.lane.b32.xlu2 %v7845_v49, %s7518_s11  ;;  %11578 = vst [vmem:[#allocation20_spill] sm:$0xff] %v8045_v0 }
  0x80   : > { %759 = vrot.lane.b32.xlu0 %v7852_v50, %s7518_s11 }
  0x82   : > { %761 = vrot.lane.b32.xlu1 %v7854_v51, %s7518_s11 }
  0x84   : > { %751 = vrot.lane.b32.xlu2 %v7860_v53, %s7518_s11 }
  0x87   : > { %v712_v59 = vpop.permute.xlu0 %711 }
  0x88   : > { %765 = vrot.lane.b32.xlu0 %v7866_v54, %s7518_s11  ;;  %808 = vst.msk [vmem:[#allocation5] sm:$0xff] %vm807_vm2, %v712_v59  ;;  %v7992_v59 = vld [vmem:[#allocation2 + $0xc4] sm:$0xff] }
  0x89   : > { %v716_v6 = vpop.permute.xlu1 %715  ;;  %11572 = vst [vmem:[#allocation14_spill] sm:$0xff] %v7992_v59 }
  0x8a   : > { %767 = vrot.lane.b32.xlu1 %v7868_v55, %s7518_s11  ;;  %810 = vst.msk [vmem:[#allocation5 + $0x10] sm:$0xff] %vm807_vm2, %v716_v6  ;;  %v8003_v6 = vld [vmem:[#allocation2 + $0x94] sm:$0xff] }
  0x8b   : > { %11574 = vst [vmem:[#allocation16_spill] sm:$0xff] %v8003_v6 }
  0x8c   : > { %757 = vrot.lane.b32.xlu2 %v7872_v56, %s7518_s11 }
  0x90   : > { %771 = vrot.lane.b32.xlu0 %v7878_v57, %s7518_s11 }
  0x92   : > { %773 = vrot.lane.b32.xlu1 %v7880_v58, %s7518_s11 }
  0x94   : > { %763 = vrot.lane.b32.xlu2 %v7884_v61, %s7518_s11 }
  0x98   : > { %906 = vrot.lane.b32.xlu0 %v841_v62, %s7519_s16  ;;  %v7995_v62 = vld [vmem:[#allocation2 + $0xcc] sm:$0xff] }
  0x99   : > { %11573 = vst [vmem:[#allocation15_spill] sm:$0xff] %v7995_v62 }
  0x9a   : > { %908 = vrot.lane.b32.xlu1 %v842_v63, %s7519_s16  ;;  %v7999_v63 = vld [vmem:[#allocation2 + $0x98] sm:$0xff] }
  0x9b   : > { %628 = vst.msk [vmem:[#allocation5 + $0x68] sm:$0xff] %vm334_vm0, %v7999_v63 }
  0x9c   : > { %769 = vrot.lane.b32.xlu2 %v7895_v3, %s7518_s11 }
  0xa0   : > { %912 = vrot.lane.b32.xlu0 %v7903_v4, %s7519_s16 }
  0xa2   : > { %914 = vrot.lane.b32.xlu1 %v7905_v5, %s7519_s16 }
  0xa4   : > { %904 = vrot.lane.b32.xlu2 %v840_v8, %s7519_s16 }
  0xa8   : > { %918 = vrot.lane.b32.xlu0 %v7922_v11, %s7519_s16 }
  0xaa   : > { %920 = vrot.lane.b32.xlu1 %v7924_v12, %s7519_s16 }
  0xac   : > { %910 = vrot.lane.b32.xlu2 %v843_v16, %s7519_s16  ;;  %v8018_v16 = vld [vmem:[#allocation2 + $0xe4] sm:$0xff] }
  0xad   : > { %11575 = vst [vmem:[#allocation17_spill] sm:$0xff] %v8018_v16 }
  0xae   : > { %v714_v20 = vpop.permute.xlu0 %713  ;;  %v720_v24 = vpop.permute.xlu2 %719 }
  0xaf   : > { %809 = vst.msk [vmem:[#allocation5 + $0x8] sm:$0xff] %vm807_vm2, %v714_v20  ;;  %v718_v26 = vpop.permute.xlu1 %717 }
  0xb0   : > { %924 = vrot.lane.b32.xlu0 %v7940_v19, %s7519_s16  ;;  %812 = vst.msk [vmem:[#allocation5 + $0x20] sm:$0xff] %vm807_vm2, %v720_v24  ;;  %v8022_v24 = vld [vmem:[#allocation2 + $0xf4] sm:$0xff] }
  0xb1   : > { %811 = vst.msk [vmem:[#allocation5 + $0x18] sm:$0xff] %vm807_vm2, %v718_v26  ;;  %v8026_v26 = vld [vmem:[#allocation2 + $0xc0] sm:$0xff] }
  0xb2   : > { %926 = vrot.lane.b32.xlu1 %v7943_v25, %s7519_s16  ;;  %11576 = vst [vmem:[#allocation18_spill] sm:$0xff] %v8022_v24  ;;  %v8115_v25 = vld [vmem:[#allocation2 + $0x158] sm:$0xff] }
  0xb3   : > { %631 = vst.msk [vmem:[#allocation5 + $0x80] sm:$0xff] %vm334_vm0, %v8026_v26 }
  0xb4   : > { %916 = vrot.lane.b32.xlu2 %v7952_v32, %s7519_s16  ;;  %644 = vst.msk [vmem:[#allocation5 + $0xe8] sm:$0xff] %vm334_vm0, %v8115_v25 }
  0xb6   : > { %v722_v38 = vpop.permute.xlu2 %721 }
  0xb7   : > { %813 = vst.msk [vmem:[#allocation5 + $0x28] sm:$0xff] %vm807_vm2, %v722_v38  ;;  %v8028_v38 = vld [vmem:[#allocation2 + $0xf8] sm:$0xff] }
  0xb8   : > { %930 = vrot.lane.b32.xlu0 %v7967_v37, %s7519_s16  ;;  %636 = vst.msk [vmem:[#allocation5 + $0xa8] sm:$0xff] %vm334_vm0, %v8028_v38  ;;  %v8057_v37 = vld [vmem:[#allocation2 + $0xdc] sm:$0xff] }
  0xb9   : > { %11580 = vst [vmem:[#allocation22_spill] sm:$0xff] %v8057_v37 }
  0xba   : > { %932 = vrot.lane.b32.xlu1 %v7970_v42, %s7519_s16  ;;  %v8088_v42 = vld [vmem:[#allocation2 + $0x138] sm:$0xff] }
  0xbb   : > { %641 = vst.msk [vmem:[#allocation5 + $0xd0] sm:$0xff] %vm334_vm0, %v8088_v42 }
  0xbc   : > { %922 = vrot.lane.b32.xlu2 %v7978_v48, %s7519_s16  ;;  %v8149_v48 = vld [vmem:[#allocation2 + $0x16c] sm:$0xff] }
  0xbe   : > { %v728_v60 = vpop.permute.xlu2 %727 }
  0xbf   : > { %816 = vst.msk [vmem:[#allocation5 + $0x40] sm:$0xff] %vm807_vm2, %v728_v60  ;;  %v8030_v60 = vld [vmem:[#allocation2 + $0xb4] sm:$0xff] }
  0xc0   : > { %936 = vrot.lane.b32.xlu0 %v7992_v59, %s7519_s16  ;;  %11577 = vst [vmem:[#allocation19_spill] sm:$0xff] %v8030_v60  ;;  %v8049_v59 = vld [vmem:[#allocation2 + $0x114] sm:$0xff] }
  0xc1   : > { %11579 = vst [vmem:[#allocation21_spill] sm:$0xff] %v8049_v59 }
  0xc2   : > { %v724_v8 = vpop.permute.xlu0 %723  ;;  %938 = vrot.lane.b32.xlu1 %v7995_v62, %s7519_s16  ;;  %v8061_v62 = vld [vmem:[#allocation2 + $0x110] sm:$0xff] }
  0xc3   : > { %814 = vst.msk [vmem:[#allocation5 + $0x30] sm:$0xff] %vm807_vm2, %v724_v8  ;;  %v8034_v8 = vld [vmem:[#allocation2 + $0xf0] sm:$0xff] }
  0xc4   : > { %928 = vrot.lane.b32.xlu2 %v8003_v6, %s7519_s16  ;;  %v726_v13 = vpop.permute.xlu1 %725  ;;  %635 = vst.msk [vmem:[#allocation5 + $0xa0] sm:$0xff] %vm334_vm0, %v8034_v8  ;;  %v8109_v6 = vld [vmem:[#allocation2 + $0x168] sm:$0xff] }
  0xc5   : > { %815 = vst.msk [vmem:[#allocation5 + $0x38] sm:$0xff] %vm807_vm2, %v726_v13 }
  0xc6   : > { %v734_v20 = vpop.permute.xlu2 %733  ;;  %638 = vst.msk [vmem:[#allocation5 + $0xb8] sm:$0xff] %vm334_vm0, %v8061_v62 }
  0xc7   : > { %819 = vst.msk [vmem:[#allocation5 + $0x58] sm:$0xff] %vm807_vm2, %v734_v20 }
  0xc8   : > { %942 = vrot.lane.b32.xlu0 %v8018_v16, %s7519_s16  ;;  %645 = vst.msk [vmem:[#allocation5 + $0xf0] sm:$0xff] %vm334_vm0, %v8109_v6 }
  0xca   : > { %v730_v13 = vpop.permute.xlu0 %729  ;;  %944 = vrot.lane.b32.xlu1 %v8022_v24, %s7519_s16  ;;  %v8055_v24 = vld [vmem:[#allocation2 + $0x120] sm:$0xff] }
  0xcb   : > { %817 = vst.msk [vmem:[#allocation5 + $0x48] sm:$0xff] %vm807_vm2, %v730_v13  ;;  %v8053_v13 = vld [vmem:[#allocation2 + $0xe0] sm:$0xff] }
  0xcc   : > { %934 = vrot.lane.b32.xlu2 %v8030_v60, %s7519_s16  ;;  %v732_v20 = vpop.permute.xlu1 %731  ;;  %634 = vst.msk [vmem:[#allocation5 + $0x98] sm:$0xff] %vm334_vm0, %v8053_v13  ;;  %v8082_v60 = vld [vmem:[#allocation2 + $0x140] sm:$0xff] }
  0xcd   : > { %818 = vst.msk [vmem:[#allocation5 + $0x50] sm:$0xff] %vm807_vm2, %v732_v20 }
  0xce   : > { %v740_v16 = vpop.permute.xlu2 %739  ;;  %639 = vst.msk [vmem:[#allocation5 + $0xc0] sm:$0xff] %vm334_vm0, %v8055_v24 }
  0xcf   : > { %822 = vst.msk [vmem:[#allocation5 + $0x70] sm:$0xff] %vm807_vm2, %v740_v16 }
  0xd0   : > { %948 = vrot.lane.b32.xlu0 %v8045_v0, %s7519_s16  ;;  %v8072_v0 = vld [vmem:[#allocation2 + $0x12c] sm:$0xff]  ;;  %642 = vst.msk [vmem:[#allocation5 + $0xd8] sm:$0xff] %vm334_vm0, %v8082_v60 }
  0xd1   : > { %11581 = vst [vmem:[#allocation23_spill] sm:$0xff] %v8072_v0 }
  0xd2   : > { %v736_v20 = vpop.permute.xlu0 %735  ;;  %950 = vrot.lane.b32.xlu1 %v8049_v59, %s7519_s16  ;;  %v8076_v59 = vld [vmem:[#allocation2 + $0x13c] sm:$0xff] }
  0xd3   : > { %820 = vst.msk [vmem:[#allocation5 + $0x60] sm:$0xff] %vm807_vm2, %v736_v20  ;;  %v8080_v20 = vld [vmem:[#allocation2 + $0x108] sm:$0xff] }
  0xd4   : > { %940 = vrot.lane.b32.xlu2 %v8057_v37, %s7519_s16  ;;  %v738_v16 = vpop.permute.xlu1 %737  ;;  %11582 = vst [vmem:[#allocation24_spill] sm:$0xff] %v8076_v59  ;;  %v8084_v37 = vld [vmem:[#allocation2 + $0xfc] sm:$0xff] }
  0xd5   : > { %821 = vst.msk [vmem:[#allocation5 + $0x68] sm:$0xff] %vm807_vm2, %v738_v16 }
  0xd6   : > { %v746_v19 = vpop.permute.xlu2 %745  ;;  %11583 = vst [vmem:[#allocation25_spill] sm:$0xff] %v8084_v37 }
  0xd7   : > { %825 = vst.msk [vmem:[#allocation5 + $0x88] sm:$0xff] %vm807_vm2, %v746_v19 }
  0xd8   : > { %954 = vrot.lane.b32.xlu0 %v8072_v0, %s7519_s16  ;;  %637 = vst.msk [vmem:[#allocation5 + $0xb0] sm:$0xff] %vm334_vm0, %v8080_v20  ;;  %v8099_v0 = vld [vmem:[#allocation2 + $0x154] sm:$0xff] }
  0xd9   : > { %11584 = vst [vmem:[#allocation26_spill] sm:$0xff] %v8099_v0 }
  0xda   : > { %v742_v16 = vpop.permute.xlu0 %741  ;;  %956 = vrot.lane.b32.xlu1 %v8076_v59, %s7519_s16  ;;  %v8103_v59 = vld [vmem:[#allocation2 + $0x15c] sm:$0xff] }
  0xdb   : > { %823 = vst.msk [vmem:[#allocation5 + $0x78] sm:$0xff] %vm807_vm2, %v742_v16  ;;  %v8107_v16 = vld [vmem:[#allocation2 + $0x128] sm:$0xff] }
  0xdc   : > { %946 = vrot.lane.b32.xlu2 %v8084_v37, %s7519_s16  ;;  %v744_v19 = vpop.permute.xlu1 %743  ;;  %11585 = vst [vmem:[#allocation27_spill] sm:$0xff] %v8103_v59  ;;  %v8111_v37 = vld [vmem:[#allocation2 + $0x124] sm:$0xff] }
  0xdd   : > { %824 = vst.msk [vmem:[#allocation5 + $0x80] sm:$0xff] %vm807_vm2, %v744_v19 }
  0xde   : > { %v752_v11 = vpop.permute.xlu2 %751  ;;  %11586 = vst [vmem:[#allocation28_spill] sm:$0xff] %v8111_v37 }
  0xdf   : > { %828 = vst.msk [vmem:[#allocation5 + $0xa0] sm:$0xff] %vm807_vm2, %v752_v11 }
  0xe0   : > { %960 = vrot.lane.b32.xlu0 %v8099_v0, %s7519_s16  ;;  %640 = vst.msk [vmem:[#allocation5 + $0xc8] sm:$0xff] %vm334_vm0, %v8107_v16  ;;  %v8126_v0 = vld [vmem:[#allocation2 + $0x174] sm:$0xff] }
  0xe1   : > { %11587 = vst [vmem:[#allocation29_spill] sm:$0xff] %v8126_v0 }
  0xe2   : > { %v748_v19 = vpop.permute.xlu0 %747  ;;  %962 = vrot.lane.b32.xlu1 %v8103_v59, %s7519_s16  ;;  %v8132_v59 = vld [vmem:[#allocation2 + $0x150] sm:$0xff] }
  0xe3   : > { %826 = vst.msk [vmem:[#allocation5 + $0x90] sm:$0xff] %vm807_vm2, %v748_v19  ;;  %v8134_v19 = vld [vmem:[#allocation2 + $0x144] sm:$0xff] }
  0xe4   : > { %952 = vrot.lane.b32.xlu2 %v8111_v37, %s7519_s16  ;;  %v750_v11 = vpop.permute.xlu1 %749  ;;  %643 = vst.msk [vmem:[#allocation5 + $0xe0] sm:$0xff] %vm334_vm0, %v8132_v59 }
  0xe5   : > { %827 = vst.msk [vmem:[#allocation5 + $0x98] sm:$0xff] %vm807_vm2, %v750_v11 }
  0xe6   : > { %v758_v4 = vpop.permute.xlu2 %757 }
  0xe7   : > { %831 = vst.msk [vmem:[#allocation5 + $0xb8] sm:$0xff] %vm807_vm2, %v758_v4 }
  0xe8   : > { %966 = vrot.lane.b32.xlu0 %v8126_v0, %s7519_s16  ;;  %v8147_v0 = vld [vmem:[#allocation2 + $0x170] sm:$0xff] }
  0xe9   : > { %646 = vst.msk [vmem:[#allocation5 + $0xf8] sm:$0xff] %vm334_vm0, %v8147_v0 }
  0xea   : > { %v754_v37 = vpop.permute.xlu0 %753  ;;  %1097 = vrot.lane.b32.xlu1 %v7893_v2, %s7520_s17 }
  0xeb   : > { %829 = vst.msk [vmem:[#allocation5 + $0xa8] sm:$0xff] %vm807_vm2, %v754_v37 }
  0xec   : > { %958 = vrot.lane.b32.xlu2 %v8134_v19, %s7519_s16  ;;  %v756_v4 = vpop.permute.xlu1 %755 }
  0xed   : > { %830 = vst.msk [vmem:[#allocation5 + $0xb0] sm:$0xff] %vm807_vm2, %v756_v4 }
  0xee   : > { %v764_v11 = vpop.permute.xlu2 %763 }
  0xef   : > { %834 = vst.msk [vmem:[#allocation5 + $0xd0] sm:$0xff] %vm807_vm2, %v764_v11 }
  0xf0   : > { %1101 = vrot.lane.b32.xlu0 %v7910_v9, %s7520_s17 }
  0xf2   : > { %v760_v2 = vpop.permute.xlu0 %759  ;;  %1103 = vrot.lane.b32.xlu1 %v7948_v30, %s7520_s17 }
  0xf3   : > { %832 = vst.msk [vmem:[#allocation5 + $0xc0] sm:$0xff] %vm807_vm2, %v760_v2 }
  0xf4   : > { %964 = vrot.lane.b32.xlu2 %v8149_v48, %s7519_s16  ;;  %v762_v37 = vpop.permute.xlu1 %761 }
  0xf5   : > { %833 = vst.msk [vmem:[#allocation5 + $0xc8] sm:$0xff] %vm807_vm2, %v762_v37 }
  0xf6   : > { %v770_v9 = vpop.permute.xlu2 %769 }
  0xf7   : > { %837 = vst.msk [vmem:[#allocation5 + $0xe8] sm:$0xff] %vm807_vm2, %v770_v9 }
  0xf8   : > { %1107 = vrot.lane.b32.xlu0 %v7928_v14, %s7520_s17 }
  0xfa   : > { %v766_v4 = vpop.permute.xlu0 %765  ;;  %1109 = vrot.lane.b32.xlu1 %v7974_v43, %s7520_s17 }
  0xfb   : > { %835 = vst.msk [vmem:[#allocation5 + $0xd8] sm:$0xff] %vm807_vm2, %v766_v4  ;;  %v546_v4 = vld [vmem:[%s7714_s15 + $0xe0] sm:$0xff] }
  0xfc   : > { %1099 = vrot.lane.b32.xlu2 %v7912_v10, %s7520_s17  ;;  %v768_v30 = vpop.permute.xlu1 %767  ;;  %579 = vst.msk [vmem:[#allocation2 + $0x182] sm:$0xff] %vm334_vm0, %v546_v4 }
  0xfd   : > { %836 = vst.msk [vmem:[#allocation5 + $0xe0] sm:$0xff] %vm807_vm2, %v768_v30  ;;  %v547_v30 = vld [vmem:[%s7714_s15 + $0xe8] sm:$0xff] }
  0xfe   : > { %v905_v11 = vpop.permute.xlu2 %904  ;;  %580 = vst.msk [vmem:[#allocation2 + $0x18a] sm:$0xff] %vm334_vm0, %v547_v30 }
  0xff   : > { %1001 = vst.msk [vmem:[#allocation5] sm:$0xff] %vm1000_vm3, %v905_v11 }
 0x100   : > { %1113 = vrot.lane.b32.xlu0 %v7950_v31, %s7520_s17 }
 0x102   : > { %v772_v14 = vpop.permute.xlu0 %771  ;;  %1115 = vrot.lane.b32.xlu1 %v7999_v63, %s7520_s17 }
 0x103   : > { %838 = vst.msk [vmem:[#allocation5 + $0xf0] sm:$0xff] %vm807_vm2, %v772_v14 }
 0x104   : > { %1105 = vrot.lane.b32.xlu2 %v7931_v17, %s7520_s17  ;;  %v774_v10 = vpop.permute.xlu1 %773 }
 0x105   : > { %839 = vst.msk [vmem:[#allocation5 + $0xf8] sm:$0xff] %vm807_vm2, %v774_v10  ;;  %vm3464_vm2 = vcmask 326912  }
 0x106   : > { %v911_v2 = vpop.permute.xlu2 %910 }
 0x107   : > { %1004 = vst.msk [vmem:[#allocation5 + $0x18] sm:$0xff] %vm1000_vm3, %v911_v2 }
 0x108   : > { %1119 = vrot.lane.b32.xlu0 %v7976_v47, %s7520_s17 }
 0x10a   : > { %v907_v31 = vpop.permute.xlu0 %906  ;;  %1121 = vrot.lane.b32.xlu1 %v8026_v26, %s7520_s17 }
 0x10b   : > { %1002 = vst.msk [vmem:[#allocation5 + $0x8] sm:$0xff] %vm1000_vm3, %v907_v31  ;;  %v548_v31 = vld [vmem:[%s7714_s15 + $0xf0] sm:$0xff] }
 0x10c   : > { %1111 = vrot.lane.b32.xlu2 %v7955_v36, %s7520_s17  ;;  %v909_v37 = vpop.permute.xlu1 %908  ;;  %581 = vst.msk [vmem:[#allocation2 + $0x19a] sm:$0xff] %vm334_vm0, %v548_v31 }
 0x10d   : > { %1003 = vst.msk [vmem:[#allocation5 + $0x10] sm:$0xff] %vm1000_vm3, %v909_v37 }
 0x10e   : > { %v917_v9 = vpop.permute.xlu2 %916 }
 0x10f   : > { %1007 = vst.msk [vmem:[#allocation5 + $0x30] sm:$0xff] %vm1000_vm3, %v917_v9 }
 0x110   : > { %1125 = vrot.lane.b32.xlu0 %v8001_v1, %s7520_s17 }
 0x112   : > { %v913_v47 = vpop.permute.xlu0 %912  ;;  %1127 = vrot.lane.b32.xlu1 %v8053_v13, %s7520_s17 }
 0x113   : > { %1005 = vst.msk [vmem:[#allocation5 + $0x20] sm:$0xff] %vm1000_vm3, %v913_v47  ;;  %v8242_v31 = vld [vmem:[#allocation2 + $0x198] sm:$0xff] }
 0x114   : > { %1117 = vrot.lane.b32.xlu2 %v7982_v52, %s7520_s17  ;;  %v915_v11 = vpop.permute.xlu1 %914 }
 0x115   : > { %1006 = vst.msk [vmem:[#allocation5 + $0x28] sm:$0xff] %vm1000_vm3, %v915_v11  ;;  %v549_v11 = vld [vmem:[%s7714_s15 + $0xf8] sm:$0xff]  ;;  %s11202_s15 = scalar_lea.vmem %s11503_s9, %s7466_s12 }
 0x116   : > { %v923_v14 = vpop.permute.xlu2 %922  ;;  %582 = vst.msk [vmem:[#allocation2 + $0x1a2] sm:$0xff] %vm334_vm0, %v549_v11  ;;  %vm3078_vm0 = vcmask 195712  }
 0x117   : > { %1010 = vst.msk [vmem:[#allocation5 + $0x48] sm:$0xff] %vm1000_vm3, %v923_v14 }
 0x118   : > { %1131 = vrot.lane.b32.xlu0 %v8028_v38, %s7520_s17 }
 0x11a   : > { %v919_v1 = vpop.permute.xlu0 %918  ;;  %1133 = vrot.lane.b32.xlu1 %v8080_v20, %s7520_s17 }
 0x11b   : > { %1008 = vst.msk [vmem:[#allocation5 + $0x38] sm:$0xff] %vm1000_vm3, %v919_v1 }
 0x11c   : > { %1123 = vrot.lane.b32.xlu2 %v8007_v7, %s7520_s17  ;;  %v921_v10 = vpop.permute.xlu1 %920 }
 0x11d   : > { %1009 = vst.msk [vmem:[#allocation5 + $0x40] sm:$0xff] %vm1000_vm3, %v921_v10  ;;  %v8238_v10 = vld [vmem:[#allocation2 + $0x188] sm:$0xff] }
 0x11e   : > { %v929_v2 = vpop.permute.xlu2 %928 }
 0x11f   : > { %1013 = vst.msk [vmem:[#allocation5 + $0x60] sm:$0xff] %vm1000_vm3, %v929_v2 }
 0x120   : > { %1137 = vrot.lane.b32.xlu0 %v8055_v24, %s7520_s17 }
 0x122   : > { %v925_v38 = vpop.permute.xlu0 %924  ;;  %1139 = vrot.lane.b32.xlu1 %v8107_v16, %s7520_s17 }
 0x123   : > { %1011 = vst.msk [vmem:[#allocation5 + $0x50] sm:$0xff] %vm1000_vm3, %v925_v38 }
 0x124   : > { %1129 = vrot.lane.b32.xlu2 %v8034_v8, %s7520_s17  ;;  %v927_v37 = vpop.permute.xlu1 %926 }
 0x125   : > { %1012 = vst.msk [vmem:[#allocation5 + $0x58] sm:$0xff] %vm1000_vm3, %v927_v37 }
 0x126   : > { %v935_v9 = vpop.permute.xlu2 %934 }
 0x127   : > { %1016 = vst.msk [vmem:[#allocation5 + $0x78] sm:$0xff] %vm1000_vm3, %v935_v9 }
 0x128   : > { %1143 = vrot.lane.b32.xlu0 %v8082_v60, %s7520_s17 }
 0x12a   : > { %v931_v4 = vpop.permute.xlu0 %930  ;;  %1145 = vrot.lane.b32.xlu1 %v8132_v59, %s7520_s17 }
 0x12b   : > { %1014 = vst.msk [vmem:[#allocation5 + $0x68] sm:$0xff] %vm1000_vm3, %v931_v4  ;;  %v8255_v4 = vld [vmem:[#allocation2 + $0x180] sm:$0xff] }
 0x12c   : > { %1135 = vrot.lane.b32.xlu2 %v8061_v62, %s7520_s17  ;;  %v933_v30 = vpop.permute.xlu1 %932 }
 0x12d   : > { %1015 = vst.msk [vmem:[#allocation5 + $0x70] sm:$0xff] %vm1000_vm3, %v933_v30 }
 0x12e   : > { %v941_v47 = vpop.permute.xlu2 %940 }
 0x12f   : > { %1019 = vst.msk [vmem:[#allocation5 + $0x90] sm:$0xff] %vm1000_vm3, %v941_v47 }
 0x130   : > { %1149 = vrot.lane.b32.xlu0 %v8109_v6, %s7520_s17 }
 0x132   : > { %v937_v14 = vpop.permute.xlu0 %936  ;;  %1151 = vrot.lane.b32.xlu1 %v8147_v0, %s7520_s17 }
 0x133   : > { %1017 = vst.msk [vmem:[#allocation5 + $0x80] sm:$0xff] %vm1000_vm3, %v937_v14 }
 0x134   : > { %1141 = vrot.lane.b32.xlu2 %v8088_v42, %s7520_s17  ;;  %v939_v1 = vpop.permute.xlu1 %938 }
 0x135   : > { %1018 = vst.msk [vmem:[#allocation5 + $0x88] sm:$0xff] %vm1000_vm3, %v939_v1 }
 0x136   : > { %v947_v2 = vpop.permute.xlu2 %946 }
 0x137   : > { %1022 = vst.msk [vmem:[#allocation5 + $0xa8] sm:$0xff] %vm1000_vm3, %v947_v2 }
 0x138   : > { %1155 = vrot.lane.b32.xlu0 %v8238_v10, %s7520_s17 }
 0x13a   : > { %v943_v38 = vpop.permute.xlu0 %942  ;;  %1157 = vrot.lane.b32.xlu1 %v8242_v31, %s7520_s17 }
 0x13b   : > { %1020 = vst.msk [vmem:[#allocation5 + $0x98] sm:$0xff] %vm1000_vm3, %v943_v38 }
 0x13c   : > { %1147 = vrot.lane.b32.xlu2 %v8115_v25, %s7520_s17  ;;  %v945_v37 = vpop.permute.xlu1 %944 }
 0x13d   : > { %1021 = vst.msk [vmem:[#allocation5 + $0xa0] sm:$0xff] %vm1000_vm3, %v945_v37 }
 0x13e   : > { %v953_v9 = vpop.permute.xlu2 %952 }
 0x13f   : > { %1025 = vst.msk [vmem:[#allocation5 + $0xc0] sm:$0xff] %vm1000_vm3, %v953_v9  ;;  %v8351_v9 = vld [vmem:[#allocation2 + $0x1a2] sm:$0xff] }
 0x140   : > { %1290 = vrot.lane.b32.xlu0 %v7759_v21, %s7521_s18  ;;  %v8266_v21 = vld [vmem:[#allocation2 + $0x1a0] sm:$0xff] }
 0x142   : > { %v949_v30 = vpop.permute.xlu0 %948  ;;  %1292 = vrot.lane.b32.xlu1 %v7776_v27, %s7521_s18 }
 0x143   : > { %1023 = vst.msk [vmem:[#allocation5 + $0xb0] sm:$0xff] %vm1000_vm3, %v949_v30 }
 0x144   : > { %1153 = vrot.lane.b32.xlu2 %v8255_v4, %s7520_s17  ;;  %v951_v47 = vpop.permute.xlu1 %950 }
 0x145   : > { %1024 = vst.msk [vmem:[#allocation5 + $0xb8] sm:$0xff] %vm1000_vm3, %v951_v47  ;;  %v8364_v47 = vld [vmem:[#allocation2 + $0x18a] sm:$0xff] }
 0x146   : > { %v959_v11 = vpop.permute.xlu2 %958 }
 0x147   : > { %1028 = vst.msk [vmem:[#allocation5 + $0xd8] sm:$0xff] %vm1000_vm3, %v959_v11 }
 0x148   : > { %1296 = vrot.lane.b32.xlu0 %v7751_v18, %s7521_s18 }
 0x14a   : > { %v955_v14 = vpop.permute.xlu0 %954  ;;  %1298 = vrot.lane.b32.xlu1 %v7794_v33, %s7521_s18 }
 0x14b   : > { %1026 = vst.msk [vmem:[#allocation5 + $0xc8] sm:$0xff] %vm1000_vm3, %v955_v14 }
 0x14c   : > { %1159 = vrot.lane.b32.xlu2 %v8266_v21, %s7520_s17  ;;  %v957_v27 = vpop.permute.xlu1 %956 }
 0x14d   : > { %1027 = vst.msk [vmem:[#allocation5 + $0xd0] sm:$0xff] %vm1000_vm3, %v957_v27  ;;  %v11588_v27 = vld [vmem:[#allocation13_spill] sm:$0xff] }
 0x14e   : > { %v965_v1 = vpop.permute.xlu2 %964 }
 0x14f   : > { %1031 = vst.msk [vmem:[#allocation5 + $0xf0] sm:$0xff] %vm1000_vm3, %v965_v1 }
 0x150   : > { %1302 = vrot.lane.b32.xlu0 %v7768_v23, %s7521_s18 }
 0x152   : > { %v961_v18 = vpop.permute.xlu0 %960  ;;  %1304 = vrot.lane.b32.xlu1 %v7812_v39, %s7521_s18 }
 0x153   : > { %1029 = vst.msk [vmem:[#allocation5 + $0xe0] sm:$0xff] %vm1000_vm3, %v961_v18 }
 0x154   : > { %1294 = vrot.lane.b32.xlu2 %v7743_v15, %s7521_s18  ;;  %v963_v33 = vpop.permute.xlu1 %962 }
 0x155   : > { %1030 = vst.msk [vmem:[#allocation5 + $0xe8] sm:$0xff] %vm1000_vm3, %v963_v33  ;;  %v11590_v33 = vld [vmem:[#allocation10_spill] sm:$0xff] }
 0x156   : > { %v1100_v2 = vpop.permute.xlu2 %1099 }
 0x157   : > { %1195 = vst.msk [vmem:[#allocation5 + $0x8] sm:$0xff] %vm1193_vm4, %v1100_v2 }
 0x158   : > { %1308 = vrot.lane.b32.xlu0 %v7786_v29, %s7521_s18 }
 0x15a   : > { %v967_v23 = vpop.permute.xlu0 %966  ;;  %1310 = vrot.lane.b32.xlu1 %v7829_v44, %s7521_s18 }
 0x15b   : > { %1032 = vst.msk [vmem:[#allocation5 + $0xf8] sm:$0xff] %vm1000_vm3, %v967_v23  ;;  %v11592_v23 = vld [vmem:[#allocation8_spill] sm:$0xff]  ;;  %vm3657_vm3 = vcmask 392512  }
 0x15c   : > { %1300 = vrot.lane.b32.xlu2 %v7765_v22, %s7521_s18  ;;  %v1098_v15 = vpop.permute.xlu1 %1097 }
 0x15d   : > { %1194 = vst.msk [vmem:[#allocation5] sm:$0xff] %vm1193_vm4, %v1098_v15 }
 0x15e   : > { %v1106_v39 = vpop.permute.xlu2 %1105 }
 0x15f   : > { %1198 = vst.msk [vmem:[#allocation5 + $0x20] sm:$0xff] %vm1193_vm4, %v1106_v39 }
 0x160   : > { %1314 = vrot.lane.b32.xlu0 %v7804_v35, %s7521_s18 }
 0x162   : > { %v1102_v38 = vpop.permute.xlu0 %1101  ;;  %1316 = vrot.lane.b32.xlu1 %v7845_v49, %s7521_s18 }
 0x163   : > { %1196 = vst.msk [vmem:[#allocation5 + $0x10] sm:$0xff] %vm1193_vm4, %v1102_v38  ;;  %v11593_v38 = vld [vmem:[#allocation12_spill] sm:$0xff] }
 0x164   : > { %1306 = vrot.lane.b32.xlu2 %v7784_v28, %s7521_s18  ;;  %v1104_v29 = vpop.permute.xlu1 %1103 }
 0x165   : > { %1197 = vst.msk [vmem:[#allocation5 + $0x18] sm:$0xff] %vm1193_vm4, %v1104_v29 }
 0x166   : > { %v1112_v22 = vpop.permute.xlu2 %1111 }
 0x167   : > { %1201 = vst.msk [vmem:[#allocation5 + $0x38] sm:$0xff] %vm1193_vm4, %v1112_v22  ;;  %v11594_v22 = vld [vmem:[#allocation19_spill] sm:$0xff] }
 0x168   : > { %1320 = vrot.lane.b32.xlu0 %v7822_v41, %s7521_s18 }
 0x16a   : > { %v1108_v44 = vpop.permute.xlu0 %1107  ;;  %1322 = vrot.lane.b32.xlu1 %v7860_v53, %s7521_s18 }
 0x16b   : > { %1199 = vst.msk [vmem:[#allocation5 + $0x28] sm:$0xff] %vm1193_vm4, %v1108_v44  ;;  %v11595_v44 = vld [vmem:[#allocation9_spill] sm:$0xff] }
 0x16c   : > { %1312 = vrot.lane.b32.xlu2 %v7802_v34, %s7521_s18  ;;  %v1110_v35 = vpop.permute.xlu1 %1109 }
 0x16d   : > { %1200 = vst.msk [vmem:[#allocation5 + $0x30] sm:$0xff] %vm1193_vm4, %v1110_v35 }
 0x16e   : > { %v1118_v28 = vpop.permute.xlu2 %1117 }
 0x16f   : > { %1204 = vst.msk [vmem:[#allocation5 + $0x50] sm:$0xff] %vm1193_vm4, %v1118_v28 }
 0x170   : > { %1326 = vrot.lane.b32.xlu0 %v7838_v46, %s7521_s18 }
 0x172   : > { %v1114_v49 = vpop.permute.xlu0 %1113  ;;  %1328 = vrot.lane.b32.xlu1 %v7872_v56, %s7521_s18 }
 0x173   : > { %1202 = vst.msk [vmem:[#allocation5 + $0x40] sm:$0xff] %vm1193_vm4, %v1114_v49  ;;  %v11596_v49 = vld [vmem:[#allocation15_spill] sm:$0xff] }
 0x174   : > { %1318 = vrot.lane.b32.xlu2 %v7820_v40, %s7521_s18  ;;  %v1116_v41 = vpop.permute.xlu1 %1115 }
 0x175   : > { %1203 = vst.msk [vmem:[#allocation5 + $0x48] sm:$0xff] %vm1193_vm4, %v1116_v41 }
 0x176   : > { %v1124_v34 = vpop.permute.xlu2 %1123 }
 0x177   : > { %1207 = vst.msk [vmem:[#allocation5 + $0x68] sm:$0xff] %vm1193_vm4, %v1124_v34  ;;  %v11597_v34 = vld [vmem:[#allocation22_spill] sm:$0xff] }
 0x178   : > { %1332 = vrot.lane.b32.xlu0 %v7854_v51, %s7521_s18 }
 0x17a   : > { %v1120_v53 = vpop.permute.xlu0 %1119  ;;  %1334 = vrot.lane.b32.xlu1 %v7884_v61, %s7521_s18  ;;  %v8338_v61 = vld [vmem:[#allocation2 + $0x182] sm:$0xff] }
 0x17b   : > { %1205 = vst.msk [vmem:[#allocation5 + $0x58] sm:$0xff] %vm1193_vm4, %v1120_v53  ;;  %v11598_v53 = vld [vmem:[#allocation11_spill] sm:$0xff] }
 0x17c   : > { %1324 = vrot.lane.b32.xlu2 %v7836_v45, %s7521_s18  ;;  %v1122_v46 = vpop.permute.xlu1 %1121 }
 0x17d   : > { %1206 = vst.msk [vmem:[#allocation5 + $0x60] sm:$0xff] %vm1193_vm4, %v1122_v46 }
 0x17e   : > { %v1130_v40 = vpop.permute.xlu2 %1129 }
 0x17f   : > { %1210 = vst.msk [vmem:[#allocation5 + $0x80] sm:$0xff] %vm1193_vm4, %v1130_v40 }
 0x180   : > { %1338 = vrot.lane.b32.xlu0 %v7868_v55, %s7521_s18 }
 0x182   : > { %v1126_v56 = vpop.permute.xlu0 %1125  ;;  %1340 = vrot.lane.b32.xlu1 %v7895_v3, %s7521_s18  ;;  %v8347_v3 = vld [vmem:[#allocation2 + $0x19a] sm:$0xff] }
 0x183   : > { %1208 = vst.msk [vmem:[#allocation5 + $0x70] sm:$0xff] %vm1193_vm4, %v1126_v56  ;;  %v11599_v56 = vld [vmem:[#allocation18_spill] sm:$0xff] }
 0x184   : > { %1330 = vrot.lane.b32.xlu2 %v7852_v50, %s7521_s18  ;;  %v1128_v51 = vpop.permute.xlu1 %1127 }
 0x185   : > { %1209 = vst.msk [vmem:[#allocation5 + $0x78] sm:$0xff] %vm1193_vm4, %v1128_v51 }
 0x186   : > { %v1136_v45 = vpop.permute.xlu2 %1135 }
 0x187   : > { %1213 = vst.msk [vmem:[#allocation5 + $0x98] sm:$0xff] %vm1193_vm4, %v1136_v45  ;;  %v11600_v45 = vld [vmem:[#allocation25_spill] sm:$0xff] }
 0x188   : > { %1344 = vrot.lane.b32.xlu0 %v7880_v58, %s7521_s18 }
 0x18a   : > { %v1132_v55 = vpop.permute.xlu0 %1131  ;;  %1346 = vrot.lane.b32.xlu1 %v8338_v61, %s7521_s18 }
 0x18b   : > { %1211 = vst.msk [vmem:[#allocation5 + $0x88] sm:$0xff] %vm1193_vm4, %v1132_v55  ;;  %v11601_v55 = vld [vmem:[#allocation14_spill] sm:$0xff] }
 0x18c   : > { %1336 = vrot.lane.b32.xlu2 %v7866_v54, %s7521_s18  ;;  %v1134_v50 = vpop.permute.xlu1 %1133 }
 0x18d   : > { %1212 = vst.msk [vmem:[#allocation5 + $0x90] sm:$0xff] %vm1193_vm4, %v1134_v50 }
 0x18e   : > { %v1142_v37 = vpop.permute.xlu2 %1141 }
 0x18f   : > { %1216 = vst.msk [vmem:[#allocation5 + $0xb0] sm:$0xff] %vm1193_vm4, %v1142_v37 }
 0x190   : > { %1350 = vrot.lane.b32.xlu0 %v8347_v3, %s7521_s18 }
 0x192   : > { %v1138_v58 = vpop.permute.xlu0 %1137  ;;  %1352 = vrot.lane.b32.xlu1 %v8351_v9, %s7521_s18 }
 0x193   : > { %1214 = vst.msk [vmem:[#allocation5 + $0xa0] sm:$0xff] %vm1193_vm4, %v1138_v58  ;;  %v11602_v58 = vld [vmem:[#allocation21_spill] sm:$0xff] }
 0x194   : > { %1342 = vrot.lane.b32.xlu2 %v7878_v57, %s7521_s18  ;;  %v1140_v54 = vpop.permute.xlu1 %1139 }
 0x195   : > { %1215 = vst.msk [vmem:[#allocation5 + $0xa8] sm:$0xff] %vm1193_vm4, %v1140_v54 }
 0x196   : > { %v1148_v30 = vpop.permute.xlu2 %1147 }
 0x197   : > { %1219 = vst.msk [vmem:[#allocation5 + $0xc8] sm:$0xff] %vm1193_vm4, %v1148_v30  ;;  %v11603_v30 = vld [vmem:[#allocation28_spill] sm:$0xff] }
 0x198   : > { %1485 = vrot.lane.b32.xlu0 %v7905_v5, %s7522_s19 }
 0x19a   : > { %v1144_v11 = vpop.permute.xlu0 %1143  ;;  %1487 = vrot.lane.b32.xlu1 %v7952_v32, %s7522_s19  ;;  %v11589_v32 = vld [vmem:[#allocation7_spill] sm:$0xff] }
 0x19b   : > { %1217 = vst.msk [vmem:[#allocation5 + $0xb8] sm:$0xff] %vm1193_vm4, %v1144_v11  ;;  %v11604_v11 = vld [vmem:[#allocation17_spill] sm:$0xff] }
 0x19c   : > { %1348 = vrot.lane.b32.xlu2 %v8364_v47, %s7521_s18  ;;  %v1146_v57 = vpop.permute.xlu1 %1145 }
 0x19d   : > { %1218 = vst.msk [vmem:[#allocation5 + $0xc0] sm:$0xff] %vm1193_vm4, %v1146_v57 }
 0x19e   : > { %v1154_v14 = vpop.permute.xlu2 %1153 }
 0x19f   : > { %1222 = vst.msk [vmem:[#allocation5 + $0xe0] sm:$0xff] %vm1193_vm4, %v1154_v14 }
 0x1a0   : > { %1491 = vrot.lane.b32.xlu0 %v7924_v12, %s7522_s19  ;;  %v11591_v12 = vld [vmem:[#allocation16_spill] sm:$0xff] }
 0x1a2   : > { %v1150_v5 = vpop.permute.xlu0 %1149  ;;  %1493 = vrot.lane.b32.xlu1 %v11588_v27, %s7522_s19 }
 0x1a3   : > { %1220 = vst.msk [vmem:[#allocation5 + $0xd0] sm:$0xff] %vm1193_vm4, %v1150_v5  ;;  %v11605_v5 = vld [vmem:[#allocation24_spill] sm:$0xff] }
 0x1a4   : > { %1483 = vrot.lane.b32.xlu2 %v11589_v32, %s7522_s19  ;;  %v1152_v1 = vpop.permute.xlu1 %1151  ;;  %v11606_v32 = vld [vmem:[#allocation20_spill] sm:$0xff] }
 0x1a5   : > { %1221 = vst.msk [vmem:[#allocation5 + $0xd8] sm:$0xff] %vm1193_vm4, %v1152_v1 }
 0x1a6   : > { %v1160_v18 = vpop.permute.xlu2 %1159 }
 0x1a7   : > { %1225 = vst.msk [vmem:[#allocation5 + $0xf8] sm:$0xff] %vm1193_vm4, %v1160_v18 }
 0x1a8   : > { %1497 = vrot.lane.b32.xlu0 %v11590_v33, %s7522_s19  ;;  %v11607_v33 = vld [vmem:[#allocation27_spill] sm:$0xff] }
 0x1aa   : > { %v1156_v2 = vpop.permute.xlu0 %1155  ;;  %1499 = vrot.lane.b32.xlu1 %v11591_v12, %s7522_s19 }
 0x1ab   : > { %1223 = vst.msk [vmem:[#allocation5 + $0xe8] sm:$0xff] %vm1193_vm4, %v1156_v2 }
 0x1ac   : > { %1489 = vrot.lane.b32.xlu2 %v11592_v23, %s7522_s19  ;;  %v1158_v15 = vpop.permute.xlu1 %1157  ;;  %v8443_v23 = vld [vmem:[#allocation2 + $0x184] sm:$0xff] }
 0x1ad   : > { %1224 = vst.msk [vmem:[#allocation5 + $0xf0] sm:$0xff] %vm1193_vm4, %v1158_v15  ;;  %vm3851_vm4 = vcmask 458112  }
 0x1ae   : > { %v1295_v39 = vpop.permute.xlu2 %1294 }
 0x1af   : > { %1389 = vst.msk [vmem:[#allocation5 + $0x10] sm:$0xff] %vm1386_vm5, %v1295_v39  ;;  %v8447_v39 = vld [vmem:[#allocation2 + $0x18c] sm:$0xff] }
 0x1b0   : > { %1503 = vrot.lane.b32.xlu0 %v11593_v38, %s7522_s19 }
 0x1b2   : > { %v1291_v29 = vpop.permute.xlu0 %1290  ;;  %1505 = vrot.lane.b32.xlu1 %v11594_v22, %s7522_s19  ;;  %v8456_v22 = vld [vmem:[#allocation2 + $0x1a4] sm:$0xff] }
 0x1b3   : > { %1387 = vst.msk [vmem:[#allocation5] sm:$0xff] %vm1386_vm5, %v1291_v29 }
 0x1b4   : > { %1495 = vrot.lane.b32.xlu2 %v11595_v44, %s7522_s19  ;;  %v1293_v35 = vpop.permute.xlu1 %1292 }
 0x1b5   : > { %1388 = vst.msk [vmem:[#allocation5 + $0x8] sm:$0xff] %vm1386_vm5, %v1293_v35 }
 0x1b6   : > { %v1301_v28 = vpop.permute.xlu2 %1300 }
 0x1b7   : > { %1392 = vst.msk [vmem:[#allocation5 + $0x28] sm:$0xff] %vm1386_vm5, %v1301_v28  ;;  %v11610_v28 = vld [vmem:[#allocation29_spill] sm:$0xff] }
 0x1b8   : > { %1509 = vrot.lane.b32.xlu0 %v11596_v49, %s7522_s19 }
 0x1ba   : > { %v1297_v41 = vpop.permute.xlu0 %1296  ;;  %1511 = vrot.lane.b32.xlu1 %v11597_v34, %s7522_s19  ;;  %v8471_v34 = vld [vmem:[#allocation2 + $0x19c] sm:$0xff] }
 0x1bb   : > { %1390 = vst.msk [vmem:[#allocation5 + $0x18] sm:$0xff] %vm1386_vm5, %v1297_v41 }
 0x1bc   : > { %1501 = vrot.lane.b32.xlu2 %v11598_v53, %s7522_s19  ;;  %v1299_v46 = vpop.permute.xlu1 %1298 }
 0x1bd   : > { %1391 = vst.msk [vmem:[#allocation5 + $0x20] sm:$0xff] %vm1386_vm5, %v1299_v46 }
 0x1be   : > { %v1307_v40 = vpop.permute.xlu2 %1306 }
 0x1bf   : > { %1395 = vst.msk [vmem:[#allocation5 + $0x40] sm:$0xff] %vm1386_vm5, %v1307_v40 }
 0x1c0   : > { %1515 = vrot.lane.b32.xlu0 %v11599_v56, %s7522_s19 }
 0x1c2   : > { %v1303_v51 = vpop.permute.xlu0 %1302  ;;  %1517 = vrot.lane.b32.xlu1 %v11600_v45, %s7522_s19 }
 0x1c3   : > { %1393 = vst.msk [vmem:[#allocation5 + $0x30] sm:$0xff] %vm1386_vm5, %v1303_v51 }
 0x1c4   : > { %1507 = vrot.lane.b32.xlu2 %v11601_v55, %s7522_s19  ;;  %v1305_v50 = vpop.permute.xlu1 %1304  ;;  %v1620_v55 = vld [vmem:[#allocation2 + $0xb0] sm:$0xff] }
 0x1c5   : > { %1394 = vst.msk [vmem:[#allocation5 + $0x38] sm:$0xff] %vm1386_vm5, %v1305_v50 }
 0x1c6   : > { %v1313_v37 = vpop.permute.xlu2 %1312 }
 0x1c7   : > { %1398 = vst.msk [vmem:[#allocation5 + $0x58] sm:$0xff] %vm1386_vm5, %v1313_v37  ;;  %v1623_v37 = vld [vmem:[#allocation2 + $0xd8] sm:$0xff] }
 0x1c8   : > { %1521 = vrot.lane.b32.xlu0 %v11602_v58, %s7522_s19 }
 0x1ca   : > { %v1309_v54 = vpop.permute.xlu0 %1308  ;;  %1523 = vrot.lane.b32.xlu1 %v11603_v30, %s7522_s19 }
 0x1cb   : > { %1396 = vst.msk [vmem:[#allocation5 + $0x48] sm:$0xff] %vm1386_vm5, %v1309_v54  ;;  %v1626_v54 = vld [vmem:[#allocation2 + $0xf8] sm:$0xff] }
 0x1cc   : > { %1513 = vrot.lane.b32.xlu2 %v11604_v11, %s7522_s19  ;;  %v1311_v57 = vpop.permute.xlu1 %1310 }
 0x1cd   : > { %1397 = vst.msk [vmem:[#allocation5 + $0x50] sm:$0xff] %vm1386_vm5, %v1311_v57 }
 0x1ce   : > { %v1319_v14 = vpop.permute.xlu2 %1318 }
 0x1cf   : > { %1401 = vst.msk [vmem:[#allocation5 + $0x70] sm:$0xff] %vm1386_vm5, %v1319_v14  ;;  %v1643_v14 = vld [vmem:[#allocation2 + $0x1c8] sm:$0xff] }
 0x1d0   : > { %1527 = vrot.lane.b32.xlu0 %v11605_v5, %s7522_s19 }
 0x1d2   : > { %v1315_v27 = vpop.permute.xlu0 %1314  ;;  %1529 = vrot.lane.b32.xlu1 %v8134_v19, %s7522_s19  ;;  %v11608_v19 = vld [vmem:[#allocation23_spill] sm:$0xff] }
 0x1d3   : > { %1399 = vst.msk [vmem:[#allocation5 + $0x60] sm:$0xff] %vm1386_vm5, %v1315_v27  ;;  %v1807_v27 = vld [vmem:[#allocation2 + $0x6a] sm:$0xff] }
 0x1d4   : > { %1519 = vrot.lane.b32.xlu2 %v11606_v32, %s7522_s19  ;;  %v1317_v1 = vpop.permute.xlu1 %1316  ;;  %v1641_v32 = vld [vmem:[#allocation2 + $0x1b0] sm:$0xff] }
 0x1d5   : > { %1400 = vst.msk [vmem:[#allocation5 + $0x68] sm:$0xff] %vm1386_vm5, %v1317_v1 }
 0x1d6   : > { %v1325_v18 = vpop.permute.xlu2 %1324 }
 0x1d7   : > { %1404 = vst.msk [vmem:[#allocation5 + $0x88] sm:$0xff] %vm1386_vm5, %v1325_v18  ;;  %v1809_v18 = vld [vmem:[#allocation2 + $0x82] sm:$0xff] }
 0x1d8   : > { %1533 = vrot.lane.b32.xlu0 %v11607_v33, %s7522_s19 }
 0x1da   : > { %v1321_v2 = vpop.permute.xlu0 %1320  ;;  %1535 = vrot.lane.b32.xlu1 %v8149_v48, %s7522_s19  ;;  %v11609_v48 = vld [vmem:[#allocation26_spill] sm:$0xff] }
 0x1db   : > { %1402 = vst.msk [vmem:[#allocation5 + $0x78] sm:$0xff] %vm1386_vm5, %v1321_v2  ;;  %v1810_v2 = vld [vmem:[#allocation2 + $0x92] sm:$0xff] }
 0x1dc   : > { %1525 = vrot.lane.b32.xlu2 %v11608_v19, %s7522_s19  ;;  %v1323_v12 = vpop.permute.xlu1 %1322  ;;  %v1644_v19 = vld [vmem:[#allocation2 + $0x1d0] sm:$0xff] }
 0x1dd   : > { %1403 = vst.msk [vmem:[#allocation5 + $0x80] sm:$0xff] %vm1386_vm5, %v1323_v12 }
 0x1de   : > { %v1331_v15 = vpop.permute.xlu2 %1330 }
 0x1df   : > { %1407 = vst.msk [vmem:[#allocation5 + $0xa0] sm:$0xff] %vm1386_vm5, %v1331_v15 }
 0x1e0   : > { %1539 = vrot.lane.b32.xlu0 %v8443_v23, %s7522_s19 }
 0x1e2   : > { %v1327_v38 = vpop.permute.xlu0 %1326  ;;  %1541 = vrot.lane.b32.xlu1 %v8447_v39, %s7522_s19 }
 0x1e3   : > { %1405 = vst.msk [vmem:[#allocation5 + $0x90] sm:$0xff] %vm1386_vm5, %v1327_v38  ;;  %v1812_v38 = vld [vmem:[#allocation2 + $0xaa] sm:$0xff] }
 0x1e4   : > { %1531 = vrot.lane.b32.xlu2 %v11609_v48, %s7522_s19  ;;  %v1329_v29 = vpop.permute.xlu1 %1328 }
 0x1e5   : > { %1406 = vst.msk [vmem:[#allocation5 + $0x98] sm:$0xff] %vm1386_vm5, %v1329_v29  ;;  %v1813_v29 = vld [vmem:[#allocation2 + $0xb2] sm:$0xff] }
 0x1e6   : > { %v1337_v44 = vpop.permute.xlu2 %1336 }
 0x1e7   : > { %1410 = vst.msk [vmem:[#allocation5 + $0xb8] sm:$0xff] %vm1386_vm5, %v1337_v44  ;;  %v1808_v44 = vld [vmem:[#allocation2 + $0x7a] sm:$0xff] }
 0x1e8   : > { %1545 = vrot.lane.b32.xlu0 %v8456_v22, %s7522_s19 }
 0x1ea   : > { %v1333_v35 = vpop.permute.xlu0 %1332  ;;  %1677 = vrot.lane.b32.xlu1 %v7931_v17, %s7523_s20 }
 0x1eb   : > { %1408 = vst.msk [vmem:[#allocation5 + $0xa8] sm:$0xff] %vm1386_vm5, %v1333_v35 }
 0x1ec   : > { %1537 = vrot.lane.b32.xlu2 %v11610_v28, %s7522_s19  ;;  %v1335_v49 = vpop.permute.xlu1 %1334 }
 0x1ed   : > { %1409 = vst.msk [vmem:[#allocation5 + $0xb0] sm:$0xff] %vm1386_vm5, %v1335_v49  ;;  %v1815_v49 = vld [vmem:[#allocation2 + $0xca] sm:$0xff] }
 0x1ee   : > { %v1343_v41 = vpop.permute.xlu2 %1342 }
 0x1ef   : > { %1413 = vst.msk [vmem:[#allocation5 + $0xd0] sm:$0xff] %vm1386_vm5, %v1343_v41 }
 0x1f0   : > { %1681 = vrot.lane.b32.xlu0 %v7974_v43, %s7523_s20  ;;  %v1614_v43 = vld [vmem:[#allocation2 + $0x68] sm:$0xff] }
 0x1f2   : > { %v1339_v53 = vpop.permute.xlu0 %1338  ;;  %1683 = vrot.lane.b32.xlu1 %v7955_v36, %s7523_s20 }
 0x1f3   : > { %1411 = vst.msk [vmem:[#allocation5 + $0xc0] sm:$0xff] %vm1386_vm5, %v1339_v53  ;;  %v1816_v53 = vld [vmem:[#allocation2 + $0xda] sm:$0xff] }
 0x1f4   : > { %1543 = vrot.lane.b32.xlu2 %v8471_v34, %s7522_s19  ;;  %v1341_v17 = vpop.permute.xlu1 %1340  ;;  %s7526_s19 = smov 40  }
 0x1f5   : > { %1412 = vst.msk [vmem:[#allocation5 + $0xc8] sm:$0xff] %vm1386_vm5, %v1341_v17  ;;  %v1811_v17 = vld [vmem:[#allocation2 + $0x9a] sm:$0xff] }
 0x1f6   : > { %v1349_v46 = vpop.permute.xlu2 %1348 }
 0x1f7   : > { %1416 = vst.msk [vmem:[#allocation5 + $0xe8] sm:$0xff] %vm1386_vm5, %v1349_v46 }
 0x1f8   : > { %1687 = vrot.lane.b32.xlu0 %v7999_v63, %s7523_s20  ;;  %v1617_v63 = vld [vmem:[#allocation2 + $0x90] sm:$0xff] }
 0x1fa   : > { %v1345_v40 = vpop.permute.xlu0 %1344  ;;  %1689 = vrot.lane.b32.xlu1 %v7982_v52, %s7523_s20 }
 0x1fb   : > { %1414 = vst.msk [vmem:[#allocation5 + $0xd8] sm:$0xff] %vm1386_vm5, %v1345_v40  ;;  %v1818_v40 = vld [vmem:[#allocation2 + $0xf2] sm:$0xff] }
 0x1fc   : > { %1679 = vrot.lane.b32.xlu2 %v1614_v43, %s7523_s20  ;;  %v1347_v36 = vpop.permute.xlu1 %1346 }
 0x1fd   : > { %1415 = vst.msk [vmem:[#allocation5 + $0xe0] sm:$0xff] %vm1386_vm5, %v1347_v36 }
 0x1fe   : > { %v1484_v56 = vpop.permute.xlu2 %1483 }
 0x1ff   : > { %1580 = vst.msk [vmem:[#allocation5] sm:$0xff] %vm1579_vm6, %v1484_v56  ;;  %v1819_v56 = vld [vmem:[#allocation2 + $0xfa] sm:$0xff] }
 0x200   : > { %1693 = vrot.lane.b32.xlu0 %v8026_v26, %s7523_s20 }
 0x202   : > { %v1351_v51 = vpop.permute.xlu0 %1350  ;;  %1695 = vrot.lane.b32.xlu1 %v8007_v7, %s7523_s20 }
 0x203   : > { %1417 = vst.msk [vmem:[#allocation5 + $0xf0] sm:$0xff] %vm1386_vm5, %v1351_v51 }
 0x204   : > { %1685 = vrot.lane.b32.xlu2 %v1617_v63, %s7523_s20  ;;  %v1353_v52 = vpop.permute.xlu1 %1352  ;;  %v1814_v63 = vld [vmem:[#allocation2 + $0xc2] sm:$0xff] }
 0x205   : > { %1418 = vst.msk [vmem:[#allocation5 + $0xf8] sm:$0xff] %vm1386_vm5, %v1353_v52  ;;  %vm4044_vm5 = vcmask 523712  }
 0x206   : > { %v1490_v45 = vpop.permute.xlu2 %1489 }
 0x207   : > { %1583 = vst.msk [vmem:[#allocation5 + $0x18] sm:$0xff] %vm1579_vm6, %v1490_v45  ;;  %v1821_v45 = vld [vmem:[#allocation2 + $0x112] sm:$0xff] }
 0x208   : > { %1699 = vrot.lane.b32.xlu0 %v8053_v13, %s7523_s20 }
 0x20a   : > { %v1486_v26 = vpop.permute.xlu0 %1485  ;;  %1701 = vrot.lane.b32.xlu1 %v8034_v8, %s7523_s20 }
 0x20b   : > { %1581 = vst.msk [vmem:[#allocation5 + $0x8] sm:$0xff] %vm1579_vm6, %v1486_v26  ;;  %v1822_v26 = vld [vmem:[#allocation2 + $0x122] sm:$0xff] }
 0x20c   : > { %1691 = vrot.lane.b32.xlu2 %v1620_v55, %s7523_s20  ;;  %v1488_v7 = vpop.permute.xlu1 %1487 }
 0x20d   : > { %1582 = vst.msk [vmem:[#allocation5 + $0x10] sm:$0xff] %vm1579_vm6, %v1488_v7  ;;  %v1817_v7 = vld [vmem:[#allocation2 + $0xe2] sm:$0xff] }
 0x20e   : > { %v1496_v50 = vpop.permute.xlu2 %1495 }
 0x20f   : > { %1586 = vst.msk [vmem:[#allocation5 + $0x30] sm:$0xff] %vm1579_vm6, %v1496_v50 }
 0x210   : > { %1705 = vrot.lane.b32.xlu0 %v8080_v20, %s7523_s20 }
 0x212   : > { %v1492_v13 = vpop.permute.xlu0 %1491  ;;  %1707 = vrot.lane.b32.xlu1 %v8061_v62, %s7523_s20 }
 0x213   : > { %1584 = vst.msk [vmem:[#allocation5 + $0x20] sm:$0xff] %vm1579_vm6, %v1492_v13  ;;  %v1824_v13 = vld [vmem:[#allocation2 + $0x13a] sm:$0xff] }
 0x214   : > { %1697 = vrot.lane.b32.xlu2 %v1623_v37, %s7523_s20  ;;  %v1494_v8 = vpop.permute.xlu1 %1493 }
 0x215   : > { %1585 = vst.msk [vmem:[#allocation5 + $0x28] sm:$0xff] %vm1579_vm6, %v1494_v8 }
 0x216   : > { %v1502_v58 = vpop.permute.xlu2 %1501 }
 0x217   : > { %1589 = vst.msk [vmem:[#allocation5 + $0x48] sm:$0xff] %vm1579_vm6, %v1502_v58  ;;  %v1825_v58 = vld [vmem:[#allocation2 + $0x142] sm:$0xff] }
 0x218   : > { %1711 = vrot.lane.b32.xlu0 %v8107_v16, %s7523_s20 }
 0x21a   : > { %v1498_v20 = vpop.permute.xlu0 %1497  ;;  %1713 = vrot.lane.b32.xlu1 %v8088_v42, %s7523_s20 }
 0x21b   : > { %1587 = vst.msk [vmem:[#allocation5 + $0x38] sm:$0xff] %vm1579_vm6, %v1498_v20 }
 0x21c   : > { %1703 = vrot.lane.b32.xlu2 %v1626_v54, %s7523_s20  ;;  %v1500_v62 = vpop.permute.xlu1 %1499  ;;  %v1820_v54 = vld [vmem:[#allocation2 + $0x10a] sm:$0xff] }
 0x21d   : > { %1588 = vst.msk [vmem:[#allocation5 + $0x40] sm:$0xff] %vm1579_vm6, %v1500_v62 }
 0x21e   : > { %v1508_v30 = vpop.permute.xlu2 %1507 }
 0x21f   : > { %1592 = vst.msk [vmem:[#allocation5 + $0x60] sm:$0xff] %vm1579_vm6, %v1508_v30  ;;  %v1827_v30 = vld [vmem:[#allocation2 + $0x15a] sm:$0xff] }
 0x220   : > { %1717 = vrot.lane.b32.xlu0 %v8132_v59, %s7523_s20 }
 0x222   : > { %v1504_v11 = vpop.permute.xlu0 %1503  ;;  %1719 = vrot.lane.b32.xlu1 %v8115_v25, %s7523_s20 }
 0x223   : > { %1590 = vst.msk [vmem:[#allocation5 + $0x50] sm:$0xff] %vm1579_vm6, %v1504_v11 }
 0x224   : > { %1709 = vrot.lane.b32.xlu2 %v8055_v24, %s7523_s20  ;;  %v1506_v42 = vpop.permute.xlu1 %1505 }
 0x225   : > { %1591 = vst.msk [vmem:[#allocation5 + $0x58] sm:$0xff] %vm1579_vm6, %v1506_v42  ;;  %v1828_v42 = vld [vmem:[#allocation2 + $0x16a] sm:$0xff] }
 0x226   : > { %v1514_v16 = vpop.permute.xlu2 %1513 }
 0x227   : > { %1595 = vst.msk [vmem:[#allocation5 + $0x78] sm:$0xff] %vm1579_vm6, %v1514_v16  ;;  %v1823_v16 = vld [vmem:[#allocation2 + $0x12a] sm:$0xff] }
 0x228   : > { %1723 = vrot.lane.b32.xlu0 %v8147_v0, %s7523_s20 }
 0x22a   : > { %v1510_v57 = vpop.permute.xlu0 %1509  ;;  %1725 = vrot.lane.b32.xlu1 %v8255_v4, %s7523_s20 }
 0x22b   : > { %1593 = vst.msk [vmem:[#allocation5 + $0x68] sm:$0xff] %vm1579_vm6, %v1510_v57 }
 0x22c   : > { %1715 = vrot.lane.b32.xlu2 %v8082_v60, %s7523_s20  ;;  %v1512_v25 = vpop.permute.xlu1 %1511  ;;  %v1642_v60 = vld [vmem:[#allocation2 + $0x1b8] sm:$0xff] }
 0x22d   : > { %1594 = vst.msk [vmem:[#allocation5 + $0x70] sm:$0xff] %vm1579_vm6, %v1512_v25 }
 0x22e   : > { %v1520_v59 = vpop.permute.xlu2 %1519 }
 0x22f   : > { %1598 = vst.msk [vmem:[#allocation5 + $0x90] sm:$0xff] %vm1579_vm6, %v1520_v59 }
 0x230   : > { %1729 = vrot.lane.b32.xlu0 %v8242_v31, %s7523_s20 }
 0x232   : > { %v1516_v24 = vpop.permute.xlu0 %1515  ;;  %1731 = vrot.lane.b32.xlu1 %v8266_v21, %s7523_s20 }
 0x233   : > { %1596 = vst.msk [vmem:[#allocation5 + $0x80] sm:$0xff] %vm1579_vm6, %v1516_v24  ;;  %v1826_v24 = vld [vmem:[#allocation2 + $0x152] sm:$0xff] }
 0x234   : > { %1721 = vrot.lane.b32.xlu2 %v8109_v6, %s7523_s20  ;;  %v1518_v0 = vpop.permute.xlu1 %1517  ;;  %v1806_v6 = vld [vmem:[#allocation2 + $0x62] sm:$0xff] }
 0x235   : > { %1597 = vst.msk [vmem:[#allocation5 + $0x88] sm:$0xff] %vm1579_vm6, %v1518_v0 }
 0x236   : > { %v1526_v4 = vpop.permute.xlu2 %1525 }
 0x237   : > { %1601 = vst.msk [vmem:[#allocation5 + $0xa8] sm:$0xff] %vm1579_vm6, %v1526_v4 }
 0x238   : > { %1735 = vrot.lane.b32.xlu0 %v1642_v60, %s7523_s20 }
 0x23a   : > { %v1522_v31 = vpop.permute.xlu0 %1521  ;;  %1737 = vrot.lane.b32.xlu1 %v1643_v14, %s7523_s20  ;;  %v1834_v14 = vld [vmem:[#allocation2 + $0x1b2] sm:$0xff] }
 0x23b   : > { %1599 = vst.msk [vmem:[#allocation5 + $0x98] sm:$0xff] %vm1579_vm6, %v1522_v31 }
 0x23c   : > { %1727 = vrot.lane.b32.xlu2 %v8238_v10, %s7523_s20  ;;  %v1524_v21 = vpop.permute.xlu1 %1523 }
 0x23d   : > { %1600 = vst.msk [vmem:[#allocation5 + $0xa0] sm:$0xff] %vm1579_vm6, %v1524_v21  ;;  %v1836_v21 = vld [vmem:[#allocation2 + $0x1ca] sm:$0xff] }
 0x23e   : > { %v1532_v5 = vpop.permute.xlu2 %1531 }
 0x23f   : > { %1604 = vst.msk [vmem:[#allocation5 + $0xc0] sm:$0xff] %vm1579_vm6, %v1532_v5  ;;  %v1837_v5 = vld [vmem:[#allocation2 + $0x1d2] sm:$0xff] }
 0x240   : > { %1870 = vrot.lane.b32.xlu0 %v1806_v6, %s7524_s21 }
 0x242   : > { %v1528_v1 = vpop.permute.xlu0 %1527  ;;  %1872 = vrot.lane.b32.xlu1 %v1807_v27, %s7524_s21 }
 0x243   : > { %1602 = vst.msk [vmem:[#allocation5 + $0xb0] sm:$0xff] %vm1579_vm6, %v1528_v1 }
 0x244   : > { %1733 = vrot.lane.b32.xlu2 %v1641_v32, %s7523_s20  ;;  %v1530_v10 = vpop.permute.xlu1 %1529  ;;  %v2000_v32 = vld [vmem:[#allocation2 + $0x6c] sm:$0xff] }
 0x245   : > { %1603 = vst.msk [vmem:[#allocation5 + $0xb8] sm:$0xff] %vm1579_vm6, %v1530_v10  ;;  %v2001_v10 = vld [vmem:[#allocation2 + $0x7c] sm:$0xff] }
 0x246   : > { %v1538_v33 = vpop.permute.xlu2 %1537 }
 0x247   : > { %1607 = vst.msk [vmem:[#allocation5 + $0xd8] sm:$0xff] %vm1579_vm6, %v1538_v33 }
 0x248   : > { %1876 = vrot.lane.b32.xlu0 %v1809_v18, %s7524_s21  ;;  %v1835_v18 = vld [vmem:[#allocation2 + $0x1ba] sm:$0xff] }
 0x24a   : > { %v1534_v12 = vpop.permute.xlu0 %1533  ;;  %1878 = vrot.lane.b32.xlu1 %v1810_v2, %s7524_s21  ;;  %v2003_v2 = vld [vmem:[#allocation2 + $0x94] sm:$0xff] }
 0x24b   : > { %1605 = vst.msk [vmem:[#allocation5 + $0xc8] sm:$0xff] %vm1579_vm6, %v1534_v12  ;;  %v2004_v12 = vld [vmem:[#allocation2 + $0x9c] sm:$0xff] }
 0x24c   : > { %1739 = vrot.lane.b32.xlu2 %v1644_v19, %s7523_s20  ;;  %v1536_v15 = vpop.permute.xlu1 %1535 }
 0x24d   : > { %1606 = vst.msk [vmem:[#allocation5 + $0xd0] sm:$0xff] %vm1579_vm6, %v1536_v15  ;;  %v1999_v15 = vld [vmem:[#allocation2 + $0x64] sm:$0xff] }
 0x24e   : > { %v1544_v48 = vpop.permute.xlu2 %1543 }
 0x24f   : > { %1610 = vst.msk [vmem:[#allocation5 + $0xf0] sm:$0xff] %vm1579_vm6, %v1544_v48 }
 0x250   : > { %1882 = vrot.lane.b32.xlu0 %v1812_v38, %s7524_s21 }
 0x252   : > { %v1540_v35 = vpop.permute.xlu0 %1539  ;;  %1884 = vrot.lane.b32.xlu1 %v1813_v29, %s7524_s21  ;;  %v2006_v29 = vld [vmem:[#allocation2 + $0xb4] sm:$0xff] }
 0x253   : > { %1608 = vst.msk [vmem:[#allocation5 + $0xe0] sm:$0xff] %vm1579_vm6, %v1540_v35  ;;  %v2002_v35 = vld [vmem:[#allocation2 + $0x84] sm:$0xff] }
 0x254   : > { %1874 = vrot.lane.b32.xlu2 %v1808_v44, %s7524_s21  ;;  %v1542_v28 = vpop.permute.xlu1 %1541 }
 0x255   : > { %1609 = vst.msk [vmem:[#allocation5 + $0xe8] sm:$0xff] %vm1579_vm6, %v1542_v28 }
 0x256   : > { %v1680_v41 = vpop.permute.xlu2 %1679 }
 0x257   : > { %1775 = vst.msk [vmem:[#allocation5 + $0x8] sm:$0xff] %vm1773_vm7, %v1680_v41 }
 0x258   : > { %1888 = vrot.lane.b32.xlu0 %v1815_v49, %s7524_s21 }
 0x25a   : > { %v1546_v46 = vpop.permute.xlu0 %1545  ;;  %1890 = vrot.lane.b32.xlu1 %v1816_v53, %s7524_s21 }
 0x25b   : > { %1611 = vst.msk [vmem:[#allocation5 + $0xf8] sm:$0xff] %vm1579_vm6, %v1546_v46  ;;  %vm4237_vm6 = vcmask 589312  }
 0x25c   : > { %1880 = vrot.lane.b32.xlu2 %v1811_v17, %s7524_s21  ;;  %v1678_v43 = vpop.permute.xlu1 %1677  ;;  %v2007_v17 = vld [vmem:[#allocation2 + $0xc4] sm:$0xff] }
 0x25d   : > { %1774 = vst.msk [vmem:[#allocation5] sm:$0xff] %vm1773_vm7, %v1678_v43 }
 0x25e   : > { %v1686_v36 = vpop.permute.xlu2 %1685 }
 0x25f   : > { %1778 = vst.msk [vmem:[#allocation5 + $0x20] sm:$0xff] %vm1773_vm7, %v1686_v36  ;;  %v2005_v36 = vld [vmem:[#allocation2 + $0xac] sm:$0xff] }
 0x260   : > { %1894 = vrot.lane.b32.xlu0 %v1818_v40, %s7524_s21 }
 0x262   : > { %v1682_v51 = vpop.permute.xlu0 %1681  ;;  %1896 = vrot.lane.b32.xlu1 %v1819_v56, %s7524_s21 }
 0x263   : > { %1776 = vst.msk [vmem:[#allocation5 + $0x10] sm:$0xff] %vm1773_vm7, %v1682_v51 }
 0x264   : > { %1886 = vrot.lane.b32.xlu2 %v1814_v63, %s7524_s21  ;;  %v1684_v52 = vpop.permute.xlu1 %1683 }
 0x265   : > { %1777 = vst.msk [vmem:[#allocation5 + $0x18] sm:$0xff] %vm1773_vm7, %v1684_v52  ;;  %v2010_v52 = vld [vmem:[#allocation2 + $0xe4] sm:$0xff] }
 0x266   : > { %v1692_v55 = vpop.permute.xlu2 %1691 }
 0x267   : > { %1781 = vst.msk [vmem:[#allocation5 + $0x38] sm:$0xff] %vm1773_vm7, %v1692_v55 }
 0x268   : > { %1900 = vrot.lane.b32.xlu0 %v1821_v45, %s7524_s21  ;;  %v2009_v45 = vld [vmem:[#allocation2 + $0xdc] sm:$0xff] }
 0x26a   : > { %v1688_v50 = vpop.permute.xlu0 %1687  ;;  %1902 = vrot.lane.b32.xlu1 %v1822_v26, %s7524_s21 }
 0x26b   : > { %1779 = vst.msk [vmem:[#allocation5 + $0x28] sm:$0xff] %vm1773_vm7, %v1688_v50  ;;  %v2008_v50 = vld [vmem:[#allocation2 + $0xcc] sm:$0xff] }
 0x26c   : > { %1892 = vrot.lane.b32.xlu2 %v1817_v7, %s7524_s21  ;;  %v1690_v37 = vpop.permute.xlu1 %1689 }
 0x26d   : > { %1780 = vst.msk [vmem:[#allocation5 + $0x30] sm:$0xff] %vm1773_vm7, %v1690_v37 }
 0x26e   : > { %v1698_v8 = vpop.permute.xlu2 %1697 }
 0x26f   : > { %1784 = vst.msk [vmem:[#allocation5 + $0x50] sm:$0xff] %vm1773_vm7, %v1698_v8 }
 0x270   : > { %1906 = vrot.lane.b32.xlu0 %v1824_v13, %s7524_s21 }
 0x272   : > { %v1694_v20 = vpop.permute.xlu0 %1693  ;;  %1908 = vrot.lane.b32.xlu1 %v1825_v58, %s7524_s21  ;;  %v2012_v58 = vld [vmem:[#allocation2 + $0xfc] sm:$0xff] }
 0x273   : > { %1782 = vst.msk [vmem:[#allocation5 + $0x40] sm:$0xff] %vm1773_vm7, %v1694_v20 }
 0x274   : > { %1898 = vrot.lane.b32.xlu2 %v1820_v54, %s7524_s21  ;;  %v1696_v62 = vpop.permute.xlu1 %1695 }
 0x275   : > { %1783 = vst.msk [vmem:[#allocation5 + $0x48] sm:$0xff] %vm1773_vm7, %v1696_v62 }
 0x276   : > { %v1704_v11 = vpop.permute.xlu2 %1703 }
 0x277   : > { %1787 = vst.msk [vmem:[#allocation5 + $0x68] sm:$0xff] %vm1773_vm7, %v1704_v11 }
 0x278   : > { %1912 = vrot.lane.b32.xlu0 %v1827_v30, %s7524_s21 }
 0x27a   : > { %v1700_v57 = vpop.permute.xlu0 %1699  ;;  %1914 = vrot.lane.b32.xlu1 %v1828_v42, %s7524_s21 }
 0x27b   : > { %1785 = vst.msk [vmem:[#allocation5 + $0x58] sm:$0xff] %vm1773_vm7, %v1700_v57  ;;  %v2244_v57 = vld [vmem:[%s11495_s1 + $0x10] sm:$0x3] }
 0x27c   : > { %1904 = vrot.lane.b32.xlu2 %v1823_v16, %s7524_s21  ;;  %v1702_v25 = vpop.permute.xlu1 %1701  ;;  %v2013_v16 = vld [vmem:[#allocation2 + $0x10c] sm:$0xff] }
 0x27d   : > { %1786 = vst.msk [vmem:[#allocation5 + $0x60] sm:$0xff] %vm1773_vm7, %v1702_v25 }
 0x27e   : > { %v1710_v59 = vpop.permute.xlu2 %1709 }
 0x27f   : > { %1790 = vst.msk [vmem:[#allocation5 + $0x80] sm:$0xff] %vm1773_vm7, %v1710_v59  ;;  %v2258_v59 = vunpack.c.l.b16 %v2244_v57  ;;  %v11611_v57 = vmov 0.0  }
 0x280   : > { %1918 = vrot.lane.b32.xlu0 %v8338_v61, %s7524_s21  ;;  %v1829_v61 = vld [vmem:[#allocation2 + $0x172] sm:$0xff]  ;;  %404 = vst.msk [vmem:[#allocation3 + $0x30] sm:$0xff] %vm396_vm12, %v11611_v57 }
 0x281   : > { %405 = vst.msk [vmem:[#allocation3 + $0x38] sm:$0xff] %vm396_vm12, %v11611_v57 }
 0x282   : > { %v1706_v0 = vpop.permute.xlu0 %1705  ;;  %1920 = vrot.lane.b32.xlu1 %v8364_v47, %s7524_s21  ;;  %397 = vst.msk [vmem:[#allocation3] sm:$0xff] %vm396_vm12, %v11611_v57 }
 0x283   : > { %1788 = vst.msk [vmem:[#allocation5 + $0x70] sm:$0xff] %vm1773_vm7, %v1706_v0  ;;  %v2261_v0 = vpack.c.b16 %v2258_v59, %v2258_v59 }
 0x284   : > { %1910 = vrot.lane.b32.xlu2 %v1826_v24, %s7524_s21  ;;  %v1708_v60 = vpop.permute.xlu1 %1707  ;;  %398 = vst.msk [vmem:[#allocation3 + $0x8] sm:$0xff] %vm396_vm12, %v11611_v57 }
 0x285   : > { %1789 = vst.msk [vmem:[#allocation5 + $0x78] sm:$0xff] %vm1773_vm7, %v1708_v60  ;;  %v2315_v60 = vsel %vm2313_vm9, %v2261_v0, 0 }
 0x286   : > { %v1716_v4 = vpop.permute.xlu2 %1715  ;;  %2322 = vmatpush.bf16.msra.mxu0 %v2315_v60  ;;  %401 = vst.msk [vmem:[#allocation3 + $0x18] sm:$0xff] %vm396_vm12, %v11611_v57 }
 0x287   : > { %1793 = vst.msk [vmem:[#allocation5 + $0x98] sm:$0xff] %vm1773_vm7, %v1716_v4 }
 0x288   : > { %1924 = vrot.lane.b32.xlu0 %v8351_v9, %s7524_s21  ;;  %402 = vst.msk [vmem:[#allocation3 + $0x20] sm:$0xff] %vm396_vm12, %v11611_v57 }
 0x289   : > { %407 = vst.msk [vmem:[#allocation3 + $0x48] sm:$0xff] %vm396_vm12, %v11611_v57 }
 0x28a   : > { %v1712_v31 = vpop.permute.xlu0 %1711  ;;  %1926 = vrot.lane.b32.xlu1 %v1834_v14, %s7524_s21  ;;  %v7469_v14 = vld [vmem:[%s11495_s1 + $0x8] sm:$0xff]  ;;  %408 = vst.msk [vmem:[#allocation3 + $0x50] sm:$0xff] %vm396_vm12, %v11611_v57 }
 0x28b   : > { %1791 = vst.msk [vmem:[#allocation5 + $0x88] sm:$0xff] %vm1773_vm7, %v1712_v31  ;;  %2323 = vmatpush.bf16.msra.mxu0 %v7469_v14  ;;  %v2030_v14 = vld [vmem:[#allocation2 + $0x1d4] sm:$0xff] }
 0x28c   : > { %1916 = vrot.lane.b32.xlu2 %v1829_v61, %s7524_s21  ;;  %v1714_v47 = vpop.permute.xlu1 %1713  ;;  %v2011_v61 = vld [vmem:[#allocation2 + $0xf4] sm:$0xff]  ;;  %410 = vst.msk [vmem:[#allocation3 + $0x60] sm:$0xff] %vm396_vm12, %v11611_v57 }
 0x28d   : > { %1792 = vst.msk [vmem:[#allocation5 + $0x90] sm:$0xff] %vm1773_vm7, %v1714_v47  ;;  %v7468_v47 = vld [vmem:[%s11495_s1] sm:$0xff] }
 0x28e   : > { %v1722_v6 = vpop.permute.xlu2 %1721  ;;  %411 = vst.msk [vmem:[#allocation3 + $0x68] sm:$0xff] %vm396_vm12, %v11611_v57 }
 0x28f   : > { %1796 = vst.msk [vmem:[#allocation5 + $0xb0] sm:$0xff] %vm1773_vm7, %v1722_v6  ;;  %2324 = vmatpush.bf16.msra.mxu0 %v7468_v47 }
 0x290   : > { %1930 = vrot.lane.b32.xlu0 %v1836_v21, %s7524_s21  ;;  %413 = vst.msk [vmem:[#allocation3 + $0x78] sm:$0xff] %vm396_vm12, %v11611_v57 }
 0x291   : > { %414 = vst.msk [vmem:[#allocation3 + $0x80] sm:$0xff] %vm396_vm12, %v11611_v57 }
 0x292   : > { %v1718_v27 = vpop.permute.xlu0 %1717  ;;  %1932 = vrot.lane.b32.xlu1 %v1837_v5, %s7524_s21  ;;  %416 = vst.msk [vmem:[#allocation3 + $0x90] sm:$0xff] %vm396_vm12, %v11611_v57 }
 0x293   : > { %1794 = vst.msk [vmem:[#allocation5 + $0xa0] sm:$0xff] %vm1773_vm7, %v1718_v27  ;;  %v2016_v27 = vld [vmem:[#allocation2 + $0x12c] sm:$0xff] }
 0x294   : > { %1922 = vrot.lane.b32.xlu2 %v8347_v3, %s7524_s21  ;;  %v1720_v9 = vpop.permute.xlu1 %1719  ;;  %417 = vst.msk [vmem:[#allocation3 + $0x98] sm:$0xff] %vm396_vm12, %v11611_v57 }
 0x295   : > { %1795 = vst.msk [vmem:[#allocation5 + $0xa8] sm:$0xff] %vm1773_vm7, %v1720_v9  ;;  %v2015_v9 = vld [vmem:[#allocation2 + $0x124] sm:$0xff] }
 0x296   : > { %v1728_v1 = vpop.permute.xlu2 %1727  ;;  %419 = vst.msk [vmem:[#allocation3 + $0xa8] sm:$0xff] %vm396_vm12, %v11611_v57 }
 0x297   : > { %1799 = vst.msk [vmem:[#allocation5 + $0xc8] sm:$0xff] %vm1773_vm7, %v1728_v1 }
 0x298   : > { %2065 = vrot.lane.b32.xlu0 %v2000_v32, %s7525_s22  ;;  %v2014_v32 = vld [vmem:[#allocation2 + $0x114] sm:$0xff]  ;;  %420 = vst.msk [vmem:[#allocation3 + $0xb0] sm:$0xff] %vm396_vm12, %v11611_v57 }
 0x299   : > { %422 = vst.msk [vmem:[#allocation3 + $0xc0] sm:$0xff] %vm396_vm12, %v11611_v57 }
 0x29a   : > { %v1724_v33 = vpop.permute.xlu0 %1723  ;;  %2067 = vrot.lane.b32.xlu1 %v2001_v10, %s7525_s22  ;;  %423 = vst.msk [vmem:[#allocation3 + $0xc8] sm:$0xff] %vm396_vm12, %v11611_v57 }
 0x29b   : > { %1797 = vst.msk [vmem:[#allocation5 + $0xb8] sm:$0xff] %vm1773_vm7, %v1724_v33 }
 0x29c   : > { %1928 = vrot.lane.b32.xlu2 %v1835_v18, %s7524_s21  ;;  %v1726_v3 = vpop.permute.xlu1 %1725  ;;  %425 = vst.msk [vmem:[#allocation3 + $0xd8] sm:$0xff] %vm396_vm12, %v11611_v57  ;;  %s7527_s21 = smov 48  }
 0x29d   : > { %1798 = vst.msk [vmem:[#allocation5 + $0xc0] sm:$0xff] %vm1773_vm7, %v1726_v3 }
 0x29e   : > { %v1734_v19 = vpop.permute.xlu2 %1733  ;;  %426 = vst.msk [vmem:[#allocation3 + $0xe0] sm:$0xff] %vm396_vm12, %v11611_v57 }
 0x29f   : > { %1802 = vst.msk [vmem:[#allocation5 + $0xe0] sm:$0xff] %vm1773_vm7, %v1734_v19  ;;  %v2018_v19 = vld [vmem:[#allocation2 + $0x144] sm:$0xff] }
 0x2a0   : > { %2071 = vrot.lane.b32.xlu0 %v2003_v2, %s7525_s22  ;;  %428 = vst.msk [vmem:[#allocation3 + $0xf0] sm:$0xff] %vm396_vm12, %v11611_v57 }
 0x2a1   : > { %429 = vst.msk [vmem:[#allocation3 + $0xf8] sm:$0xff] %vm396_vm12, %v11611_v57 }
 0x2a2   : > { %v1730_v38 = vpop.permute.xlu0 %1729  ;;  %2073 = vrot.lane.b32.xlu1 %v2004_v12, %s7525_s22  ;;  %431 = vst.msk [vmem:[#allocation3 + $0x108] sm:$0xff] %vm396_vm12, %v11611_v57 }
 0x2a3   : > { %1800 = vst.msk [vmem:[#allocation5 + $0xd0] sm:$0xff] %vm1773_vm7, %v1730_v38 }
 0x2a4   : > { %2063 = vrot.lane.b32.xlu2 %v1999_v15, %s7525_s22  ;;  %v1732_v48 = vpop.permute.xlu1 %1731  ;;  %432 = vst.msk [vmem:[#allocation3 + $0x110] sm:$0xff] %vm396_vm12, %v11611_v57 }
 0x2a5   : > { %1801 = vst.msk [vmem:[#allocation5 + $0xd8] sm:$0xff] %vm1773_vm7, %v1732_v48 }
 0x2a6   : > { %v1740_v44 = vpop.permute.xlu2 %1739  ;;  %434 = vst.msk [vmem:[#allocation3 + $0x120] sm:$0xff] %vm396_vm12, %v11611_v57 }
 0x2a7   : > { %1805 = vst.msk [vmem:[#allocation5 + $0xf8] sm:$0xff] %vm1773_vm7, %v1740_v44 }
 0x2a8   : > { %2077 = vrot.lane.b32.xlu0 %v2006_v29, %s7525_s22  ;;  %435 = vst.msk [vmem:[#allocation3 + $0x128] sm:$0xff] %vm396_vm12, %v11611_v57 }
 0x2a9   : > { %437 = vst.msk [vmem:[#allocation3 + $0x138] sm:$0xff] %vm396_vm12, %v11611_v57 }
 0x2aa   : > { %v1736_v28 = vpop.permute.xlu0 %1735  ;;  %2079 = vrot.lane.b32.xlu1 %v2007_v17, %s7525_s22  ;;  %438 = vst.msk [vmem:[#allocation3 + $0x140] sm:$0xff] %vm396_vm12, %v11611_v57 }
 0x2ab   : > { %1803 = vst.msk [vmem:[#allocation5 + $0xe8] sm:$0xff] %vm1773_vm7, %v1736_v28 }
 0x2ac   : > { %v1738_v49 = vpop.permute.xlu1 %1737  ;;  %2069 = vrot.lane.b32.xlu2 %v2002_v35, %s7525_s22  ;;  %440 = vst.msk [vmem:[#allocation3 + $0x150] sm:$0xff] %vm396_vm12, %v11611_v57 }
 0x2ad   : > { %1804 = vst.msk [vmem:[#allocation5 + $0xf0] sm:$0xff] %vm1773_vm7, %v1738_v49  ;;  %v2019_v49 = vld [vmem:[#allocation2 + $0x154] sm:$0xff]  ;;  %vm4354_vm7 = vcmask 588800  }
 0x2ae   : > { %v1875_v41 = vpop.permute.xlu2 %1874  ;;  %441 = vst.msk [vmem:[#allocation3 + $0x158] sm:$0xff] %vm396_vm12, %v11611_v57 }
 0x2af   : > { %1969 = vst.msk [vmem:[#allocation5 + $0x10] sm:$0xff] %vm1966_vm8, %v1875_v41  ;;  %v2017_v41 = vld [vmem:[#allocation2 + $0x13c] sm:$0xff] }
 0x2b0   : > { %2083 = vrot.lane.b32.xlu0 %v2009_v45, %s7525_s22  ;;  %443 = vst.msk [vmem:[#allocation3 + $0x168] sm:$0xff] %vm396_vm12, %v11611_v57 }
 0x2b1   : > { %444 = vst.msk [vmem:[#allocation3 + $0x170] sm:$0xff] %vm396_vm12, %v11611_v57 }
 0x2b2   : > { %v1871_v53 = vpop.permute.xlu0 %1870  ;;  %2085 = vrot.lane.b32.xlu1 %v2010_v52, %s7525_s22  ;;  %446 = vst.msk [vmem:[#allocation3 + $0x180] sm:$0xff] %vm396_vm12, %v11611_v57 }
 0x2b3   : > { %1967 = vst.msk [vmem:[#allocation5] sm:$0xff] %vm1966_vm8, %v1871_v53 }
 0x2b4   : > { %v1873_v46 = vpop.permute.xlu1 %1872  ;;  %2075 = vrot.lane.b32.xlu2 %v2005_v36, %s7525_s22  ;;  %v2022_v36 = vld [vmem:[#allocation2 + $0x174] sm:$0xff]  ;;  %447 = vst.msk [vmem:[#allocation3 + $0x188] sm:$0xff] %vm396_vm12, %v11611_v57 }
 0x2b5   : > { %1968 = vst.msk [vmem:[#allocation5 + $0x8] sm:$0xff] %vm1966_vm8, %v1873_v46 }
 0x2b6   : > { %v1881_v43 = vpop.permute.xlu2 %1880  ;;  %449 = vst.msk [vmem:[#allocation3 + $0x198] sm:$0xff] %vm396_vm12, %v11611_v57 }
 0x2b7   : > { %1972 = vst.msk [vmem:[#allocation5 + $0x28] sm:$0xff] %vm1966_vm8, %v1881_v43 }
 0x2b8   : > { %2089 = vrot.lane.b32.xlu0 %v2012_v58, %s7525_s22  ;;  %450 = vst.msk [vmem:[#allocation3 + $0x1a0] sm:$0xff] %vm396_vm12, %v11611_v57 }
 0x2b9   : > { %452 = vst.msk [vmem:[#allocation3 + $0x1b0] sm:$0xff] %vm396_vm12, %v11611_v57 }
 0x2ba   : > { %v1877_v40 = vpop.permute.xlu0 %1876  ;;  %2091 = vrot.lane.b32.xlu1 %v2013_v16, %s7525_s22  ;;  %v2029_v16 = vld [vmem:[#allocation2 + $0x1cc] sm:$0xff]  ;;  %453 = vst.msk [vmem:[#allocation3 + $0x1b8] sm:$0xff] %vm396_vm12, %v11611_v57 }
 0x2bb   : > { %1970 = vst.msk [vmem:[#allocation5 + $0x18] sm:$0xff] %vm1966_vm8, %v1877_v40 }
 0x2bc   : > { %v1879_v56 = vpop.permute.xlu1 %1878  ;;  %2081 = vrot.lane.b32.xlu2 %v2008_v50, %s7525_s22  ;;  %455 = vst.msk [vmem:[#allocation3 + $0x1c8] sm:$0xff] %vm396_vm12, %v11611_v57 }
 0x2bd   : > { %1971 = vst.msk [vmem:[#allocation5 + $0x20] sm:$0xff] %vm1966_vm8, %v1879_v56  ;;  %v2021_v56 = vld [vmem:[#allocation2 + $0x16c] sm:$0xff] }
 0x2be   : > { %v1887_v63 = vpop.permute.xlu2 %1886  ;;  %456 = vst.msk [vmem:[#allocation3 + $0x1d0] sm:$0xff] %vm396_vm12, %v11611_v57 }
 0x2bf   : > { %1975 = vst.msk [vmem:[#allocation5 + $0x40] sm:$0xff] %vm1966_vm8, %v1887_v63  ;;  %v2020_v63 = vld [vmem:[#allocation2 + $0x15c] sm:$0xff] }
 0x2c0   : > { %2095 = vrot.lane.b32.xlu0 %v2015_v9, %s7525_s22  ;;  %458 = vst.msk [vmem:[#allocation4] sm:$0xff] %vm396_vm12, %v11611_v57 }
 0x2c1   : > { %459 = vst.msk [vmem:[#allocation4 + $0x8] sm:$0xff] %vm396_vm12, %v11611_v57 }
 0x2c2   : > { %v1883_v51 = vpop.permute.xlu0 %1882  ;;  %2097 = vrot.lane.b32.xlu1 %v2016_v27, %s7525_s22  ;;  %461 = vst.msk [vmem:[#allocation4 + $0x18] sm:$0xff] %vm396_vm12, %v11611_v57 }
 0x2c3   : > { %1973 = vst.msk [vmem:[#allocation5 + $0x30] sm:$0xff] %vm1966_vm8, %v1883_v51 }
 0x2c4   : > { %v1885_v55 = vpop.permute.xlu1 %1884  ;;  %2087 = vrot.lane.b32.xlu2 %v2011_v61, %s7525_s22  ;;  %462 = vst.msk [vmem:[#allocation4 + $0x20] sm:$0xff] %vm396_vm12, %v11611_v57 }
 0x2c5   : > { %1974 = vst.msk [vmem:[#allocation5 + $0x38] sm:$0xff] %vm1966_vm8, %v1885_v55 }
 0x2c6   : > { %v1893_v26 = vpop.permute.xlu2 %1892  ;;  %464 = vst.msk [vmem:[#allocation4 + $0x30] sm:$0xff] %vm396_vm12, %v11611_v57 }
 0x2c7   : > { %1978 = vst.msk [vmem:[#allocation5 + $0x58] sm:$0xff] %vm1966_vm8, %v1893_v26 }
 0x2c8   : > { %2101 = vrot.lane.b32.xlu0 %v2018_v19, %s7525_s22  ;;  %465 = vst.msk [vmem:[#allocation4 + $0x38] sm:$0xff] %vm396_vm12, %v11611_v57 }
 0x2c9   : > { %467 = vst.msk [vmem:[#allocation4 + $0x48] sm:$0xff] %vm396_vm12, %v11611_v57 }
 0x2ca   : > { %v1889_v7 = vpop.permute.xlu0 %1888  ;;  %2103 = vrot.lane.b32.xlu1 %v2019_v49, %s7525_s22  ;;  %468 = vst.msk [vmem:[#allocation4 + $0x50] sm:$0xff] %vm396_vm12, %v11611_v57 }
 0x2cb   : > { %1976 = vst.msk [vmem:[#allocation5 + $0x48] sm:$0xff] %vm1966_vm8, %v1889_v7 }
 0x2cc   : > { %v1891_v37 = vpop.permute.xlu1 %1890  ;;  %2093 = vrot.lane.b32.xlu2 %v2014_v32, %s7525_s22  ;;  %470 = vst.msk [vmem:[#allocation4 + $0x60] sm:$0xff] %vm396_vm12, %v11611_v57 }
 0x2cd   : > { %1977 = vst.msk [vmem:[#allocation5 + $0x50] sm:$0xff] %vm1966_vm8, %v1891_v37 }
 0x2ce   : > { %v1899_v13 = vpop.permute.xlu2 %1898  ;;  %471 = vst.msk [vmem:[#allocation4 + $0x68] sm:$0xff] %vm396_vm12, %v11611_v57 }
 0x2cf   : > { %1981 = vst.msk [vmem:[#allocation5 + $0x70] sm:$0xff] %vm1966_vm8, %v1899_v13 }
 0x2d0   : > { %2107 = vrot.lane.b32.xlu0 %v2021_v56, %s7525_s22  ;;  %473 = vst.msk [vmem:[#allocation4 + $0x78] sm:$0xff] %vm396_vm12, %v11611_v57 }
 0x2d1   : > { %474 = vst.msk [vmem:[#allocation4 + $0x80] sm:$0xff] %vm396_vm12, %v11611_v57 }
 0x2d2   : > { %v1895_v8 = vpop.permute.xlu0 %1894  ;;  %2109 = vrot.lane.b32.xlu1 %v2022_v36, %s7525_s22  ;;  %476 = vst.msk [vmem:[#allocation4 + $0x90] sm:$0xff] %vm396_vm12, %v11611_v57 }
 0x2d3   : > { %1979 = vst.msk [vmem:[#allocation5 + $0x60] sm:$0xff] %vm1966_vm8, %v1895_v8 }
 0x2d4   : > { %v1897_v54 = vpop.permute.xlu1 %1896  ;;  %2099 = vrot.lane.b32.xlu2 %v2017_v41, %s7525_s22  ;;  %477 = vst.msk [vmem:[#allocation4 + $0x98] sm:$0xff] %vm396_vm12, %v11611_v57 }
 0x2d5   : > { %1980 = vst.msk [vmem:[#allocation5 + $0x68] sm:$0xff] %vm1966_vm8, %v1897_v54 }
 0x2d6   : > { %v1905_v20 = vpop.permute.xlu2 %1904  ;;  %479 = vst.msk [vmem:[#allocation4 + $0xa8] sm:$0xff] %vm396_vm12, %v11611_v57 }
 0x2d7   : > { %1984 = vst.msk [vmem:[#allocation5 + $0x88] sm:$0xff] %vm1966_vm8, %v1905_v20 }
 0x2d8   : > { %2113 = vrot.lane.b32.xlu0 %v8447_v39, %s7525_s22  ;;  %480 = vst.msk [vmem:[#allocation4 + $0xb0] sm:$0xff] %vm396_vm12, %v11611_v57 }
 0x2d9   : > { %482 = vst.msk [vmem:[#allocation4 + $0xc0] sm:$0xff] %vm396_vm12, %v11611_v57 }
 0x2da   : > { %v1901_v62 = vpop.permute.xlu0 %1900  ;;  %2115 = vrot.lane.b32.xlu1 %v8471_v34, %s7525_s22  ;;  %483 = vst.msk [vmem:[#allocation4 + $0xc8] sm:$0xff] %vm396_vm12, %v11611_v57 }
 0x2db   : > { %1982 = vst.msk [vmem:[#allocation5 + $0x78] sm:$0xff] %vm1966_vm8, %v1901_v62 }
 0x2dc   : > { %v1903_v30 = vpop.permute.xlu1 %1902  ;;  %2105 = vrot.lane.b32.xlu2 %v2020_v63, %s7525_s22  ;;  %485 = vst.msk [vmem:[#allocation4 + $0xd8] sm:$0xff] %vm396_vm12, %v11611_v57 }
 0x2dd   : > { %1983 = vst.msk [vmem:[#allocation5 + $0x80] sm:$0xff] %vm1966_vm8, %v1903_v30 }
 0x2de   : > { %v1911_v11 = vpop.permute.xlu2 %1910  ;;  %486 = vst.msk [vmem:[#allocation4 + $0xe0] sm:$0xff] %vm396_vm12, %v11611_v57 }
 0x2df   : > { %1987 = vst.msk [vmem:[#allocation5 + $0xa0] sm:$0xff] %vm1966_vm8, %v1911_v11 }
 0x2e0   : > { %488 = vst.msk [vmem:[#allocation4 + $0xf0] sm:$0xff] %vm396_vm12, %v11611_v57 }
 0x2e1   : > { %489 = vst.msk [vmem:[#allocation4 + $0xf8] sm:$0xff] %vm396_vm12, %v11611_v57 }
 0x2e2   : > { %v1907_v42 = vpop.permute.xlu0 %1906  ;;  %491 = vst.msk [vmem:[#allocation4 + $0x108] sm:$0xff] %vm396_vm12, %v11611_v57 }
 0x2e3   : > { %1985 = vst.msk [vmem:[#allocation5 + $0x90] sm:$0xff] %vm1966_vm8, %v1907_v42  ;;  %v2027_v42 = vld [vmem:[#allocation2 + $0x1b4] sm:$0xff] }
 0x2e4   : > { %v1909_v25 = vpop.permute.xlu1 %1908  ;;  %2111 = vrot.lane.b32.xlu2 %v8443_v23, %s7525_s22  ;;  %2119 = vrot.lane.b32.xlu0 %v2027_v42, %s7525_s22  ;;  %492 = vst.msk [vmem:[#allocation4 + $0x110] sm:$0xff] %vm396_vm12, %v11611_v57 }
 0x2e5   : > { %1986 = vst.msk [vmem:[#allocation5 + $0x98] sm:$0xff] %vm1966_vm8, %v1909_v25 }
 0x2e6   : > { %v1917_v24 = vpop.permute.xlu2 %1916  ;;  %494 = vst.msk [vmem:[#allocation4 + $0x120] sm:$0xff] %vm396_vm12, %v11611_v57 }
 0x2e7   : > { %1990 = vst.msk [vmem:[#allocation5 + $0xb8] sm:$0xff] %vm1966_vm8, %v1917_v24 }
 0x2e8   : > { %495 = vst.msk [vmem:[#allocation4 + $0x128] sm:$0xff] %vm396_vm12, %v11611_v57 }
 0x2e9   : > { %497 = vst.msk [vmem:[#allocation4 + $0x138] sm:$0xff] %vm396_vm12, %v11611_v57 }
 0x2ea   : > { %v1913_v4 = vpop.permute.xlu0 %1912  ;;  %498 = vst.msk [vmem:[#allocation4 + $0x140] sm:$0xff] %vm396_vm12, %v11611_v57 }
 0x2eb   : > { %1988 = vst.msk [vmem:[#allocation5 + $0xa8] sm:$0xff] %vm1966_vm8, %v1913_v4  ;;  %v2028_v4 = vld [vmem:[#allocation2 + $0x1bc] sm:$0xff] }
 0x2ec   : > { %v1915_v31 = vpop.permute.xlu1 %1914  ;;  %2117 = vrot.lane.b32.xlu2 %v8456_v22, %s7525_s22  ;;  %2121 = vrot.lane.b32.xlu1 %v2028_v4, %s7525_s22  ;;  %500 = vst.msk [vmem:[#allocation4 + $0x150] sm:$0xff] %vm396_vm12, %v11611_v57 }
 0x2ed   : > { %1989 = vst.msk [vmem:[#allocation5 + $0xb0] sm:$0xff] %vm1966_vm8, %v1915_v31  ;;  %2125 = vrot.lane.b32.xlu0 %v2030_v14, %s7525_s22 }
 0x2ee   : > { %v1923_v21 = vpop.permute.xlu2 %1922  ;;  %501 = vst.msk [vmem:[#allocation4 + $0x158] sm:$0xff] %vm396_vm12, %v11611_v57 }
 0x2ef   : > { %1993 = vst.msk [vmem:[#allocation5 + $0xd0] sm:$0xff] %vm1966_vm8, %v1923_v21 }
 0x2f0   : > { %503 = vst.msk [vmem:[#allocation4 + $0x168] sm:$0xff] %vm396_vm12, %v11611_v57 }
 0x2f1   : > { %504 = vst.msk [vmem:[#allocation4 + $0x170] sm:$0xff] %vm396_vm12, %v11611_v57 }
 0x2f2   : > { %v1919_v6 = vpop.permute.xlu0 %1918  ;;  %506 = vst.msk [vmem:[#allocation4 + $0x180] sm:$0xff] %vm396_vm12, %v11611_v57 }
 0x2f3   : > { %1991 = vst.msk [vmem:[#allocation5 + $0xc0] sm:$0xff] %vm1966_vm8, %v1919_v6 }
 0x2f4   : > { %v1921_v5 = vpop.permute.xlu1 %1920  ;;  %2123 = vrot.lane.b32.xlu2 %v2029_v16, %s7525_s22  ;;  %507 = vst.msk [vmem:[#allocation4 + $0x188] sm:$0xff] %vm396_vm12, %v11611_v57 }
 0x2f5   : > { %1992 = vst.msk [vmem:[#allocation5 + $0xc8] sm:$0xff] %vm1966_vm8, %v1921_v5  ;;  %v8817_v5 = vld [vmem:[%s11496_s2] ss:$0 sm:$0xff] }
 0x2f6   : > { %v1929_v1 = vpop.permute.xlu2 %1928  ;;  %509 = vst.msk [vmem:[#allocation4 + $0x198] sm:$0xff] %vm396_vm12, %v11611_v57 }
 0x2f7   : > { %1996 = vst.msk [vmem:[#allocation5 + $0xe8] sm:$0xff] %vm1966_vm8, %v1929_v1 }
 0x2f8   : > { %510 = vst.msk [vmem:[#allocation4 + $0x1a0] sm:$0xff] %vm396_vm12, %v11611_v57 }
 0x2f9   : > { %512 = vst.msk [vmem:[#allocation4 + $0x1b0] sm:$0xff] %vm396_vm12, %v11611_v57 }
 0x2fa   : > { %v1925_v10 = vpop.permute.xlu0 %1924  ;;  %513 = vst.msk [vmem:[#allocation4 + $0x1b8] sm:$0xff] %vm396_vm12, %v11611_v57 }
 0x2fb   : > { %1994 = vst.msk [vmem:[#allocation5 + $0xd8] sm:$0xff] %vm1966_vm8, %v1925_v10 }
 0x2fc   : > { %v1927_v18 = vpop.permute.xlu1 %1926  ;;  %515 = vst.msk [vmem:[#allocation4 + $0x1c8] sm:$0xff] %vm396_vm12, %v11611_v57 }
 0x2fd   : > { %1995 = vst.msk [vmem:[#allocation5 + $0xe0] sm:$0xff] %vm1966_vm8, %v1927_v18 }
 0x2fe   : > { %v2064_v33 = vpop.permute.xlu2 %2063  ;;  %516 = vst.msk [vmem:[#allocation4 + $0x1d0] sm:$0xff] %vm396_vm12, %v11611_v57 }
 0x2ff   : > { %2160 = vst.msk [vmem:[#allocation5] sm:$0xff] %vm2159_vm10, %v2064_v33 }
 0x300   : > { %400 = vst.msk [vmem:[#allocation3 + $0x10] sm:$0xf] %vm399_vm13, %v11611_v57 }
 0x301   : > { %403 = vst.msk [vmem:[#allocation3 + $0x28] sm:$0xf] %vm399_vm13, %v11611_v57 }
 0x302   : > { %v1931_v3 = vpop.permute.xlu0 %1930  ;;  %406 = vst.msk [vmem:[#allocation3 + $0x40] sm:$0xf] %vm399_vm13, %v11611_v57 }
 0x303   : > { %1997 = vst.msk [vmem:[#allocation5 + $0xf0] sm:$0xff] %vm1966_vm8, %v1931_v3 }
 0x304   : > { %v1933_v2 = vpop.permute.xlu1 %1932  ;;  %409 = vst.msk [vmem:[#allocation3 + $0x58] sm:$0xf] %vm399_vm13, %v11611_v57 }
 0x305   : > { %1998 = vst.msk [vmem:[#allocation5 + $0xf8] sm:$0xff] %vm1966_vm8, %v1933_v2  ;;  %v2487_v2 = vld [vmem:[%s11497_s3] sm:$0xf] }
 0x306   : > { %v2070_v12 = vpop.permute.xlu2 %2069  ;;  %v2192_v48 = vld [vmem:[#allocation5] sm:$0xff]  ;;  %412 = vst.msk [vmem:[#allocation3 + $0x70] sm:$0xf] %vm399_vm13, %v11611_v57  ;;  %v2538_v19 = vsel %vm2536_vm14, %v2487_v2, 0 }
 0x307   : > { %2163 = vst.msk [vmem:[#allocation5 + $0x18] sm:$0xff] %vm2159_vm10, %v2070_v12  ;;  %v2726_v10 = vld [vmem:[#allocation3 + $0xa] sm:$0xff]  ;;  %v2725_v12 = vld [vmem:[#allocation3 + $0x2] sm:$0xff]  ;;  %2547 = vmatpush.bf16.msra.mxu1 %v2538_v19 }
 0x308   : > { %415 = vst.msk [vmem:[#allocation3 + $0x88] sm:$0xf] %vm399_vm13, %v11611_v57  ;;  %2791 = vrot.lane.b32.xlu2 %v2726_v10, %s7519_s16  ;;  %2789 = vrot.lane.b32.xlu1 %v2725_v12, %s7519_s16 }
 0x309   : > { %418 = vst.msk [vmem:[#allocation3 + $0xa0] sm:$0xf] %vm399_vm13, %v11611_v57 }
 0x30a   : > { %v2066_v15 = vpop.permute.xlu0 %2065  ;;  %421 = vst.msk [vmem:[#allocation3 + $0xb8] sm:$0xf] %vm399_vm13, %v11611_v57 }
 0x30b   : > { %2161 = vst.msk [vmem:[#allocation5 + $0x8] sm:$0xff] %vm2159_vm10, %v2066_v15  ;;  %v2727_v15 = vld [vmem:[#allocation3 + $0x1a] sm:$0xff] }
 0x30c   : > { %v2068_v38 = vpop.permute.xlu1 %2067  ;;  %424 = vst.msk [vmem:[#allocation3 + $0xd0] sm:$0xf] %vm399_vm13, %v11611_v57  ;;  %2793 = vrot.lane.b32.xlu0 %v2727_v15, %s7519_s16 }
 0x30d   : > { %2162 = vst.msk [vmem:[#allocation5 + $0x10] sm:$0xff] %vm2159_vm10, %v2068_v38 }
 0x30e   : > { %v2076_v53 = vpop.permute.xlu2 %2075  ;;  %v2195_v43 = vld [vmem:[#allocation5 + $0x18] sm:$0xff]  ;;  %427 = vst.msk [vmem:[#allocation3 + $0xe8] sm:$0xf] %vm399_vm13, %v11611_v57 }
 0x30f   : > { %2166 = vst.msk [vmem:[#allocation5 + $0x30] sm:$0xff] %vm2159_vm10, %v2076_v53 }
 0x310   : > { %430 = vst.msk [vmem:[#allocation3 + $0x100] sm:$0xf] %vm399_vm13, %v11611_v57 }
 0x311   : > { %433 = vst.msk [vmem:[#allocation3 + $0x118] sm:$0xf] %vm399_vm13, %v11611_v57 }
 0x312   : > { %v2193_v29 = vld [vmem:[#allocation5 + $0x8] sm:$0xff]  ;;  %v2072_v44 = vpop.permute.xlu0 %2071  ;;  %436 = vst.msk [vmem:[#allocation3 + $0x130] sm:$0xf] %vm399_vm13, %v11611_v57 }
 0x313   : > { %v2224_v35 = vpack.c.bf16 %v2193_v29, %v2192_v48  ;;  %2164 = vst.msk [vmem:[#allocation5 + $0x20] sm:$0xff] %vm2159_vm10, %v2072_v44  ;;  %v2728_v44 = vld [vmem:[#allocation3 + $0x22] sm:$0xff] }
 0x314   : > { %v2074_v28 = vpop.permute.xlu1 %2073  ;;  %v2194_v46 = vld [vmem:[#allocation5 + $0x10] sm:$0xff]  ;;  %439 = vst.msk [vmem:[#allocation3 + $0x148] sm:$0xf] %vm399_vm13, %v11611_v57  ;;  %2795 = vrot.lane.b32.xlu1 %v2728_v44, %s7519_s16 }
 0x315   : > { %7286 = vmatmul.msk.bf16.vlgmr.msra.gmra.mxu0 %vm2264_vm11, %v2224_v35  ;;  %2165 = vst.msk [vmem:[#allocation5 + $0x28] sm:$0xff] %vm2159_vm10, %v2074_v28  ;;  %v2225_v40 = vpack.c.bf16 %v2195_v43, %v2194_v46 }
 0x316   : > { %v2082_v52 = vpop.permute.xlu2 %2081  ;;  %v2198_v37 = vld [vmem:[#allocation5 + $0x30] sm:$0xff]  ;;  %442 = vst.msk [vmem:[#allocation3 + $0x160] sm:$0xf] %vm399_vm13, %v11611_v57 }
 0x317   : > { %2169 = vst.msk [vmem:[#allocation5 + $0x48] sm:$0xff] %vm2159_vm10, %v2082_v52 }
 0x318   : > { %445 = vst.msk [vmem:[#allocation3 + $0x178] sm:$0xf] %vm399_vm13, %v11611_v57 }
 0x319   : > { %448 = vst.msk [vmem:[#allocation3 + $0x190] sm:$0xf] %vm399_vm13, %v11611_v57 }
 0x31a   : > { %v2078_v17 = vpop.permute.xlu0 %2077  ;;  %v2196_v45 = vld [vmem:[#allocation5 + $0x20] sm:$0xff]  ;;  %451 = vst.msk [vmem:[#allocation3 + $0x1a8] sm:$0xf] %vm399_vm13, %v11611_v57 }
 0x31b   : > { %2167 = vst.msk [vmem:[#allocation5 + $0x38] sm:$0xff] %vm2159_vm10, %v2078_v17 }
 0x31c   : > { %v2080_v51 = vpop.permute.xlu1 %2079  ;;  %v2197_v55 = vld [vmem:[#allocation5 + $0x28] sm:$0xff]  ;;  %454 = vst.msk [vmem:[#allocation3 + $0x1c0] sm:$0xf] %vm399_vm13, %v11611_v57 }
 0x31d   : > { %2168 = vst.msk [vmem:[#allocation5 + $0x40] sm:$0xff] %vm2159_vm10, %v2080_v51  ;;  %v2226_v26 = vpack.c.bf16 %v2197_v55, %v2196_v45 }
 0x31e   : > { %v2088_v8 = vpop.permute.xlu2 %2087  ;;  %v2201_v58 = vld [vmem:[#allocation5 + $0x48] sm:$0xff]  ;;  %457 = vst.msk [vmem:[#allocation3 + $0x1d8] sm:$0xf] %vm399_vm13, %v11611_v57 }
 0x31f   : > { %2172 = vst.msk [vmem:[#allocation5 + $0x60] sm:$0xff] %vm2159_vm10, %v2088_v8 }
 0x320   : > { %460 = vst.msk [vmem:[#allocation4 + $0x10] sm:$0xf] %vm399_vm13, %v11611_v57 }
 0x321   : > { %463 = vst.msk [vmem:[#allocation4 + $0x28] sm:$0xf] %vm399_vm13, %v11611_v57 }
 0x322   : > { %v2084_v50 = vpop.permute.xlu0 %2083  ;;  %v2199_v39 = vld [vmem:[#allocation5 + $0x38] sm:$0xff]  ;;  %466 = vst.msk [vmem:[#allocation4 + $0x40] sm:$0xf] %vm399_vm13, %v11611_v57 }
 0x323   : > { %2170 = vst.msk [vmem:[#allocation5 + $0x50] sm:$0xff] %vm2159_vm10, %v2084_v50  ;;  %v2227_v13 = vpack.c.bf16 %v2199_v39, %v2198_v37 }
 0x324   : > { %v2086_v7 = vpop.permute.xlu1 %2085  ;;  %v2200_v23 = vld [vmem:[#allocation5 + $0x40] sm:$0xff]  ;;  %469 = vst.msk [vmem:[#allocation4 + $0x58] sm:$0xf] %vm399_vm13, %v11611_v57 }
 0x325   : > { %7287 = vmatmul.msk.bf16.gmra.mxu0 %vm2264_vm11, %v2225_v40  ;;  %2171 = vst.msk [vmem:[#allocation5 + $0x58] sm:$0xff] %vm2159_vm10, %v2086_v7  ;;  %v2228_v54 = vpack.c.bf16 %v2201_v58, %v2200_v23 }
 0x326   : > { %v2094_v20 = vpop.permute.xlu2 %2093  ;;  %v2204_v24 = vld [vmem:[#allocation5 + $0x60] sm:$0xff]  ;;  %472 = vst.msk [vmem:[#allocation4 + $0x70] sm:$0xf] %vm399_vm13, %v11611_v57 }
 0x327   : > { %2175 = vst.msk [vmem:[#allocation5 + $0x78] sm:$0xff] %vm2159_vm10, %v2094_v20 }
 0x328   : > { %475 = vst.msk [vmem:[#allocation4 + $0x88] sm:$0xf] %vm399_vm13, %v11611_v57 }
 0x329   : > { %478 = vst.msk [vmem:[#allocation4 + $0xa0] sm:$0xf] %vm399_vm13, %v11611_v57 }
 0x32a   : > { %v2090_v34 = vpop.permute.xlu0 %2089  ;;  %v2202_v62 = vld [vmem:[#allocation5 + $0x50] sm:$0xff]  ;;  %481 = vst.msk [vmem:[#allocation4 + $0xb8] sm:$0xf] %vm399_vm13, %v11611_v57 }
 0x32b   : > { %2173 = vst.msk [vmem:[#allocation5 + $0x68] sm:$0xff] %vm2159_vm10, %v2090_v34 }
 0x32c   : > { %v2092_v22 = vpop.permute.xlu1 %2091  ;;  %v2203_v30 = vld [vmem:[#allocation5 + $0x58] sm:$0xff]  ;;  %484 = vst.msk [vmem:[#allocation4 + $0xd0] sm:$0xf] %vm399_vm13, %v11611_v57 }
 0x32d   : > { %2174 = vst.msk [vmem:[#allocation5 + $0x70] sm:$0xff] %vm2159_vm10, %v2092_v22  ;;  %v2229_v11 = vpack.c.bf16 %v2203_v30, %v2202_v62 }
 0x32e   : > { %v2207_v31 = vld [vmem:[#allocation5 + $0x78] sm:$0xff]  ;;  %487 = vst.msk [vmem:[#allocation4 + $0xe8] sm:$0xf] %vm399_vm13, %v11611_v57  ;;  %v2100_v43 = vpop.permute.xlu2 %2099 }
 0x32f   : > { %490 = vst.msk [vmem:[#allocation4 + $0x100] sm:$0xf] %vm399_vm13, %v11611_v57 }
 0x330   : > { %493 = vst.msk [vmem:[#allocation4 + $0x118] sm:$0xf] %vm399_vm13, %v11611_v57 }
 0x331   : > { %496 = vst.msk [vmem:[#allocation4 + $0x130] sm:$0xf] %vm399_vm13, %v11611_v57 }
 0x332   : > { %v2096_v59 = vpop.permute.xlu0 %2095  ;;  %v2205_v0 = vld [vmem:[#allocation5 + $0x68] sm:$0xff]  ;;  %499 = vst.msk [vmem:[#allocation4 + $0x148] sm:$0xf] %vm399_vm13, %v11611_v57 }
 0x333   : > { %2176 = vst.msk [vmem:[#allocation5 + $0x80] sm:$0xff] %vm2159_vm10, %v2096_v59  ;;  %v2230_v60 = vpack.c.bf16 %v2205_v0, %v2204_v24 }
 0x334   : > { %v2098_v25 = vpop.permute.xlu1 %2097  ;;  %v2206_v61 = vld [vmem:[#allocation5 + $0x70] sm:$0xff]  ;;  %502 = vst.msk [vmem:[#allocation4 + $0x160] sm:$0xf] %vm399_vm13, %v11611_v57 }
 0x335   : > { %7288 = vmatmul.msk.bf16.gmra.mxu0 %vm2264_vm11, %v2226_v26  ;;  %2177 = vst.msk [vmem:[#allocation5 + $0x88] sm:$0xff] %vm2159_vm10, %v2098_v25  ;;  %v2231_v47 = vpack.c.bf16 %v2207_v31, %v2206_v61 }
 0x336   : > { %505 = vst.msk [vmem:[#allocation4 + $0x178] sm:$0xf] %vm399_vm13, %v11611_v57  ;;  %v2106_v55 = vpop.permute.xlu2 %2105 }
 0x337   : > { %508 = vst.msk [vmem:[#allocation4 + $0x190] sm:$0xf] %vm399_vm13, %v11611_v57 }
 0x338   : > { %511 = vst.msk [vmem:[#allocation4 + $0x1a8] sm:$0xf] %vm399_vm13, %v11611_v57 }
 0x339   : > { %514 = vst.msk [vmem:[#allocation4 + $0x1c0] sm:$0xf] %vm399_vm13, %v11611_v57 }
 0x33a   : > { %v2208_v21 = vld [vmem:[#allocation5 + $0x80] sm:$0xff]  ;;  %v2102_v40 = vpop.permute.xlu0 %2101  ;;  %517 = vst.msk [vmem:[#allocation4 + $0x1d8] sm:$0xf] %vm399_vm13, %v11611_v57 }
 0x33b   : > { %2179 = vst.msk [vmem:[#allocation5 + $0x98] sm:$0xff] %vm2159_vm10, %v2102_v40 }
 0x33c   : > { %v2209_v6 = vld [vmem:[#allocation5 + $0x88] sm:$0xff]  ;;  %v2104_v36 = vpop.permute.xlu1 %2103  ;;  %2178 = vst.msk [vmem:[#allocation5 + $0x90] sm:$0xff] %vm2159_vm10, %v2100_v43 }
 0x33d   : > { %v2232_v27 = vpack.c.bf16 %v2209_v6, %v2208_v21  ;;  %2180 = vst.msk [vmem:[#allocation5 + $0xa0] sm:$0xff] %vm2159_vm10, %v2104_v36  ;;  %v2662_v36 = vld [vmem:[#allocation3 + $0x8] sm:$0xff] }
 0x33e   : > { %2181 = vst.msk [vmem:[#allocation5 + $0xa8] sm:$0xff] %vm2159_vm10, %v2106_v55  ;;  %v2112_v30 = vpop.permute.xlu2 %2111 }
 0x33f   : > { %2184 = vst.msk [vmem:[#allocation5 + $0xc0] sm:$0xff] %vm2159_vm10, %v2112_v30 }
 0x340   : > { %2694 = vst.msk [vmem:[#allocation6 + $0x8] sm:$0xff] %vm396_vm12, %v2662_v36 }
 0x342   : > { %v2108_v26 = vpop.permute.xlu0 %2107  ;;  %v2211_v37 = vld [vmem:[#allocation5 + $0x98] sm:$0xff] }
 0x343   : > { %v2210_v23 = vld [vmem:[#allocation5 + $0x90] sm:$0xff]  ;;  %2182 = vst.msk [vmem:[#allocation5 + $0xb0] sm:$0xff] %vm2159_vm10, %v2108_v26 }
 0x344   : > { %v2110_v50 = vpop.permute.xlu1 %2109  ;;  %v2233_v58 = vpack.c.bf16 %v2211_v37, %v2210_v23  ;;  %v2212_v31 = vld [vmem:[#allocation5 + $0xa0] sm:$0xff] }
 0x345   : > { %7289 = vmatmul.msk.bf16.gmra.mxu0 %vm2264_vm11, %v2227_v13  ;;  %2183 = vst.msk [vmem:[#allocation5 + $0xb8] sm:$0xff] %vm2159_vm10, %v2110_v50 }
 0x34a   : > { %v2114_v62 = vpop.permute.xlu0 %2113 }
 0x34b   : > { %2185 = vst.msk [vmem:[#allocation5 + $0xc8] sm:$0xff] %vm2159_vm10, %v2114_v62 }
 0x34c   : > { %v2215_v44 = vld [vmem:[#allocation5 + $0xb8] sm:$0xff] }
 0x352   : > { %v2217_v23 = vld [vmem:[#allocation5 + $0xc8] sm:$0xff] }
 0x355   : > { %7290 = vmatmul.msk.bf16.gmra.mxu0 %vm2264_vm11, %v2228_v54 }
 0x365   : > { %7291 = vmatmul.msk.bf16.gmra.mxu0 %vm2264_vm11, %v2229_v11 }
 0x375   : > { %7292 = vmatmul.msk.bf16.gmra.mxu0 %vm2264_vm11, %v2230_v60 }
 0x385   : > { %7293 = vmatmul.msk.bf16.gmra.mxu0 %vm2264_vm11, %v2231_v47  ;;  %v2213_v47 = vld [vmem:[#allocation5 + $0xa8] sm:$0xff] }
 0x386   : > { %v2234_v6 = vpack.c.bf16 %v2213_v47, %v2212_v31 }
 0x392   : > { %v2326_v9 = vpop.f32.mrf.mxu0 }
 0x393   : > { %v2327_v32 = vadd.f32 %v8817_v5, %v2326_v9 }
 0x395   : > { %v8832_v1 = vmax.f32 %v2327_v32, 0.0  ;;  %7294 = vmatmul.msk.bf16.gmra.mxu0 %vm2264_vm11, %v2232_v27 }
 0x397   : > { %11612 = vst [vmem:[#allocation13_spill] sm:$0xff] %v8832_v1 }
 0x398   : > { %2439 = vst.msk [vmem:[#allocation3 + $0x32] sm:$0xff] %vm396_vm12, %v8832_v1 }
 0x39a   : > { %v2328_v18 = vpop.f32.mrf.mxu0 }
 0x39b   : > { %v2329_v33 = vadd.f32 %v8817_v5, %v2328_v18  ;;  %v2116_v18 = vpop.permute.xlu1 %2115 }
 0x39c   : > { %2186 = vst.msk [vmem:[#allocation5 + $0xd0] sm:$0xff] %vm2159_vm10, %v2116_v18 }
 0x39d   : > { %v8931_v3 = vmax.f32 %v2329_v33, 0.0  ;;  %v2118_v33 = vpop.permute.xlu2 %2117 }
 0x39e   : > { %2187 = vst.msk [vmem:[#allocation5 + $0xd8] sm:$0xff] %vm2159_vm10, %v2118_v33 }
 0x39f   : > { %11613 = vst [vmem:[#allocation7_spill] sm:$0xff] %v8931_v3  ;;  %v2471_v38 = vpack.c.bf16 %v8931_v3, %v8832_v1  ;;  %v2729_v48 = vld [vmem:[#allocation3 + $0x32] sm:$0xff] }
 0x3a0   : > { %2797 = vrot.lane.b32.xlu2 %v2729_v48, %s7519_s16  ;;  %2440 = vst.msk [vmem:[#allocation3 + $0x3a] sm:$0xff] %vm396_vm12, %v8931_v3  ;;  %v9034_v8 = vld [vmem:[#allocation3 + $0x30] sm:$0xff] }
 0x3a1   : > { %7302 = vmatmul.msk.bf16.vlgmr.msra.gmra.mxu1 %vm396_vm12, %v2471_v38  ;;  %2697 = vst.msk [vmem:[#allocation6 + $0x20] sm:$0xff] %vm396_vm12, %v9034_v8 }
 0x3a2   : > { %v2331_v29 = vpop.f32.mrf.mxu0 }
 0x3a3   : > { %v2332_v35 = vadd.f32 %v8817_v5, %v2331_v29  ;;  %v2214_v29 = vld [vmem:[#allocation5 + $0xb0] sm:$0xff] }
 0x3a5   : > { %v8978_v41 = vmax.f32 %v2332_v35, 0.0  ;;  %7295 = vmatmul.msk.bf16.gmra.mxu0 %vm2264_vm11, %v2233_v58  ;;  %v2124_v40 = vpop.permute.xlu2 %2123 }
 0x3a6   : > { %2190 = vst.msk [vmem:[#allocation5 + $0xf0] sm:$0xff] %vm2159_vm10, %v2124_v40 }
 0x3a7   : > { %11614 = vst [vmem:[#allocation10_spill] sm:$0xff] %v8978_v41  ;;  %v2730_v13 = vld [vmem:[#allocation3 + $0x3a] sm:$0xff] }
 0x3a8   : > { %2441 = vst.msk [vmem:[#allocation3 + $0x4a] sm:$0xff] %vm396_vm12, %v8978_v41  ;;  %2799 = vrot.lane.b32.xlu0 %v2730_v13, %s7519_s16  ;;  %v9052_v42 = vld [vmem:[#allocation3 + $0x38] sm:$0xff]  ;;  %v2661_v13 = vld [vmem:[#allocation3] sm:$0xff] }
 0x3a9   : > { %2698 = vst.msk [vmem:[#allocation6 + $0x28] sm:$0xff] %vm396_vm12, %v9052_v42 }
 0x3aa   : > { %v2333_v28 = vpop.f32.mrf.mxu0  ;;  %2693 = vst.msk [vmem:[#allocation6] sm:$0xff] %vm396_vm12, %v2661_v13 }
 0x3ab   : > { %v2334_v49 = vadd.f32 %v8817_v5, %v2333_v28  ;;  %v2235_v28 = vpack.c.bf16 %v2215_v44, %v2214_v29 }
 0x3ad   : > { %v8980_v53 = vmax.f32 %v2334_v49, 0.0  ;;  %v2792_v30 = vpop.permute.xlu2 %2791 }
 0x3ae   : > { %2887 = vst.msk [vmem:[#allocation6 + $0x8] sm:$0xff] %vm2885_vm15, %v2792_v30 }
 0x3af   : > { %11615 = vst [vmem:[#allocation16_spill] sm:$0xff] %v8980_v53  ;;  %v2472_v17 = vpack.c.bf16 %v8980_v53, %v8978_v41  ;;  %v2731_v54 = vld [vmem:[#allocation3 + $0x4a] sm:$0xff] }
 0x3b0   : > { %2442 = vst.msk [vmem:[#allocation3 + $0x52] sm:$0xff] %vm396_vm12, %v8980_v53  ;;  %2801 = vrot.lane.b32.xlu1 %v2731_v54, %s7519_s16  ;;  %v9055_v57 = vld [vmem:[#allocation3 + $0x48] sm:$0xff]  ;;  %v2663_v54 = vld [vmem:[#allocation3 + $0x18] sm:$0xff] }
 0x3b1   : > { %7303 = vmatmul.msk.bf16.gmra.mxu1 %vm396_vm12, %v2472_v17  ;;  %2699 = vst.msk [vmem:[#allocation6 + $0x30] sm:$0xff] %vm396_vm12, %v9055_v57 }
 0x3b2   : > { %v2336_v46 = vpop.f32.mrf.mxu0  ;;  %2695 = vst.msk [vmem:[#allocation6 + $0x10] sm:$0xff] %vm396_vm12, %v2663_v54 }
 0x3b3   : > { %v2337_v56 = vadd.f32 %v8817_v5, %v2336_v46 }
 0x3b5   : > { %v9017_v52 = vmax.f32 %v2337_v56, 0.0  ;;  %7296 = vmatmul.msk.bf16.gmra.mxu0 %vm2264_vm11, %v2234_v6  ;;  %v2120_v56 = vpop.permute.xlu0 %2119 }
 0x3b6   : > { %2188 = vst.msk [vmem:[#allocation5 + $0xe0] sm:$0xff] %vm2159_vm10, %v2120_v56 }
 0x3b7   : > { %11616 = vst [vmem:[#allocation8_spill] sm:$0xff] %v9017_v52  ;;  %v2732_v22 = vld [vmem:[#allocation3 + $0x52] sm:$0xff] }
 0x3b8   : > { %2443 = vst.msk [vmem:[#allocation3 + $0x62] sm:$0xff] %vm396_vm12, %v9017_v52  ;;  %v9048_v11 = vld [vmem:[#allocation3 + $0x50] sm:$0xff]  ;;  %2803 = vrot.lane.b32.xlu2 %v2732_v22, %s7519_s16 }
 0x3b9   : > { %2700 = vst.msk [vmem:[#allocation6 + $0x38] sm:$0xff] %vm396_vm12, %v9048_v11 }
 0x3ba   : > { %v2338_v63 = vpop.f32.mrf.mxu0 }
 0x3bb   : > { %v2339_v51 = vadd.f32 %v8817_v5, %v2338_v63 }
 0x3bd   : > { %v9019_v45 = vmax.f32 %v2339_v51, 0.0  ;;  %v2122_v51 = vpop.permute.xlu1 %2121 }
 0x3be   : > { %2189 = vst.msk [vmem:[#allocation5 + $0xe8] sm:$0xff] %vm2159_vm10, %v2122_v51 }
 0x3bf   : > { %11617 = vst [vmem:[#allocation12_spill] sm:$0xff] %v9019_v45  ;;  %v2473_v7 = vpack.c.bf16 %v9019_v45, %v9017_v52  ;;  %v2733_v16 = vld [vmem:[#allocation3 + $0x62] sm:$0xff] }
 0x3c0   : > { %2444 = vst.msk [vmem:[#allocation3 + $0x6a] sm:$0xff] %vm396_vm12, %v9019_v45  ;;  %v9059_v59 = vld [vmem:[#allocation3 + $0x60] sm:$0xff]  ;;  %2805 = vrot.lane.b32.xlu0 %v2733_v16, %s7519_s16 }
 0x3c1   : > { %7304 = vmatmul.msk.bf16.gmra.mxu1 %vm396_vm12, %v2473_v7  ;;  %2701 = vst.msk [vmem:[#allocation6 + $0x40] sm:$0xff] %vm396_vm12, %v9059_v59 }
 0x3c2   : > { %v2341_v39 = vpop.f32.mrf.mxu0 }
 0x3c3   : > { %v2342_v34 = vadd.f32 %v8817_v5, %v2341_v39  ;;  %v2126_v39 = vpop.permute.xlu0 %2125 }
 0x3c4   : > { %2191 = vst.msk [vmem:[#allocation5 + $0xf8] sm:$0xff] %vm2159_vm10, %v2126_v39 }
 0x3c5   : > { %v9040_v20 = vmax.f32 %v2342_v34, 0.0  ;;  %7297 = vmatmul.msk.bf16.gmra.mxu0 %vm2264_vm11, %v2235_v28  ;;  %v2216_v34 = vld [vmem:[#allocation5 + $0xc0] sm:$0xff]  ;;  %v2790_v36 = vpop.permute.xlu1 %2789 }
 0x3c6   : > { %v2236_v22 = vpack.c.bf16 %v2217_v23, %v2216_v34  ;;  %2886 = vst.msk [vmem:[#allocation6] sm:$0xff] %vm2885_vm15, %v2790_v36 }
 0x3c7   : > { %11618 = vst [vmem:[#allocation19_spill] sm:$0xff] %v9040_v20  ;;  %v2734_v0 = vld [vmem:[#allocation3 + $0x6a] sm:$0xff] }
 0x3c8   : > { %2445 = vst.msk [vmem:[#allocation3 + $0x7a] sm:$0xff] %vm396_vm12, %v9040_v20  ;;  %v9071_v4 = vld [vmem:[#allocation3 + $0x68] sm:$0xff]  ;;  %2807 = vrot.lane.b32.xlu1 %v2734_v0, %s7519_s16 }
 0x3c9   : > { %2702 = vst.msk [vmem:[#allocation6 + $0x48] sm:$0xff] %vm396_vm12, %v9071_v4 }
 0x3ca   : > { %v2343_v25 = vpop.f32.mrf.mxu0 }
 0x3cb   : > { %v2344_v24 = vadd.f32 %v8817_v5, %v2343_v25  ;;  %v2794_v56 = vpop.permute.xlu0 %2793 }
 0x3cc   : > { %2888 = vst.msk [vmem:[#allocation6 + $0x10] sm:$0xff] %vm2885_vm15, %v2794_v56 }
 0x3cd   : > { %v9067_v60 = vmax.f32 %v2344_v24, 0.0  ;;  %v2796_v39 = vpop.permute.xlu1 %2795 }
 0x3cf   : > { %11619 = vst [vmem:[#allocation9_spill] sm:$0xff] %v9067_v60  ;;  %v2735_v14 = vld [vmem:[#allocation3 + $0x7a] sm:$0xff]  ;;  %v2474_v61 = vpack.c.bf16 %v9067_v60, %v9040_v20 }
 0x3d0   : > { %2446 = vst.msk [vmem:[#allocation3 + $0x82] sm:$0xff] %vm396_vm12, %v9067_v60  ;;  %2809 = vrot.lane.b32.xlu2 %v2735_v14, %s7519_s16  ;;  %v9085_v32 = vld [vmem:[#allocation3 + $0x78] sm:$0xff] }
 0x3d1   : > { %7305 = vmatmul.msk.bf16.gmra.mxu1 %vm396_vm12, %v2474_v61  ;;  %2703 = vst.msk [vmem:[#allocation6 + $0x50] sm:$0xff] %vm396_vm12, %v9085_v32 }
 0x3d2   : > { %v2346_v21 = vpop.f32.mrf.mxu0 }
 0x3d3   : > { %v2347_v27 = vadd.f32 %v8817_v5, %v2346_v21 }
 0x3d5   : > { %v9083_v9 = vmax.f32 %v2347_v27, 0.0  ;;  %7298 = vmatmul.msk.bf16.gmra.mxu0 %vm2264_vm11, %v2236_v22  ;;  %v2218_v27 = vld [vmem:[#allocation5 + $0xd0] sm:$0xff] }
 0x3d7   : > { %11620 = vst [vmem:[#allocation15_spill] sm:$0xff] %v9083_v9  ;;  %v2736_v10 = vld [vmem:[#allocation3 + $0x82] sm:$0xff] }
 0x3d8   : > { %2447 = vst.msk [vmem:[#allocation3 + $0x92] sm:$0xff] %vm396_vm12, %v9083_v9  ;;  %2811 = vrot.lane.b32.xlu0 %v2736_v10, %s7519_s16  ;;  %v9098_v15 = vld [vmem:[#allocation3 + $0x80] sm:$0xff]  ;;  %v2219_v10 = vld [vmem:[#allocation5 + $0xd8] sm:$0xff] }
 0x3d9   : > { %2704 = vst.msk [vmem:[#allocation6 + $0x58] sm:$0xff] %vm396_vm12, %v9098_v15  ;;  %v2237_v33 = vpack.c.bf16 %v2219_v10, %v2218_v27 }
 0x3da   : > { %v2348_v2 = vpop.f32.mrf.mxu0 }
 0x3db   : > { %v2349_v19 = vadd.f32 %v8817_v5, %v2348_v2 }
 0x3dd   : > { %v9096_v12 = vmax.f32 %v2349_v19, 0.0  ;;  %v2664_v19 = vld [vmem:[#allocation3 + $0x20] sm:$0xff] }
 0x3de   : > { %2696 = vst.msk [vmem:[#allocation6 + $0x18] sm:$0xff] %vm396_vm12, %v2664_v19 }
 0x3df   : > { %11621 = vst [vmem:[#allocation22_spill] sm:$0xff] %v9096_v12  ;;  %v2737_v38 = vld [vmem:[#allocation3 + $0x92] sm:$0xff]  ;;  %v2475_v48 = vpack.c.bf16 %v9096_v12, %v9083_v9 }
 0x3e0   : > { %2448 = vst.msk [vmem:[#allocation3 + $0x9a] sm:$0xff] %vm396_vm12, %v9096_v12  ;;  %2813 = vrot.lane.b32.xlu1 %v2737_v38, %s7519_s16  ;;  %v9111_v46 = vld [vmem:[#allocation3 + $0x90] sm:$0xff] }
 0x3e1   : > { %7306 = vmatmul.msk.bf16.gmra.mxu1 %vm396_vm12, %v2475_v48  ;;  %2705 = vst.msk [vmem:[#allocation6 + $0x60] sm:$0xff] %vm396_vm12, %v9111_v46 }
 0x3e2   : > { %v2351_v35 = vpop.f32.mrf.mxu0  ;;  %2889 = vst.msk [vmem:[#allocation6 + $0x18] sm:$0xff] %vm2885_vm15, %v2796_v39 }
 0x3e3   : > { %v2352_v49 = vadd.f32 %v8817_v5, %v2351_v35 }
 0x3e5   : > { %v9109_v17 = vmax.f32 %v2352_v49, 0.0  ;;  %7299 = vmatmul.msk.bf16.gmra.mxu0 %vm2264_vm11, %v2237_v33 }
 0x3e7   : > { %11622 = vst [vmem:[#allocation11_spill] sm:$0xff] %v9109_v17  ;;  %v2738_v43 = vld [vmem:[#allocation3 + $0x9a] sm:$0xff] }
 0x3e8   : > { %2449 = vst.msk [vmem:[#allocation3 + $0xaa] sm:$0xff] %vm396_vm12, %v9109_v17  ;;  %2815 = vrot.lane.b32.xlu2 %v2738_v43, %s7519_s16  ;;  %v9126_v7 = vld [vmem:[#allocation3 + $0x98] sm:$0xff] }
 0x3e9   : > { %2706 = vst.msk [vmem:[#allocation6 + $0x68] sm:$0xff] %vm396_vm12, %v9126_v7 }
 0x3ea   : > { %v2353_v63 = vpop.f32.mrf.mxu0 }
 0x3eb   : > { %v2354_v55 = vadd.f32 %v8817_v5, %v2353_v63 }
 0x3ed   : > { %v9124_v26 = vmax.f32 %v2354_v55, 0.0 }
 0x3ef   : > { %11623 = vst [vmem:[#allocation18_spill] sm:$0xff] %v9124_v26  ;;  %v2739_v50 = vld [vmem:[#allocation3 + $0xaa] sm:$0xff]  ;;  %v2476_v37 = vpack.c.bf16 %v9124_v26, %v9109_v17 }
 0x3f0   : > { %2450 = vst.msk [vmem:[#allocation3 + $0xb2] sm:$0xff] %vm396_vm12, %v9124_v26  ;;  %2817 = vrot.lane.b32.xlu0 %v2739_v50, %s7519_s16  ;;  %v9142_v25 = vld [vmem:[#allocation3 + $0xa8] sm:$0xff]  ;;  %v9437_v26 = vld [vmem:[#allocation3 + $0x9c] sm:$0xff] }
 0x3f1   : > { %7307 = vmatmul.msk.bf16.gmra.mxu1 %vm396_vm12, %v2476_v37  ;;  %2707 = vst.msk [vmem:[#allocation6 + $0x70] sm:$0xff] %vm396_vm12, %v9142_v25  ;;  %v9439_v17 = vld [vmem:[#allocation3 + $0x84] sm:$0xff] }
 0x3f2   : > { %v2356_v58 = vpop.f32.mrf.mxu0 }
 0x3f3   : > { %v2357_v62 = vadd.f32 %v8817_v5, %v2356_v58 }
 0x3f5   : > { %v9140_v16 = vmax.f32 %v2357_v62, 0.0 }
 0x3f7   : > { %11624 = vst [vmem:[#allocation25_spill] sm:$0xff] %v9140_v16  ;;  %v2740_v24 = vld [vmem:[#allocation3 + $0xb2] sm:$0xff] }
 0x3f8   : > { %2451 = vst.msk [vmem:[#allocation3 + $0xc2] sm:$0xff] %vm396_vm12, %v9140_v16  ;;  %2819 = vrot.lane.b32.xlu1 %v2740_v24, %s7519_s16  ;;  %v9154_v47 = vld [vmem:[#allocation3 + $0xb0] sm:$0xff] }
 0x3f9   : > { %2708 = vst.msk [vmem:[#allocation6 + $0x78] sm:$0xff] %vm396_vm12, %v9154_v47  ;;  %v9451_v9 = vld [vmem:[#allocation3 + $0xac] sm:$0xff] }
 0x3fa   : > { %v2358_v0 = vpop.f32.mrf.mxu0  ;;  %v2798_v61 = vpop.permute.xlu2 %2797 }
 0x3fb   : > { %v2359_v14 = vadd.f32 %v8817_v5, %v2358_v0  ;;  %2890 = vst.msk [vmem:[#allocation6 + $0x20] sm:$0xff] %vm2885_vm15, %v2798_v61 }
 0x3fd   : > { %v9152_v31 = vmax.f32 %v2359_v14, 0.0 }
 0x3ff   : > { %11625 = vst [vmem:[#allocation14_spill] sm:$0xff] %v9152_v31  ;;  %v2741_v21 = vld [vmem:[#allocation3 + $0xc2] sm:$0xff]  ;;  %v2477_v6 = vpack.c.bf16 %v9152_v31, %v9140_v16  ;;  %v9433_v16 = vld [vmem:[#allocation3 + $0x94] sm:$0xff] }
 0x400   : > { %2452 = vst.msk [vmem:[#allocation3 + $0xca] sm:$0xff] %vm396_vm12, %v9152_v31  ;;  %2821 = vrot.lane.b32.xlu2 %v2741_v21, %s7519_s16  ;;  %v9169_v48 = vld [vmem:[#allocation3 + $0xc0] sm:$0xff] }
 0x401   : > { %7308 = vmatmul.msk.bf16.gmra.mxu1 %vm396_vm12, %v2477_v6  ;;  %2709 = vst.msk [vmem:[#allocation6 + $0x80] sm:$0xff] %vm396_vm12, %v9169_v48  ;;  %v9427_v31 = vld [vmem:[#allocation3 + $0x64] sm:$0xff] }
 0x402   : > { %v2361_v18 = vpop.f32.mrf.mxu0 }
 0x403   : > { %v2362_v2 = vadd.f32 %v8817_v5, %v2361_v18 }
 0x405   : > { %v9167_v38 = vmax.f32 %v2362_v2, 0.0 }
 0x407   : > { %11626 = vst [vmem:[#allocation21_spill] sm:$0xff] %v9167_v38  ;;  %v2742_v29 = vld [vmem:[#allocation3 + $0xca] sm:$0xff] }
 0x408   : > { %2453 = vst.msk [vmem:[#allocation3 + $0xda] sm:$0xff] %vm396_vm12, %v9167_v38  ;;  %2823 = vrot.lane.b32.xlu0 %v2742_v29, %s7519_s16  ;;  %v9180_v49 = vld [vmem:[#allocation3 + $0xc8] sm:$0xff] }
 0x409   : > { %2710 = vst.msk [vmem:[#allocation6 + $0x88] sm:$0xff] %vm396_vm12, %v9180_v49  ;;  %v9449_v12 = vld [vmem:[#allocation3 + $0xc4] sm:$0xff]  ;;  %v9464_v52 = vld [vmem:[#allocation3 + $0xcc] sm:$0xff] }
 0x40a   : > { %v2363_v44 = vpop.f32.mrf.mxu0 }
 0x40b   : > { %v2364_v35 = vadd.f32 %v8817_v5, %v2363_v44 }
 0x40d   : > { %v9178_v28 = vmax.f32 %v2364_v35, 0.0 }
 0x40f   : > { %11627 = vst [vmem:[#allocation28_spill] sm:$0xff] %v9178_v28  ;;  %v2743_v43 = vld [vmem:[#allocation3 + $0xda] sm:$0xff]  ;;  %v2478_v40 = vpack.c.bf16 %v9178_v28, %v9167_v38 }
 0x410   : > { %2454 = vst.msk [vmem:[#allocation3 + $0xe2] sm:$0xff] %vm396_vm12, %v9178_v28  ;;  %2825 = vrot.lane.b32.xlu1 %v2743_v43, %s7519_s16  ;;  %v9195_v50 = vld [vmem:[#allocation3 + $0xd8] sm:$0xff] }
 0x411   : > { %7309 = vmatmul.msk.bf16.gmra.mxu1 %vm396_vm12, %v2478_v40  ;;  %2711 = vst.msk [vmem:[#allocation6 + $0x90] sm:$0xff] %vm396_vm12, %v9195_v50  ;;  %v9425_v38 = vld [vmem:[#allocation3 + $0x7c] sm:$0xff] }
 0x412   : > { %v2366_v63 = vpop.f32.mrf.mxu0  ;;  %v2804_v62 = vpop.permute.xlu2 %2803 }
 0x413   : > { %v2367_v51 = vadd.f32 %v8817_v5, %v2366_v63  ;;  %2893 = vst.msk [vmem:[#allocation6 + $0x38] sm:$0xff] %vm2885_vm15, %v2804_v62 }
 0x415   : > { %v9193_v55 = vmax.f32 %v2367_v51, 0.0 }
 0x417   : > { %11628 = vst [vmem:[#allocation17_spill] sm:$0xff] %v9193_v55  ;;  %v2744_v37 = vld [vmem:[#allocation3 + $0xe2] sm:$0xff] }
 0x418   : > { %2455 = vst.msk [vmem:[#allocation3 + $0xf2] sm:$0xff] %vm396_vm12, %v9193_v55  ;;  %2827 = vrot.lane.b32.xlu2 %v2744_v37, %s7519_s16  ;;  %v9206_v58 = vld [vmem:[#allocation3 + $0xe0] sm:$0xff] }
 0x419   : > { %2712 = vst.msk [vmem:[#allocation6 + $0x98] sm:$0xff] %vm396_vm12, %v9206_v58  ;;  %v9457_v60 = vld [vmem:[#allocation3 + $0xdc] sm:$0xff]  ;;  %v9462_v45 = vld [vmem:[#allocation3 + $0xe4] sm:$0xff] }
 0x41a   : > { %v2368_v13 = vpop.f32.mrf.mxu0  ;;  %v2800_v61 = vpop.permute.xlu0 %2799 }
 0x41b   : > { %v2369_v34 = vadd.f32 %v8817_v5, %v2368_v13  ;;  %2891 = vst.msk [vmem:[#allocation6 + $0x28] sm:$0xff] %vm2885_vm15, %v2800_v61 }
 0x41d   : > { %v9204_v23 = vmax.f32 %v2369_v34, 0.0 }
 0x41f   : > { %11629 = vst [vmem:[#allocation24_spill] sm:$0xff] %v9204_v23  ;;  %v2745_v54 = vld [vmem:[#allocation3 + $0xf2] sm:$0xff]  ;;  %v2479_v22 = vpack.c.bf16 %v9204_v23, %v9193_v55 }
 0x420   : > { %2456 = vst.msk [vmem:[#allocation3 + $0xfa] sm:$0xff] %vm396_vm12, %v9204_v23  ;;  %2829 = vrot.lane.b32.xlu0 %v2745_v54, %s7519_s16  ;;  %v9217_v30 = vld [vmem:[#allocation3 + $0xf0] sm:$0xff] }
 0x421   : > { %7310 = vmatmul.msk.bf16.gmra.mxu1 %vm396_vm12, %v2479_v22  ;;  %2713 = vst.msk [vmem:[#allocation6 + $0xa0] sm:$0xff] %vm396_vm12, %v9217_v30 }
 0x422   : > { %v2802_v21 = vpop.permute.xlu1 %2801  ;;  %v2371_v18 = vpop.f32.mrf.mxu0 }
 0x423   : > { %2892 = vst.msk [vmem:[#allocation6 + $0x30] sm:$0xff] %vm2885_vm15, %v2802_v21  ;;  %v2372_v33 = vadd.f32 %v8817_v5, %v2371_v18 }
 0x425   : > { %v9236_v2 = vmax.f32 %v2372_v33, 0.0 }
 0x427   : > { %v9221_v24 = vld [vmem:[#allocation3 + $0xfa] sm:$0xff]  ;;  %11630 = vst [vmem:[#allocation20_spill] sm:$0xff] %v9236_v2 }
 0x428   : > { %2831 = vrot.lane.b32.xlu1 %v9221_v24, %s7519_s16  ;;  %v9226_v14 = vld [vmem:[#allocation3 + $0xf8] sm:$0xff]  ;;  %2457 = vst.msk [vmem:[#allocation3 + $0x10a] sm:$0xff] %vm396_vm12, %v9236_v2 }
 0x429   : > { %2714 = vst.msk [vmem:[#allocation6 + $0xa8] sm:$0xff] %vm396_vm12, %v9226_v14  ;;  %v9470_v53 = vld [vmem:[#allocation3 + $0xfc] sm:$0xff] }
 0x42a   : > { %v2810_v0 = vpop.permute.xlu2 %2809  ;;  %v2373_v29 = vpop.f32.mrf.mxu0  ;;  %11644 = vst [vmem:[#allocation39_spill] sm:$0xff] %v9470_v53 }
 0x42b   : > { %2896 = vst.msk [vmem:[#allocation6 + $0x50] sm:$0xff] %vm2885_vm15, %v2810_v0  ;;  %v2374_v44 = vadd.f32 %v8817_v5, %v2373_v29 }
 0x42d   : > { %v9242_v35 = vmax.f32 %v2374_v44, 0.0 }
 0x42f   : > { %11631 = vst [vmem:[#allocation27_spill] sm:$0xff] %v9242_v35  ;;  %v9244_v43 = vld [vmem:[#allocation3 + $0x10a] sm:$0xff]  ;;  %v2480_v36 = vpack.c.bf16 %v9242_v35, %v9236_v2 }
 0x430   : > { %v9246_v40 = vld [vmem:[#allocation3 + $0x108] sm:$0xff]  ;;  %2458 = vst.msk [vmem:[#allocation3 + $0x112] sm:$0xff] %vm396_vm12, %v9242_v35  ;;  %2833 = vrot.lane.b32.xlu2 %v9244_v43, %s7519_s16 }
 0x431   : > { %7311 = vmatmul.msk.bf16.gmra.mxu1 %vm396_vm12, %v2480_v36  ;;  %2715 = vst.msk [vmem:[#allocation6 + $0xb0] sm:$0xff] %vm396_vm12, %v9246_v40 }
 0x432   : > { %v2806_v6 = vpop.permute.xlu0 %2805  ;;  %v2376_v63 = vpop.f32.mrf.mxu0 }
 0x433   : > { %2894 = vst.msk [vmem:[#allocation6 + $0x40] sm:$0xff] %vm2885_vm15, %v2806_v6  ;;  %v2377_v51 = vadd.f32 %v8817_v5, %v2376_v63 }
 0x435   : > { %v9259_v37 = vmax.f32 %v2377_v51, 0.0 }
 0x437   : > { %11632 = vst [vmem:[#allocation23_spill] sm:$0xff] %v9259_v37  ;;  %v9261_v39 = vld [vmem:[#allocation3 + $0x112] sm:$0xff] }
 0x438   : > { %v9263_v13 = vld [vmem:[#allocation3 + $0x110] sm:$0xff]  ;;  %2459 = vst.msk [vmem:[#allocation3 + $0x122] sm:$0xff] %vm396_vm12, %v9259_v37  ;;  %2835 = vrot.lane.b32.xlu0 %v9261_v39, %s7519_s16 }
 0x439   : > { %2716 = vst.msk [vmem:[#allocation6 + $0xb8] sm:$0xff] %vm396_vm12, %v9263_v13  ;;  %v9475_v3 = vld [vmem:[#allocation3 + $0x10c] sm:$0xff] }
 0x43a   : > { %v2808_v27 = vpop.permute.xlu1 %2807  ;;  %v2378_v54 = vpop.f32.mrf.mxu0 }
 0x43b   : > { %2895 = vst.msk [vmem:[#allocation6 + $0x48] sm:$0xff] %vm2885_vm15, %v2808_v27  ;;  %v2379_v22 = vadd.f32 %v8817_v5, %v2378_v54  ;;  %v2220_v54 = vld [vmem:[#allocation5 + $0xe0] sm:$0xff] }
 0x43d   : > { %v9273_v62 = vmax.f32 %v2379_v22, 0.0  ;;  %v2221_v22 = vld [vmem:[#allocation5 + $0xe8] sm:$0xff] }
 0x43f   : > { %11633 = vst [vmem:[#allocation26_spill] sm:$0xff] %v9273_v62  ;;  %v9275_v0 = vld [vmem:[#allocation3 + $0x122] sm:$0xff]  ;;  %v2481_v21 = vpack.c.bf16 %v9273_v62, %v9259_v37 }
 0x440   : > { %v9277_v61 = vld [vmem:[#allocation3 + $0x120] sm:$0xff]  ;;  %2460 = vst.msk [vmem:[#allocation3 + $0x12a] sm:$0xff] %vm396_vm12, %v9273_v62  ;;  %2837 = vrot.lane.b32.xlu1 %v9275_v0, %s7519_s16 }
 0x441   : > { %2717 = vst.msk [vmem:[#allocation6 + $0xc0] sm:$0xff] %vm396_vm12, %v9277_v61  ;;  %7312 = vmatmul.msk.bf16.gmra.mxu1 %vm396_vm12, %v2481_v21 }
 0x442   : > { %v2816_v10 = vpop.permute.xlu2 %2815  ;;  %v2381_v27 = vpop.f32.mrf.mxu0 }
 0x443   : > { %2899 = vst.msk [vmem:[#allocation6 + $0x68] sm:$0xff] %vm2885_vm15, %v2816_v10  ;;  %v2382_v10 = vadd.f32 %v8817_v5, %v2381_v27 }
 0x445   : > { %v9290_v18 = vmax.f32 %v2382_v10, 0.0  ;;  %v9321_v10 = vpop.f32.mrf.mxu1 }
 0x446   : > { %11636 = vst [vmem:[#allocation31_spill] sm:$0xff] %v9321_v10 }
 0x447   : > { %11634 = vst [vmem:[#allocation29_spill] sm:$0xff] %v9290_v18  ;;  %v9292_v33 = vld [vmem:[#allocation3 + $0x12a] sm:$0xff] }
 0x448   : > { %2461 = vst.msk [vmem:[#allocation3 + $0x13a] sm:$0xff] %vm396_vm12, %v9290_v18  ;;  %2839 = vrot.lane.b32.xlu2 %v9292_v33, %s7519_s16  ;;  %v9483_v1 = vld [vmem:[#allocation3 + $0x124] sm:$0xff] }
 0x449   : > { %11645 = vst [vmem:[#allocation40_spill] sm:$0xff] %v9483_v1 }
 0x44a   : > { %v2812_v19 = vpop.permute.xlu0 %2811  ;;  %v2383_v44 = vpop.f32.mrf.mxu0 }
 0x44b   : > { %2897 = vst.msk [vmem:[#allocation6 + $0x58] sm:$0xff] %vm2885_vm15, %v2812_v19  ;;  %v9294_v19 = vld [vmem:[#allocation3 + $0x128] sm:$0xff]  ;;  %v2384_v36 = vadd.f32 %v8817_v5, %v2383_v44 }
 0x44c   : > { %2718 = vst.msk [vmem:[#allocation6 + $0xc8] sm:$0xff] %vm396_vm12, %v9294_v19 }
 0x44f   : > { %v9306_v63 = vld [vmem:[#allocation3 + $0x13a] sm:$0xff] }
 0x450   : > { %v9308_v51 = vld [vmem:[#allocation3 + $0x138] sm:$0xff]  ;;  %2841 = vrot.lane.b32.xlu0 %v9306_v63, %s7519_s16 }
 0x451   : > { %2719 = vst.msk [vmem:[#allocation6 + $0xd0] sm:$0xff] %vm396_vm12, %v9308_v51 }
 0x452   : > { %v2814_v56 = vpop.permute.xlu1 %2813  ;;  %v2386_v27 = vpop.f32.mrf.mxu0 }
 0x453   : > { %2898 = vst.msk [vmem:[#allocation6 + $0x60] sm:$0xff] %vm2885_vm15, %v2814_v56  ;;  %v9304_v56 = vmax.f32 %v2384_v36, 0.0 }
 0x455   : > { %11635 = vst [vmem:[#allocation30_spill] sm:$0xff] %v9304_v56 }
 0x456   : > { %2462 = vst.msk [vmem:[#allocation3 + $0x142] sm:$0xff] %vm396_vm12, %v9304_v56 }
 0x45a   : > { %v2822_v34 = vpop.permute.xlu2 %2821 }
 0x45b   : > { %2902 = vst.msk [vmem:[#allocation6 + $0x80] sm:$0xff] %vm2885_vm15, %v2822_v34  ;;  %v2482_v34 = vpack.c.bf16 %v9304_v56, %v9290_v18 }
 0x45d   : > { %7313 = vmatmul.msk.bf16.gmra.mxu1 %vm396_vm12, %v2482_v34  ;;  %v9326_v36 = vld [vmem:[#allocation3 + $0x142] sm:$0xff] }
 0x45e   : > { %2843 = vrot.lane.b32.xlu1 %v9326_v36, %s7519_s16  ;;  %v9332_v34 = vld [vmem:[#allocation3 + $0x140] sm:$0xff] }
 0x45f   : > { %2720 = vst.msk [vmem:[#allocation6 + $0xd8] sm:$0xff] %vm396_vm12, %v9332_v34  ;;  %v9496_v10 = vld [vmem:[#allocation3 + $0x144] sm:$0xff] }
 0x460   : > { %11647 = vst [vmem:[#allocation42_spill] sm:$0xff] %v9496_v10 }
 0x462   : > { %v2818_v6 = vpop.permute.xlu0 %2817 }
 0x463   : > { %2900 = vst.msk [vmem:[#allocation6 + $0x70] sm:$0xff] %vm2885_vm15, %v2818_v6  ;;  %v2238_v6 = vpack.c.bf16 %v2221_v22, %v2220_v54  ;;  %v2388_v22 = vpop.f32.mrf.mxu0 }
 0x465   : > { %7300 = vmatmul.msk.bf16.gmra.mxu0 %vm2264_vm11, %v2238_v6  ;;  %v2222_v6 = vld [vmem:[#allocation5 + $0xf0] sm:$0xff] }
 0x46a   : > { %v2820_v29 = vpop.permute.xlu1 %2819 }
 0x46b   : > { %2901 = vst.msk [vmem:[#allocation6 + $0x78] sm:$0xff] %vm2885_vm15, %v2820_v29  ;;  %v2387_v29 = vadd.f32 %v8817_v5, %v2386_v27  ;;  %v2223_v27 = vld [vmem:[#allocation5 + $0xf8] sm:$0xff] }
 0x46c   : > { %v2239_v62 = vpack.c.bf16 %v2223_v27, %v2222_v6 }
 0x46d   : > { %v9324_v44 = vmax.f32 %v2387_v29, 0.0  ;;  %v9338_v29 = vpop.f32.mrf.mxu1 }
 0x46e   : > { %11638 = vst [vmem:[#allocation33_spill] sm:$0xff] %v9338_v29 }
 0x46f   : > { %11637 = vst [vmem:[#allocation32_spill] sm:$0xff] %v9324_v44 }
 0x470   : > { %2463 = vst.msk [vmem:[#allocation3 + $0x152] sm:$0xff] %vm396_vm12, %v9324_v44 }
 0x472   : > { %v2828_v21 = vpop.permute.xlu2 %2827 }
 0x473   : > { %2905 = vst.msk [vmem:[#allocation6 + $0x98] sm:$0xff] %vm2885_vm15, %v2828_v21  ;;  %v2389_v21 = vadd.f32 %v8817_v5, %v2388_v22 }
 0x475   : > { %v9340_v56 = vmax.f32 %v2389_v21, 0.0  ;;  %v2391_v21 = vpop.f32.mrf.mxu0  ;;  %7301 = vmatmul.msk.bf16.gmra.mxu0 %vm2264_vm11, %v2239_v62 }
 0x476   : > { %v2392_v6 = vadd.f32 %v8817_v5, %v2391_v21  ;;  %v2918_v21 = vld [vmem:[#allocation3 + $0x4] sm:$0xff] }
 0x477   : > { %11639 = vst [vmem:[#allocation34_spill] sm:$0xff] %v9340_v56  ;;  %v9342_v18 = vld [vmem:[#allocation3 + $0x152] sm:$0xff] }
 0x478   : > { %v9344_v37 = vld [vmem:[#allocation3 + $0x150] sm:$0xff]  ;;  %2464 = vst.msk [vmem:[#allocation3 + $0x15a] sm:$0xff] %vm396_vm12, %v9340_v56  ;;  %2845 = vrot.lane.b32.xlu2 %v9342_v18, %s7519_s16  ;;  %v9358_v27 = vmax.f32 %v2392_v6, 0.0 }
 0x479   : > { %2721 = vst.msk [vmem:[#allocation6 + $0xe0] sm:$0xff] %vm396_vm12, %v9344_v37 }
 0x47a   : > { %v2824_v54 = vpop.permute.xlu0 %2823  ;;  %11640 = vst [vmem:[#allocation35_spill] sm:$0xff] %v9358_v27 }
 0x47b   : > { %2903 = vst.msk [vmem:[#allocation6 + $0x88] sm:$0xff] %vm2885_vm15, %v2824_v54  ;;  %v2483_v54 = vpack.c.bf16 %v9340_v56, %v9324_v44  ;;  %v9362_v56 = vpop.f32.mrf.mxu1 }
 0x47c   : > { %11641 = vst [vmem:[#allocation36_spill] sm:$0xff] %v9362_v56 }
 0x47d   : > { %7314 = vmatmul.msk.bf16.gmra.mxu1 %vm396_vm12, %v2483_v54  ;;  %2465 = vst.msk [vmem:[#allocation3 + $0x16a] sm:$0xff] %vm396_vm12, %v9358_v27  ;;  %v2393_v62 = vpop.f32.mrf.mxu0 }
 0x47f   : > { %v9360_v35 = vld [vmem:[#allocation3 + $0x15a] sm:$0xff] }
 0x480   : > { %2847 = vrot.lane.b32.xlu0 %v9360_v35, %s7519_s16  ;;  %v9368_v54 = vld [vmem:[#allocation3 + $0x158] sm:$0xff] }
 0x481   : > { %2722 = vst.msk [vmem:[#allocation6 + $0xe8] sm:$0xff] %vm396_vm12, %v9368_v54 }
 0x482   : > { %v2826_v22 = vpop.permute.xlu1 %2825 }
 0x483   : > { %2904 = vst.msk [vmem:[#allocation6 + $0x90] sm:$0xff] %vm2885_vm15, %v2826_v22  ;;  %v2394_v22 = vadd.f32 %v8817_v5, %v2393_v62  ;;  %v9388_v5 = vpop.f32.mrf.mxu1  ;;  %v2919_v62 = vld [vmem:[#allocation3 + $0xc] sm:$0xff] }
 0x484   : > { %v9375_v44 = vld [vmem:[#allocation3 + $0x16a] sm:$0xff]  ;;  %11643 = vst [vmem:[#allocation38_spill] sm:$0xff] %v9388_v5 }
 0x485   : > { %v9373_v6 = vmax.f32 %v2394_v22, 0.0  ;;  %v9377_v2 = vld [vmem:[#allocation3 + $0x168] sm:$0xff]  ;;  %2849 = vrot.lane.b32.xlu1 %v9375_v44, %s7519_s16 }
 0x486   : > { %2723 = vst.msk [vmem:[#allocation6 + $0xf0] sm:$0xff] %vm396_vm12, %v9377_v2  ;;  %v2921_v22 = vld [vmem:[#allocation3 + $0x24] sm:$0xff]  ;;  %v9488_v5 = vld [vmem:[#allocation3 + $0x12c] sm:$0xff] }
 0x487   : > { %11642 = vst [vmem:[#allocation37_spill] sm:$0xff] %v9373_v6  ;;  %v2484_v23 = vpack.c.bf16 %v9373_v6, %v9358_v27  ;;  %v9408_v27 = vld [vmem:[#allocation3 + $0x4c] sm:$0xff] }
 0x488   : > { %2466 = vst.msk [vmem:[#allocation3 + $0x172] sm:$0xff] %vm396_vm12, %v9373_v6  ;;  %2982 = vrot.lane.b32.xlu0 %v2918_v21, %s7521_s18 }
 0x489   : > { %11646 = vst [vmem:[#allocation41_spill] sm:$0xff] %v9488_v5 }
 0x48d   : > { %7315 = vmatmul.msk.bf16.gmra.mxu1 %vm396_vm12, %v2484_v23  ;;  %2984 = vrot.lane.b32.xlu1 %v2919_v62, %s7521_s18  ;;  %v9403_v23 = vld [vmem:[#allocation3 + $0x34] sm:$0xff]  ;;  %v9412_v62 = vld [vmem:[#allocation3 + $0x3c] sm:$0xff] }
 0x48f   : > { %v9392_v28 = vld [vmem:[#allocation3 + $0x172] sm:$0xff] }
 0x490   : > { %2851 = vrot.lane.b32.xlu2 %v9392_v28, %s7519_s16  ;;  %v9397_v21 = vld [vmem:[#allocation3 + $0x170] sm:$0xff]  ;;  %2988 = vrot.lane.b32.xlu0 %v2921_v22, %s7521_s18 }
 0x491   : > { %2724 = vst.msk [vmem:[#allocation6 + $0xf8] sm:$0xff] %vm396_vm12, %v9397_v21  ;;  %v9414_v22 = vld [vmem:[#allocation3 + $0x54] sm:$0xff] }
 0x492   : > { %v2830_v55 = vpop.permute.xlu0 %2829 }
 0x493   : > { %2906 = vst.msk [vmem:[#allocation6 + $0xa0] sm:$0xff] %vm2885_vm15, %v2830_v55  ;;  %v2920_v55 = vld [vmem:[#allocation3 + $0x1c] sm:$0xff] }
 0x495   : > { %2990 = vrot.lane.b32.xlu1 %v9403_v23, %s7521_s18 }
 0x498   : > { %2986 = vrot.lane.b32.xlu2 %v2920_v55, %s7521_s18  ;;  %2994 = vrot.lane.b32.xlu0 %v9408_v27, %s7521_s18  ;;  %v2834_v55 = vpop.permute.xlu2 %2833 }
 0x499   : > { %2908 = vst.msk [vmem:[#allocation6 + $0xb0] sm:$0xff] %vm2885_vm15, %v2834_v55  ;;  %v9445_v55 = vld [vmem:[#allocation3 + $0xb4] sm:$0xff] }
 0x49a   : > { %v2832_v6 = vpop.permute.xlu1 %2831 }
 0x49b   : > { %2907 = vst.msk [vmem:[#allocation6 + $0xa8] sm:$0xff] %vm2885_vm15, %v2832_v6  ;;  %v9420_v6 = vld [vmem:[#allocation3 + $0x6c] sm:$0xff] }
 0x49d   : > { %2996 = vrot.lane.b32.xlu1 %v9414_v22, %s7521_s18 }
 0x4a0   : > { %2992 = vrot.lane.b32.xlu2 %v9412_v62, %s7521_s18  ;;  %3000 = vrot.lane.b32.xlu0 %v9420_v6, %s7521_s18 }
 0x4a2   : > { %v2840_v20 = vpop.permute.xlu2 %2839 }
 0x4a3   : > { %2911 = vst.msk [vmem:[#allocation6 + $0xc8] sm:$0xff] %vm2885_vm15, %v2840_v20  ;;  %v9477_v20 = vld [vmem:[#allocation3 + $0xf4] sm:$0xff] }
 0x4a5   : > { %3002 = vrot.lane.b32.xlu1 %v9425_v38, %s7521_s18 }
 0x4a8   : > { %2998 = vrot.lane.b32.xlu2 %v9427_v31, %s7521_s18  ;;  %3006 = vrot.lane.b32.xlu0 %v9433_v16, %s7521_s18 }
 0x4aa   : > { %v2836_v41 = vpop.permute.xlu0 %2835 }
 0x4ab   : > { %2909 = vst.msk [vmem:[#allocation6 + $0xb8] sm:$0xff] %vm2885_vm15, %v2836_v41  ;;  %v9490_v41 = vld [vmem:[#allocation3 + $0x114] sm:$0xff] }
 0x4ad   : > { %3008 = vrot.lane.b32.xlu1 %v9437_v26, %s7521_s18 }
 0x4b0   : > { %3004 = vrot.lane.b32.xlu2 %v9439_v17, %s7521_s18  ;;  %3012 = vrot.lane.b32.xlu0 %v9445_v55, %s7521_s18 }
 0x4b2   : > { %v2838_v56 = vpop.permute.xlu1 %2837 }
 0x4b3   : > { %2910 = vst.msk [vmem:[#allocation6 + $0xc0] sm:$0xff] %vm2885_vm15, %v2838_v56  ;;  %v9503_v56 = vld [vmem:[#allocation3 + $0x13c] sm:$0xff] }
 0x4b5   : > { %3014 = vrot.lane.b32.xlu1 %v9449_v12, %s7521_s18 }
 0x4b8   : > { %3010 = vrot.lane.b32.xlu2 %v9451_v9, %s7521_s18  ;;  %3018 = vrot.lane.b32.xlu0 %v9457_v60, %s7521_s18 }
 0x4bd   : > { %3020 = vrot.lane.b32.xlu1 %v9462_v45, %s7521_s18 }
 0x4c0   : > { %3016 = vrot.lane.b32.xlu2 %v9464_v52, %s7521_s18  ;;  %3024 = vrot.lane.b32.xlu0 %v9470_v53, %s7521_s18 }
 0x4c2   : > { %v2842_v53 = vpop.permute.xlu0 %2841 }
 0x4c3   : > { %2912 = vst.msk [vmem:[#allocation6 + $0xd0] sm:$0xff] %vm2885_vm15, %v2842_v53 }
 0x4c5   : > { %3026 = vrot.lane.b32.xlu1 %v9475_v3, %s7521_s18 }
 0x4c8   : > { %3022 = vrot.lane.b32.xlu2 %v9477_v20, %s7521_s18  ;;  %3030 = vrot.lane.b32.xlu0 %v9483_v1, %s7521_s18  ;;  %v9501_v1 = vld [vmem:[#allocation3 + $0x154] sm:$0xff] }
 0x4c9   : > { %11648 = vst [vmem:[#allocation43_spill] sm:$0xff] %v9501_v1 }
 0x4cd   : > { %3032 = vrot.lane.b32.xlu1 %v9488_v5, %s7521_s18  ;;  %v9509_v5 = vld [vmem:[#allocation3 + $0x16c] sm:$0xff] }
 0x4ce   : > { %11649 = vst [vmem:[#allocation44_spill] sm:$0xff] %v9509_v5 }
 0x4d0   : > { %3028 = vrot.lane.b32.xlu2 %v9490_v41, %s7521_s18  ;;  %3036 = vrot.lane.b32.xlu0 %v9496_v10, %s7521_s18  ;;  %v9514_v10 = vld [vmem:[#allocation3 + $0x174] sm:$0xff] }
 0x4d1   : > { %11650 = vst [vmem:[#allocation45_spill] sm:$0xff] %v9514_v10 }
 0x4d2   : > { %v2846_v29 = vpop.permute.xlu2 %2845 }
 0x4d3   : > { %2914 = vst.msk [vmem:[#allocation6 + $0xe0] sm:$0xff] %vm2885_vm15, %v2846_v29  ;;  %v9516_v29 = vld [vmem:[#allocation3 + $0x15c] sm:$0xff] }
 0x4d4   : > { %11651 = vst [vmem:[#allocation46_spill] sm:$0xff] %v9516_v29 }
 0x4d5   : > { %3038 = vrot.lane.b32.xlu1 %v9501_v1, %s7521_s18  ;;  %v2844_v1 = vpop.permute.xlu1 %2843 }
 0x4d6   : > { %2913 = vst.msk [vmem:[#allocation6 + $0xd8] sm:$0xff] %vm2885_vm15, %v2844_v1 }
 0x4d8   : > { %3034 = vrot.lane.b32.xlu2 %v9503_v56, %s7521_s18  ;;  %3042 = vrot.lane.b32.xlu0 %v9509_v5, %s7521_s18  ;;  %v9529_v5 = vpop.f32.mrf.mxu1 }
 0x4dd   : > { %3044 = vrot.lane.b32.xlu1 %v9514_v10, %s7521_s18  ;;  %v7505_v10 = vld [vmem:[%s11496_s2] ss:$0 sm:$0xff] }
 0x4e0   : > { %3040 = vrot.lane.b32.xlu2 %v9516_v29, %s7521_s18  ;;  %3177 = vrot.lane.b32.xlu0 %v9052_v42, %s7523_s20 }
 0x4e2   : > { %v2396_v53 = vpop.f32.mrf.mxu0 }
 0x4e3   : > { %v2397_v42 = vadd.f32 %v7505_v10, %v2396_v53 }
 0x4e5   : > { %3179 = vrot.lane.b32.xlu1 %v9055_v57, %s7523_s20  ;;  %v9537_v1 = vmax.f32 %v2397_v42, 0.0 }
 0x4e7   : > { %2467 = vst.msk [vmem:[#allocation3 + $0x182] sm:$0xff] %vm396_vm12, %v9537_v1 }
 0x4e8   : > { %3175 = vrot.lane.b32.xlu2 %v9034_v8, %s7523_s20  ;;  %3183 = vrot.lane.b32.xlu0 %v9059_v59, %s7523_s20 }
 0x4ea   : > { %v2852_v29 = vpop.permute.xlu2 %2851  ;;  %v2398_v8 = vpop.f32.mrf.mxu0 }
 0x4eb   : > { %2917 = vst.msk [vmem:[#allocation6 + $0xf8] sm:$0xff] %vm2885_vm15, %v2852_v29  ;;  %v2399_v57 = vadd.f32 %v7505_v10, %v2398_v8  ;;  %v9547_v29 = vpop.f32.mrf.mxu1 }
 0x4ed   : > { %3185 = vrot.lane.b32.xlu1 %v9071_v4, %s7523_s20  ;;  %v9550_v42 = vmax.f32 %v2399_v57, 0.0 }
 0x4ef   : > { %2468 = vst.msk [vmem:[#allocation3 + $0x18a] sm:$0xff] %vm396_vm12, %v9550_v42 }
 0x4f0   : > { %3181 = vrot.lane.b32.xlu2 %v9048_v11, %s7523_s20  ;;  %3189 = vrot.lane.b32.xlu0 %v9098_v15, %s7523_s20  ;;  %v2485_v11 = vpack.c.bf16 %v9550_v42, %v9537_v1 }
 0x4f2   : > { %v2987_v59 = vpop.permute.xlu2 %2986  ;;  %v2848_v53 = vpop.permute.xlu0 %2847  ;;  %7316 = vmatmul.msk.bf16.gmra.mxu1 %vm396_vm12, %v2485_v11 }
 0x4f3   : > { %3081 = vst.msk [vmem:[#allocation6 + $0x10] sm:$0xff] %vm3078_vm0, %v2987_v59  ;;  %v2401_v4 = vpop.f32.mrf.mxu0  ;;  %v9568_v11 = vpop.f32.mrf.mxu1 }
 0x4f4   : > { %2915 = vst.msk [vmem:[#allocation6 + $0xe8] sm:$0xff] %vm2885_vm15, %v2848_v53  ;;  %v2402_v15 = vadd.f32 %v7505_v10, %v2401_v4 }
 0x4f5   : > { %3191 = vrot.lane.b32.xlu1 %v9111_v46, %s7523_s20 }
 0x4f6   : > { %v9566_v53 = vmax.f32 %v2402_v15, 0.0 }
 0x4f7   : > { %v2850_v57 = vpop.permute.xlu1 %2849 }
 0x4f8   : > { %3187 = vrot.lane.b32.xlu2 %v9085_v32, %s7523_s20  ;;  %3195 = vrot.lane.b32.xlu0 %v9142_v25, %s7523_s20  ;;  %2916 = vst.msk [vmem:[#allocation6 + $0xf0] sm:$0xff] %vm2885_vm15, %v2850_v57 }
 0x4f9   : > { %2469 = vst.msk [vmem:[#allocation3 + $0x19a] sm:$0xff] %vm396_vm12, %v9566_v53 }
 0x4fa   : > { %v2993_v8 = vpop.permute.xlu2 %2992  ;;  %v2983_v59 = vpop.permute.xlu0 %2982 }
 0x4fb   : > { %3084 = vst.msk [vmem:[#allocation6 + $0x28] sm:$0xff] %vm3078_vm0, %v2993_v8  ;;  %v2403_v32 = vpop.f32.mrf.mxu0 }
 0x4fc   : > { %3079 = vst.msk [vmem:[#allocation6] sm:$0xff] %vm3078_vm0, %v2983_v59  ;;  %v2404_v46 = vadd.f32 %v7505_v10, %v2403_v32  ;;  %v9631_v59 = vld [vmem:[#allocation3 + $0x180] sm:$0xff] }
 0x4fd   : > { %3197 = vrot.lane.b32.xlu1 %v9154_v47, %s7523_s20 }
 0x4fe   : > { %v9580_v8 = vmax.f32 %v2404_v46, 0.0 }
 0x4ff   : > { %v2985_v25 = vpop.permute.xlu1 %2984 }
 0x500   : > { %3193 = vrot.lane.b32.xlu2 %v9126_v7, %s7523_s20  ;;  %3201 = vrot.lane.b32.xlu0 %v9180_v49, %s7523_s20  ;;  %3080 = vst.msk [vmem:[#allocation6 + $0x8] sm:$0xff] %vm3078_vm0, %v2985_v25  ;;  %v2486_v47 = vpack.c.bf16 %v9580_v8, %v9566_v53  ;;  %v9588_v7 = vpop.f32.mrf.mxu1 }
 0x501   : > { %2470 = vst.msk [vmem:[#allocation3 + $0x1a2] sm:$0xff] %vm396_vm12, %v9580_v8 }
 0x502   : > { %v2999_v4 = vpop.permute.xlu2 %2998  ;;  %v2989_v15 = vpop.permute.xlu0 %2988  ;;  %7317 = vmatmul.msk.bf16.gmra.mxu1 %vm396_vm12, %v2486_v47 }
 0x503   : > { %3087 = vst.msk [vmem:[#allocation6 + $0x40] sm:$0xff] %vm3078_vm0, %v2999_v4  ;;  %v9640_v4 = vld [vmem:[#allocation3 + $0x188] sm:$0xff] }
 0x504   : > { %3082 = vst.msk [vmem:[#allocation6 + $0x18] sm:$0xff] %vm3078_vm0, %v2989_v15 }
 0x505   : > { %3203 = vrot.lane.b32.xlu1 %v9195_v50, %s7523_s20 }
 0x507   : > { %v2991_v49 = vpop.permute.xlu1 %2990 }
 0x508   : > { %3199 = vrot.lane.b32.xlu2 %v9169_v48, %s7523_s20  ;;  %3207 = vrot.lane.b32.xlu0 %v9217_v30, %s7523_s20  ;;  %3083 = vst.msk [vmem:[#allocation6 + $0x20] sm:$0xff] %vm3078_vm0, %v2991_v49  ;;  %v9638_v25 = vld [vmem:[#allocation3 + $0x1a0] sm:$0xff]  ;;  %v3304_v49 = vld [vmem:[#allocation3 + $0x32] sm:$0xff] }
 0x50a   : > { %v3005_v10 = vpop.permute.xlu2 %3004  ;;  %v2995_v57 = vpop.permute.xlu0 %2994 }
 0x50b   : > { %3090 = vst.msk [vmem:[#allocation6 + $0x58] sm:$0xff] %vm3078_vm0, %v3005_v10  ;;  %v9651_v10 = vld [vmem:[#allocation3 + $0x198] sm:$0xff] }
 0x50c   : > { %3085 = vst.msk [vmem:[#allocation6 + $0x30] sm:$0xff] %vm3078_vm0, %v2995_v57  ;;  %v3306_v57 = vld [vmem:[#allocation3 + $0x4a] sm:$0xff] }
 0x50d   : > { %3209 = vrot.lane.b32.xlu1 %v9226_v14, %s7523_s20 }
 0x50f   : > { %v2997_v48 = vpop.permute.xlu1 %2996 }
 0x510   : > { %3205 = vrot.lane.b32.xlu2 %v9206_v58, %s7523_s20  ;;  %3213 = vrot.lane.b32.xlu0 %v9263_v13, %s7523_s20  ;;  %3086 = vst.msk [vmem:[#allocation6 + $0x38] sm:$0xff] %vm3078_vm0, %v2997_v48 }
 0x512   : > { %v3011_v50 = vpop.permute.xlu2 %3010  ;;  %v3001_v30 = vpop.permute.xlu0 %3000 }
 0x513   : > { %3093 = vst.msk [vmem:[#allocation6 + $0x70] sm:$0xff] %vm3078_vm0, %v3011_v50 }
 0x514   : > { %3088 = vst.msk [vmem:[#allocation6 + $0x48] sm:$0xff] %vm3078_vm0, %v3001_v30 }
 0x515   : > { %3215 = vrot.lane.b32.xlu1 %v9277_v61, %s7523_s20 }
 0x517   : > { %v3003_v58 = vpop.permute.xlu1 %3002 }
 0x518   : > { %3211 = vrot.lane.b32.xlu2 %v9246_v40, %s7523_s20  ;;  %3219 = vrot.lane.b32.xlu0 %v9308_v51, %s7523_s20  ;;  %3089 = vst.msk [vmem:[#allocation6 + $0x50] sm:$0xff] %vm3078_vm0, %v3003_v58  ;;  %v3307_v58 = vld [vmem:[#allocation3 + $0x52] sm:$0xff] }
 0x51a   : > { %v3017_v14 = vpop.permute.xlu2 %3016  ;;  %v3007_v13 = vpop.permute.xlu0 %3006 }
 0x51b   : > { %3096 = vst.msk [vmem:[#allocation6 + $0x88] sm:$0xff] %vm3078_vm0, %v3017_v14  ;;  %v3305_v14 = vld [vmem:[#allocation3 + $0x3a] sm:$0xff] }
 0x51c   : > { %3091 = vst.msk [vmem:[#allocation6 + $0x60] sm:$0xff] %vm3078_vm0, %v3007_v13  ;;  %v9662_v13 = vld [vmem:[#allocation3 + $0x6a] sm:$0xff] }
 0x51d   : > { %3221 = vrot.lane.b32.xlu1 %v9332_v34, %s7523_s20 }
 0x51f   : > { %v3009_v40 = vpop.permute.xlu1 %3008 }
 0x520   : > { %3217 = vrot.lane.b32.xlu2 %v9294_v19, %s7523_s20  ;;  %3225 = vrot.lane.b32.xlu0 %v9368_v54, %s7523_s20  ;;  %3092 = vst.msk [vmem:[#allocation6 + $0x68] sm:$0xff] %vm3078_vm0, %v3009_v40 }
 0x522   : > { %v3023_v61 = vpop.permute.xlu2 %3022  ;;  %v3013_v51 = vpop.permute.xlu0 %3012 }
 0x523   : > { %3099 = vst.msk [vmem:[#allocation6 + $0xa0] sm:$0xff] %vm3078_vm0, %v3023_v61 }
 0x524   : > { %3094 = vst.msk [vmem:[#allocation6 + $0x78] sm:$0xff] %vm3078_vm0, %v3013_v51 }
 0x525   : > { %3227 = vrot.lane.b32.xlu1 %v9377_v2, %s7523_s20 }
 0x527   : > { %v3015_v19 = vpop.permute.xlu1 %3014 }
 0x528   : > { %3223 = vrot.lane.b32.xlu2 %v9344_v37, %s7523_s20  ;;  %3231 = vrot.lane.b32.xlu0 %v9631_v59, %s7523_s20  ;;  %3095 = vst.msk [vmem:[#allocation6 + $0x80] sm:$0xff] %vm3078_vm0, %v3015_v19  ;;  %v9669_v19 = vld [vmem:[#allocation3 + $0x7a] sm:$0xff] }
 0x52a   : > { %v3029_v32 = vpop.permute.xlu2 %3028  ;;  %v3019_v46 = vpop.permute.xlu0 %3018 }
 0x52b   : > { %3102 = vst.msk [vmem:[#allocation6 + $0xb8] sm:$0xff] %vm3078_vm0, %v3029_v32  ;;  %v9671_v32 = vld [vmem:[#allocation3 + $0x62] sm:$0xff] }
 0x52c   : > { %3097 = vst.msk [vmem:[#allocation6 + $0x90] sm:$0xff] %vm3078_vm0, %v3019_v46  ;;  %v9677_v46 = vld [vmem:[#allocation3 + $0x92] sm:$0xff] }
 0x52d   : > { %3233 = vrot.lane.b32.xlu1 %v9640_v4, %s7523_s20 }
 0x52f   : > { %v3021_v37 = vpop.permute.xlu1 %3020 }
 0x530   : > { %3229 = vrot.lane.b32.xlu2 %v9397_v21, %s7523_s20  ;;  %3237 = vrot.lane.b32.xlu0 %v9638_v25, %s7523_s20  ;;  %3098 = vst.msk [vmem:[#allocation6 + $0x98] sm:$0xff] %vm3078_vm0, %v3021_v37 }
 0x532   : > { %v3035_v15 = vpop.permute.xlu2 %3034  ;;  %v3025_v47 = vpop.permute.xlu0 %3024 }
 0x533   : > { %3105 = vst.msk [vmem:[#allocation6 + $0xd0] sm:$0xff] %vm3078_vm0, %v3035_v15 }
 0x534   : > { %3100 = vst.msk [vmem:[#allocation6 + $0xa8] sm:$0xff] %vm3078_vm0, %v3025_v47 }
 0x535   : > { %3368 = vrot.lane.b32.xlu1 %v3304_v49, %s7525_s22  ;;  %v9684_v49 = vld [vmem:[#allocation3 + $0x9a] sm:$0xff] }
 0x537   : > { %v3027_v48 = vpop.permute.xlu1 %3026 }
 0x538   : > { %3235 = vrot.lane.b32.xlu2 %v9651_v10, %s7523_s20  ;;  %3372 = vrot.lane.b32.xlu0 %v3306_v57, %s7525_s22  ;;  %3101 = vst.msk [vmem:[#allocation6 + $0xb0] sm:$0xff] %vm3078_vm0, %v3027_v48  ;;  %v9686_v57 = vld [vmem:[#allocation3 + $0x82] sm:$0xff]  ;;  %v9692_v48 = vld [vmem:[#allocation3 + $0xb2] sm:$0xff] }
 0x53a   : > { %v3041_v50 = vpop.permute.xlu2 %3040  ;;  %v3031_v30 = vpop.permute.xlu0 %3030 }
 0x53b   : > { %3108 = vst.msk [vmem:[#allocation6 + $0xe8] sm:$0xff] %vm3078_vm0, %v3041_v50 }
 0x53c   : > { %3103 = vst.msk [vmem:[#allocation6 + $0xc0] sm:$0xff] %vm3078_vm0, %v3031_v30 }
 0x53d   : > { %3374 = vrot.lane.b32.xlu1 %v3307_v58, %s7525_s22 }
 0x53f   : > { %v3033_v40 = vpop.permute.xlu1 %3032 }
 0x540   : > { %3370 = vrot.lane.b32.xlu2 %v3305_v14, %s7525_s22  ;;  %3378 = vrot.lane.b32.xlu0 %v9662_v13, %s7525_s22  ;;  %3104 = vst.msk [vmem:[#allocation6 + $0xc8] sm:$0xff] %vm3078_vm0, %v3033_v40  ;;  %v9699_v14 = vld [vmem:[#allocation3 + $0xc2] sm:$0xff]  ;;  %v9701_v40 = vld [vmem:[#allocation3 + $0xaa] sm:$0xff] }
 0x542   : > { %v3176_v61 = vpop.permute.xlu2 %3175  ;;  %v3037_v51 = vpop.permute.xlu0 %3036 }
 0x543   : > { %3272 = vst.msk [vmem:[#allocation6] sm:$0xff] %vm3271_vm1, %v3176_v61  ;;  %v9707_v61 = vld [vmem:[#allocation3 + $0xda] sm:$0xff] }
 0x544   : > { %3106 = vst.msk [vmem:[#allocation6 + $0xd8] sm:$0xff] %vm3078_vm0, %v3037_v51 }
 0x545   : > { %3380 = vrot.lane.b32.xlu1 %v9669_v19, %s7525_s22 }
 0x547   : > { %v3039_v37 = vpop.permute.xlu1 %3038 }
 0x548   : > { %3376 = vrot.lane.b32.xlu2 %v9671_v32, %s7525_s22  ;;  %3384 = vrot.lane.b32.xlu0 %v9677_v46, %s7525_s22  ;;  %3107 = vst.msk [vmem:[#allocation6 + $0xe0] sm:$0xff] %vm3078_vm0, %v3039_v37 }
 0x54a   : > { %v3182_v15 = vpop.permute.xlu2 %3181  ;;  %v3043_v47 = vpop.permute.xlu0 %3042 }
 0x54b   : > { %3275 = vst.msk [vmem:[#allocation6 + $0x18] sm:$0xff] %vm3271_vm1, %v3182_v15 }
 0x54c   : > { %3109 = vst.msk [vmem:[#allocation6 + $0xf0] sm:$0xff] %vm3078_vm0, %v3043_v47  ;;  %v9714_v47 = vld [vmem:[#allocation3 + $0xe2] sm:$0xff] }
 0x54d   : > { %3386 = vrot.lane.b32.xlu1 %v9684_v49, %s7525_s22 }
 0x54f   : > { %v3045_v50 = vpop.permute.xlu1 %3044 }
 0x550   : > { %3382 = vrot.lane.b32.xlu2 %v9686_v57, %s7525_s22  ;;  %3390 = vrot.lane.b32.xlu0 %v9692_v48, %s7525_s22  ;;  %3110 = vst.msk [vmem:[#allocation6 + $0xf8] sm:$0xff] %vm3078_vm0, %v3045_v50  ;;  %v9716_v50 = vld [vmem:[#allocation3 + $0xca] sm:$0xff] }
 0x552   : > { %v3188_v30 = vpop.permute.xlu2 %3187  ;;  %v3178_v58 = vpop.permute.xlu0 %3177 }
 0x553   : > { %3278 = vst.msk [vmem:[#allocation6 + $0x30] sm:$0xff] %vm3271_vm1, %v3188_v30 }
 0x554   : > { %3273 = vst.msk [vmem:[#allocation6 + $0x8] sm:$0xff] %vm3271_vm1, %v3178_v58 }
 0x555   : > { %3392 = vrot.lane.b32.xlu1 %v9699_v14, %s7525_s22 }
 0x557   : > { %v3180_v51 = vpop.permute.xlu1 %3179 }
 0x558   : > { %3388 = vrot.lane.b32.xlu2 %v9701_v40, %s7525_s22  ;;  %3396 = vrot.lane.b32.xlu0 %v9707_v61, %s7525_s22  ;;  %3274 = vst.msk [vmem:[#allocation6 + $0x10] sm:$0xff] %vm3271_vm1, %v3180_v51 }
 0x55a   : > { %v3194_v37 = vpop.permute.xlu2 %3193  ;;  %v3184_v15 = vpop.permute.xlu0 %3183 }
 0x55b   : > { %3281 = vst.msk [vmem:[#allocation6 + $0x48] sm:$0xff] %vm3271_vm1, %v3194_v37  ;;  %v9727_v37 = vld [vmem:[#allocation3 + $0xf2] sm:$0xff] }
 0x55c   : > { %3276 = vst.msk [vmem:[#allocation6 + $0x20] sm:$0xff] %vm3271_vm1, %v3184_v15 }
 0x55d   : > { %3398 = vrot.lane.b32.xlu1 %v9714_v47, %s7525_s22 }
 0x55f   : > { %v3186_v30 = vpop.permute.xlu1 %3185 }
 0x560   : > { %3394 = vrot.lane.b32.xlu2 %v9716_v50, %s7525_s22  ;;  %3402 = vrot.lane.b32.xlu0 %v9221_v24, %s7525_s22  ;;  %3277 = vst.msk [vmem:[#allocation6 + $0x28] sm:$0xff] %vm3271_vm1, %v3186_v30 }
 0x562   : > { %v3200_v58 = vpop.permute.xlu2 %3199  ;;  %v3190_v51 = vpop.permute.xlu0 %3189 }
 0x563   : > { %3284 = vst.msk [vmem:[#allocation6 + $0x60] sm:$0xff] %vm3271_vm1, %v3200_v58 }
 0x564   : > { %3279 = vst.msk [vmem:[#allocation6 + $0x38] sm:$0xff] %vm3271_vm1, %v3190_v51 }
 0x565   : > { %3404 = vrot.lane.b32.xlu1 %v9244_v43, %s7525_s22 }
 0x567   : > { %v3192_v24 = vpop.permute.xlu1 %3191 }
 0x568   : > { %3400 = vrot.lane.b32.xlu2 %v9727_v37, %s7525_s22  ;;  %3408 = vrot.lane.b32.xlu0 %v9275_v0, %s7525_s22  ;;  %3280 = vst.msk [vmem:[#allocation6 + $0x40] sm:$0xff] %vm3271_vm1, %v3192_v24  ;;  %v9767_v24 = vld [vmem:[#allocation3 + $0x19a] sm:$0xff] }
 0x56a   : > { %v3206_v15 = vpop.permute.xlu2 %3205  ;;  %v3196_v30 = vpop.permute.xlu0 %3195 }
 0x56b   : > { %3287 = vst.msk [vmem:[#allocation6 + $0x78] sm:$0xff] %vm3271_vm1, %v3206_v15 }
 0x56c   : > { %3282 = vst.msk [vmem:[#allocation6 + $0x50] sm:$0xff] %vm3271_vm1, %v3196_v30 }
 0x56d   : > { %3410 = vrot.lane.b32.xlu1 %v9292_v33, %s7525_s22 }
 0x56f   : > { %v3198_v43 = vpop.permute.xlu1 %3197 }
 0x570   : > { %3406 = vrot.lane.b32.xlu2 %v9261_v39, %s7525_s22  ;;  %3414 = vrot.lane.b32.xlu0 %v9326_v36, %s7525_s22  ;;  %3283 = vst.msk [vmem:[#allocation6 + $0x58] sm:$0xff] %vm3271_vm1, %v3198_v43  ;;  %v9780_v43 = vld [vmem:[#allocation3 + $0x1a2] sm:$0xff] }
 0x572   : > { %v3212_v0 = vpop.permute.xlu2 %3211  ;;  %v3202_v58 = vpop.permute.xlu0 %3201 }
 0x573   : > { %3290 = vst.msk [vmem:[#allocation6 + $0x90] sm:$0xff] %vm3271_vm1, %v3212_v0 }
 0x574   : > { %3285 = vst.msk [vmem:[#allocation6 + $0x68] sm:$0xff] %vm3271_vm1, %v3202_v58 }
 0x575   : > { %3416 = vrot.lane.b32.xlu1 %v9342_v18, %s7525_s22  ;;  %v9760_v18 = vld [vmem:[#allocation3 + $0x18a] sm:$0xff] }
 0x577   : > { %v3204_v39 = vpop.permute.xlu1 %3203 }
 0x578   : > { %3412 = vrot.lane.b32.xlu2 %v9306_v63, %s7525_s22  ;;  %3420 = vrot.lane.b32.xlu0 %v9375_v44, %s7525_s22  ;;  %3286 = vst.msk [vmem:[#allocation6 + $0x70] sm:$0xff] %vm3271_vm1, %v3204_v39 }
 0x57a   : > { %v3218_v33 = vpop.permute.xlu2 %3217  ;;  %v3208_v36 = vpop.permute.xlu0 %3207 }
 0x57b   : > { %3293 = vst.msk [vmem:[#allocation6 + $0xa8] sm:$0xff] %vm3271_vm1, %v3218_v33 }
 0x57c   : > { %3288 = vst.msk [vmem:[#allocation6 + $0x80] sm:$0xff] %vm3271_vm1, %v3208_v36 }
 0x57d   : > { %3422 = vrot.lane.b32.xlu1 %v9392_v28, %s7525_s22  ;;  %v9769_v28 = vld [vmem:[#allocation3 + $0x182] sm:$0xff] }
 0x57f   : > { %v3210_v63 = vpop.permute.xlu1 %3209 }
 0x580   : > { %3418 = vrot.lane.b32.xlu2 %v9360_v35, %s7525_s22  ;;  %3426 = vrot.lane.b32.xlu0 %v9760_v18, %s7525_s22  ;;  %3289 = vst.msk [vmem:[#allocation6 + $0x88] sm:$0xff] %vm3271_vm1, %v3210_v63  ;;  %v11655_v63 = vld [vmem:[#allocation43_spill] sm:$0xff] }
 0x582   : > { %v3224_v44 = vpop.permute.xlu2 %3223  ;;  %v3214_v51 = vpop.permute.xlu0 %3213 }
 0x583   : > { %3296 = vst.msk [vmem:[#allocation6 + $0xc0] sm:$0xff] %vm3271_vm1, %v3224_v44 }
 0x584   : > { %3291 = vst.msk [vmem:[#allocation6 + $0x98] sm:$0xff] %vm3271_vm1, %v3214_v51 }
 0x585   : > { %3428 = vrot.lane.b32.xlu1 %v9767_v24, %s7525_s22 }
 0x587   : > { %v3216_v35 = vpop.permute.xlu1 %3215 }
 0x588   : > { %3424 = vrot.lane.b32.xlu2 %v9769_v28, %s7525_s22  ;;  %3561 = vrot.lane.b32.xlu0 %v9403_v23, %s7526_s19  ;;  %3292 = vst.msk [vmem:[#allocation6 + $0xa0] sm:$0xff] %vm3271_vm1, %v3216_v35 }
 0x58a   : > { %v3230_v15 = vpop.permute.xlu2 %3229  ;;  %v3220_v30 = vpop.permute.xlu0 %3219 }
 0x58b   : > { %3299 = vst.msk [vmem:[#allocation6 + $0xd8] sm:$0xff] %vm3271_vm1, %v3230_v15  ;;  %v11656_v15 = vld [vmem:[#allocation46_spill] sm:$0xff] }
 0x58c   : > { %3294 = vst.msk [vmem:[#allocation6 + $0xb0] sm:$0xff] %vm3271_vm1, %v3220_v30  ;;  %v11658_v30 = vld [vmem:[#allocation45_spill] sm:$0xff] }
 0x58d   : > { %3563 = vrot.lane.b32.xlu1 %v9412_v62, %s7526_s19 }
 0x58f   : > { %v3222_v23 = vpop.permute.xlu1 %3221 }
 0x590   : > { %3430 = vrot.lane.b32.xlu2 %v9780_v43, %s7525_s22  ;;  %3567 = vrot.lane.b32.xlu0 %v9414_v22, %s7526_s19  ;;  %3295 = vst.msk [vmem:[#allocation6 + $0xb8] sm:$0xff] %vm3271_vm1, %v3222_v23 }
 0x592   : > { %v3236_v0 = vpop.permute.xlu2 %3235  ;;  %v3226_v58 = vpop.permute.xlu0 %3225 }
 0x593   : > { %3302 = vst.msk [vmem:[#allocation6 + $0xf0] sm:$0xff] %vm3271_vm1, %v3236_v0 }
 0x594   : > { %3297 = vst.msk [vmem:[#allocation6 + $0xc8] sm:$0xff] %vm3271_vm1, %v3226_v58 }
 0x595   : > { %3569 = vrot.lane.b32.xlu1 %v9427_v31, %s7526_s19 }
 0x597   : > { %v3228_v62 = vpop.permute.xlu1 %3227 }
 0x598   : > { %3565 = vrot.lane.b32.xlu2 %v9408_v27, %s7526_s19  ;;  %3573 = vrot.lane.b32.xlu0 %v9425_v38, %s7526_s19  ;;  %3298 = vst.msk [vmem:[#allocation6 + $0xd0] sm:$0xff] %vm3271_vm1, %v3228_v62  ;;  %v9863_v62 = vld [vmem:[#allocation3 + $0x184] sm:$0xff] }
 0x59a   : > { %v3371_v22 = vpop.permute.xlu2 %3370  ;;  %v3232_v39 = vpop.permute.xlu0 %3231 }
 0x59b   : > { %3466 = vst.msk [vmem:[#allocation6 + $0x8] sm:$0xff] %vm3464_vm2, %v3371_v22  ;;  %v11659_v22 = vld [vmem:[#allocation44_spill] sm:$0xff] }
 0x59c   : > { %3300 = vst.msk [vmem:[#allocation6 + $0xe0] sm:$0xff] %vm3271_vm1, %v3232_v39  ;;  %v9869_v39 = vld [vmem:[#allocation3 + $0x19c] sm:$0xff] }
 0x59d   : > { %3575 = vrot.lane.b32.xlu1 %v9439_v17, %s7526_s19 }
 0x59f   : > { %v3234_v31 = vpop.permute.xlu1 %3233 }
 0x5a0   : > { %3571 = vrot.lane.b32.xlu2 %v9420_v6, %s7526_s19  ;;  %3579 = vrot.lane.b32.xlu0 %v9437_v26, %s7526_s19  ;;  %3301 = vst.msk [vmem:[#allocation6 + $0xe8] sm:$0xff] %vm3271_vm1, %v3234_v31 }
 0x5a2   : > { %v3377_v38 = vpop.permute.xlu2 %3376  ;;  %v3238_v27 = vpop.permute.xlu0 %3237 }
 0x5a3   : > { %3469 = vst.msk [vmem:[#allocation6 + $0x20] sm:$0xff] %vm3464_vm2, %v3377_v38 }
 0x5a4   : > { %3303 = vst.msk [vmem:[#allocation6 + $0xf8] sm:$0xff] %vm3271_vm1, %v3238_v27 }
 0x5a5   : > { %3581 = vrot.lane.b32.xlu1 %v9451_v9, %s7526_s19 }
 0x5a7   : > { %v3369_v17 = vpop.permute.xlu1 %3368 }
 0x5a8   : > { %3577 = vrot.lane.b32.xlu2 %v9433_v16, %s7526_s19  ;;  %3585 = vrot.lane.b32.xlu0 %v9449_v12, %s7526_s19  ;;  %3465 = vst.msk [vmem:[#allocation6] sm:$0xff] %vm3464_vm2, %v3369_v17  ;;  %v9876_v17 = vld [vmem:[#allocation3 + $0x1a4] sm:$0xff] }
 0x5aa   : > { %v3383_v26 = vpop.permute.xlu2 %3382  ;;  %v3373_v6 = vpop.permute.xlu0 %3372 }
 0x5ab   : > { %3472 = vst.msk [vmem:[#allocation6 + $0x38] sm:$0xff] %vm3464_vm2, %v3383_v26  ;;  %v9878_v26 = vld [vmem:[#allocation3 + $0x18c] sm:$0xff] }
 0x5ac   : > { %3467 = vst.msk [vmem:[#allocation6 + $0x10] sm:$0xff] %vm3464_vm2, %v3373_v6  ;;  %v3692_v6 = vld [vmem:[#allocation3 + $0x68] sm:$0xff] }
 0x5ad   : > { %3587 = vrot.lane.b32.xlu1 %v9464_v52, %s7526_s19 }
 0x5af   : > { %v3375_v9 = vpop.permute.xlu1 %3374 }
 0x5b0   : > { %3583 = vrot.lane.b32.xlu2 %v9445_v55, %s7526_s19  ;;  %3591 = vrot.lane.b32.xlu0 %v9462_v45, %s7526_s19  ;;  %3468 = vst.msk [vmem:[#allocation6 + $0x18] sm:$0xff] %vm3464_vm2, %v3375_v9 }
 0x5b2   : > { %v3389_v12 = vpop.permute.xlu2 %3388  ;;  %v3379_v16 = vpop.permute.xlu0 %3378 }
 0x5b3   : > { %3475 = vst.msk [vmem:[#allocation6 + $0x50] sm:$0xff] %vm3464_vm2, %v3389_v12 }
 0x5b4   : > { %3470 = vst.msk [vmem:[#allocation6 + $0x28] sm:$0xff] %vm3464_vm2, %v3379_v16 }
 0x5b5   : > { %3593 = vrot.lane.b32.xlu1 %v9477_v20, %s7526_s19  ;;  %v11652_v20 = vld [vmem:[#allocation39_spill] sm:$0xff] }
 0x5b7   : > { %v3381_v52 = vpop.permute.xlu1 %3380 }
 0x5b8   : > { %3589 = vrot.lane.b32.xlu2 %v9457_v60, %s7526_s19  ;;  %3597 = vrot.lane.b32.xlu0 %v9475_v3, %s7526_s19  ;;  %3471 = vst.msk [vmem:[#allocation6 + $0x30] sm:$0xff] %vm3464_vm2, %v3381_v52  ;;  %v11653_v60 = vld [vmem:[#allocation41_spill] sm:$0xff]  ;;  %v3693_v52 = vld [vmem:[#allocation3 + $0x78] sm:$0xff] }
 0x5ba   : > { %v3395_v45 = vpop.permute.xlu2 %3394  ;;  %v3385_v55 = vpop.permute.xlu0 %3384 }
 0x5bb   : > { %3478 = vst.msk [vmem:[#allocation6 + $0x68] sm:$0xff] %vm3464_vm2, %v3395_v45  ;;  %v3691_v45 = vld [vmem:[#allocation3 + $0x60] sm:$0xff] }
 0x5bc   : > { %3473 = vst.msk [vmem:[#allocation6 + $0x40] sm:$0xff] %vm3464_vm2, %v3385_v55  ;;  %v3695_v55 = vld [vmem:[#allocation3 + $0x90] sm:$0xff] }
 0x5bd   : > { %3599 = vrot.lane.b32.xlu1 %v9490_v41, %s7526_s19  ;;  %v11654_v41 = vld [vmem:[#allocation40_spill] sm:$0xff] }
 0x5bf   : > { %v3387_v33 = vpop.permute.xlu1 %3386 }
 0x5c0   : > { %3595 = vrot.lane.b32.xlu2 %v11652_v20, %s7526_s19  ;;  %3603 = vrot.lane.b32.xlu0 %v11653_v60, %s7526_s19  ;;  %3474 = vst.msk [vmem:[#allocation6 + $0x48] sm:$0xff] %vm3464_vm2, %v3387_v33 }
 0x5c2   : > { %v3401_v3 = vpop.permute.xlu2 %3400  ;;  %v3391_v36 = vpop.permute.xlu0 %3390 }
 0x5c3   : > { %3481 = vst.msk [vmem:[#allocation6 + $0x80] sm:$0xff] %vm3464_vm2, %v3401_v3  ;;  %v3696_v3 = vld [vmem:[#allocation3 + $0x98] sm:$0xff] }
 0x5c4   : > { %3476 = vst.msk [vmem:[#allocation6 + $0x58] sm:$0xff] %vm3464_vm2, %v3391_v36  ;;  %v3694_v36 = vld [vmem:[#allocation3 + $0x80] sm:$0xff] }
 0x5c5   : > { %3605 = vrot.lane.b32.xlu1 %v9503_v56, %s7526_s19  ;;  %v11657_v56 = vld [vmem:[#allocation42_spill] sm:$0xff] }
 0x5c7   : > { %v3393_v44 = vpop.permute.xlu1 %3392 }
 0x5c8   : > { %3601 = vrot.lane.b32.xlu2 %v11654_v41, %s7526_s19  ;;  %3609 = vrot.lane.b32.xlu0 %v11655_v63, %s7526_s19  ;;  %3477 = vst.msk [vmem:[#allocation6 + $0x60] sm:$0xff] %vm3464_vm2, %v3393_v44  ;;  %v3698_v41 = vld [vmem:[#allocation3 + $0xb0] sm:$0xff] }
 0x5ca   : > { %v3407_v51 = vpop.permute.xlu2 %3406  ;;  %v3397_v35 = vpop.permute.xlu0 %3396 }
 0x5cb   : > { %3484 = vst.msk [vmem:[#allocation6 + $0x98] sm:$0xff] %vm3464_vm2, %v3407_v51 }
 0x5cc   : > { %3479 = vst.msk [vmem:[#allocation6 + $0x70] sm:$0xff] %vm3464_vm2, %v3397_v35  ;;  %v3699_v35 = vld [vmem:[#allocation3 + $0xc0] sm:$0xff] }
 0x5cd   : > { %3611 = vrot.lane.b32.xlu1 %v11656_v15, %s7526_s19  ;;  %v3697_v15 = vld [vmem:[#allocation3 + $0xa8] sm:$0xff] }
 0x5cf   : > { %v3399_v23 = vpop.permute.xlu1 %3398 }
 0x5d0   : > { %3607 = vrot.lane.b32.xlu2 %v11657_v56, %s7526_s19  ;;  %3615 = vrot.lane.b32.xlu0 %v11658_v30, %s7526_s19  ;;  %3480 = vst.msk [vmem:[#allocation6 + $0x78] sm:$0xff] %vm3464_vm2, %v3399_v23  ;;  %v3701_v56 = vld [vmem:[#allocation3 + $0xd8] sm:$0xff] }
 0x5d2   : > { %v3413_v0 = vpop.permute.xlu2 %3412  ;;  %v3403_v58 = vpop.permute.xlu0 %3402 }
 0x5d3   : > { %3487 = vst.msk [vmem:[#allocation6 + $0xb0] sm:$0xff] %vm3464_vm2, %v3413_v0 }
 0x5d4   : > { %3482 = vst.msk [vmem:[#allocation6 + $0x88] sm:$0xff] %vm3464_vm2, %v3403_v58  ;;  %v3702_v58 = vld [vmem:[#allocation3 + $0xe0] sm:$0xff] }
 0x5d5   : > { %3617 = vrot.lane.b32.xlu1 %v9863_v62, %s7526_s19 }
 0x5d7   : > { %v3405_v31 = vpop.permute.xlu1 %3404 }
 0x5d8   : > { %3613 = vrot.lane.b32.xlu2 %v11659_v22, %s7526_s19  ;;  %3621 = vrot.lane.b32.xlu0 %v9869_v39, %s7526_s19  ;;  %3483 = vst.msk [vmem:[#allocation6 + $0x90] sm:$0xff] %vm3464_vm2, %v3405_v31  ;;  %v3700_v22 = vld [vmem:[#allocation3 + $0xc8] sm:$0xff]  ;;  %v3704_v31 = vld [vmem:[#allocation3 + $0xf8] sm:$0xff] }
 0x5da   : > { %v3419_v38 = vpop.permute.xlu2 %3418  ;;  %v3409_v27 = vpop.permute.xlu0 %3408 }
 0x5db   : > { %3490 = vst.msk [vmem:[#allocation6 + $0xc8] sm:$0xff] %vm3464_vm2, %v3419_v38 }
 0x5dc   : > { %3485 = vst.msk [vmem:[#allocation6 + $0xa0] sm:$0xff] %vm3464_vm2, %v3409_v27 }
 0x5dd   : > { %3623 = vrot.lane.b32.xlu1 %v9876_v17, %s7526_s19 }
 0x5df   : > { %v3411_v9 = vpop.permute.xlu1 %3410 }
 0x5e0   : > { %3619 = vrot.lane.b32.xlu2 %v9878_v26, %s7526_s19  ;;  %3757 = vrot.lane.b32.xlu0 %v3692_v6, %s7527_s21  ;;  %3486 = vst.msk [vmem:[#allocation6 + $0xa8] sm:$0xff] %vm3464_vm2, %v3411_v9  ;;  %v3705_v9 = vld [vmem:[#allocation3 + $0x108] sm:$0xff] }
 0x5e2   : > { %v3425_v12 = vpop.permute.xlu2 %3424  ;;  %v3415_v16 = vpop.permute.xlu0 %3414 }
 0x5e3   : > { %3493 = vst.msk [vmem:[#allocation6 + $0xe0] sm:$0xff] %vm3464_vm2, %v3425_v12  ;;  %v3703_v12 = vld [vmem:[#allocation3 + $0xf0] sm:$0xff] }
 0x5e4   : > { %3488 = vst.msk [vmem:[#allocation6 + $0xb8] sm:$0xff] %vm3464_vm2, %v3415_v16  ;;  %v3707_v16 = vld [vmem:[#allocation3 + $0x120] sm:$0xff] }
 0x5e5   : > { %3759 = vrot.lane.b32.xlu1 %v3693_v52, %s7527_s21 }
 0x5e7   : > { %v3417_v20 = vpop.permute.xlu1 %3416 }
 0x5e8   : > { %3755 = vrot.lane.b32.xlu2 %v3691_v45, %s7527_s21  ;;  %3763 = vrot.lane.b32.xlu0 %v3695_v55, %s7527_s21  ;;  %3489 = vst.msk [vmem:[#allocation6 + $0xc0] sm:$0xff] %vm3464_vm2, %v3417_v20  ;;  %v3708_v20 = vld [vmem:[#allocation3 + $0x128] sm:$0xff] }
 0x5ea   : > { %v3431_v60 = vpop.permute.xlu2 %3430  ;;  %v3421_v33 = vpop.permute.xlu0 %3420 }
 0x5eb   : > { %3496 = vst.msk [vmem:[#allocation6 + $0xf8] sm:$0xff] %vm3464_vm2, %v3431_v60  ;;  %v3706_v60 = vld [vmem:[#allocation3 + $0x110] sm:$0xff] }
 0x5ec   : > { %3491 = vst.msk [vmem:[#allocation6 + $0xd0] sm:$0xff] %vm3464_vm2, %v3421_v33 }
 0x5ed   : > { %3765 = vrot.lane.b32.xlu1 %v3696_v3, %s7527_s21 }
 0x5ef   : > { %v3423_v63 = vpop.permute.xlu1 %3422 }
 0x5f0   : > { %3761 = vrot.lane.b32.xlu2 %v3694_v36, %s7527_s21  ;;  %3769 = vrot.lane.b32.xlu0 %v3698_v41, %s7527_s21  ;;  %3492 = vst.msk [vmem:[#allocation6 + $0xd8] sm:$0xff] %vm3464_vm2, %v3423_v63  ;;  %v3711_v41 = vld [vmem:[#allocation3 + $0x150] sm:$0xff]  ;;  %v3709_v63 = vld [vmem:[#allocation3 + $0x138] sm:$0xff] }
 0x5f2   : > { %v3566_v44 = vpop.permute.xlu2 %3565  ;;  %v3427_v51 = vpop.permute.xlu0 %3426 }
 0x5f3   : > { %3660 = vst.msk [vmem:[#allocation6 + $0x10] sm:$0xff] %vm3657_vm3, %v3566_v44 }
 0x5f4   : > { %3494 = vst.msk [vmem:[#allocation6 + $0xe8] sm:$0xff] %vm3464_vm2, %v3427_v51 }
 0x5f5   : > { %3771 = vrot.lane.b32.xlu1 %v3699_v35, %s7527_s21 }
 0x5f7   : > { %v3429_v30 = vpop.permute.xlu1 %3428 }
 0x5f8   : > { %3767 = vrot.lane.b32.xlu2 %v3697_v15, %s7527_s21  ;;  %3775 = vrot.lane.b32.xlu0 %v3701_v56, %s7527_s21  ;;  %3495 = vst.msk [vmem:[#allocation6 + $0xf0] sm:$0xff] %vm3464_vm2, %v3429_v30  ;;  %v3719_v56 = vld [vmem:[#allocation3 + $0x1b0] sm:$0xff]  ;;  %v3720_v30 = vld [vmem:[#allocation3 + $0x1b8] sm:$0xff] }
 0x5fa   : > { %v3572_v23 = vpop.permute.xlu2 %3571  ;;  %v3562_v0 = vpop.permute.xlu0 %3561 }
 0x5fb   : > { %3663 = vst.msk [vmem:[#allocation6 + $0x28] sm:$0xff] %vm3657_vm3, %v3572_v23  ;;  %v3722_v23 = vld [vmem:[#allocation3 + $0x1d0] sm:$0xff] }
 0x5fc   : > { %3658 = vst.msk [vmem:[#allocation6] sm:$0xff] %vm3657_vm3, %v3562_v0 }
 0x5fd   : > { %3777 = vrot.lane.b32.xlu1 %v3702_v58, %s7527_s21  ;;  %v3721_v58 = vld [vmem:[#allocation3 + $0x1c8] sm:$0xff] }
 0x5ff   : > { %v3564_v38 = vpop.permute.xlu1 %3563 }
 0x600   : > { %3773 = vrot.lane.b32.xlu2 %v3700_v22, %s7527_s21  ;;  %3781 = vrot.lane.b32.xlu0 %v3704_v31, %s7527_s21  ;;  %3659 = vst.msk [vmem:[#allocation6 + $0x8] sm:$0xff] %vm3657_vm3, %v3564_v38 }
 0x602   : > { %v3578_v27 = vpop.permute.xlu2 %3577  ;;  %v3568_v6 = vpop.permute.xlu0 %3567 }
 0x603   : > { %3666 = vst.msk [vmem:[#allocation6 + $0x40] sm:$0xff] %vm3657_vm3, %v3578_v27 }
 0x604   : > { %3661 = vst.msk [vmem:[#allocation6 + $0x18] sm:$0xff] %vm3657_vm3, %v3568_v6  ;;  %v3899_v6 = vld [vmem:[#allocation3 + $0x112] sm:$0xff] }
 0x605   : > { %3783 = vrot.lane.b32.xlu1 %v3705_v9, %s7527_s21  ;;  %v3897_v9 = vld [vmem:[#allocation3 + $0xfa] sm:$0xff] }
 0x607   : > { %v3570_v52 = vpop.permute.xlu1 %3569 }
 0x608   : > { %3779 = vrot.lane.b32.xlu2 %v3703_v12, %s7527_s21  ;;  %3787 = vrot.lane.b32.xlu0 %v3707_v16, %s7527_s21  ;;  %3662 = vst.msk [vmem:[#allocation6 + $0x20] sm:$0xff] %vm3657_vm3, %v3570_v52  ;;  %v3902_v52 = vld [vmem:[#allocation3 + $0x13a] sm:$0xff] }
 0x60a   : > { %v3584_v45 = vpop.permute.xlu2 %3583  ;;  %v3574_v55 = vpop.permute.xlu0 %3573 }
 0x60b   : > { %3669 = vst.msk [vmem:[#allocation6 + $0x58] sm:$0xff] %vm3657_vm3, %v3584_v45  ;;  %v3900_v45 = vld [vmem:[#allocation3 + $0x122] sm:$0xff] }
 0x60c   : > { %3664 = vst.msk [vmem:[#allocation6 + $0x30] sm:$0xff] %vm3657_vm3, %v3574_v55  ;;  %v3904_v55 = vld [vmem:[#allocation3 + $0x152] sm:$0xff] }
 0x60d   : > { %3789 = vrot.lane.b32.xlu1 %v3708_v20, %s7527_s21 }
 0x60f   : > { %v3576_v33 = vpop.permute.xlu1 %3575 }
 0x610   : > { %3785 = vrot.lane.b32.xlu2 %v3706_v60, %s7527_s21  ;;  %3793 = vrot.lane.b32.xlu0 %v9332_v34, %s7527_s21  ;;  %3665 = vst.msk [vmem:[#allocation6 + $0x38] sm:$0xff] %vm3657_vm3, %v3576_v33 }
 0x612   : > { %v3590_v3 = vpop.permute.xlu2 %3589  ;;  %v3580_v36 = vpop.permute.xlu0 %3579 }
 0x613   : > { %3672 = vst.msk [vmem:[#allocation6 + $0x70] sm:$0xff] %vm3657_vm3, %v3590_v3  ;;  %v3905_v3 = vld [vmem:[#allocation3 + $0x15a] sm:$0xff] }
 0x614   : > { %3667 = vst.msk [vmem:[#allocation6 + $0x48] sm:$0xff] %vm3657_vm3, %v3580_v36  ;;  %v3903_v36 = vld [vmem:[#allocation3 + $0x142] sm:$0xff] }
 0x615   : > { %3795 = vrot.lane.b32.xlu1 %v3711_v41, %s7527_s21  ;;  %v3907_v41 = vld [vmem:[#allocation3 + $0x172] sm:$0xff] }
 0x617   : > { %v3582_v44 = vpop.permute.xlu1 %3581 }
 0x618   : > { %3791 = vrot.lane.b32.xlu2 %v3709_v63, %s7527_s21  ;;  %3799 = vrot.lane.b32.xlu0 %v9377_v2, %s7527_s21  ;;  %3668 = vst.msk [vmem:[#allocation6 + $0x50] sm:$0xff] %vm3657_vm3, %v3582_v44 }
 0x61a   : > { %v3596_v34 = vpop.permute.xlu2 %3595  ;;  %v3586_v51 = vpop.permute.xlu0 %3585 }
 0x61b   : > { %3675 = vst.msk [vmem:[#allocation6 + $0x88] sm:$0xff] %vm3657_vm3, %v3596_v34 }
 0x61c   : > { %3670 = vst.msk [vmem:[#allocation6 + $0x60] sm:$0xff] %vm3657_vm3, %v3586_v51  ;;  %v3906_v51 = vld [vmem:[#allocation3 + $0x16a] sm:$0xff] }
 0x61d   : > { %3801 = vrot.lane.b32.xlu1 %v9397_v21, %s7527_s21 }
 0x61f   : > { %v3588_v35 = vpop.permute.xlu1 %3587 }
 0x620   : > { %3797 = vrot.lane.b32.xlu2 %v9368_v54, %s7527_s21  ;;  %3805 = vrot.lane.b32.xlu0 %v9640_v4, %s7527_s21  ;;  %3671 = vst.msk [vmem:[#allocation6 + $0x68] sm:$0xff] %vm3657_vm3, %v3588_v35 }
 0x622   : > { %v3602_v2 = vpop.permute.xlu2 %3601  ;;  %v3592_v15 = vpop.permute.xlu0 %3591 }
 0x623   : > { %3678 = vst.msk [vmem:[#allocation6 + $0xa0] sm:$0xff] %vm3657_vm3, %v3602_v2 }
 0x624   : > { %3673 = vst.msk [vmem:[#allocation6 + $0x78] sm:$0xff] %vm3657_vm3, %v3592_v15 }
 0x625   : > { %3807 = vrot.lane.b32.xlu1 %v9651_v10, %s7527_s21 }
 0x627   : > { %v3594_v54 = vpop.permute.xlu1 %3593 }
 0x628   : > { %3803 = vrot.lane.b32.xlu2 %v9631_v59, %s7527_s21  ;;  %3811 = vrot.lane.b32.xlu0 %v3719_v56, %s7527_s21  ;;  %3674 = vst.msk [vmem:[#allocation6 + $0x80] sm:$0xff] %vm3657_vm3, %v3594_v54  ;;  %v3913_v56 = vld [vmem:[#allocation3 + $0x1ba] sm:$0xff] }
 0x62a   : > { %v3608_v21 = vpop.permute.xlu2 %3607  ;;  %v3598_v4 = vpop.permute.xlu0 %3597 }
 0x62b   : > { %3681 = vst.msk [vmem:[#allocation6 + $0xb8] sm:$0xff] %vm3657_vm3, %v3608_v21  ;;  %v3914_v21 = vld [vmem:[#allocation3 + $0x1ca] sm:$0xff] }
 0x62c   : > { %3676 = vst.msk [vmem:[#allocation6 + $0x90] sm:$0xff] %vm3657_vm3, %v3598_v4  ;;  %v3912_v4 = vld [vmem:[#allocation3 + $0x1b2] sm:$0xff] }
 0x62d   : > { %3813 = vrot.lane.b32.xlu1 %v3720_v30, %s7527_s21 }
 0x62f   : > { %v3600_v59 = vpop.permute.xlu1 %3599 }
 0x630   : > { %3809 = vrot.lane.b32.xlu2 %v9638_v25, %s7527_s21  ;;  %3817 = vrot.lane.b32.xlu0 %v3722_v23, %s7527_s21  ;;  %3677 = vst.msk [vmem:[#allocation6 + $0x98] sm:$0xff] %vm3657_vm3, %v3600_v59  ;;  %v3915_v59 = vld [vmem:[#allocation3 + $0x1d2] sm:$0xff] }
 0x632   : > { %v3614_v10 = vpop.permute.xlu2 %3613  ;;  %v3604_v0 = vpop.permute.xlu0 %3603 }
 0x633   : > { %3684 = vst.msk [vmem:[#allocation6 + $0xd0] sm:$0xff] %vm3657_vm3, %v3614_v10  ;;  %v4078_v10 = vld [vmem:[#allocation3 + $0x6c] sm:$0xff] }
 0x634   : > { %3679 = vst.msk [vmem:[#allocation6 + $0xa8] sm:$0xff] %vm3657_vm3, %v3604_v0  ;;  %v4080_v0 = vld [vmem:[#allocation3 + $0x84] sm:$0xff] }
 0x635   : > { %3948 = vrot.lane.b32.xlu1 %v9671_v32, %s7528_s23 }
 0x637   : > { %v3606_v25 = vpop.permute.xlu1 %3605 }
 0x638   : > { %3815 = vrot.lane.b32.xlu2 %v3721_v58, %s7527_s21  ;;  %3952 = vrot.lane.b32.xlu0 %v9669_v19, %s7528_s23  ;;  %3680 = vst.msk [vmem:[#allocation6 + $0xb0] sm:$0xff] %vm3657_vm3, %v3606_v25 }
 0x63a   : > { %v3620_v22 = vpop.permute.xlu2 %3619  ;;  %v3610_v31 = vpop.permute.xlu0 %3609 }
 0x63b   : > { %3687 = vst.msk [vmem:[#allocation6 + $0xe8] sm:$0xff] %vm3657_vm3, %v3620_v22 }
 0x63c   : > { %3682 = vst.msk [vmem:[#allocation6 + $0xc0] sm:$0xff] %vm3657_vm3, %v3610_v31  ;;  %v4081_v31 = vld [vmem:[#allocation3 + $0x94] sm:$0xff] }
 0x63d   : > { %3954 = vrot.lane.b32.xlu1 %v9686_v57, %s7528_s23 }
 0x63f   : > { %v3612_v19 = vpop.permute.xlu1 %3611 }
 0x640   : > { %3950 = vrot.lane.b32.xlu2 %v9662_v13, %s7528_s23  ;;  %3958 = vrot.lane.b32.xlu0 %v9684_v49, %s7528_s23  ;;  %3683 = vst.msk [vmem:[#allocation6 + $0xc8] sm:$0xff] %vm3657_vm3, %v3612_v19  ;;  %v4079_v19 = vld [vmem:[#allocation3 + $0x7c] sm:$0xff] }
 0x642   : > { %v3756_v32 = vpop.permute.xlu2 %3755  ;;  %v3616_v38 = vpop.permute.xlu0 %3615 }
 0x643   : > { %3852 = vst.msk [vmem:[#allocation6] sm:$0xff] %vm3851_vm4, %v3756_v32  ;;  %v4083_v32 = vld [vmem:[#allocation3 + $0xac] sm:$0xff] }
 0x644   : > { %3685 = vst.msk [vmem:[#allocation6 + $0xd8] sm:$0xff] %vm3657_vm3, %v3616_v38 }
 0x645   : > { %3960 = vrot.lane.b32.xlu1 %v9701_v40, %s7528_s23 }
 0x647   : > { %v3618_v13 = vpop.permute.xlu1 %3617 }
 0x648   : > { %3956 = vrot.lane.b32.xlu2 %v9677_v46, %s7528_s23  ;;  %3964 = vrot.lane.b32.xlu0 %v9699_v14, %s7528_s23  ;;  %3686 = vst.msk [vmem:[#allocation6 + $0xe0] sm:$0xff] %vm3657_vm3, %v3618_v13 }
 0x64a   : > { %v3762_v49 = vpop.permute.xlu2 %3761  ;;  %v3622_v57 = vpop.permute.xlu0 %3621 }
 0x64b   : > { %3855 = vst.msk [vmem:[#allocation6 + $0x18] sm:$0xff] %vm3851_vm4, %v3762_v49 }
 0x64c   : > { %3688 = vst.msk [vmem:[#allocation6 + $0xf0] sm:$0xff] %vm3657_vm3, %v3622_v57  ;;  %v4084_v57 = vld [vmem:[#allocation3 + $0xb4] sm:$0xff] }
 0x64d   : > { %3966 = vrot.lane.b32.xlu1 %v9716_v50, %s7528_s23  ;;  %v3898_v50 = vld [vmem:[#allocation3 + $0x10a] sm:$0xff] }
 0x64f   : > { %v3624_v46 = vpop.permute.xlu1 %3623 }
 0x650   : > { %3962 = vrot.lane.b32.xlu2 %v9692_v48, %s7528_s23  ;;  %3970 = vrot.lane.b32.xlu0 %v9714_v47, %s7528_s23  ;;  %3689 = vst.msk [vmem:[#allocation6 + $0xf8] sm:$0xff] %vm3657_vm3, %v3624_v46  ;;  %v4082_v46 = vld [vmem:[#allocation3 + $0x9c] sm:$0xff] }
 0x652   : > { %v3768_v14 = vpop.permute.xlu2 %3767  ;;  %v3758_v40 = vpop.permute.xlu0 %3757 }
 0x653   : > { %3858 = vst.msk [vmem:[#allocation6 + $0x30] sm:$0xff] %vm3851_vm4, %v3768_v14  ;;  %v4086_v14 = vld [vmem:[#allocation3 + $0xcc] sm:$0xff] }
 0x654   : > { %3853 = vst.msk [vmem:[#allocation6 + $0x8] sm:$0xff] %vm3851_vm4, %v3758_v40 }
 0x655   : > { %3972 = vrot.lane.b32.xlu1 %v9727_v37, %s7528_s23  ;;  %v3901_v37 = vld [vmem:[#allocation3 + $0x12a] sm:$0xff] }
 0x657   : > { %v3760_v48 = vpop.permute.xlu1 %3759 }
 0x658   : > { %3968 = vrot.lane.b32.xlu2 %v9707_v61, %s7528_s23  ;;  %3976 = vrot.lane.b32.xlu0 %v3898_v50, %s7528_s23  ;;  %3854 = vst.msk [vmem:[#allocation6 + $0x10] sm:$0xff] %vm3851_vm4, %v3760_v48 }
 0x65a   : > { %v3774_v47 = vpop.permute.xlu2 %3773  ;;  %v3764_v27 = vpop.permute.xlu0 %3763 }
 0x65b   : > { %3861 = vst.msk [vmem:[#allocation6 + $0x48] sm:$0xff] %vm3851_vm4, %v3774_v47  ;;  %v4087_v47 = vld [vmem:[#allocation3 + $0xdc] sm:$0xff] }
 0x65c   : > { %3856 = vst.msk [vmem:[#allocation6 + $0x20] sm:$0xff] %vm3851_vm4, %v3764_v27  ;;  %v4085_v27 = vld [vmem:[#allocation3 + $0xc4] sm:$0xff] }
 0x65d   : > { %3978 = vrot.lane.b32.xlu1 %v3899_v6, %s7528_s23  ;;  %v4089_v6 = vld [vmem:[#allocation3 + $0xf4] sm:$0xff] }
 0x65f   : > { %v3766_v61 = vpop.permute.xlu1 %3765 }
 0x660   : > { %3974 = vrot.lane.b32.xlu2 %v3897_v9, %s7528_s23  ;;  %3982 = vrot.lane.b32.xlu0 %v3901_v37, %s7528_s23  ;;  %3857 = vst.msk [vmem:[#allocation6 + $0x28] sm:$0xff] %vm3851_vm4, %v3766_v61 }
 0x662   : > { %v3780_v12 = vpop.permute.xlu2 %3779  ;;  %v3770_v16 = vpop.permute.xlu0 %3769 }
 0x663   : > { %3864 = vst.msk [vmem:[#allocation6 + $0x60] sm:$0xff] %vm3851_vm4, %v3780_v12  ;;  %v4090_v12 = vld [vmem:[#allocation3 + $0xfc] sm:$0xff] }
 0x664   : > { %3859 = vst.msk [vmem:[#allocation6 + $0x38] sm:$0xff] %vm3851_vm4, %v3770_v16  ;;  %v4088_v16 = vld [vmem:[#allocation3 + $0xe4] sm:$0xff] }
 0x665   : > { %3984 = vrot.lane.b32.xlu1 %v3902_v52, %s7528_s23  ;;  %v4092_v52 = vld [vmem:[#allocation3 + $0x114] sm:$0xff] }
 0x667   : > { %v3772_v20 = vpop.permute.xlu1 %3771 }
 0x668   : > { %3980 = vrot.lane.b32.xlu2 %v3900_v45, %s7528_s23  ;;  %3988 = vrot.lane.b32.xlu0 %v3904_v55, %s7528_s23  ;;  %3860 = vst.msk [vmem:[#allocation6 + $0x40] sm:$0xff] %vm3851_vm4, %v3772_v20 }
 0x66a   : > { %v3786_v60 = vpop.permute.xlu2 %3785  ;;  %v3776_v33 = vpop.permute.xlu0 %3775 }
 0x66b   : > { %3867 = vst.msk [vmem:[#allocation6 + $0x78] sm:$0xff] %vm3851_vm4, %v3786_v60  ;;  %v4093_v60 = vld [vmem:[#allocation3 + $0x124] sm:$0xff] }
 0x66c   : > { %3862 = vst.msk [vmem:[#allocation6 + $0x50] sm:$0xff] %vm3851_vm4, %v3776_v33  ;;  %v4091_v33 = vld [vmem:[#allocation3 + $0x10c] sm:$0xff] }
 0x66d   : > { %3990 = vrot.lane.b32.xlu1 %v3905_v3, %s7528_s23  ;;  %v4095_v3 = vld [vmem:[#allocation3 + $0x13c] sm:$0xff] }
 0x66f   : > { %v3778_v63 = vpop.permute.xlu1 %3777 }
 0x670   : > { %3986 = vrot.lane.b32.xlu2 %v3903_v36, %s7528_s23  ;;  %3994 = vrot.lane.b32.xlu0 %v3907_v41, %s7528_s23  ;;  %3863 = vst.msk [vmem:[#allocation6 + $0x58] sm:$0xff] %vm3851_vm4, %v3778_v63 }
 0x672   : > { %v3792_v44 = vpop.permute.xlu2 %3791  ;;  %v3782_v34 = vpop.permute.xlu0 %3781 }
 0x673   : > { %3870 = vst.msk [vmem:[#allocation6 + $0x90] sm:$0xff] %vm3851_vm4, %v3792_v44  ;;  %v4096_v44 = vld [vmem:[#allocation3 + $0x144] sm:$0xff] }
 0x674   : > { %3865 = vst.msk [vmem:[#allocation6 + $0x68] sm:$0xff] %vm3851_vm4, %v3782_v34  ;;  %v4094_v34 = vld [vmem:[#allocation3 + $0x12c] sm:$0xff] }
 0x675   : > { %3996 = vrot.lane.b32.xlu1 %v9769_v28, %s7528_s23 }
 0x677   : > { %v3784_v35 = vpop.permute.xlu1 %3783 }
 0x678   : > { %3992 = vrot.lane.b32.xlu2 %v3906_v51, %s7528_s23  ;;  %4000 = vrot.lane.b32.xlu0 %v9767_v24, %s7528_s23  ;;  %3866 = vst.msk [vmem:[#allocation6 + $0x70] sm:$0xff] %vm3851_vm4, %v3784_v35  ;;  %v4098_v51 = vld [vmem:[#allocation3 + $0x15c] sm:$0xff] }
 0x67a   : > { %v3798_v2 = vpop.permute.xlu2 %3797  ;;  %v3788_v15 = vpop.permute.xlu0 %3787 }
 0x67b   : > { %3873 = vst.msk [vmem:[#allocation6 + $0xa8] sm:$0xff] %vm3851_vm4, %v3798_v2 }
 0x67c   : > { %3868 = vst.msk [vmem:[#allocation6 + $0x80] sm:$0xff] %vm3851_vm4, %v3788_v15 }
 0x67d   : > { %4002 = vrot.lane.b32.xlu1 %v9780_v43, %s7528_s23  ;;  %v4077_v43 = vld [vmem:[#allocation3 + $0x64] sm:$0xff] }
 0x67f   : > { %v3790_v28 = vpop.permute.xlu1 %3789 }
 0x680   : > { %3998 = vrot.lane.b32.xlu2 %v9760_v18, %s7528_s23  ;;  %4006 = vrot.lane.b32.xlu0 %v3913_v56, %s7528_s23  ;;  %3869 = vst.msk [vmem:[#allocation6 + $0x88] sm:$0xff] %vm3851_vm4, %v3790_v28  ;;  %v4099_v56 = vld [vmem:[#allocation3 + $0x16c] sm:$0xff]  ;;  %v4097_v28 = vld [vmem:[#allocation3 + $0x154] sm:$0xff] }
 0x682   : > { %v3804_v24 = vpop.permute.xlu2 %3803  ;;  %v3794_v54 = vpop.permute.xlu0 %3793 }
 0x683   : > { %3876 = vst.msk [vmem:[#allocation6 + $0xc0] sm:$0xff] %vm3851_vm4, %v3804_v24 }
 0x684   : > { %3871 = vst.msk [vmem:[#allocation6 + $0x98] sm:$0xff] %vm3851_vm4, %v3794_v54 }
 0x685   : > { %4008 = vrot.lane.b32.xlu1 %v3914_v21, %s7528_s23 }
 0x687   : > { %v3796_v18 = vpop.permute.xlu1 %3795 }
 0x688   : > { %4004 = vrot.lane.b32.xlu2 %v3912_v4, %s7528_s23  ;;  %4141 = vrot.lane.b32.xlu0 %v4077_v43, %s7529_s24  ;;  %3872 = vst.msk [vmem:[#allocation6 + $0xa0] sm:$0xff] %vm3851_vm4, %v3796_v18  ;;  %v4100_v4 = vld [vmem:[#allocation3 + $0x174] sm:$0xff] }
 0x68a   : > { %v3810_v30 = vpop.permute.xlu2 %3809  ;;  %v3800_v23 = vpop.permute.xlu0 %3799 }
 0x68b   : > { %3879 = vst.msk [vmem:[#allocation6 + $0xd8] sm:$0xff] %vm3851_vm4, %v3810_v30  ;;  %v4326_v30 = vld [vmem:[%s11498_s4 + $0x20] sm:$0xf] }
 0x68c   : > { %3874 = vst.msk [vmem:[#allocation6 + $0xb0] sm:$0xff] %vm3851_vm4, %v3800_v23  ;;  %v4344_v23 = vunpack.c.l.b16 %v4326_v30 }
 0x68d   : > { %4143 = vrot.lane.b32.xlu1 %v4078_v10, %s7529_s24 }
 0x68f   : > { %v3802_v58 = vpop.permute.xlu1 %3801 }
 0x690   : > { %4010 = vrot.lane.b32.xlu2 %v3915_v59, %s7528_s23  ;;  %4147 = vrot.lane.b32.xlu0 %v4080_v0, %s7529_s24  ;;  %3875 = vst.msk [vmem:[#allocation6 + $0xb8] sm:$0xff] %vm3851_vm4, %v3802_v58 }
 0x692   : > { %v3816_v25 = vpop.permute.xlu2 %3815  ;;  %v3806_v22 = vpop.permute.xlu0 %3805 }
 0x693   : > { %3882 = vst.msk [vmem:[#allocation6 + $0xf0] sm:$0xff] %vm3851_vm4, %v3816_v25 }
 0x694   : > { %3877 = vst.msk [vmem:[#allocation6 + $0xc8] sm:$0xff] %vm3851_vm4, %v3806_v22 }
 0x695   : > { %4149 = vrot.lane.b32.xlu1 %v4081_v31, %s7529_s24 }
 0x697   : > { %v3808_v38 = vpop.permute.xlu1 %3807 }
 0x698   : > { %4145 = vrot.lane.b32.xlu2 %v4079_v19, %s7529_s24  ;;  %4153 = vrot.lane.b32.xlu0 %v4083_v32, %s7529_s24  ;;  %3878 = vst.msk [vmem:[#allocation6 + $0xd0] sm:$0xff] %vm3851_vm4, %v3808_v38  ;;  %v7477_v19 = vld [vmem:[%s11499_s5 + $0x18] sm:$0xff]  ;;  %v7472_v32 = vld [vmem:[%s11498_s4 + $0x10] sm:$0xff] }
 0x699   : > { %v7476_v38 = vld [vmem:[%s11499_s5 + $0x10] sm:$0xff] }
 0x69a   : > { %v3951_v13 = vpop.permute.xlu2 %3950  ;;  %v3812_v49 = vpop.permute.xlu0 %3811 }
 0x69b   : > { %4046 = vst.msk [vmem:[#allocation6 + $0x8] sm:$0xff] %vm4044_vm5, %v3951_v13 }
 0x69c   : > { %3880 = vst.msk [vmem:[#allocation6 + $0xe0] sm:$0xff] %vm3851_vm4, %v3812_v49 }
 0x69d   : > { %4155 = vrot.lane.b32.xlu1 %v4084_v57, %s7529_s24 }
 0x69f   : > { %v3814_v40 = vpop.permute.xlu1 %3813 }
 0x6a0   : > { %4151 = vrot.lane.b32.xlu2 %v4082_v46, %s7529_s24  ;;  %4159 = vrot.lane.b32.xlu0 %v4086_v14, %s7529_s24  ;;  %3881 = vst.msk [vmem:[#allocation6 + $0xe8] sm:$0xff] %vm3851_vm4, %v3814_v40  ;;  %v7471_v46 = vld [vmem:[%s11498_s4 + $0x8] sm:$0xff]  ;;  %v7470_v40 = vld [vmem:[%s11498_s4] sm:$0xff] }
 0x6a1   : > { %v7475_v14 = vld [vmem:[%s11499_s5 + $0x8] sm:$0xff] }
 0x6a2   : > { %v3957_v50 = vpop.permute.xlu2 %3956  ;;  %v3818_v48 = vpop.permute.xlu0 %3817 }
 0x6a3   : > { %4049 = vst.msk [vmem:[#allocation6 + $0x20] sm:$0xff] %vm4044_vm5, %v3957_v50  ;;  %v7474_v50 = vld [vmem:[%s11499_s5] sm:$0xff] }
 0x6a4   : > { %3883 = vst.msk [vmem:[#allocation6 + $0xf8] sm:$0xff] %vm3851_vm4, %v3818_v48 }
 0x6a5   : > { %4161 = vrot.lane.b32.xlu1 %v4087_v47, %s7529_s24 }
 0x6a7   : > { %v3949_v9 = vpop.permute.xlu1 %3948 }
 0x6a8   : > { %4157 = vrot.lane.b32.xlu2 %v4085_v27, %s7529_s24  ;;  %4165 = vrot.lane.b32.xlu0 %v4089_v6, %s7529_s24  ;;  %4045 = vst.msk [vmem:[#allocation6] sm:$0xff] %vm4044_vm5, %v3949_v9 }
 0x6aa   : > { %v3963_v37 = vpop.permute.xlu2 %3962  ;;  %v3953_v61 = vpop.permute.xlu0 %3952 }
 0x6ab   : > { %4052 = vst.msk [vmem:[#allocation6 + $0x38] sm:$0xff] %vm4044_vm5, %v3963_v37 }
 0x6ac   : > { %4047 = vst.msk [vmem:[#allocation6 + $0x10] sm:$0xff] %vm4044_vm5, %v3953_v61 }
 0x6ad   : > { %4167 = vrot.lane.b32.xlu1 %v4090_v12, %s7529_s24 }
 0x6af   : > { %v3955_v45 = vpop.permute.xlu1 %3954 }
 0x6b0   : > { %4163 = vrot.lane.b32.xlu2 %v4088_v16, %s7529_s24  ;;  %4171 = vrot.lane.b32.xlu0 %v4092_v52, %s7529_s24  ;;  %4048 = vst.msk [vmem:[#allocation6 + $0x18] sm:$0xff] %vm4044_vm5, %v3955_v45 }
 0x6b2   : > { %v3969_v55 = vpop.permute.xlu2 %3968  ;;  %v3959_v20 = vpop.permute.xlu0 %3958 }
 0x6b3   : > { %4055 = vst.msk [vmem:[#allocation6 + $0x50] sm:$0xff] %vm4044_vm5, %v3969_v55 }
 0x6b4   : > { %4050 = vst.msk [vmem:[#allocation6 + $0x28] sm:$0xff] %vm4044_vm5, %v3959_v20 }
 0x6b5   : > { %4173 = vrot.lane.b32.xlu1 %v4093_v60, %s7529_s24 }
 0x6b7   : > { %v3961_v36 = vpop.permute.xlu1 %3960 }
 0x6b8   : > { %4169 = vrot.lane.b32.xlu2 %v4091_v33, %s7529_s24  ;;  %4177 = vrot.lane.b32.xlu0 %v4095_v3, %s7529_s24  ;;  %4051 = vst.msk [vmem:[#allocation6 + $0x30] sm:$0xff] %vm4044_vm5, %v3961_v36 }
 0x6ba   : > { %v3975_v41 = vpop.permute.xlu2 %3974  ;;  %v3965_v63 = vpop.permute.xlu0 %3964 }
 0x6bb   : > { %4058 = vst.msk [vmem:[#allocation6 + $0x68] sm:$0xff] %vm4044_vm5, %v3975_v41 }
 0x6bc   : > { %4053 = vst.msk [vmem:[#allocation6 + $0x40] sm:$0xff] %vm4044_vm5, %v3965_v63 }
 0x6bd   : > { %4179 = vrot.lane.b32.xlu1 %v4096_v44, %s7529_s24 }
 0x6bf   : > { %v3967_v35 = vpop.permute.xlu1 %3966 }
 0x6c0   : > { %4175 = vrot.lane.b32.xlu2 %v4094_v34, %s7529_s24  ;;  %4183 = vrot.lane.b32.xlu0 %v4098_v51, %s7529_s24  ;;  %4054 = vst.msk [vmem:[#allocation6 + $0x48] sm:$0xff] %vm4044_vm5, %v3967_v35 }
 0x6c2   : > { %v3981_v2 = vpop.permute.xlu2 %3980  ;;  %v3971_v15 = vpop.permute.xlu0 %3970 }
 0x6c3   : > { %4061 = vst.msk [vmem:[#allocation6 + $0x80] sm:$0xff] %vm4044_vm5, %v3981_v2 }
 0x6c4   : > { %4056 = vst.msk [vmem:[#allocation6 + $0x58] sm:$0xff] %vm4044_vm5, %v3971_v15 }
 0x6c5   : > { %4185 = vrot.lane.b32.xlu1 %v4099_v56, %s7529_s24 }
 0x6c7   : > { %v3973_v24 = vpop.permute.xlu1 %3972 }
 0x6c8   : > { %4181 = vrot.lane.b32.xlu2 %v4097_v28, %s7529_s24  ;;  %4189 = vrot.lane.b32.xlu0 %v9863_v62, %s7529_s24  ;;  %4057 = vst.msk [vmem:[#allocation6 + $0x60] sm:$0xff] %vm4044_vm5, %v3973_v24 }
 0x6ca   : > { %v3987_v54 = vpop.permute.xlu2 %3986  ;;  %v3977_v21 = vpop.permute.xlu0 %3976 }
 0x6cb   : > { %4064 = vst.msk [vmem:[#allocation6 + $0x98] sm:$0xff] %vm4044_vm5, %v3987_v54 }
 0x6cc   : > { %4059 = vst.msk [vmem:[#allocation6 + $0x70] sm:$0xff] %vm4044_vm5, %v3977_v21 }
 0x6cd   : > { %4191 = vrot.lane.b32.xlu1 %v9878_v26, %s7529_s24  ;;  %v4535_v26 = vld [vmem:[%s11499_s5 + $0x20] sm:$0xf] }
 0x6ce   : > { %v4553_v59 = vunpack.c.l.b16 %v4535_v26 }
 0x6cf   : > { %v3979_v43 = vpop.permute.xlu1 %3978 }
 0x6d0   : > { %4187 = vrot.lane.b32.xlu2 %v4100_v4, %s7529_s24  ;;  %4195 = vrot.lane.b32.xlu0 %v9876_v17, %s7529_s24  ;;  %4060 = vst.msk [vmem:[#allocation6 + $0x78] sm:$0xff] %vm4044_vm5, %v3979_v43  ;;  %v4349_v17 = vpack.c.b16 %v4344_v23, %v4344_v23  ;;  %v4558_v10 = vpack.c.b16 %v4553_v59, %v4553_v59 }
 0x6d2   : > { %v3993_v62 = vpop.permute.xlu2 %3992  ;;  %v3983_v18 = vpop.permute.xlu0 %3982  ;;  %v4404_v25 = vsel %vm2536_vm14, %v4349_v17, 0  ;;  %v4564_v22 = vsel %vm2536_vm14, %v4558_v10, 0 }
 0x6d3   : > { %4067 = vst.msk [vmem:[#allocation6 + $0xb0] sm:$0xff] %vm4044_vm5, %v3993_v62  ;;  %4409 = vmatpush.bf16.msra.mxu2 %v4404_v25  ;;  %4569 = vmatpush.bf16.msra.mxu3 %v4564_v22 }
 0x6d4   : > { %4062 = vst.msk [vmem:[#allocation6 + $0x88] sm:$0xff] %vm4044_vm5, %v3983_v18 }
 0x6d7   : > { %v3985_v0 = vpop.permute.xlu1 %3984  ;;  %4570 = vmatpush.bf16.msra.mxu3 %v7477_v19 }
 0x6d8   : > { %4193 = vrot.lane.b32.xlu2 %v9869_v39, %s7529_s24  ;;  %4063 = vst.msk [vmem:[#allocation6 + $0x90] sm:$0xff] %vm4044_vm5, %v3985_v0  ;;  %v7473_v39 = vld [vmem:[%s11498_s4 + $0x18] sm:$0xff] }
 0x6d9   : > { %4410 = vmatpush.bf16.msra.mxu2 %v7473_v39 }
 0x6da   : > { %v3999_v58 = vpop.permute.xlu2 %3998  ;;  %v3989_v31 = vpop.permute.xlu0 %3988 }
 0x6db   : > { %4070 = vst.msk [vmem:[#allocation6 + $0xc8] sm:$0xff] %vm4044_vm5, %v3999_v58  ;;  %4571 = vmatpush.bf16.msra.mxu3 %v7476_v38 }
 0x6dc   : > { %4065 = vst.msk [vmem:[#allocation6 + $0xa0] sm:$0xff] %vm4044_vm5, %v3989_v31 }
 0x6dd   : > { %4411 = vmatpush.bf16.msra.mxu2 %v7472_v32 }
 0x6df   : > { %v3991_v13 = vpop.permute.xlu1 %3990  ;;  %4572 = vmatpush.bf16.msra.mxu3 %v7475_v14  ;;  %v4108_v14 = vld [vmem:[#allocation3 + $0x1d4] sm:$0xff] }
 0x6e0   : > { %4066 = vst.msk [vmem:[#allocation6 + $0xa8] sm:$0xff] %vm4044_vm5, %v3991_v13  ;;  %v4105_v13 = vld [vmem:[#allocation3 + $0x1b4] sm:$0xff] }
 0x6e1   : > { %4412 = vmatpush.bf16.msra.mxu2 %v7471_v46  ;;  %4197 = vrot.lane.b32.xlu1 %v4105_v13, %s7529_s24 }
 0x6e2   : > { %v4005_v49 = vpop.permute.xlu2 %4004  ;;  %v3995_v57 = vpop.permute.xlu0 %3994 }
 0x6e3   : > { %4073 = vst.msk [vmem:[#allocation6 + $0xe0] sm:$0xff] %vm4044_vm5, %v4005_v49  ;;  %4573 = vmatpush.bf16.msra.mxu3 %v7474_v50  ;;  %v4106_v50 = vld [vmem:[#allocation3 + $0x1bc] sm:$0xff] }
 0x6e4   : > { %4068 = vst.msk [vmem:[#allocation6 + $0xb8] sm:$0xff] %vm4044_vm5, %v3995_v57  ;;  %4199 = vrot.lane.b32.xlu2 %v4106_v50, %s7529_s24 }
 0x6e5   : > { %4413 = vmatpush.bf16.msra.mxu2 %v7470_v40  ;;  %v4107_v40 = vld [vmem:[#allocation3 + $0x1cc] sm:$0xff] }
 0x6e6   : > { %4201 = vrot.lane.b32.xlu0 %v4107_v40, %s7529_s24 }
 0x6e7   : > { %v3997_v48 = vpop.permute.xlu1 %3996 }
 0x6e8   : > { %4069 = vst.msk [vmem:[#allocation6 + $0xc0] sm:$0xff] %vm4044_vm5, %v3997_v48 }
 0x6e9   : > { %4203 = vrot.lane.b32.xlu1 %v4108_v14, %s7529_s24 }
 0x6ea   : > { %v4011_v47 = vpop.permute.xlu2 %4010  ;;  %v4001_v27 = vpop.permute.xlu0 %4000 }
 0x6eb   : > { %4076 = vst.msk [vmem:[#allocation6 + $0xf8] sm:$0xff] %vm4044_vm5, %v4011_v47 }
 0x6ec   : > { %4071 = vst.msk [vmem:[#allocation6 + $0xd0] sm:$0xff] %vm4044_vm5, %v4001_v27 }
 0x6ef   : > { %v4003_v6 = vpop.permute.xlu1 %4002 }
 0x6f0   : > { %4072 = vst.msk [vmem:[#allocation6 + $0xd8] sm:$0xff] %vm4044_vm5, %v4003_v6  ;;  %v4785_v6 = vld [vmem:[#allocation4 + $0xa] sm:$0xff] }
 0x6f1   : > { %4850 = vrot.lane.b32.xlu0 %v4785_v6, %s7519_s16 }
 0x6f2   : > { %v4146_v9 = vpop.permute.xlu2 %4145  ;;  %v4007_v37 = vpop.permute.xlu0 %4006 }
 0x6f3   : > { %4240 = vst.msk [vmem:[#allocation6 + $0x10] sm:$0xff] %vm4237_vm6, %v4146_v9 }
 0x6f4   : > { %4074 = vst.msk [vmem:[#allocation6 + $0xe8] sm:$0xff] %vm4044_vm5, %v4007_v37 }
 0x6f7   : > { %v4009_v61 = vpop.permute.xlu1 %4008 }
 0x6f8   : > { %4075 = vst.msk [vmem:[#allocation6 + $0xf0] sm:$0xff] %vm4044_vm5, %v4009_v61 }
 0x6fa   : > { %v4152_v12 = vpop.permute.xlu2 %4151  ;;  %v4142_v16 = vpop.permute.xlu0 %4141  ;;  %v4272_v15 = vld [vmem:[#allocation6 + $0x10] sm:$0xff] }
 0x6fb   : > { %4243 = vst.msk [vmem:[#allocation6 + $0x28] sm:$0xff] %vm4237_vm6, %v4152_v12  ;;  %v7414_v12 = vld [vmem:[%s11501_s7 + $0x4] sm:$0xf] }
 0x6fc   : > { %4238 = vst.msk [vmem:[#allocation6] sm:$0xff] %vm4237_vm6, %v4142_v16  ;;  %v4786_v16 = vld [vmem:[#allocation4 + $0x1a] sm:$0xff] }
 0x6fd   : > { %4852 = vrot.lane.b32.xlu1 %v4786_v16, %s7519_s16 }
 0x6ff   : > { %v4144_v52 = vpop.permute.xlu1 %4143 }
 0x700   : > { %4239 = vst.msk [vmem:[#allocation6 + $0x8] sm:$0xff] %vm4237_vm6, %v4144_v52  ;;  %v4784_v52 = vld [vmem:[#allocation4 + $0x2] sm:$0xff] }
 0x701   : > { %4848 = vrot.lane.b32.xlu2 %v4784_v52, %s7519_s16 }
 0x702   : > { %v4158_v45 = vpop.permute.xlu2 %4157  ;;  %v4148_v55 = vpop.permute.xlu0 %4147  ;;  %v4275_v18 = vld [vmem:[#allocation6 + $0x28] sm:$0xff] }
 0x703   : > { %4246 = vst.msk [vmem:[#allocation6 + $0x40] sm:$0xff] %vm4237_vm6, %v4158_v45  ;;  %v4270_v33 = vld [vmem:[#allocation6] sm:$0xff]  ;;  %v6661_v45 = vsel %vm2536_vm14, %v7414_v12, 0 }
 0x704   : > { %4241 = vst.msk [vmem:[#allocation6 + $0x18] sm:$0xff] %vm4237_vm6, %v4148_v55  ;;  %6670 = vmatpush.bf16.msrb.mxu0 %v6661_v45  ;;  %v4787_v55 = vld [vmem:[#allocation4 + $0x22] sm:$0xff] }
 0x707   : > { %v4150_v20 = vpop.permute.xlu1 %4149  ;;  %v4271_v3 = vld [vmem:[#allocation6 + $0x8] sm:$0xff] }
 0x708   : > { %4242 = vst.msk [vmem:[#allocation6 + $0x20] sm:$0xff] %vm4237_vm6, %v4150_v20  ;;  %v4302_v41 = vpack.c.bf16 %v4271_v3, %v4270_v33 }
 0x709   : > { %4854 = vrot.lane.b32.xlu2 %v4787_v55, %s7519_s16 }
 0x70a   : > { %v4164_v60 = vpop.permute.xlu2 %4163  ;;  %v4154_v36 = vpop.permute.xlu0 %4153  ;;  %7334 = vmatmul.msk.bf16.vlgmr.msra.gmra.mxu2 %vm4354_vm7, %v4302_v41  ;;  %7366 = vmatmul.msk.bf16.vlgmr.msra.gmra.mxu3 %vm4354_vm7, %v4302_v41  ;;  %v4278_v32 = vld [vmem:[#allocation6 + $0x40] sm:$0xff] }
 0x70b   : > { %4249 = vst.msk [vmem:[#allocation6 + $0x58] sm:$0xff] %vm4237_vm6, %v4164_v60  ;;  %v4273_v51 = vld [vmem:[#allocation6 + $0x18] sm:$0xff] }
 0x70c   : > { %4244 = vst.msk [vmem:[#allocation6 + $0x30] sm:$0xff] %vm4237_vm6, %v4154_v36  ;;  %v4303_v28 = vpack.c.bf16 %v4273_v51, %v4272_v15 }
 0x70f   : > { %v4156_v63 = vpop.permute.xlu1 %4155  ;;  %v4274_v4 = vld [vmem:[#allocation6 + $0x20] sm:$0xff] }
 0x710   : > { %4245 = vst.msk [vmem:[#allocation6 + $0x38] sm:$0xff] %vm4237_vm6, %v4156_v63  ;;  %v4304_v26 = vpack.c.bf16 %v4275_v18, %v4274_v4 }
 0x712   : > { %v4170_v44 = vpop.permute.xlu2 %4169  ;;  %v4160_v34 = vpop.permute.xlu0 %4159  ;;  %v4281_v57 = vld [vmem:[#allocation6 + $0x58] sm:$0xff] }
 0x713   : > { %4252 = vst.msk [vmem:[#allocation6 + $0x70] sm:$0xff] %vm4237_vm6, %v4170_v44  ;;  %v4276_v58 = vld [vmem:[#allocation6 + $0x30] sm:$0xff] }
 0x714   : > { %4247 = vst.msk [vmem:[#allocation6 + $0x48] sm:$0xff] %vm4237_vm6, %v4160_v34 }
 0x717   : > { %v4162_v35 = vpop.permute.xlu1 %4161  ;;  %v4277_v10 = vld [vmem:[#allocation6 + $0x38] sm:$0xff] }
 0x718   : > { %4248 = vst.msk [vmem:[#allocation6 + $0x50] sm:$0xff] %vm4237_vm6, %v4162_v35  ;;  %v4305_v22 = vpack.c.bf16 %v4277_v10, %v4276_v58 }
 0x71a   : > { %v4176_v2 = vpop.permute.xlu2 %4175  ;;  %v4166_v56 = vpop.permute.xlu0 %4165  ;;  %7335 = vmatmul.msk.bf16.gmra.mxu2 %vm4354_vm7, %v4303_v28  ;;  %7367 = vmatmul.msk.bf16.gmra.mxu3 %vm4354_vm7, %v4303_v28  ;;  %v4284_v37 = vld [vmem:[#allocation6 + $0x70] sm:$0xff] }
 0x71b   : > { %4255 = vst.msk [vmem:[#allocation6 + $0x88] sm:$0xff] %vm4237_vm6, %v4176_v2  ;;  %v4279_v19 = vld [vmem:[#allocation6 + $0x48] sm:$0xff] }
 0x71c   : > { %4250 = vst.msk [vmem:[#allocation6 + $0x60] sm:$0xff] %vm4237_vm6, %v4166_v56  ;;  %v4306_v38 = vpack.c.bf16 %v4279_v19, %v4278_v32 }
 0x71f   : > { %v4168_v24 = vpop.permute.xlu1 %4167  ;;  %v4280_v49 = vld [vmem:[#allocation6 + $0x50] sm:$0xff] }
 0x720   : > { %4251 = vst.msk [vmem:[#allocation6 + $0x68] sm:$0xff] %vm4237_vm6, %v4168_v24  ;;  %v4307_v46 = vpack.c.bf16 %v4281_v57, %v4280_v49 }
 0x722   : > { %v4182_v54 = vpop.permute.xlu2 %4181  ;;  %v4172_v21 = vpop.permute.xlu0 %4171  ;;  %v4287_v60 = vld [vmem:[#allocation6 + $0x88] sm:$0xff] }
 0x723   : > { %4258 = vst.msk [vmem:[#allocation6 + $0xa0] sm:$0xff] %vm4237_vm6, %v4182_v54  ;;  %v4282_v47 = vld [vmem:[#allocation6 + $0x60] sm:$0xff] }
 0x724   : > { %4253 = vst.msk [vmem:[#allocation6 + $0x78] sm:$0xff] %vm4237_vm6, %v4172_v21 }
 0x727   : > { %v4174_v43 = vpop.permute.xlu1 %4173  ;;  %v4283_v48 = vld [vmem:[#allocation6 + $0x68] sm:$0xff] }
 0x728   : > { %4254 = vst.msk [vmem:[#allocation6 + $0x80] sm:$0xff] %vm4237_vm6, %v4174_v43  ;;  %v4308_v27 = vpack.c.bf16 %v4283_v48, %v4282_v47 }
 0x72a   : > { %v4188_v62 = vpop.permute.xlu2 %4187  ;;  %v4178_v30 = vpop.permute.xlu0 %4177  ;;  %7336 = vmatmul.msk.bf16.gmra.mxu2 %vm4354_vm7, %v4304_v26  ;;  %7368 = vmatmul.msk.bf16.gmra.mxu3 %vm4354_vm7, %v4304_v26  ;;  %v4290_v58 = vld [vmem:[#allocation6 + $0xa0] sm:$0xff] }
 0x72b   : > { %4261 = vst.msk [vmem:[#allocation6 + $0xb8] sm:$0xff] %vm4237_vm6, %v4188_v62  ;;  %v4285_v9 = vld [vmem:[#allocation6 + $0x78] sm:$0xff] }
 0x72c   : > { %4256 = vst.msk [vmem:[#allocation6 + $0x90] sm:$0xff] %vm4237_vm6, %v4178_v30  ;;  %v4309_v61 = vpack.c.bf16 %v4285_v9, %v4284_v37 }
 0x72f   : > { %v4180_v23 = vpop.permute.xlu1 %4179  ;;  %v4286_v20 = vld [vmem:[#allocation6 + $0x80] sm:$0xff] }
 0x730   : > { %4257 = vst.msk [vmem:[#allocation6 + $0x98] sm:$0xff] %vm4237_vm6, %v4180_v23  ;;  %v4310_v33 = vpack.c.bf16 %v4287_v60, %v4286_v20 }
 0x732   : > { %v4194_v59 = vpop.permute.xlu2 %4193  ;;  %v4184_v17 = vpop.permute.xlu0 %4183  ;;  %v4293_v47 = vld [vmem:[#allocation6 + $0xb8] sm:$0xff] }
 0x733   : > { %4264 = vst.msk [vmem:[#allocation6 + $0xd0] sm:$0xff] %vm4237_vm6, %v4194_v59  ;;  %v4288_v56 = vld [vmem:[#allocation6 + $0x90] sm:$0xff] }
 0x734   : > { %4259 = vst.msk [vmem:[#allocation6 + $0xa8] sm:$0xff] %vm4237_vm6, %v4184_v17 }
 0x737   : > { %v4186_v0 = vpop.permute.xlu1 %4185  ;;  %v4289_v34 = vld [vmem:[#allocation6 + $0x98] sm:$0xff] }
 0x738   : > { %4260 = vst.msk [vmem:[#allocation6 + $0xb0] sm:$0xff] %vm4237_vm6, %v4186_v0  ;;  %v4311_v54 = vpack.c.bf16 %v4289_v34, %v4288_v56 }
 0x73a   : > { %v4190_v25 = vpop.permute.xlu0 %4189  ;;  %7337 = vmatmul.msk.bf16.gmra.mxu2 %vm4354_vm7, %v4305_v22  ;;  %7369 = vmatmul.msk.bf16.gmra.mxu3 %vm4354_vm7, %v4305_v22 }
 0x73b   : > { %4262 = vst.msk [vmem:[#allocation6 + $0xc0] sm:$0xff] %vm4237_vm6, %v4190_v25  ;;  %v4291_v23 = vld [vmem:[#allocation6 + $0xa8] sm:$0xff] }
 0x73e   : > { %v4200_v45 = vpop.permute.xlu2 %4199 }
 0x73f   : > { %v4192_v31 = vpop.permute.xlu1 %4191  ;;  %4267 = vst.msk [vmem:[#allocation6 + $0xe8] sm:$0xff] %vm4237_vm6, %v4200_v45 }
 0x740   : > { %4263 = vst.msk [vmem:[#allocation6 + $0xc8] sm:$0xff] %vm4237_vm6, %v4192_v31  ;;  %v4312_v31 = vpack.c.bf16 %v4291_v23, %v4290_v58  ;;  %v4296_v58 = vld [vmem:[#allocation6 + $0xd0] sm:$0xff] }
 0x742   : > { %v4196_v39 = vpop.permute.xlu0 %4195 }
 0x743   : > { %4265 = vst.msk [vmem:[#allocation6 + $0xd8] sm:$0xff] %vm4237_vm6, %v4196_v39 }
 0x74a   : > { %7338 = vmatmul.msk.bf16.gmra.mxu2 %vm4354_vm7, %v4306_v38  ;;  %7370 = vmatmul.msk.bf16.gmra.mxu3 %vm4354_vm7, %v4306_v38  ;;  %v4297_v23 = vld [vmem:[#allocation6 + $0xd8] sm:$0xff] }
 0x753   : > { %v4198_v52 = vpop.permute.xlu1 %4197 }
 0x754   : > { %4266 = vst.msk [vmem:[#allocation6 + $0xe0] sm:$0xff] %vm4237_vm6, %v4198_v52 }
 0x75a   : > { %7339 = vmatmul.msk.bf16.gmra.mxu2 %vm4354_vm7, %v4307_v46  ;;  %7371 = vmatmul.msk.bf16.gmra.mxu3 %vm4354_vm7, %v4307_v46  ;;  %v4292_v46 = vld [vmem:[#allocation6 + $0xb0] sm:$0xff] }
 0x75b   : > { %v4313_v9 = vpack.c.bf16 %v4293_v47, %v4292_v46  ;;  %v4721_v47 = vld [vmem:[#allocation4 + $0x8] sm:$0xff] }
 0x75c   : > { %4753 = vst.msk [vmem:[#allocation6 + $0x8] sm:$0xff] %vm396_vm12, %v4721_v47 }
 0x76a   : > { %7340 = vmatmul.msk.bf16.gmra.mxu2 %vm4354_vm7, %v4308_v27  ;;  %7372 = vmatmul.msk.bf16.gmra.mxu3 %vm4354_vm7, %v4308_v27 }
 0x77a   : > { %7341 = vmatmul.msk.bf16.gmra.mxu2 %vm4354_vm7, %v4309_v61  ;;  %7373 = vmatmul.msk.bf16.gmra.mxu3 %vm4354_vm7, %v4309_v61 }
 0x78a   : > { %7342 = vmatmul.msk.bf16.gmra.mxu2 %vm4354_vm7, %v4310_v33  ;;  %7374 = vmatmul.msk.bf16.gmra.mxu3 %vm4354_vm7, %v4310_v33  ;;  %v4295_v33 = vld [vmem:[#allocation6 + $0xc8] sm:$0xff] }
 0x78d   : > { %v4415_v3 = vpop.f32.mrf.mxu2  ;;  %v4575_v36 = vpop.f32.mrf.mxu3 }
 0x78e   : > { %v4655_v41 = vmax.f32 %v4575_v36, 0.0  ;;  %v4495_v51 = vmax.f32 %v4415_v3, 0.0 }
 0x790   : > { %4688 = vst.msk [vmem:[#allocation4 + $0x32] sm:$0xff] %vm396_vm12, %v4655_v41 }
 0x795   : > { %v4417_v63 = vpop.f32.mrf.mxu2  ;;  %v4577_v44 = vpop.f32.mrf.mxu3 }
 0x796   : > { %v4496_v35 = vmax.f32 %v4417_v63, 0.0  ;;  %v4656_v2 = vmax.f32 %v4577_v44, 0.0  ;;  %v4294_v44 = vld [vmem:[#allocation6 + $0xc0] sm:$0xff] }
 0x797   : > { %v4788_v15 = vld [vmem:[#allocation4 + $0x32] sm:$0xff] }
 0x798   : > { %v10201_v28 = vld [vmem:[#allocation4 + $0x30] sm:$0xff]  ;;  %v6594_v24 = vpack.c.bf16 %v4496_v35, %v4495_v51  ;;  %4689 = vst.msk [vmem:[#allocation4 + $0x3a] sm:$0xff] %vm396_vm12, %v4656_v2  ;;  %4856 = vrot.lane.b32.xlu0 %v4788_v15, %s7519_s16  ;;  %v4314_v35 = vpack.c.bf16 %v4295_v33, %v4294_v44 }
 0x799   : > { %4756 = vst.msk [vmem:[#allocation6 + $0x20] sm:$0xff] %vm396_vm12, %v10201_v28 }
 0x79a   : > { %7343 = vmatmul.msk.bf16.gmra.mxu2 %vm4354_vm7, %v4311_v54  ;;  %7375 = vmatmul.msk.bf16.gmra.mxu3 %vm4354_vm7, %v4311_v54  ;;  %v4204_v54 = vpop.permute.xlu1 %4203 }
 0x79b   : > { %7415 = vmatmul.msk.bf16.vlgmr.msrb.gmra.mxu0 %vm396_vm12, %v6594_v24  ;;  %4269 = vst.msk [vmem:[#allocation6 + $0xf8] sm:$0xff] %vm4237_vm6, %v4204_v54 }
 0x79d   : > { %v4420_v21 = vpop.f32.mrf.mxu2  ;;  %v4580_v4 = vpop.f32.mrf.mxu3 }
 0x79e   : > { %v4657_v43 = vmax.f32 %v4580_v4, 0.0  ;;  %v4497_v59 = vmax.f32 %v4420_v21, 0.0  ;;  %v4202_v21 = vpop.permute.xlu0 %4201  ;;  %v4720_v4 = vld [vmem:[#allocation4] sm:$0xff] }
 0x79f   : > { %v4789_v62 = vld [vmem:[#allocation4 + $0x3a] sm:$0xff]  ;;  %4268 = vst.msk [vmem:[#allocation6 + $0xf0] sm:$0xff] %vm4237_vm6, %v4202_v21 }
 0x7a0   : > { %v10210_v18 = vld [vmem:[#allocation4 + $0x38] sm:$0xff]  ;;  %4690 = vst.msk [vmem:[#allocation4 + $0x4a] sm:$0xff] %vm396_vm12, %v4657_v43  ;;  %4858 = vrot.lane.b32.xlu1 %v4789_v62, %s7519_s16  ;;  %v4849_v62 = vpop.permute.xlu2 %4848 }
 0x7a1   : > { %4757 = vst.msk [vmem:[#allocation6 + $0x28] sm:$0xff] %vm396_vm12, %v10210_v18 }
 0x7a2   : > { %4752 = vst.msk [vmem:[#allocation6] sm:$0xff] %vm396_vm12, %v4720_v4 }
 0x7a3   : > { %4944 = vst.msk [vmem:[#allocation6] sm:$0xff] %vm2885_vm15, %v4849_v62 }
 0x7a5   : > { %v4422_v30 = vpop.f32.mrf.mxu2  ;;  %v4582_v26 = vpop.f32.mrf.mxu3 }
 0x7a6   : > { %v4498_v17 = vmax.f32 %v4422_v30, 0.0  ;;  %v4658_v10 = vmax.f32 %v4582_v26, 0.0 }
 0x7a7   : > { %v4790_v0 = vld [vmem:[#allocation4 + $0x4a] sm:$0xff] }
 0x7a8   : > { %v10216_v25 = vld [vmem:[#allocation4 + $0x48] sm:$0xff]  ;;  %v6595_v22 = vpack.c.bf16 %v4498_v17, %v4497_v59  ;;  %4691 = vst.msk [vmem:[#allocation4 + $0x52] sm:$0xff] %vm396_vm12, %v4658_v10  ;;  %4860 = vrot.lane.b32.xlu2 %v4790_v0, %s7519_s16 }
 0x7a9   : > { %4758 = vst.msk [vmem:[#allocation6 + $0x30] sm:$0xff] %vm396_vm12, %v10216_v25 }
 0x7aa   : > { %7344 = vmatmul.msk.bf16.gmra.mxu2 %vm4354_vm7, %v4312_v31  ;;  %7376 = vmatmul.msk.bf16.gmra.mxu3 %vm4354_vm7, %v4312_v31 }
 0x7ab   : > { %7416 = vmatmul.msk.bf16.gmra.mxu0 %vm396_vm12, %v6595_v22 }
 0x7ad   : > { %v4425_v39 = vpop.f32.mrf.mxu2  ;;  %v4585_v19 = vpop.f32.mrf.mxu3 }
 0x7ae   : > { %v4659_v32 = vmax.f32 %v4585_v19, 0.0  ;;  %v4499_v14 = vmax.f32 %v4425_v39, 0.0  ;;  %v4315_v39 = vpack.c.bf16 %v4297_v23, %v4296_v58  ;;  %v4723_v19 = vld [vmem:[#allocation4 + $0x20] sm:$0xff] }
 0x7af   : > { %v4791_v38 = vld [vmem:[#allocation4 + $0x52] sm:$0xff]  ;;  %4755 = vst.msk [vmem:[#allocation6 + $0x18] sm:$0xff] %vm396_vm12, %v4723_v19 }
 0x7b0   : > { %v10225_v13 = vld [vmem:[#allocation4 + $0x50] sm:$0xff]  ;;  %4692 = vst.msk [vmem:[#allocation4 + $0x62] sm:$0xff] %vm396_vm12, %v4659_v32  ;;  %4862 = vrot.lane.b32.xlu0 %v4791_v38, %s7519_s16  ;;  %v4855_v32 = vpop.permute.xlu2 %4854 }
 0x7b1   : > { %4759 = vst.msk [vmem:[#allocation6 + $0x38] sm:$0xff] %vm396_vm12, %v10225_v13 }
 0x7b2   : > { %4947 = vst.msk [vmem:[#allocation6 + $0x18] sm:$0xff] %vm2885_vm15, %v4855_v32  ;;  %v11660_v32 = vld [vmem:[#allocation33_spill] sm:$0xff] }
 0x7b5   : > { %v4427_v49 = vpop.f32.mrf.mxu2  ;;  %v4587_v57 = vpop.f32.mrf.mxu3 }
 0x7b6   : > { %v4500_v40 = vmax.f32 %v4427_v49, 0.0  ;;  %v4660_v50 = vmax.f32 %v4587_v57, 0.0 }
 0x7b7   : > { %v10231_v48 = vld [vmem:[#allocation4 + $0x62] sm:$0xff] }
 0x7b8   : > { %v10233_v27 = vld [vmem:[#allocation4 + $0x60] sm:$0xff]  ;;  %v6596_v6 = vpack.c.bf16 %v4500_v40, %v4499_v14  ;;  %4693 = vst.msk [vmem:[#allocation4 + $0x6a] sm:$0xff] %vm396_vm12, %v4660_v50  ;;  %4864 = vrot.lane.b32.xlu1 %v10231_v48, %s7519_s16  ;;  %v4299_v50 = vld [vmem:[#allocation6 + $0xe8] sm:$0xff] }
 0x7b9   : > { %4760 = vst.msk [vmem:[#allocation6 + $0x40] sm:$0xff] %vm396_vm12, %v10233_v27  ;;  %v4298_v40 = vld [vmem:[#allocation6 + $0xe0] sm:$0xff] }
 0x7ba   : > { %7345 = vmatmul.msk.bf16.gmra.mxu2 %vm4354_vm7, %v4313_v9  ;;  %7377 = vmatmul.msk.bf16.gmra.mxu3 %vm4354_vm7, %v4313_v9  ;;  %v4316_v45 = vpack.c.bf16 %v4299_v50, %v4298_v40 }
 0x7bb   : > { %7417 = vmatmul.msk.bf16.gmra.mxu0 %vm396_vm12, %v6596_v6  ;;  %v4851_v6 = vpop.permute.xlu0 %4850 }
 0x7bc   : > { %4945 = vst.msk [vmem:[#allocation6 + $0x8] sm:$0xff] %vm2885_vm15, %v4851_v6 }
 0x7bd   : > { %v4430_v37 = vpop.f32.mrf.mxu2  ;;  %v4590_v61 = vpop.f32.mrf.mxu3 }
 0x7be   : > { %v4661_v12 = vmax.f32 %v4590_v61, 0.0  ;;  %v4501_v3 = vmax.f32 %v4430_v37, 0.0 }
 0x7bf   : > { %v10243_v16 = vld [vmem:[#allocation4 + $0x6a] sm:$0xff] }
 0x7c0   : > { %4694 = vst.msk [vmem:[#allocation4 + $0x7a] sm:$0xff] %vm396_vm12, %v4661_v12  ;;  %4866 = vrot.lane.b32.xlu2 %v10243_v16, %s7519_s16  ;;  %v10248_v55 = vld [vmem:[#allocation4 + $0x68] sm:$0xff] }
 0x7c1   : > { %4761 = vst.msk [vmem:[#allocation6 + $0x48] sm:$0xff] %vm396_vm12, %v10248_v55 }
 0x7c5   : > { %v4432_v20 = vpop.f32.mrf.mxu2  ;;  %v4592_v60 = vpop.f32.mrf.mxu3 }
 0x7c6   : > { %v4502_v36 = vmax.f32 %v4432_v20, 0.0  ;;  %v4662_v41 = vmax.f32 %v4592_v60, 0.0 }
 0x7c7   : > { %v4794_v63 = vld [vmem:[#allocation4 + $0x7a] sm:$0xff] }
 0x7c8   : > { %v10254_v34 = vld [vmem:[#allocation4 + $0x78] sm:$0xff]  ;;  %v6597_v51 = vpack.c.bf16 %v4502_v36, %v4501_v3  ;;  %4695 = vst.msk [vmem:[#allocation4 + $0x82] sm:$0xff] %vm396_vm12, %v4662_v41  ;;  %4868 = vrot.lane.b32.xlu0 %v4794_v63, %s7519_s16  ;;  %v6593_v3 = vld [vmem:[%s11501_s7] sm:$0xf]  ;;  %v4853_v63 = vpop.permute.xlu1 %4852 }
 0x7c9   : > { %4762 = vst.msk [vmem:[#allocation6 + $0x50] sm:$0xff] %vm396_vm12, %v10254_v34  ;;  %v4722_v36 = vld [vmem:[#allocation4 + $0x18] sm:$0xff]  ;;  %v6801_v41 = vsel %vm2536_vm14, %v6593_v3, 0 }
 0x7ca   : > { %7346 = vmatmul.msk.bf16.gmra.mxu2 %vm4354_vm7, %v4314_v35  ;;  %7378 = vmatmul.msk.bf16.gmra.mxu3 %vm4354_vm7, %v4314_v35  ;;  %4754 = vst.msk [vmem:[#allocation6 + $0x10] sm:$0xff] %vm396_vm12, %v4722_v36 }
 0x7cb   : > { %7418 = vmatmul.msk.bf16.gmra.mxu0 %vm396_vm12, %v6597_v51  ;;  %6810 = vmatpush.bf16.msrb.mxu2 %v6801_v41  ;;  %4946 = vst.msk [vmem:[#allocation6 + $0x10] sm:$0xff] %vm2885_vm15, %v4853_v63 }
 0x7cd   : > { %v4435_v2 = vpop.f32.mrf.mxu2  ;;  %v4595_v15 = vpop.f32.mrf.mxu3 }
 0x7ce   : > { %v4663_v56 = vmax.f32 %v4595_v15, 0.0  ;;  %v4503_v59 = vmax.f32 %v4435_v2, 0.0 }
 0x7cf   : > { %v4795_v24 = vld [vmem:[#allocation4 + $0x82] sm:$0xff] }
 0x7d0   : > { %4696 = vst.msk [vmem:[#allocation4 + $0x92] sm:$0xff] %vm396_vm12, %v4663_v56  ;;  %4870 = vrot.lane.b32.xlu1 %v4795_v24, %s7519_s16  ;;  %v10267_v43 = vld [vmem:[#allocation4 + $0x80] sm:$0xff]  ;;  %v4300_v56 = vld [vmem:[#allocation6 + $0xf0] sm:$0xff]  ;;  %v4301_v24 = vld [vmem:[#allocation6 + $0xf8] sm:$0xff] }
 0x7d1   : > { %4763 = vst.msk [vmem:[#allocation6 + $0x58] sm:$0xff] %vm396_vm12, %v10267_v43 }
 0x7d5   : > { %v4437_v30 = vpop.f32.mrf.mxu2  ;;  %v4597_v26 = vpop.f32.mrf.mxu3 }
 0x7d6   : > { %v4504_v17 = vmax.f32 %v4437_v30, 0.0  ;;  %v4664_v10 = vmax.f32 %v4597_v26, 0.0  ;;  %v4317_v26 = vpack.c.bf16 %v4301_v24, %v4300_v56  ;;  %v11663_v56 = vld [vmem:[#allocation36_spill] sm:$0xff] }
 0x7d7   : > { %v4796_v0 = vld [vmem:[#allocation4 + $0x92] sm:$0xff]  ;;  %v2631_v24 = vmax.f32 %v11663_v56, 0.0 }
 0x7d8   : > { %v10273_v22 = vld [vmem:[#allocation4 + $0x90] sm:$0xff]  ;;  %v6598_v31 = vpack.c.bf16 %v4504_v17, %v4503_v59  ;;  %4697 = vst.msk [vmem:[#allocation4 + $0x9a] sm:$0xff] %vm396_vm12, %v4664_v10  ;;  %4872 = vrot.lane.b32.xlu2 %v4796_v0, %s7519_s16 }
 0x7d9   : > { %4764 = vst.msk [vmem:[#allocation6 + $0x60] sm:$0xff] %vm396_vm12, %v10273_v22 }
 0x7da   : > { %7347 = vmatmul.msk.bf16.gmra.mxu2 %vm4354_vm7, %v4315_v39  ;;  %7379 = vmatmul.msk.bf16.gmra.mxu3 %vm4354_vm7, %v4315_v39 }
 0x7db   : > { %7419 = vmatmul.msk.bf16.gmra.mxu0 %vm396_vm12, %v6598_v31 }
 0x7dd   : > { %v4440_v38 = vpop.f32.mrf.mxu2  ;;  %v4600_v49 = vpop.f32.mrf.mxu3 }
 0x7de   : > { %v4665_v57 = vmax.f32 %v4600_v49, 0.0  ;;  %v4505_v61 = vmax.f32 %v4440_v38, 0.0  ;;  %v2630_v38 = vmax.f32 %v11660_v32, 0.0 }
 0x7df   : > { %v4797_v46 = vld [vmem:[#allocation4 + $0x9a] sm:$0xff] }
 0x7e0   : > { %v10284_v14 = vld [vmem:[#allocation4 + $0x98] sm:$0xff]  ;;  %4698 = vst.msk [vmem:[#allocation4 + $0xaa] sm:$0xff] %vm396_vm12, %v4665_v57  ;;  %4874 = vrot.lane.b32.xlu0 %v4797_v46, %s7519_s16  ;;  %v11661_v46 = vld [vmem:[#allocation31_spill] sm:$0xff] }
 0x7e1   : > { %4765 = vst.msk [vmem:[#allocation6 + $0x68] sm:$0xff] %vm396_vm12, %v10284_v14  ;;  %v2629_v40 = vmax.f32 %v11661_v46, 0.0 }
 0x7e5   : > { %v4442_v9 = vpop.f32.mrf.mxu2  ;;  %v4602_v37 = vpop.f32.mrf.mxu3 }
 0x7e6   : > { %v4506_v12 = vmax.f32 %v4442_v9, 0.0  ;;  %v4666_v52 = vmax.f32 %v4602_v37, 0.0 }
 0x7e7   : > { %v4798_v20 = vld [vmem:[#allocation4 + $0xaa] sm:$0xff] }
 0x7e8   : > { %v10292_v60 = vld [vmem:[#allocation4 + $0xa8] sm:$0xff]  ;;  %v6599_v33 = vpack.c.bf16 %v4506_v12, %v4505_v61  ;;  %4699 = vst.msk [vmem:[#allocation4 + $0xb2] sm:$0xff] %vm396_vm12, %v4666_v52  ;;  %4876 = vrot.lane.b32.xlu1 %v4798_v20, %s7519_s16  ;;  %v6577_v61 = vpack.c.bf16 %v2630_v38, %v2629_v40 }
 0x7e9   : > { %4766 = vst.msk [vmem:[#allocation6 + $0x70] sm:$0xff] %vm396_vm12, %v10292_v60 }
 0x7ea   : > { %7348 = vmatmul.msk.bf16.gmra.mxu2 %vm4354_vm7, %v4316_v45  ;;  %7380 = vmatmul.msk.bf16.gmra.mxu3 %vm4354_vm7, %v4316_v45  ;;  %v10337_v45 = vpop.f32.mrf.mxu1 }
 0x7eb   : > { %7420 = vmatmul.msk.bf16.gmra.mxu0 %vm396_vm12, %v6599_v33 }
 0x7ed   : > { %v4445_v44 = vpop.f32.mrf.mxu2  ;;  %v4605_v51 = vpop.f32.mrf.mxu3 }
 0x7ee   : > { %v4667_v35 = vmax.f32 %v4605_v51, 0.0  ;;  %v4507_v4 = vmax.f32 %v4445_v44, 0.0  ;;  %v11662_v44 = vld [vmem:[#allocation38_spill] sm:$0xff] }
 0x7ef   : > { %v4799_v2 = vld [vmem:[#allocation4 + $0xb2] sm:$0xff]  ;;  %v2632_v51 = vmax.f32 %v11662_v44, 0.0 }
 0x7f0   : > { %v10307_v15 = vld [vmem:[#allocation4 + $0xb0] sm:$0xff]  ;;  %4700 = vst.msk [vmem:[#allocation4 + $0xc2] sm:$0xff] %vm396_vm12, %v4667_v35  ;;  %4878 = vrot.lane.b32.xlu2 %v4799_v2, %s7519_s16 }
 0x7f1   : > { %4767 = vst.msk [vmem:[#allocation6 + $0x78] sm:$0xff] %vm396_vm12, %v10307_v15 }
 0x7f5   : > { %v4447_v54 = vpop.f32.mrf.mxu2  ;;  %v4607_v21 = vpop.f32.mrf.mxu3 }
 0x7f6   : > { %v4508_v62 = vmax.f32 %v4447_v54, 0.0  ;;  %v4668_v30 = vmax.f32 %v4607_v21, 0.0  ;;  %v10348_v54 = vpop.f32.mrf.mxu1 }
 0x7f7   : > { %v4800_v23 = vld [vmem:[#allocation4 + $0xc2] sm:$0xff] }
 0x7f8   : > { %v10313_v59 = vld [vmem:[#allocation4 + $0xc0] sm:$0xff]  ;;  %v6600_v17 = vpack.c.bf16 %v4508_v62, %v4507_v4  ;;  %4701 = vst.msk [vmem:[#allocation4 + $0xca] sm:$0xff] %vm396_vm12, %v4668_v30  ;;  %4880 = vrot.lane.b32.xlu0 %v4800_v23, %s7519_s16  ;;  %v6578_v23 = vpack.c.bf16 %v2632_v51, %v2631_v24  ;;  %v2636_v51 = vmax.f32 %v9588_v7, 0.0  ;;  %v2635_v24 = vmax.f32 %v9568_v11, 0.0 }
 0x7f9   : > { %4768 = vst.msk [vmem:[#allocation6 + $0x80] sm:$0xff] %vm396_vm12, %v10313_v59 }
 0x7fa   : > { %7349 = vmatmul.msk.bf16.gmra.mxu2 %vm4354_vm7, %v4317_v26  ;;  %7381 = vmatmul.msk.bf16.gmra.mxu3 %vm4354_vm7, %v4317_v26 }
 0x7fb   : > { %7421 = vmatmul.msk.bf16.gmra.mxu0 %vm396_vm12, %v6600_v17 }
 0x7fd   : > { %v4450_v10 = vpop.f32.mrf.mxu2  ;;  %v4610_v0 = vpop.f32.mrf.mxu3 }
 0x7fe   : > { %v4669_v58 = vmax.f32 %v4610_v0, 0.0  ;;  %v4509_v50 = vmax.f32 %v4450_v10, 0.0  ;;  %v10359_v38 = vpop.f32.mrf.mxu1 }
 0x7ff   : > { %v4801_v31 = vld [vmem:[#allocation4 + $0xca] sm:$0xff] }
 0x800   : > { %v10322_v39 = vld [vmem:[#allocation4 + $0xc8] sm:$0xff]  ;;  %4702 = vst.msk [vmem:[#allocation4 + $0xda] sm:$0xff] %vm396_vm12, %v4669_v58  ;;  %4882 = vrot.lane.b32.xlu1 %v4801_v31, %s7519_s16 }
 0x801   : > { %4769 = vst.msk [vmem:[#allocation6 + $0x88] sm:$0xff] %vm396_vm12, %v10322_v39 }
 0x802   : > { %v4861_v19 = vpop.permute.xlu2 %4860 }
 0x803   : > { %4950 = vst.msk [vmem:[#allocation6 + $0x30] sm:$0xff] %vm2885_vm15, %v4861_v19 }
 0x805   : > { %v4452_v49 = vpop.f32.mrf.mxu2  ;;  %v4612_v57 = vpop.f32.mrf.mxu3 }
 0x806   : > { %v4510_v47 = vmax.f32 %v4452_v49, 0.0  ;;  %v4670_v6 = vmax.f32 %v4612_v57, 0.0  ;;  %v2634_v57 = vmax.f32 %v9547_v29, 0.0 }
 0x807   : > { %v4802_v9 = vld [vmem:[#allocation4 + $0xda] sm:$0xff] }
 0x808   : > { %v4738_v37 = vld [vmem:[#allocation4 + $0xd8] sm:$0xff]  ;;  %v6601_v12 = vpack.c.bf16 %v4510_v47, %v4509_v50  ;;  %4703 = vst.msk [vmem:[#allocation4 + $0xe2] sm:$0xff] %vm396_vm12, %v4670_v6  ;;  %4884 = vrot.lane.b32.xlu2 %v4802_v9, %s7519_s16  ;;  %v2633_v50 = vmax.f32 %v9529_v5, 0.0 }
 0x809   : > { %4770 = vst.msk [vmem:[#allocation6 + $0x90] sm:$0xff] %vm396_vm12, %v4738_v37 }
 0x80a   : > { %v4857_v52 = vpop.permute.xlu0 %4856  ;;  %7431 = vmatmul.msk.bf16.vlgmr.msrb.gmra.mxu2 %vm396_vm12, %v6577_v61 }
 0x80b   : > { %4948 = vst.msk [vmem:[#allocation6 + $0x20] sm:$0xff] %vm2885_vm15, %v4857_v52  ;;  %7422 = vmatmul.msk.bf16.gmra.mxu0 %vm396_vm12, %v6601_v12  ;;  %v6579_v12 = vpack.c.bf16 %v2634_v57, %v2633_v50  ;;  %v2638_v57 = vmax.f32 %v10348_v54, 0.0 }
 0x80d   : > { %v4455_v20 = vpop.f32.mrf.mxu2  ;;  %v4615_v33 = vpop.f32.mrf.mxu3 }
 0x80e   : > { %v4671_v3 = vmax.f32 %v4615_v33, 0.0  ;;  %v4511_v21 = vmax.f32 %v4455_v20, 0.0  ;;  %v10370_v20 = vpop.f32.mrf.mxu1 }
 0x80f   : > { %v4803_v36 = vld [vmem:[#allocation4 + $0xe2] sm:$0xff] }
 0x810   : > { %v10339_v41 = vld [vmem:[#allocation4 + $0xe0] sm:$0xff]  ;;  %4704 = vst.msk [vmem:[#allocation4 + $0xf2] sm:$0xff] %vm396_vm12, %v4671_v3  ;;  %4886 = vrot.lane.b32.xlu0 %v4803_v36, %s7519_s16 }
 0x811   : > { %4771 = vst.msk [vmem:[#allocation6 + $0x98] sm:$0xff] %vm396_vm12, %v10339_v41 }
 0x812   : > { %v4859_v63 = vpop.permute.xlu1 %4858 }
 0x813   : > { %4949 = vst.msk [vmem:[#allocation6 + $0x28] sm:$0xff] %vm2885_vm15, %v4859_v63 }
 0x815   : > { %v4457_v35 = vpop.f32.mrf.mxu2  ;;  %v4617_v2 = vpop.f32.mrf.mxu3 }
 0x816   : > { %v4512_v4 = vmax.f32 %v4457_v35, 0.0  ;;  %v4672_v62 = vmax.f32 %v4617_v2, 0.0  ;;  %v10380_v35 = vpop.f32.mrf.mxu1 }
 0x817   : > { %v4804_v30 = vld [vmem:[#allocation4 + $0xf2] sm:$0xff] }
 0x818   : > { %v10350_v26 = vld [vmem:[#allocation4 + $0xf0] sm:$0xff]  ;;  %v6602_v17 = vpack.c.bf16 %v4512_v4, %v4511_v21  ;;  %4705 = vst.msk [vmem:[#allocation4 + $0xfa] sm:$0xff] %vm396_vm12, %v4672_v62  ;;  %4888 = vrot.lane.b32.xlu1 %v4804_v30, %s7519_s16 }
 0x819   : > { %4772 = vst.msk [vmem:[#allocation6 + $0xa0] sm:$0xff] %vm396_vm12, %v10350_v26 }
 0x81a   : > { %v4867_v10 = vpop.permute.xlu2 %4866  ;;  %7432 = vmatmul.msk.bf16.gmra.mxu2 %vm396_vm12, %v6578_v23 }
 0x81b   : > { %4953 = vst.msk [vmem:[#allocation6 + $0x48] sm:$0xff] %vm2885_vm15, %v4867_v10  ;;  %7423 = vmatmul.msk.bf16.gmra.mxu0 %vm396_vm12, %v6602_v17  ;;  %v6580_v17 = vpack.c.bf16 %v2636_v51, %v2635_v24 }
 0x81d   : > { %v4460_v0 = vpop.f32.mrf.mxu2  ;;  %v4620_v58 = vpop.f32.mrf.mxu3 }
 0x81e   : > { %v4673_v31 = vmax.f32 %v4620_v58, 0.0  ;;  %v4513_v47 = vmax.f32 %v4460_v0, 0.0  ;;  %v10389_v58 = vpop.f32.mrf.mxu1 }
 0x81f   : > { %v4805_v19 = vld [vmem:[#allocation4 + $0xfa] sm:$0xff] }
 0x820   : > { %v4741_v32 = vld [vmem:[#allocation4 + $0xf8] sm:$0xff]  ;;  %4706 = vst.msk [vmem:[#allocation4 + $0x10a] sm:$0xff] %vm396_vm12, %v4673_v31  ;;  %4890 = vrot.lane.b32.xlu2 %v4805_v19, %s7519_s16 }
 0x821   : > { %4773 = vst.msk [vmem:[#allocation6 + $0xa8] sm:$0xff] %vm396_vm12, %v4741_v32 }
 0x822   : > { %v4863_v49 = vpop.permute.xlu0 %4862 }
 0x823   : > { %4951 = vst.msk [vmem:[#allocation6 + $0x38] sm:$0xff] %vm2885_vm15, %v4863_v49 }
 0x825   : > { %v4462_v46 = vpop.f32.mrf.mxu2  ;;  %v4622_v40 = vpop.f32.mrf.mxu3 }
 0x826   : > { %v4514_v6 = vmax.f32 %v4462_v46, 0.0  ;;  %v4674_v9 = vmax.f32 %v4622_v40, 0.0  ;;  %v10396_v46 = vpop.f32.mrf.mxu0 }
 0x827   : > { %v4806_v37 = vld [vmem:[#allocation4 + $0x10a] sm:$0xff] }
 0x828   : > { %v4742_v61 = vld [vmem:[#allocation4 + $0x108] sm:$0xff]  ;;  %v6603_v52 = vpack.c.bf16 %v4514_v6, %v4513_v47  ;;  %4707 = vst.msk [vmem:[#allocation4 + $0x112] sm:$0xff] %vm396_vm12, %v4674_v9  ;;  %4892 = vrot.lane.b32.xlu0 %v4806_v37, %s7519_s16  ;;  %v2637_v47 = vmax.f32 %v10337_v45, 0.0 }
 0x829   : > { %4774 = vst.msk [vmem:[#allocation6 + $0xb0] sm:$0xff] %vm396_vm12, %v4742_v61 }
 0x82a   : > { %v4865_v29 = vpop.permute.xlu1 %4864  ;;  %7433 = vmatmul.msk.bf16.gmra.mxu2 %vm396_vm12, %v6579_v12 }
 0x82b   : > { %4952 = vst.msk [vmem:[#allocation6 + $0x40] sm:$0xff] %vm2885_vm15, %v4865_v29  ;;  %7424 = vmatmul.msk.bf16.gmra.mxu0 %vm396_vm12, %v6603_v52  ;;  %v6581_v52 = vpack.c.bf16 %v2638_v57, %v2637_v47  ;;  %v10399_v29 = vpop.f32.mrf.mxu1  ;;  %v2642_v47 = vmax.f32 %v10389_v58, 0.0 }
 0x82d   : > { %v4465_v5 = vpop.f32.mrf.mxu2  ;;  %v4625_v33 = vpop.f32.mrf.mxu3 }
 0x82e   : > { %v4675_v3 = vmax.f32 %v4625_v33, 0.0  ;;  %v4515_v21 = vmax.f32 %v4465_v5, 0.0 }
 0x82f   : > { %v4807_v36 = vld [vmem:[#allocation4 + $0x112] sm:$0xff] }
 0x830   : > { %v4743_v63 = vld [vmem:[#allocation4 + $0x110] sm:$0xff]  ;;  %4708 = vst.msk [vmem:[#allocation4 + $0x122] sm:$0xff] %vm396_vm12, %v4675_v3  ;;  %4894 = vrot.lane.b32.xlu1 %v4807_v36, %s7519_s16  ;;  %v10407_v36 = vpop.f32.mrf.mxu0 }
 0x831   : > { %4775 = vst.msk [vmem:[#allocation6 + $0xb8] sm:$0xff] %vm396_vm12, %v4743_v63 }
 0x832   : > { %v4873_v44 = vpop.permute.xlu2 %4872 }
 0x833   : > { %4956 = vst.msk [vmem:[#allocation6 + $0x60] sm:$0xff] %vm2885_vm15, %v4873_v44  ;;  %v10412_v51 = vpop.f32.mrf.mxu1 }
 0x835   : > { %v4467_v2 = vpop.f32.mrf.mxu2  ;;  %v4627_v56 = vpop.f32.mrf.mxu3 }
 0x836   : > { %v4516_v4 = vmax.f32 %v4467_v2, 0.0  ;;  %v4676_v62 = vmax.f32 %v4627_v56, 0.0  ;;  %v2640_v56 = vmax.f32 %v10370_v20, 0.0 }
 0x837   : > { %v4808_v30 = vld [vmem:[#allocation4 + $0x122] sm:$0xff] }
 0x838   : > { %v4744_v23 = vld [vmem:[#allocation4 + $0x120] sm:$0xff]  ;;  %v6604_v10 = vpack.c.bf16 %v4516_v4, %v4515_v21  ;;  %4709 = vst.msk [vmem:[#allocation4 + $0x12a] sm:$0xff] %vm396_vm12, %v4676_v62  ;;  %4896 = vrot.lane.b32.xlu2 %v4808_v30, %s7519_s16  ;;  %v2639_v4 = vmax.f32 %v10359_v38, 0.0 }
 0x839   : > { %4776 = vst.msk [vmem:[#allocation6 + $0xc0] sm:$0xff] %vm396_vm12, %v4744_v23 }
 0x83a   : > { %v4869_v7 = vpop.permute.xlu0 %4868  ;;  %7434 = vmatmul.msk.bf16.gmra.mxu2 %vm396_vm12, %v6580_v17 }
 0x83b   : > { %4954 = vst.msk [vmem:[#allocation6 + $0x50] sm:$0xff] %vm2885_vm15, %v4869_v7  ;;  %7425 = vmatmul.msk.bf16.gmra.mxu0 %vm396_vm12, %v6604_v10  ;;  %v6582_v7 = vpack.c.bf16 %v2640_v56, %v2639_v4  ;;  %v10425_v38 = vpop.f32.mrf.mxu1  ;;  %v4977_v56 = vld [vmem:[#allocation4 + $0xc] sm:$0xff] }
 0x83d   : > { %v4470_v11 = vpop.f32.mrf.mxu2  ;;  %v4630_v0 = vpop.f32.mrf.mxu3 }
 0x83e   : > { %v4677_v31 = vmax.f32 %v4630_v0, 0.0  ;;  %v4517_v6 = vmax.f32 %v4470_v11, 0.0  ;;  %v10419_v0 = vpop.f32.mrf.mxu0 }
 0x83f   : > { %v4809_v19 = vld [vmem:[#allocation4 + $0x12a] sm:$0xff] }
 0x840   : > { %4710 = vst.msk [vmem:[#allocation4 + $0x13a] sm:$0xff] %vm396_vm12, %v4677_v31  ;;  %4898 = vrot.lane.b32.xlu0 %v4809_v19, %s7519_s16  ;;  %v4745_v32 = vld [vmem:[#allocation4 + $0x128] sm:$0xff] }
 0x841   : > { %4777 = vst.msk [vmem:[#allocation6 + $0xc8] sm:$0xff] %vm396_vm12, %v4745_v32 }
 0x842   : > { %v4871_v49 = vpop.permute.xlu1 %4870 }
 0x843   : > { %4955 = vst.msk [vmem:[#allocation6 + $0x58] sm:$0xff] %vm2885_vm15, %v4871_v49 }
 0x845   : > { %v4472_v40 = vpop.f32.mrf.mxu2  ;;  %v4632_v50 = vpop.f32.mrf.mxu3 }
 0x846   : > { %v4518_v9 = vmax.f32 %v4472_v40, 0.0  ;;  %v4678_v37 = vmax.f32 %v4632_v50, 0.0  ;;  %v10430_v50 = vpop.f32.mrf.mxu0 }
 0x847   : > { %v4810_v61 = vld [vmem:[#allocation4 + $0x13a] sm:$0xff] }
 0x848   : > { %v4746_v12 = vld [vmem:[#allocation4 + $0x138] sm:$0xff]  ;;  %v6605_v5 = vpack.c.bf16 %v4518_v9, %v4517_v6  ;;  %4711 = vst.msk [vmem:[#allocation4 + $0x142] sm:$0xff] %vm396_vm12, %v4678_v37  ;;  %4900 = vrot.lane.b32.xlu1 %v4810_v61, %s7519_s16  ;;  %v4976_v37 = vld [vmem:[#allocation4 + $0x4] sm:$0xff]  ;;  %v2641_v61 = vmax.f32 %v10380_v35, 0.0 }
 0x849   : > { %4778 = vst.msk [vmem:[#allocation6 + $0xd0] sm:$0xff] %vm396_vm12, %v4746_v12 }
 0x84a   : > { %v4879_v54 = vpop.permute.xlu2 %4878  ;;  %7435 = vmatmul.msk.bf16.gmra.mxu2 %vm396_vm12, %v6581_v52 }
 0x84b   : > { %4959 = vst.msk [vmem:[#allocation6 + $0x78] sm:$0xff] %vm2885_vm15, %v4879_v54  ;;  %7426 = vmatmul.msk.bf16.gmra.mxu0 %vm396_vm12, %v6605_v5  ;;  %v10435_v54 = vpop.f32.mrf.mxu1 }
 0x84d   : > { %v4475_v45 = vpop.f32.mrf.mxu2  ;;  %v4635_v33 = vpop.f32.mrf.mxu3 }
 0x84e   : > { %v4679_v3 = vmax.f32 %v4635_v33, 0.0  ;;  %v4519_v62 = vmax.f32 %v4475_v45, 0.0  ;;  %v10444_v35 = vpop.f32.mrf.mxu0 }
 0x84f   : > { %v4811_v63 = vld [vmem:[#allocation4 + $0x142] sm:$0xff] }
 0x850   : > { %v4747_v44 = vld [vmem:[#allocation4 + $0x140] sm:$0xff]  ;;  %4712 = vst.msk [vmem:[#allocation4 + $0x152] sm:$0xff] %vm396_vm12, %v4679_v3  ;;  %4902 = vrot.lane.b32.xlu2 %v4811_v63, %s7519_s16  ;;  %v6583_v3 = vpack.c.bf16 %v2642_v47, %v2641_v61  ;;  %v10471_v47 = vld [vmem:[#allocation4 + $0x54] sm:$0xff]  ;;  %v2646_v61 = vmax.f32 %v10435_v54, 0.0 }
 0x851   : > { %4779 = vst.msk [vmem:[#allocation6 + $0xd8] sm:$0xff] %vm396_vm12, %v4747_v44 }
 0x852   : > { %v4875_v2 = vpop.permute.xlu0 %4874 }
 0x853   : > { %4957 = vst.msk [vmem:[#allocation6 + $0x68] sm:$0xff] %vm2885_vm15, %v4875_v2  ;;  %v4979_v2 = vld [vmem:[#allocation4 + $0x24] sm:$0xff]  ;;  %v10449_v4 = vpop.f32.mrf.mxu1 }
 0x855   : > { %v4477_v24 = vpop.f32.mrf.mxu2  ;;  %v4637_v21 = vpop.f32.mrf.mxu3 }
 0x856   : > { %v4520_v30 = vmax.f32 %v4477_v24, 0.0  ;;  %v4680_v23 = vmax.f32 %v4637_v21, 0.0 }
 0x857   : > { %v4812_v17 = vld [vmem:[#allocation4 + $0x152] sm:$0xff] }
 0x858   : > { %v4748_v10 = vld [vmem:[#allocation4 + $0x150] sm:$0xff]  ;;  %v6606_v11 = vpack.c.bf16 %v4520_v30, %v4519_v62  ;;  %4713 = vst.msk [vmem:[#allocation4 + $0x15a] sm:$0xff] %vm396_vm12, %v4680_v23  ;;  %4904 = vrot.lane.b32.xlu0 %v4812_v17, %s7519_s16  ;;  %v2644_v30 = vmax.f32 %v10412_v51, 0.0 }
 0x859   : > { %4780 = vst.msk [vmem:[#allocation6 + $0xe0] sm:$0xff] %vm396_vm12, %v4748_v10  ;;  %v2643_v10 = vmax.f32 %v10399_v29, 0.0 }
 0x85a   : > { %v4877_v20 = vpop.permute.xlu1 %4876  ;;  %7436 = vmatmul.msk.bf16.gmra.mxu2 %vm396_vm12, %v6582_v7 }
 0x85b   : > { %4958 = vst.msk [vmem:[#allocation6 + $0x70] sm:$0xff] %vm2885_vm15, %v4877_v20  ;;  %7427 = vmatmul.msk.bf16.gmra.mxu0 %vm396_vm12, %v6606_v11  ;;  %v4978_v11 = vld [vmem:[#allocation4 + $0x1c] sm:$0xff]  ;;  %v10455_v20 = vpop.f32.mrf.mxu0  ;;  %v2596_v29 = vpop.f32.mrf.mxu1 }
 0x85d   : > { %v4480_v31 = vpop.f32.mrf.mxu2  ;;  %v4640_v19 = vpop.f32.mrf.mxu3 }
 0x85e   : > { %v4681_v32 = vmax.f32 %v4640_v19, 0.0  ;;  %v4521_v12 = vmax.f32 %v4480_v31, 0.0  ;;  %v10457_v31 = vld [vmem:[#allocation4 + $0x4c] sm:$0xff]  ;;  %v10459_v19 = vld [vmem:[#allocation4 + $0x34] sm:$0xff] }
 0x85f   : > { %v4813_v49 = vld [vmem:[#allocation4 + $0x15a] sm:$0xff] }
 0x860   : > { %4714 = vst.msk [vmem:[#allocation4 + $0x16a] sm:$0xff] %vm396_vm12, %v4681_v32  ;;  %4906 = vrot.lane.b32.xlu1 %v4813_v49, %s7519_s16  ;;  %v4749_v57 = vld [vmem:[#allocation4 + $0x158] sm:$0xff]  ;;  %v6584_v32 = vpack.c.bf16 %v2644_v30, %v2643_v10 }
 0x861   : > { %4781 = vst.msk [vmem:[#allocation6 + $0xe8] sm:$0xff] %vm396_vm12, %v4749_v57  ;;  %v10517_v10 = vld [vmem:[#allocation4 + $0xdc] sm:$0xff] }
 0x862   : > { %v4885_v40 = vpop.permute.xlu2 %4884 }
 0x863   : > { %4962 = vst.msk [vmem:[#allocation6 + $0x90] sm:$0xff] %vm2885_vm15, %v4885_v40  ;;  %v10469_v40 = vld [vmem:[#allocation4 + $0x6c] sm:$0xff] }
 0x865   : > { %v4482_v6 = vpop.f32.mrf.mxu2  ;;  %v4642_v9 = vpop.f32.mrf.mxu3 }
 0x866   : > { %v4522_v52 = vmax.f32 %v4482_v6, 0.0  ;;  %v4682_v5 = vmax.f32 %v4642_v9, 0.0  ;;  %v10477_v6 = vld [vmem:[#allocation4 + $0x3c] sm:$0xff]  ;;  %v10479_v9 = vpop.f32.mrf.mxu0 }
 0x867   : > { %v4814_v45 = vld [vmem:[#allocation4 + $0x16a] sm:$0xff] }
 0x868   : > { %v4750_v33 = vld [vmem:[#allocation4 + $0x168] sm:$0xff]  ;;  %v6607_v63 = vpack.c.bf16 %v4522_v52, %v4521_v12  ;;  %4715 = vst.msk [vmem:[#allocation4 + $0x172] sm:$0xff] %vm396_vm12, %v4682_v5  ;;  %5040 = vrot.lane.b32.xlu1 %v4976_v37, %s7521_s18  ;;  %4908 = vrot.lane.b32.xlu2 %v4814_v45, %s7519_s16  ;;  %v2599_v52 = vpop.f32.mrf.mxu1  ;;  %v2645_v45 = vmax.f32 %v10425_v38, 0.0 }
 0x869   : > { %4782 = vst.msk [vmem:[#allocation6 + $0xf0] sm:$0xff] %vm396_vm12, %v4750_v33 }
 0x86a   : > { %v4881_v58 = vpop.permute.xlu0 %4880  ;;  %7437 = vmatmul.msk.bf16.gmra.mxu2 %vm396_vm12, %v6583_v3  ;;  %v10486_v3 = vld [vmem:[#allocation4 + $0x94] sm:$0xff] }
 0x86b   : > { %4960 = vst.msk [vmem:[#allocation6 + $0x80] sm:$0xff] %vm2885_vm15, %v4881_v58  ;;  %7428 = vmatmul.msk.bf16.gmra.mxu0 %vm396_vm12, %v6607_v63  ;;  %v10488_v63 = vld [vmem:[#allocation4 + $0x7c] sm:$0xff]  ;;  %v6585_v58 = vpack.c.bf16 %v2646_v61, %v2645_v45  ;;  %v5000_v45 = vld [vmem:[#allocation4 + $0x124] sm:$0xff] }
 0x86d   : > { %v4485_v44 = vpop.f32.mrf.mxu2 }
 0x86e   : > { %v4523_v23 = vmax.f32 %v4485_v44, 0.0  ;;  %v10499_v38 = vpop.f32.mrf.mxu0 }
 0x86f   : > { %v4815_v24 = vld [vmem:[#allocation4 + $0x172] sm:$0xff] }
 0x870   : > { %v4751_v21 = vld [vmem:[#allocation4 + $0x170] sm:$0xff]  ;;  %5046 = vrot.lane.b32.xlu1 %v4979_v2, %s7521_s18  ;;  %5042 = vrot.lane.b32.xlu2 %v4977_v56, %s7521_s18  ;;  %v10494_v2 = vld [vmem:[#allocation4 + $0x64] sm:$0xff]  ;;  %v2601_v56 = vpop.f32.mrf.mxu1 }
 0x871   : > { %4783 = vst.msk [vmem:[#allocation6 + $0xf8] sm:$0xff] %vm396_vm12, %v4751_v21  ;;  %4910 = vrot.lane.b32.xlu0 %v4815_v24, %s7519_s16  ;;  %v10503_v24 = vld [vmem:[#allocation4 + $0xb4] sm:$0xff]  ;;  %v10505_v21 = vld [vmem:[#allocation4 + $0x9c] sm:$0xff] }
 0x872   : > { %v4883_v62 = vpop.permute.xlu1 %4882 }
 0x873   : > { %4961 = vst.msk [vmem:[#allocation6 + $0x88] sm:$0xff] %vm2885_vm15, %v4883_v62  ;;  %v10511_v62 = vld [vmem:[#allocation4 + $0x84] sm:$0xff] }
 0x875   : > { %v4487_v17 = vpop.f32.mrf.mxu2 }
 0x876   : > { %v4524_v7 = vmax.f32 %v4487_v17, 0.0  ;;  %v2647_v17 = vmax.f32 %v10449_v4, 0.0  ;;  %v10531_v4 = vld [vmem:[#allocation4 + $0xfc] sm:$0xff] }
 0x878   : > { %v6608_v49 = vpack.c.bf16 %v4524_v7, %v4523_v23  ;;  %5052 = vrot.lane.b32.xlu1 %v10457_v31, %s7521_s18  ;;  %5048 = vrot.lane.b32.xlu2 %v10459_v19, %s7521_s18  ;;  %v2648_v23 = vmax.f32 %v2596_v29, 0.0  ;;  %v10519_v7 = vld [vmem:[#allocation4 + $0xc4] sm:$0xff] }
 0x879   : > { %5044 = vrot.lane.b32.xlu0 %v4978_v11, %s7521_s18  ;;  %v10533_v29 = vld [vmem:[#allocation4 + $0xe4] sm:$0xff] }
 0x87a   : > { %v4891_v51 = vpop.permute.xlu2 %4890  ;;  %7438 = vmatmul.msk.bf16.gmra.mxu2 %vm396_vm12, %v6584_v32  ;;  %v6586_v11 = vpack.c.bf16 %v2648_v23, %v2647_v17  ;;  %v10525_v32 = vld [vmem:[#allocation4 + $0xac] sm:$0xff]  ;;  %v10554_v23 = vld [vmem:[#allocation4 + $0x114] sm:$0xff] }
 0x87b   : > { %4965 = vst.msk [vmem:[#allocation6 + $0xa8] sm:$0xff] %vm2885_vm15, %v4891_v51  ;;  %7429 = vmatmul.msk.bf16.gmra.mxu0 %vm396_vm12, %v6608_v49  ;;  %v2604_v49 = vpop.f32.mrf.mxu1 }
 0x87d   : > { %v4490_v57 = vpop.f32.mrf.mxu2 }
 0x87e   : > { %v4525_v12 = vmax.f32 %v4490_v57, 0.0  ;;  %v10539_v57 = vld [vmem:[#allocation4 + $0xcc] sm:$0xff] }
 0x880   : > { %5058 = vrot.lane.b32.xlu1 %v10469_v40, %s7521_s18  ;;  %5054 = vrot.lane.b32.xlu2 %v10471_v47, %s7521_s18 }
 0x881   : > { %5050 = vrot.lane.b32.xlu0 %v10477_v6, %s7521_s18 }
 0x882   : > { %v4887_v37 = vpop.permute.xlu0 %4886 }
 0x883   : > { %4963 = vst.msk [vmem:[#allocation6 + $0x98] sm:$0xff] %vm2885_vm15, %v4887_v37  ;;  %v2606_v61 = vpop.f32.mrf.mxu1 }
 0x885   : > { %v4492_v5 = vpop.f32.mrf.mxu2 }
 0x886   : > { %v4526_v33 = vmax.f32 %v4492_v5, 0.0  ;;  %v2649_v5 = vmax.f32 %v2599_v52, 0.0  ;;  %v5001_v52 = vld [vmem:[#allocation4 + $0x12c] sm:$0xff] }
 0x888   : > { %v6609_v44 = vpack.c.bf16 %v4526_v33, %v4525_v12  ;;  %5064 = vrot.lane.b32.xlu1 %v10486_v3, %s7521_s18  ;;  %5060 = vrot.lane.b32.xlu2 %v10488_v63, %s7521_s18  ;;  %v2650_v12 = vmax.f32 %v2601_v56, 0.0  ;;  %v4998_v33 = vld [vmem:[#allocation4 + $0x10c] sm:$0xff]  ;;  %v5003_v56 = vld [vmem:[#allocation4 + $0x144] sm:$0xff] }
 0x889   : > { %5056 = vrot.lane.b32.xlu0 %v10494_v2, %s7521_s18 }
 0x88a   : > { %v4889_v54 = vpop.permute.xlu1 %4888  ;;  %7439 = vmatmul.msk.bf16.gmra.mxu2 %vm396_vm12, %v6585_v58  ;;  %v6587_v58 = vpack.c.bf16 %v2650_v12, %v2649_v5  ;;  %v5004_v5 = vld [vmem:[#allocation4 + $0x154] sm:$0xff] }
 0x88b   : > { %4964 = vst.msk [vmem:[#allocation6 + $0xa0] sm:$0xff] %vm2885_vm15, %v4889_v54  ;;  %7430 = vmatmul.msk.bf16.gmra.mxu0 %vm396_vm12, %v6609_v44  ;;  %v10546_v44 = vld [vmem:[#allocation4 + $0xf4] sm:$0xff] }
 0x890   : > { %5070 = vrot.lane.b32.xlu1 %v10503_v24, %s7521_s18  ;;  %5066 = vrot.lane.b32.xlu2 %v10505_v21, %s7521_s18 }
 0x891   : > { %5062 = vrot.lane.b32.xlu0 %v10511_v62, %s7521_s18 }
 0x892   : > { %v4897_v30 = vpop.permute.xlu2 %4896 }
 0x893   : > { %4968 = vst.msk [vmem:[#allocation6 + $0xc0] sm:$0xff] %vm2885_vm15, %v4897_v30  ;;  %v2609_v30 = vpop.f32.mrf.mxu1 }
 0x898   : > { %5076 = vrot.lane.b32.xlu1 %v10517_v10, %s7521_s18  ;;  %5072 = vrot.lane.b32.xlu2 %v10519_v7, %s7521_s18 }
 0x899   : > { %5068 = vrot.lane.b32.xlu0 %v10525_v32, %s7521_s18 }
 0x89a   : > { %v4893_v51 = vpop.permute.xlu0 %4892  ;;  %7440 = vmatmul.msk.bf16.gmra.mxu2 %vm396_vm12, %v6586_v11  ;;  %v10558_v11 = vpop.f32.mrf.mxu2 }
 0x89b   : > { %4966 = vst.msk [vmem:[#allocation6 + $0xb0] sm:$0xff] %vm2885_vm15, %v4893_v51  ;;  %v2652_v51 = vmax.f32 %v2606_v61, 0.0  ;;  %v2611_v12 = vpop.f32.mrf.mxu1  ;;  %v5005_v61 = vld [vmem:[#allocation4 + $0x15c] sm:$0xff] }
 0x8a0   : > { %5082 = vrot.lane.b32.xlu1 %v10531_v4, %s7521_s18  ;;  %5078 = vrot.lane.b32.xlu2 %v10533_v29, %s7521_s18 }
 0x8a1   : > { %5074 = vrot.lane.b32.xlu0 %v10539_v57, %s7521_s18 }
 0x8a2   : > { %v4895_v37 = vpop.permute.xlu1 %4894 }
 0x8a3   : > { %4967 = vst.msk [vmem:[#allocation6 + $0xb8] sm:$0xff] %vm2885_vm15, %v4895_v37  ;;  %v2651_v37 = vmax.f32 %v2604_v49, 0.0  ;;  %v7506_v49 = vld [vmem:[#allocation4 + $0x32] sm:$0xff] }
 0x8a8   : > { %5088 = vrot.lane.b32.xlu1 %v5000_v45, %s7521_s18  ;;  %5084 = vrot.lane.b32.xlu2 %v4998_v33, %s7521_s18  ;;  %v5006_v45 = vld [vmem:[#allocation4 + $0x16c] sm:$0xff]  ;;  %v6588_v33 = vpack.c.bf16 %v2652_v51, %v2651_v37  ;;  %v2654_v51 = vmax.f32 %v2611_v12, 0.0  ;;  %v2653_v37 = vmax.f32 %v2609_v30, 0.0 }
 0x8a9   : > { %5080 = vrot.lane.b32.xlu0 %v10546_v44, %s7521_s18 }
 0x8aa   : > { %v4903_v54 = vpop.permute.xlu2 %4902  ;;  %7441 = vmatmul.msk.bf16.gmra.mxu2 %vm396_vm12, %v6587_v58  ;;  %v5002_v58 = vld [vmem:[#allocation4 + $0x13c] sm:$0xff] }
 0x8ab   : > { %4971 = vst.msk [vmem:[#allocation6 + $0xd8] sm:$0xff] %vm2885_vm15, %v4903_v54 }
 0x8b0   : > { %5094 = vrot.lane.b32.xlu1 %v5003_v56, %s7521_s18  ;;  %5090 = vrot.lane.b32.xlu2 %v5001_v52, %s7521_s18  ;;  %v10566_v56 = vpop.f32.mrf.mxu2  ;;  %v2614_v52 = vpop.f32.mrf.mxu1 }
 0x8b1   : > { %5086 = vrot.lane.b32.xlu0 %v10554_v23, %s7521_s18 }
 0x8b2   : > { %v4899_v17 = vpop.permute.xlu0 %4898 }
 0x8b3   : > { %4969 = vst.msk [vmem:[#allocation6 + $0xc8] sm:$0xff] %vm2885_vm15, %v4899_v17 }
 0x8b8   : > { %5096 = vrot.lane.b32.xlu2 %v5004_v5, %s7521_s18  ;;  %5100 = vrot.lane.b32.xlu1 %v5006_v45, %s7521_s18  ;;  %v10573_v5 = vpop.f32.mrf.mxu2  ;;  %v6589_v45 = vpack.c.bf16 %v2654_v51, %v2653_v37  ;;  %v5362_v37 = vld [vmem:[#allocation4 + $0x4a] sm:$0xff] }
 0x8b9   : > { %5092 = vrot.lane.b32.xlu0 %v5002_v58, %s7521_s18 }
 0x8ba   : > { %v4901_v54 = vpop.permute.xlu1 %4900  ;;  %7442 = vmatmul.msk.bf16.gmra.mxu2 %vm396_vm12, %v6588_v33  ;;  %v7507_v33 = vld [vmem:[#allocation4 + $0x3a] sm:$0xff] }
 0x8bb   : > { %4970 = vst.msk [vmem:[#allocation6 + $0xd0] sm:$0xff] %vm2885_vm15, %v4901_v54  ;;  %v2616_v54 = vpop.f32.mrf.mxu1 }
 0x8c0   : > { %5232 = vrot.lane.b32.xlu2 %v10201_v28, %s7523_s20  ;;  %5424 = vrot.lane.b32.xlu1 %v7506_v49, %s7525_s22  ;;  %v10587_v30 = vpop.f32.mrf.mxu2  ;;  %v2656_v49 = vmax.f32 %v2616_v54, 0.0 }
 0x8c1   : > { %5098 = vrot.lane.b32.xlu0 %v5005_v61, %s7521_s18  ;;  %v2655_v61 = vmax.f32 %v2614_v52, 0.0 }
 0x8c2   : > { %v4909_v17 = vpop.permute.xlu2 %4908 }
 0x8c3   : > { %4974 = vst.msk [vmem:[#allocation6 + $0xf0] sm:$0xff] %vm2885_vm15, %v4909_v17  ;;  %v2619_v12 = vpop.f32.mrf.mxu1  ;;  %v6590_v17 = vpack.c.bf16 %v2656_v49, %v2655_v61  ;;  %v5363_v49 = vld [vmem:[#allocation4 + $0x52] sm:$0xff] }
 0x8c4   : > { %v2657_v54 = vmax.f32 %v2619_v12, 0.0 }
 0x8c8   : > { %5426 = vrot.lane.b32.xlu2 %v7507_v33, %s7525_s22  ;;  %5618 = vrot.lane.b32.xlu1 %v10477_v6, %s7526_s19  ;;  %v10600_v51 = vpop.f32.mrf.mxu2 }
 0x8c9   : > { %5234 = vrot.lane.b32.xlu0 %v10210_v18, %s7523_s20 }
 0x8ca   : > { %v4905_v28 = vpop.permute.xlu0 %4904  ;;  %v5043_v58 = vpop.permute.xlu2 %5042  ;;  %7443 = vmatmul.msk.bf16.gmra.mxu2 %vm396_vm12, %v6589_v45 }
 0x8cb   : > { %4972 = vst.msk [vmem:[#allocation6 + $0xe0] sm:$0xff] %vm2885_vm15, %v4905_v28  ;;  %v2621_v52 = vpop.f32.mrf.mxu1 }
 0x8cc   : > { %5137 = vst.msk [vmem:[#allocation6 + $0x8] sm:$0xff] %vm3078_vm0, %v5043_v58 }
 0x8d0   : > { %5809 = vrot.lane.b32.xlu2 %v10233_v27, %s7527_s21  ;;  %6001 = vrot.lane.b32.xlu1 %v10231_v48, %s7528_s23 }
 0x8d1   : > { %5616 = vrot.lane.b32.xlu0 %v10459_v19, %s7526_s19 }
 0x8d2   : > { %v4907_v18 = vpop.permute.xlu1 %4906  ;;  %v5049_v6 = vpop.permute.xlu2 %5048 }
 0x8d3   : > { %4973 = vst.msk [vmem:[#allocation6 + $0xe8] sm:$0xff] %vm2885_vm15, %v4907_v18  ;;  %v2658_v18 = vmax.f32 %v2621_v52, 0.0 }
 0x8d4   : > { %5140 = vst.msk [vmem:[#allocation6 + $0x20] sm:$0xff] %vm3078_vm0, %v5049_v6  ;;  %v10611_v6 = vpop.f32.mrf.mxu2 }
 0x8d5   : > { %v6591_v61 = vpack.c.bf16 %v2658_v18, %v2657_v54 }
 0x8d8   : > { %6003 = vrot.lane.b32.xlu2 %v10243_v16, %s7528_s23  ;;  %6195 = vrot.lane.b32.xlu1 %v10469_v40, %s7529_s24  ;;  %v4645_v16 = vpop.f32.mrf.mxu3 }
 0x8d9   : > { %5811 = vrot.lane.b32.xlu0 %v10248_v55, %s7527_s21  ;;  %v4683_v28 = vmax.f32 %v4645_v16, 0.0 }
 0x8da   : > { %v5041_v48 = vpop.permute.xlu1 %5040  ;;  %v5055_v19 = vpop.permute.xlu2 %5054  ;;  %7444 = vmatmul.msk.bf16.gmra.mxu2 %vm396_vm12, %v6590_v17 }
 0x8db   : > { %5136 = vst.msk [vmem:[#allocation6] sm:$0xff] %vm3078_vm0, %v5041_v48 }
 0x8dc   : > { %5143 = vst.msk [vmem:[#allocation6 + $0x38] sm:$0xff] %vm3078_vm0, %v5055_v19 }
 0x8dd   : > { %4716 = vst.msk [vmem:[#allocation4 + $0x182] sm:$0xff] %vm396_vm12, %v4683_v28 }
 0x8e0   : > { %5236 = vrot.lane.b32.xlu2 %v10216_v25, %s7523_s20  ;;  %5428 = vrot.lane.b32.xlu1 %v5362_v37, %s7525_s22  ;;  %v2624_v25 = vpop.f32.mrf.mxu1  ;;  %v4647_v12 = vpop.f32.mrf.mxu3 }
 0x8e1   : > { %6193 = vrot.lane.b32.xlu0 %v10494_v2, %s7529_s24  ;;  %v4684_v19 = vmax.f32 %v4647_v12, 0.0  ;;  %v10625_v37 = vpop.f32.mrf.mxu2  ;;  %v2659_v54 = vmax.f32 %v2624_v25, 0.0 }
 0x8e2   : > { %v5047_v45 = vpop.permute.xlu1 %5046  ;;  %v5061_v33 = vpop.permute.xlu2 %5060 }
 0x8e3   : > { %5139 = vst.msk [vmem:[#allocation6 + $0x18] sm:$0xff] %vm3078_vm0, %v5047_v45  ;;  %v4911_v58 = vpop.permute.xlu0 %4910 }
 0x8e4   : > { %5146 = vst.msk [vmem:[#allocation6 + $0x50] sm:$0xff] %vm3078_vm0, %v5061_v33 }
 0x8e5   : > { %4975 = vst.msk [vmem:[#allocation6 + $0xf8] sm:$0xff] %vm2885_vm15, %v4911_v58 }
 0x8e6   : > { %4717 = vst.msk [vmem:[#allocation4 + $0x18a] sm:$0xff] %vm396_vm12, %v4684_v19 }
 0x8e8   : > { %5430 = vrot.lane.b32.xlu2 %v5363_v49, %s7525_s22  ;;  %5622 = vrot.lane.b32.xlu1 %v10471_v47, %s7526_s19  ;;  %v10627_v47 = vld [vmem:[#allocation4 + $0x7a] sm:$0xff]  ;;  %v4650_v16 = vpop.f32.mrf.mxu3  ;;  %v10639_v49 = vld [vmem:[#allocation4 + $0x82] sm:$0xff] }
 0x8e9   : > { %5238 = vrot.lane.b32.xlu0 %v10225_v13, %s7523_s20  ;;  %v2626_v13 = vpop.f32.mrf.mxu1  ;;  %v4685_v28 = vmax.f32 %v4650_v16, 0.0 }
 0x8ea   : > { %v5053_v17 = vpop.permute.xlu1 %5052  ;;  %v5067_v48 = vpop.permute.xlu2 %5066  ;;  %7445 = vmatmul.msk.bf16.gmra.mxu2 %vm396_vm12, %v6591_v61  ;;  %v2660_v18 = vmax.f32 %v2626_v13, 0.0 }
 0x8eb   : > { %5142 = vst.msk [vmem:[#allocation6 + $0x30] sm:$0xff] %vm3078_vm0, %v5053_v17  ;;  %v5045_v52 = vpop.permute.xlu0 %5044 }
 0x8ec   : > { %5149 = vst.msk [vmem:[#allocation6 + $0x68] sm:$0xff] %vm3078_vm0, %v5067_v48  ;;  %v6592_v61 = vpack.c.bf16 %v2660_v18, %v2659_v54  ;;  %v10670_v54 = vld [vmem:[#allocation4 + $0x92] sm:$0xff] }
 0x8ed   : > { %5138 = vst.msk [vmem:[#allocation6 + $0x10] sm:$0xff] %vm3078_vm0, %v5045_v52  ;;  %v5364_v52 = vld [vmem:[#allocation4 + $0x62] sm:$0xff] }
 0x8ee   : > { %4718 = vst.msk [vmem:[#allocation4 + $0x19a] sm:$0xff] %vm396_vm12, %v4685_v28 }
 0x8f0   : > { %5813 = vrot.lane.b32.xlu2 %v10254_v34, %s7527_s21  ;;  %6005 = vrot.lane.b32.xlu1 %v10627_v47, %s7528_s23  ;;  %v4652_v25 = vpop.f32.mrf.mxu3 }
 0x8f1   : > { %5620 = vrot.lane.b32.xlu0 %v10457_v31, %s7526_s19  ;;  %v10645_v31 = vpop.f32.mrf.mxu2  ;;  %v4686_v48 = vmax.f32 %v4652_v25, 0.0 }
 0x8f2   : > { %v5059_v45 = vpop.permute.xlu1 %5058  ;;  %v5073_v33 = vpop.permute.xlu2 %5072 }
 0x8f3   : > { %5145 = vst.msk [vmem:[#allocation6 + $0x48] sm:$0xff] %vm3078_vm0, %v5059_v45  ;;  %v5051_v58 = vpop.permute.xlu0 %5050 }
 0x8f4   : > { %5152 = vst.msk [vmem:[#allocation6 + $0x80] sm:$0xff] %vm3078_vm0, %v5073_v33  ;;  %v5365_v33 = vld [vmem:[#allocation4 + $0x6a] sm:$0xff] }
 0x8f5   : > { %5141 = vst.msk [vmem:[#allocation6 + $0x28] sm:$0xff] %vm3078_vm0, %v5051_v58 }
 0x8f6   : > { %4719 = vst.msk [vmem:[#allocation4 + $0x1a2] sm:$0xff] %vm396_vm12, %v4686_v48 }
 0x8f8   : > { %6007 = vrot.lane.b32.xlu2 %v10639_v49, %s7528_s23  ;;  %6199 = vrot.lane.b32.xlu1 %v10511_v62, %s7529_s24 }
 0x8f9   : > { %5815 = vrot.lane.b32.xlu0 %v10267_v43, %s7527_s21 }
 0x8fa   : > { %v5065_v12 = vpop.permute.xlu1 %5064  ;;  %v5079_v17 = vpop.permute.xlu2 %5078  ;;  %7446 = vmatmul.msk.bf16.gmra.mxu2 %vm396_vm12, %v6592_v61  ;;  %v10681_v61 = vld [vmem:[#allocation4 + $0x9a] sm:$0xff] }
 0x8fb   : > { %5148 = vst.msk [vmem:[#allocation6 + $0x60] sm:$0xff] %vm3078_vm0, %v5065_v12  ;;  %v5057_v19 = vpop.permute.xlu0 %5056 }
 0x8fc   : > { %5155 = vst.msk [vmem:[#allocation6 + $0x98] sm:$0xff] %vm3078_vm0, %v5079_v17 }
 0x8fd   : > { %5144 = vst.msk [vmem:[#allocation6 + $0x40] sm:$0xff] %vm3078_vm0, %v5057_v19 }
 0x900   : > { %5240 = vrot.lane.b32.xlu2 %v10233_v27, %s7523_s20  ;;  %5432 = vrot.lane.b32.xlu1 %v5364_v52, %s7525_s22 }
 0x901   : > { %6197 = vrot.lane.b32.xlu0 %v10488_v63, %s7529_s24 }
 0x902   : > { %v5071_v13 = vpop.permute.xlu1 %5070  ;;  %v5085_v16 = vpop.permute.xlu2 %5084 }
 0x903   : > { %5151 = vst.msk [vmem:[#allocation6 + $0x78] sm:$0xff] %vm3078_vm0, %v5071_v13  ;;  %v5063_v45 = vpop.permute.xlu0 %5062 }
 0x904   : > { %5158 = vst.msk [vmem:[#allocation6 + $0xb0] sm:$0xff] %vm3078_vm0, %v5085_v16 }
 0x905   : > { %5147 = vst.msk [vmem:[#allocation6 + $0x58] sm:$0xff] %vm3078_vm0, %v5063_v45 }
 0x908   : > { %5434 = vrot.lane.b32.xlu2 %v5365_v33, %s7525_s22  ;;  %5626 = vrot.lane.b32.xlu1 %v10469_v40, %s7526_s19  ;;  %v10712_v33 = vld [vmem:[#allocation4 + $0xaa] sm:$0xff] }
 0x909   : > { %5242 = vrot.lane.b32.xlu0 %v10248_v55, %s7523_s20 }
 0x90a   : > { %v5077_v27 = vpop.permute.xlu1 %5076  ;;  %v5091_v28 = vpop.permute.xlu2 %5090 }
 0x90b   : > { %5154 = vst.msk [vmem:[#allocation6 + $0x90] sm:$0xff] %vm3078_vm0, %v5077_v27  ;;  %v5069_v58 = vpop.permute.xlu0 %5068 }
 0x90c   : > { %5161 = vst.msk [vmem:[#allocation6 + $0xc8] sm:$0xff] %vm3078_vm0, %v5091_v28 }
 0x90d   : > { %5150 = vst.msk [vmem:[#allocation6 + $0x70] sm:$0xff] %vm3078_vm0, %v5069_v58  ;;  %v7480_v58 = vld [vmem:[%s11500_s6 + $0x10] sm:$0xff] }
 0x910   : > { %5817 = vrot.lane.b32.xlu2 %v10273_v22, %s7527_s21  ;;  %6009 = vrot.lane.b32.xlu1 %v10670_v54, %s7528_s23 }
 0x911   : > { %5624 = vrot.lane.b32.xlu0 %v10494_v2, %s7526_s19 }
 0x912   : > { %v5083_v55 = vpop.permute.xlu1 %5082  ;;  %v5097_v40 = vpop.permute.xlu2 %5096 }
 0x913   : > { %5157 = vst.msk [vmem:[#allocation6 + $0xa8] sm:$0xff] %vm3078_vm0, %v5083_v55  ;;  %v5075_v18 = vpop.permute.xlu0 %5074  ;;  %v10728_v55 = vld [vmem:[#allocation4 + $0xb2] sm:$0xff] }
 0x914   : > { %5164 = vst.msk [vmem:[#allocation6 + $0xe0] sm:$0xff] %vm3078_vm0, %v5097_v40  ;;  %v7479_v40 = vld [vmem:[%s11500_s6 + $0x8] sm:$0xff] }
 0x915   : > { %5153 = vst.msk [vmem:[#allocation6 + $0x88] sm:$0xff] %vm3078_vm0, %v5075_v18 }
 0x918   : > { %6011 = vrot.lane.b32.xlu2 %v10681_v61, %s7528_s23  ;;  %6203 = vrot.lane.b32.xlu1 %v10505_v21, %s7529_s24 }
 0x919   : > { %5819 = vrot.lane.b32.xlu0 %v10284_v14, %s7527_s21 }
 0x91a   : > { %v5089_v2 = vpop.permute.xlu1 %5088  ;;  %v5233_v25 = vpop.permute.xlu2 %5232 }
 0x91b   : > { %5160 = vst.msk [vmem:[#allocation6 + $0xc0] sm:$0xff] %vm3078_vm0, %v5089_v2  ;;  %v5081_v12 = vpop.permute.xlu0 %5080 }
 0x91c   : > { %5328 = vst.msk [vmem:[#allocation6] sm:$0xff] %vm3271_vm1, %v5233_v25  ;;  %v7478_v25 = vld [vmem:[%s11500_s6] sm:$0xff] }
 0x91d   : > { %5156 = vst.msk [vmem:[#allocation6 + $0xa0] sm:$0xff] %vm3078_vm0, %v5081_v12 }
 0x920   : > { %5244 = vrot.lane.b32.xlu2 %v10254_v34, %s7523_s20  ;;  %5436 = vrot.lane.b32.xlu1 %v10627_v47, %s7525_s22  ;;  %v6377_v34 = vld [vmem:[%s11500_s6 + $0x20] sm:$0xf] }
 0x921   : > { %6201 = vrot.lane.b32.xlu0 %v10486_v3, %s7529_s24  ;;  %v6395_v13 = vunpack.c.l.b16 %v6377_v34  ;;  %v10774_v34 = vld [vmem:[#allocation4 + $0xca] sm:$0xff] }
 0x922   : > { %v5095_v17 = vpop.permute.xlu1 %5094  ;;  %v5427_v48 = vpop.permute.xlu2 %5426 }
 0x923   : > { %5163 = vst.msk [vmem:[#allocation6 + $0xd8] sm:$0xff] %vm3078_vm0, %v5095_v17  ;;  %v5087_v19 = vpop.permute.xlu0 %5086  ;;  %v6400_v45 = vpack.c.b16 %v6395_v13, %v6395_v13 }
 0x924   : > { %5159 = vst.msk [vmem:[#allocation6 + $0xb8] sm:$0xff] %vm3078_vm0, %v5087_v19  ;;  %v10764_v19 = vld [vmem:[#allocation4 + $0xc2] sm:$0xff] }
 0x928   : > { %5438 = vrot.lane.b32.xlu2 %v10639_v49, %s7525_s22  ;;  %5630 = vrot.lane.b32.xlu1 %v10511_v62, %s7526_s19  ;;  %v6454_v49 = vsel %vm2536_vm14, %v6400_v45, 0 }
 0x929   : > { %5246 = vrot.lane.b32.xlu0 %v10267_v43, %s7523_s20  ;;  %6459 = vmatpush.bf16.msrb.mxu1 %v6454_v49  ;;  %v7481_v43 = vld [vmem:[%s11500_s6 + $0x18] sm:$0xff] }
 0x92a   : > { %v5810_v47 = vpop.permute.xlu2 %5809  ;;  %v5101_v52 = vpop.permute.xlu1 %5100 }
 0x92b   : > { %5166 = vst.msk [vmem:[#allocation6 + $0xf0] sm:$0xff] %vm3078_vm0, %v5101_v52  ;;  %v5093_v16 = vpop.permute.xlu0 %5092 }
 0x92c   : > { %5162 = vst.msk [vmem:[#allocation6 + $0xd0] sm:$0xff] %vm3078_vm0, %v5093_v16 }
 0x92d   : > { %6460 = vmatpush.bf16.msrb.mxu1 %v7481_v43 }
 0x930   : > { %5821 = vrot.lane.b32.xlu2 %v10292_v60, %s7527_s21  ;;  %6013 = vrot.lane.b32.xlu1 %v10712_v33, %s7528_s23 }
 0x931   : > { %5628 = vrot.lane.b32.xlu0 %v10488_v63, %s7526_s19  ;;  %6461 = vmatpush.bf16.msrb.mxu1 %v7480_v58 }
 0x932   : > { %v6004_v62 = vpop.permute.xlu2 %6003  ;;  %v5425_v27 = vpop.permute.xlu1 %5424 }
 0x933   : > { %5520 = vst.msk [vmem:[#allocation6] sm:$0xff] %vm3464_vm2, %v5425_v27  ;;  %v5099_v28 = vpop.permute.xlu0 %5098  ;;  %v10804_v27 = vld [vmem:[#allocation4 + $0xd8] sm:$0xff] }
 0x934   : > { %5165 = vst.msk [vmem:[#allocation6 + $0xe8] sm:$0xff] %vm3078_vm0, %v5099_v28  ;;  %v10806_v28 = vld [vmem:[#allocation4 + $0xda] sm:$0xff] }
 0x935   : > { %6462 = vmatpush.bf16.msrb.mxu1 %v7479_v40  ;;  %v10816_v40 = vld [vmem:[#allocation4 + $0xe2] sm:$0xff] }
 0x938   : > { %6015 = vrot.lane.b32.xlu2 %v10728_v55, %s7528_s23  ;;  %6207 = vrot.lane.b32.xlu1 %v10503_v24, %s7529_s24 }
 0x939   : > { %5823 = vrot.lane.b32.xlu0 %v10307_v15, %s7527_s21  ;;  %6463 = vmatpush.bf16.msrb.mxu1 %v7478_v25 }
 0x93a   : > { %v5237_v63 = vpop.permute.xlu2 %5236  ;;  %v5619_v18 = vpop.permute.xlu1 %5618 }
 0x93b   : > { %5330 = vst.msk [vmem:[#allocation6 + $0x10] sm:$0xff] %vm3271_vm1, %v5237_v63  ;;  %v5235_v2 = vpop.permute.xlu0 %5234 }
 0x93c   : > { %5329 = vst.msk [vmem:[#allocation6 + $0x8] sm:$0xff] %vm3271_vm1, %v5235_v2 }
 0x93d   : > { %5521 = vst.msk [vmem:[#allocation6 + $0x8] sm:$0xff] %vm3464_vm2, %v5427_v48 }
 0x93e   : > { %5713 = vst.msk [vmem:[#allocation6 + $0x8] sm:$0xff] %vm3657_vm3, %v5619_v18 }
 0x940   : > { %5248 = vrot.lane.b32.xlu2 %v10273_v22, %s7523_s20  ;;  %5440 = vrot.lane.b32.xlu1 %v10670_v54, %s7525_s22 }
 0x941   : > { %6205 = vrot.lane.b32.xlu0 %v10525_v32, %s7529_s24 }
 0x942   : > { %v5431_v15 = vpop.permute.xlu2 %5430  ;;  %v6002_v12 = vpop.permute.xlu1 %6001 }
 0x943   : > { %v5617_v17 = vpop.permute.xlu0 %5616 }
 0x944   : > { %5712 = vst.msk [vmem:[#allocation6] sm:$0xff] %vm3657_vm3, %v5617_v17 }
 0x945   : > { %5905 = vst.msk [vmem:[#allocation6] sm:$0xff] %vm3851_vm4, %v5810_v47 }
 0x946   : > { %6097 = vst.msk [vmem:[#allocation6] sm:$0xff] %vm4044_vm5, %v6002_v12  ;;  %v5180_v12 = vld [vmem:[#allocation4 + $0xc0] sm:$0xff] }
 0x948   : > { %5442 = vrot.lane.b32.xlu2 %v10681_v61, %s7525_s22  ;;  %5634 = vrot.lane.b32.xlu1 %v10505_v21, %s7526_s19 }
 0x949   : > { %5250 = vrot.lane.b32.xlu0 %v10284_v14, %s7523_s20 }
 0x94a   : > { %v5814_v22 = vpop.permute.xlu2 %5813  ;;  %v6196_v54 = vpop.permute.xlu1 %6195 }
 0x94b   : > { %v5812_v48 = vpop.permute.xlu0 %5811 }
 0x94c   : > { %5906 = vst.msk [vmem:[#allocation6 + $0x8] sm:$0xff] %vm3851_vm4, %v5812_v48 }
 0x94d   : > { %6098 = vst.msk [vmem:[#allocation6 + $0x8] sm:$0xff] %vm4044_vm5, %v6004_v62 }
 0x94e   : > { %6290 = vst.msk [vmem:[#allocation6 + $0x8] sm:$0xff] %vm4237_vm6, %v6196_v54  ;;  %v5181_v54 = vld [vmem:[#allocation4 + $0xc8] sm:$0xff] }
 0x950   : > { %5825 = vrot.lane.b32.xlu2 %v10313_v59, %s7527_s21  ;;  %6017 = vrot.lane.b32.xlu1 %v10764_v19, %s7528_s23 }
 0x951   : > { %5632 = vrot.lane.b32.xlu0 %v10486_v3, %s7526_s19 }
 0x952   : > { %v6008_v14 = vpop.permute.xlu2 %6007  ;;  %v5429_v21 = vpop.permute.xlu1 %5428 }
 0x953   : > { %5522 = vst.msk [vmem:[#allocation6 + $0x10] sm:$0xff] %vm3464_vm2, %v5429_v21  ;;  %v6194_v61 = vpop.permute.xlu0 %6193 }
 0x954   : > { %6289 = vst.msk [vmem:[#allocation6] sm:$0xff] %vm4237_vm6, %v6194_v61 }
 0x955   : > { %v6322_v13 = vld [vmem:[#allocation6 + $0x8] sm:$0xff] }
 0x958   : > { %6019 = vrot.lane.b32.xlu2 %v10774_v34, %s7528_s23  ;;  %6211 = vrot.lane.b32.xlu1 %v10539_v57, %s7529_s24 }
 0x959   : > { %5827 = vrot.lane.b32.xlu0 %v10322_v39, %s7527_s21 }
 0x95a   : > { %v5241_v59 = vpop.permute.xlu2 %5240  ;;  %v5623_v3 = vpop.permute.xlu1 %5622 }
 0x95b   : > { %5332 = vst.msk [vmem:[#allocation6 + $0x20] sm:$0xff] %vm3271_vm1, %v5241_v59  ;;  %v5239_v47 = vpop.permute.xlu0 %5238  ;;  %v6321_v52 = vld [vmem:[#allocation6] sm:$0xff] }
 0x95c   : > { %5331 = vst.msk [vmem:[#allocation6 + $0x18] sm:$0xff] %vm3271_vm1, %v5239_v47  ;;  %v6353_v16 = vpack.c.bf16 %v6322_v13, %v6321_v52 }
 0x95d   : > { %5523 = vst.msk [vmem:[#allocation6 + $0x18] sm:$0xff] %vm3464_vm2, %v5431_v15 }
 0x95e   : > { %5715 = vst.msk [vmem:[#allocation6 + $0x18] sm:$0xff] %vm3657_vm3, %v5623_v3  ;;  %7398 = vmatmul.msk.bf16.vlgmr.msrb.gmra.mxu1 %vm4354_vm7, %v6353_v16 }
 0x960   : > { %5252 = vrot.lane.b32.xlu2 %v10292_v60, %s7523_s20  ;;  %5444 = vrot.lane.b32.xlu1 %v10712_v33, %s7525_s22  ;;  %v5179_v60 = vld [vmem:[#allocation4 + $0xb0] sm:$0xff] }
 0x961   : > { %6209 = vrot.lane.b32.xlu0 %v10519_v7, %s7529_s24 }
 0x962   : > { %v5435_v39 = vpop.permute.xlu2 %5434  ;;  %v6006_v45 = vpop.permute.xlu1 %6005 }
 0x963   : > { %v5621_v49 = vpop.permute.xlu0 %5620 }
 0x964   : > { %5714 = vst.msk [vmem:[#allocation6 + $0x10] sm:$0xff] %vm3657_vm3, %v5621_v49 }
 0x965   : > { %5907 = vst.msk [vmem:[#allocation6 + $0x10] sm:$0xff] %vm3851_vm4, %v5814_v22 }
 0x966   : > { %6099 = vst.msk [vmem:[#allocation6 + $0x10] sm:$0xff] %vm4044_vm5, %v6006_v45  ;;  %v5183_v45 = vld [vmem:[#allocation4 + $0xe0] sm:$0xff] }
 0x968   : > { %5446 = vrot.lane.b32.xlu2 %v10728_v55, %s7525_s22  ;;  %5638 = vrot.lane.b32.xlu1 %v10503_v24, %s7526_s19 }
 0x969   : > { %5254 = vrot.lane.b32.xlu0 %v5179_v60, %s7523_s20 }
 0x96a   : > { %v5818_v33 = vpop.permute.xlu2 %5817  ;;  %v6200_v43 = vpop.permute.xlu1 %6199 }
 0x96b   : > { %v5816_v62 = vpop.permute.xlu0 %5815 }
 0x96c   : > { %5908 = vst.msk [vmem:[#allocation6 + $0x18] sm:$0xff] %vm3851_vm4, %v5816_v62 }
 0x96d   : > { %6100 = vst.msk [vmem:[#allocation6 + $0x18] sm:$0xff] %vm4044_vm5, %v6008_v14  ;;  %v10845_v14 = vld [vmem:[#allocation4 + $0xf2] sm:$0xff] }
 0x96e   : > { %6292 = vst.msk [vmem:[#allocation6 + $0x18] sm:$0xff] %vm4237_vm6, %v6200_v43  ;;  %v10889_v43 = vld [vmem:[#allocation4 + $0x10a] sm:$0xff] }
 0x970   : > { %5829 = vrot.lane.b32.xlu2 %v10804_v27, %s7527_s21  ;;  %6021 = vrot.lane.b32.xlu1 %v10806_v28, %s7528_s23 }
 0x971   : > { %5636 = vrot.lane.b32.xlu0 %v10525_v32, %s7526_s19 }
 0x972   : > { %v6012_v24 = vpop.permute.xlu2 %6011  ;;  %v5433_v58 = vpop.permute.xlu1 %5432 }
 0x973   : > { %5524 = vst.msk [vmem:[#allocation6 + $0x20] sm:$0xff] %vm3464_vm2, %v5433_v58  ;;  %v6198_v55 = vpop.permute.xlu0 %6197 }
 0x974   : > { %6291 = vst.msk [vmem:[#allocation6 + $0x10] sm:$0xff] %vm4237_vm6, %v6198_v55  ;;  %v10902_v55 = vld [vmem:[#allocation4 + $0x112] sm:$0xff] }
 0x975   : > { %v6324_v25 = vld [vmem:[#allocation6 + $0x18] sm:$0xff] }
 0x978   : > { %6023 = vrot.lane.b32.xlu2 %v10816_v40, %s7528_s23  ;;  %6215 = vrot.lane.b32.xlu1 %v10533_v29, %s7529_s24 }
 0x979   : > { %5831 = vrot.lane.b32.xlu0 %v10339_v41, %s7527_s21 }
 0x97a   : > { %v5245_v63 = vpop.permute.xlu2 %5244  ;;  %v5627_v32 = vpop.permute.xlu1 %5626 }
 0x97b   : > { %5334 = vst.msk [vmem:[#allocation6 + $0x30] sm:$0xff] %vm3271_vm1, %v5245_v63  ;;  %v5243_v18 = vpop.permute.xlu0 %5242  ;;  %v6323_v2 = vld [vmem:[#allocation6 + $0x10] sm:$0xff] }
 0x97c   : > { %5333 = vst.msk [vmem:[#allocation6 + $0x28] sm:$0xff] %vm3271_vm1, %v5243_v18  ;;  %v6354_v15 = vpack.c.bf16 %v6324_v25, %v6323_v2 }
 0x97d   : > { %5525 = vst.msk [vmem:[#allocation6 + $0x28] sm:$0xff] %vm3464_vm2, %v5435_v39 }
 0x97e   : > { %5717 = vst.msk [vmem:[#allocation6 + $0x28] sm:$0xff] %vm3657_vm3, %v5627_v32  ;;  %7399 = vmatmul.msk.bf16.gmra.mxu1 %vm4354_vm7, %v6354_v15 }
 0x980   : > { %5256 = vrot.lane.b32.xlu2 %v5180_v12, %s7523_s20  ;;  %5448 = vrot.lane.b32.xlu1 %v10764_v19, %s7525_s22  ;;  %v10920_v12 = vld [vmem:[#allocation4 + $0x10c] sm:$0xff] }
 0x981   : > { %6213 = vrot.lane.b32.xlu0 %v10517_v10, %s7529_s24 }
 0x982   : > { %v5439_v41 = vpop.permute.xlu2 %5438  ;;  %v6010_v17 = vpop.permute.xlu1 %6009 }
 0x983   : > { %v5625_v22 = vpop.permute.xlu0 %5624 }
 0x984   : > { %5716 = vst.msk [vmem:[#allocation6 + $0x20] sm:$0xff] %vm3657_vm3, %v5625_v22 }
 0x985   : > { %5909 = vst.msk [vmem:[#allocation6 + $0x20] sm:$0xff] %vm3851_vm4, %v5818_v33  ;;  %v10887_v33 = vld [vmem:[#allocation4 + $0x108] sm:$0xff] }
 0x986   : > { %6101 = vst.msk [vmem:[#allocation6 + $0x20] sm:$0xff] %vm4044_vm5, %v6010_v17 }
 0x988   : > { %5450 = vrot.lane.b32.xlu2 %v10774_v34, %s7525_s22  ;;  %5642 = vrot.lane.b32.xlu1 %v10539_v57, %s7526_s19  ;;  %v10855_v34 = vld [vmem:[#allocation4 + $0xfa] sm:$0xff] }
 0x989   : > { %5258 = vrot.lane.b32.xlu0 %v5181_v54, %s7523_s20  ;;  %v5569_v54 = vld [vmem:[#allocation4 + $0xfc] sm:$0xff] }
 0x98a   : > { %v5822_v48 = vpop.permute.xlu2 %5821  ;;  %v6204_v10 = vpop.permute.xlu1 %6203 }
 0x98b   : > { %v5820_v19 = vpop.permute.xlu0 %5819 }
 0x98c   : > { %5910 = vst.msk [vmem:[#allocation6 + $0x28] sm:$0xff] %vm3851_vm4, %v5820_v19 }
 0x98d   : > { %6102 = vst.msk [vmem:[#allocation6 + $0x28] sm:$0xff] %vm4044_vm5, %v6012_v24  ;;  %v7447_v24 = vld [vmem:[%s11501_s7 + $0x8] sm:$0xf] }
 0x98e   : > { %6294 = vst.msk [vmem:[#allocation6 + $0x28] sm:$0xff] %vm4237_vm6, %v6204_v10  ;;  %v6959_v58 = vsel %vm2536_vm14, %v7447_v24, 0 }
 0x98f   : > { %6968 = vmatpush.bf16.msrb.mxu3 %v6959_v58 }
 0x990   : > { %5833 = vrot.lane.b32.xlu2 %v10350_v26, %s7527_s21  ;;  %6025 = vrot.lane.b32.xlu1 %v10845_v14, %s7528_s23  ;;  %v10861_v26 = vld [vmem:[#allocation4 + $0xf8] sm:$0xff] }
 0x991   : > { %5640 = vrot.lane.b32.xlu0 %v10519_v7, %s7526_s19 }
 0x992   : > { %v6016_v57 = vpop.permute.xlu2 %6015  ;;  %v5437_v21 = vpop.permute.xlu1 %5436 }
 0x993   : > { %5526 = vst.msk [vmem:[#allocation6 + $0x30] sm:$0xff] %vm3464_vm2, %v5437_v21  ;;  %v6202_v61 = vpop.permute.xlu0 %6201  ;;  %v5568_v21 = vld [vmem:[#allocation4 + $0xf4] sm:$0xff] }
 0x994   : > { %6293 = vst.msk [vmem:[#allocation6 + $0x20] sm:$0xff] %vm4237_vm6, %v6202_v61 }
 0x995   : > { %v6326_v52 = vld [vmem:[#allocation6 + $0x28] sm:$0xff] }
 0x998   : > { %6027 = vrot.lane.b32.xlu2 %v10855_v34, %s7528_s23  ;;  %6219 = vrot.lane.b32.xlu1 %v10531_v4, %s7529_s24 }
 0x999   : > { %5835 = vrot.lane.b32.xlu0 %v10861_v26, %s7527_s21 }
 0x99a   : > { %v5249_v7 = vpop.permute.xlu2 %5248  ;;  %v5631_v59 = vpop.permute.xlu1 %5630 }
 0x99b   : > { %5336 = vst.msk [vmem:[#allocation6 + $0x40] sm:$0xff] %vm3271_vm1, %v5249_v7  ;;  %v5247_v3 = vpop.permute.xlu0 %5246  ;;  %v6325_v47 = vld [vmem:[#allocation6 + $0x20] sm:$0xff]  ;;  %v10946_v7 = vld [vmem:[#allocation4 + $0x12a] sm:$0xff] }
 0x99c   : > { %5335 = vst.msk [vmem:[#allocation6 + $0x38] sm:$0xff] %vm3271_vm1, %v5247_v3  ;;  %v6355_v13 = vpack.c.bf16 %v6326_v52, %v6325_v47  ;;  %v10954_v3 = vld [vmem:[#allocation4 + $0x128] sm:$0xff] }
 0x99d   : > { %5527 = vst.msk [vmem:[#allocation6 + $0x38] sm:$0xff] %vm3464_vm2, %v5439_v41 }
 0x99e   : > { %5719 = vst.msk [vmem:[#allocation6 + $0x38] sm:$0xff] %vm3657_vm3, %v5631_v59  ;;  %7400 = vmatmul.msk.bf16.gmra.mxu1 %vm4354_vm7, %v6355_v13  ;;  %v10948_v59 = vld [vmem:[#allocation4 + $0x12c] sm:$0xff] }
 0x9a0   : > { %5260 = vrot.lane.b32.xlu2 %v10804_v27, %s7523_s20  ;;  %5452 = vrot.lane.b32.xlu1 %v10806_v28, %s7525_s22 }
 0x9a1   : > { %6217 = vrot.lane.b32.xlu0 %v10546_v44, %s7529_s24 }
 0x9a2   : > { %v5443_v4 = vpop.permute.xlu2 %5442  ;;  %v6014_v16 = vpop.permute.xlu1 %6013 }
 0x9a3   : > { %v5629_v39 = vpop.permute.xlu0 %5628 }
 0x9a4   : > { %5718 = vst.msk [vmem:[#allocation6 + $0x30] sm:$0xff] %vm3657_vm3, %v5629_v39 }
 0x9a5   : > { %5911 = vst.msk [vmem:[#allocation6 + $0x30] sm:$0xff] %vm3851_vm4, %v5822_v48 }
 0x9a6   : > { %6103 = vst.msk [vmem:[#allocation6 + $0x30] sm:$0xff] %vm4044_vm5, %v6014_v16 }
 0x9a8   : > { %5454 = vrot.lane.b32.xlu2 %v10816_v40, %s7525_s22  ;;  %5646 = vrot.lane.b32.xlu1 %v10533_v29, %s7526_s19  ;;  %v5566_v29 = vld [vmem:[#allocation4 + $0xdc] sm:$0xff]  ;;  %v10908_v40 = vld [vmem:[#allocation4 + $0x110] sm:$0xff] }
 0x9a9   : > { %5262 = vrot.lane.b32.xlu0 %v5183_v45, %s7523_s20 }
 0x9aa   : > { %v5826_v49 = vpop.permute.xlu2 %5825  ;;  %v6208_v44 = vpop.permute.xlu1 %6207 }
 0x9ab   : > { %v5824_v60 = vpop.permute.xlu0 %5823 }
 0x9ac   : > { %5912 = vst.msk [vmem:[#allocation6 + $0x38] sm:$0xff] %vm3851_vm4, %v5824_v60 }
 0x9ad   : > { %6104 = vst.msk [vmem:[#allocation6 + $0x38] sm:$0xff] %vm4044_vm5, %v6016_v57  ;;  %v10937_v57 = vld [vmem:[#allocation4 + $0x122] sm:$0xff] }
 0x9ae   : > { %6296 = vst.msk [vmem:[#allocation6 + $0x38] sm:$0xff] %vm4237_vm6, %v6208_v44 }
 0x9b0   : > { %5837 = vrot.lane.b32.xlu2 %v10887_v33, %s7527_s21  ;;  %6029 = vrot.lane.b32.xlu1 %v10889_v43, %s7528_s23 }
 0x9b1   : > { %5644 = vrot.lane.b32.xlu0 %v5566_v29, %s7526_s19 }
 0x9b2   : > { %v6020_v62 = vpop.permute.xlu2 %6019  ;;  %v5441_v27 = vpop.permute.xlu1 %5440 }
 0x9b3   : > { %5528 = vst.msk [vmem:[#allocation6 + $0x40] sm:$0xff] %vm3464_vm2, %v5441_v27  ;;  %v6206_v28 = vpop.permute.xlu0 %6205 }
 0x9b4   : > { %6295 = vst.msk [vmem:[#allocation6 + $0x30] sm:$0xff] %vm4237_vm6, %v6206_v28 }
 0x9b5   : > { %v6328_v25 = vld [vmem:[#allocation6 + $0x38] sm:$0xff] }
 0x9b8   : > { %6031 = vrot.lane.b32.xlu2 %v10902_v55, %s7528_s23  ;;  %6223 = vrot.lane.b32.xlu1 %v10554_v23, %s7529_s24  ;;  %v5184_v23 = vld [vmem:[#allocation4 + $0xf0] sm:$0xff] }
 0x9b9   : > { %5839 = vrot.lane.b32.xlu0 %v10908_v40, %s7527_s21 }
 0x9ba   : > { %v5253_v63 = vpop.permute.xlu2 %5252  ;;  %v5635_v32 = vpop.permute.xlu1 %5634 }
 0x9bb   : > { %5338 = vst.msk [vmem:[#allocation6 + $0x50] sm:$0xff] %vm3271_vm1, %v5253_v63  ;;  %v5251_v18 = vpop.permute.xlu0 %5250  ;;  %v6327_v2 = vld [vmem:[#allocation6 + $0x30] sm:$0xff] }
 0x9bc   : > { %5337 = vst.msk [vmem:[#allocation6 + $0x48] sm:$0xff] %vm3271_vm1, %v5251_v18  ;;  %v6356_v15 = vpack.c.bf16 %v6328_v25, %v6327_v2  ;;  %v10995_v25 = vld [vmem:[#allocation4 + $0x142] sm:$0xff] }
 0x9bd   : > { %5529 = vst.msk [vmem:[#allocation6 + $0x48] sm:$0xff] %vm3464_vm2, %v5443_v4 }
 0x9be   : > { %5721 = vst.msk [vmem:[#allocation6 + $0x48] sm:$0xff] %vm3657_vm3, %v5635_v32  ;;  %7401 = vmatmul.msk.bf16.gmra.mxu1 %vm4354_vm7, %v6356_v15  ;;  %v10983_v32 = vld [vmem:[#allocation4 + $0x138] sm:$0xff]  ;;  %v10999_v15 = vld [vmem:[#allocation4 + $0x144] sm:$0xff] }
 0x9c0   : > { %5264 = vrot.lane.b32.xlu2 %v5184_v23, %s7523_s20  ;;  %5456 = vrot.lane.b32.xlu1 %v10845_v14, %s7525_s22  ;;  %v10935_v14 = vld [vmem:[#allocation4 + $0x120] sm:$0xff] }
 0x9c1   : > { %6221 = vrot.lane.b32.xlu0 %v10920_v12, %s7529_s24  ;;  %v11001_v23 = vld [vmem:[#allocation4 + $0x140] sm:$0xff] }
 0x9c2   : > { %v5447_v41 = vpop.permute.xlu2 %5446  ;;  %v6018_v17 = vpop.permute.xlu1 %6017 }
 0x9c3   : > { %v5633_v22 = vpop.permute.xlu0 %5632 }
 0x9c4   : > { %5720 = vst.msk [vmem:[#allocation6 + $0x40] sm:$0xff] %vm3657_vm3, %v5633_v22 }
 0x9c5   : > { %5913 = vst.msk [vmem:[#allocation6 + $0x40] sm:$0xff] %vm3851_vm4, %v5826_v49  ;;  %v10967_v49 = vld [vmem:[#allocation4 + $0x124] sm:$0xff] }
 0x9c6   : > { %6105 = vst.msk [vmem:[#allocation6 + $0x40] sm:$0xff] %vm4044_vm5, %v6018_v17 }
 0x9c8   : > { %5458 = vrot.lane.b32.xlu2 %v10855_v34, %s7525_s22  ;;  %5650 = vrot.lane.b32.xlu1 %v5569_v54, %s7526_s19 }
 0x9c9   : > { %5266 = vrot.lane.b32.xlu0 %v10861_v26, %s7523_s20 }
 0x9ca   : > { %v5830_v48 = vpop.permute.xlu2 %5829  ;;  %v6212_v10 = vpop.permute.xlu1 %6211 }
 0x9cb   : > { %v5828_v19 = vpop.permute.xlu0 %5827 }
 0x9cc   : > { %5914 = vst.msk [vmem:[#allocation6 + $0x48] sm:$0xff] %vm3851_vm4, %v5828_v19  ;;  %v11014_v19 = vld [vmem:[#allocation4 + $0x13c] sm:$0xff] }
 0x9cd   : > { %6106 = vst.msk [vmem:[#allocation6 + $0x48] sm:$0xff] %vm4044_vm5, %v6020_v62 }
 0x9ce   : > { %6298 = vst.msk [vmem:[#allocation6 + $0x48] sm:$0xff] %vm4237_vm6, %v6212_v10 }
 0x9d0   : > { %5841 = vrot.lane.b32.xlu2 %v10935_v14, %s7527_s21  ;;  %6033 = vrot.lane.b32.xlu1 %v10937_v57, %s7528_s23 }
 0x9d1   : > { %5648 = vrot.lane.b32.xlu0 %v5568_v21, %s7526_s19 }
 0x9d2   : > { %v6024_v61 = vpop.permute.xlu2 %6023  ;;  %v5445_v34 = vpop.permute.xlu1 %5444 }
 0x9d3   : > { %5530 = vst.msk [vmem:[#allocation6 + $0x50] sm:$0xff] %vm3464_vm2, %v5445_v34  ;;  %v6210_v26 = vpop.permute.xlu0 %6209 }
 0x9d4   : > { %6297 = vst.msk [vmem:[#allocation6 + $0x40] sm:$0xff] %vm4237_vm6, %v6210_v26 }
 0x9d5   : > { %v6330_v39 = vld [vmem:[#allocation6 + $0x48] sm:$0xff] }
 0x9d8   : > { %6035 = vrot.lane.b32.xlu2 %v10946_v7, %s7528_s23  ;;  %6227 = vrot.lane.b32.xlu1 %v10948_v59, %s7529_s24 }
 0x9d9   : > { %5843 = vrot.lane.b32.xlu0 %v10954_v3, %s7527_s21 }
 0x9da   : > { %v5257_v47 = vpop.permute.xlu2 %5256  ;;  %v5639_v52 = vpop.permute.xlu1 %5638 }
 0x9db   : > { %5340 = vst.msk [vmem:[#allocation6 + $0x60] sm:$0xff] %vm3271_vm1, %v5257_v47  ;;  %v6465_v13 = vpop.f32.mrf.mxu1  ;;  %v5255_v4 = vpop.permute.xlu0 %5254  ;;  %v6329_v16 = vld [vmem:[#allocation6 + $0x40] sm:$0xff] }
 0x9dc   : > { %5339 = vst.msk [vmem:[#allocation6 + $0x58] sm:$0xff] %vm3271_vm1, %v5255_v4  ;;  %v6357_v45 = vpack.c.bf16 %v6330_v39, %v6329_v16  ;;  %v6545_v27 = vmax.f32 %v6465_v13, 0.0  ;;  %v11033_v16 = vld [vmem:[#allocation4 + $0x150] sm:$0xff] }
 0x9dd   : > { %5531 = vst.msk [vmem:[#allocation6 + $0x58] sm:$0xff] %vm3464_vm2, %v5447_v41 }
 0x9de   : > { %5723 = vst.msk [vmem:[#allocation6 + $0x58] sm:$0xff] %vm3657_vm3, %v5639_v52  ;;  %7402 = vmatmul.msk.bf16.gmra.mxu1 %vm4354_vm7, %v6357_v45  ;;  %v11045_v45 = vld [vmem:[#allocation4 + $0x15a] sm:$0xff] }
 0x9e0   : > { %5268 = vrot.lane.b32.xlu2 %v10887_v33, %s7523_s20  ;;  %5460 = vrot.lane.b32.xlu1 %v10889_v43, %s7525_s22  ;;  %v5571_v33 = vld [vmem:[#allocation4 + $0x114] sm:$0xff] }
 0x9e1   : > { %6225 = vrot.lane.b32.xlu0 %v10967_v49, %s7529_s24 }
 0x9e2   : > { %v5451_v44 = vpop.permute.xlu2 %5450  ;;  %v6022_v60 = vpop.permute.xlu1 %6021 }
 0x9e3   : > { %v6467_v29 = vpop.f32.mrf.mxu1  ;;  %v5637_v62 = vpop.permute.xlu0 %5636 }
 0x9e4   : > { %v6546_v28 = vmax.f32 %v6467_v29, 0.0  ;;  %5722 = vst.msk [vmem:[#allocation6 + $0x50] sm:$0xff] %vm3657_vm3, %v5637_v62 }
 0x9e5   : > { %5915 = vst.msk [vmem:[#allocation6 + $0x50] sm:$0xff] %vm3851_vm4, %v5830_v48 }
 0x9e6   : > { %v6892_v24 = vpack.c.bf16 %v6546_v28, %v6545_v27  ;;  %6107 = vst.msk [vmem:[#allocation6 + $0x50] sm:$0xff] %vm4044_vm5, %v6022_v60  ;;  %v11051_v60 = vld [vmem:[#allocation4 + $0x158] sm:$0xff] }
 0x9e8   : > { %7448 = vmatmul.msk.bf16.vlgmr.msrb.gmra.mxu3 %vm396_vm12, %v6892_v24  ;;  %5462 = vrot.lane.b32.xlu2 %v10902_v55, %s7525_s22  ;;  %v10987_v55 = vld [vmem:[#allocation4 + $0x13a] sm:$0xff] }
 0x9e9   : > { %5654 = vrot.lane.b32.xlu1 %v5571_v33, %s7526_s19  ;;  %5270 = vrot.lane.b32.xlu0 %v10908_v40, %s7523_s20 }
 0x9ea   : > { %v5834_v43 = vpop.permute.xlu2 %5833  ;;  %v6216_v58 = vpop.permute.xlu1 %6215 }
 0x9eb   : > { %v5832_v63 = vpop.permute.xlu0 %5831 }
 0x9ec   : > { %5916 = vst.msk [vmem:[#allocation6 + $0x58] sm:$0xff] %vm3851_vm4, %v5832_v63 }
 0x9ed   : > { %6108 = vst.msk [vmem:[#allocation6 + $0x58] sm:$0xff] %vm4044_vm5, %v6024_v61 }
 0x9ee   : > { %6300 = vst.msk [vmem:[#allocation6 + $0x58] sm:$0xff] %vm4237_vm6, %v6216_v58 }
 0x9f0   : > { %5845 = vrot.lane.b32.xlu2 %v10983_v32, %s7527_s21 }
 0x9f1   : > { %6037 = vrot.lane.b32.xlu1 %v10987_v55, %s7528_s23  ;;  %5652 = vrot.lane.b32.xlu0 %v10920_v12, %s7526_s19 }
 0x9f2   : > { %v6028_v40 = vpop.permute.xlu2 %6027  ;;  %v5449_v18 = vpop.permute.xlu1 %5448 }
 0x9f3   : > { %5532 = vst.msk [vmem:[#allocation6 + $0x60] sm:$0xff] %vm3464_vm2, %v5449_v18  ;;  %v6214_v2 = vpop.permute.xlu0 %6213 }
 0x9f4   : > { %6299 = vst.msk [vmem:[#allocation6 + $0x50] sm:$0xff] %vm4237_vm6, %v6214_v2 }
 0x9f5   : > { %v6332_v48 = vld [vmem:[#allocation6 + $0x58] sm:$0xff] }
 0x9f8   : > { %6039 = vrot.lane.b32.xlu2 %v10995_v25, %s7528_s23 }
 0x9f9   : > { %6231 = vrot.lane.b32.xlu1 %v10999_v15, %s7529_s24  ;;  %5847 = vrot.lane.b32.xlu0 %v11001_v23, %s7527_s21 }
 0x9fa   : > { %v5261_v12 = vpop.permute.xlu2 %5260  ;;  %v5643_v41 = vpop.permute.xlu1 %5642 }
 0x9fb   : > { %5342 = vst.msk [vmem:[#allocation6 + $0x70] sm:$0xff] %vm3271_vm1, %v5261_v12  ;;  %v6470_v17 = vpop.f32.mrf.mxu1  ;;  %v5259_v22 = vpop.permute.xlu0 %5258  ;;  %v6331_v54 = vld [vmem:[#allocation6 + $0x50] sm:$0xff] }
 0x9fc   : > { %5341 = vst.msk [vmem:[#allocation6 + $0x68] sm:$0xff] %vm3271_vm1, %v5259_v22  ;;  %v6358_v10 = vpack.c.bf16 %v6332_v48, %v6331_v54  ;;  %v6547_v47 = vmax.f32 %v6470_v17, 0.0  ;;  %v11083_v22 = vld [vmem:[#allocation4 + $0x168] sm:$0xff]  ;;  %v11095_v48 = vld [vmem:[#allocation4 + $0x172] sm:$0xff] }
 0x9fd   : > { %5533 = vst.msk [vmem:[#allocation6 + $0x68] sm:$0xff] %vm3464_vm2, %v5451_v44  ;;  %v11049_v44 = vld [vmem:[#allocation4 + $0x15c] sm:$0xff] }
 0x9fe   : > { %5725 = vst.msk [vmem:[#allocation6 + $0x68] sm:$0xff] %vm3657_vm3, %v5643_v41  ;;  %7403 = vmatmul.msk.bf16.gmra.mxu1 %vm4354_vm7, %v6358_v10  ;;  %v11099_v10 = vld [vmem:[#allocation4 + $0x174] sm:$0xff] }
 0xa00   : > { %5272 = vrot.lane.b32.xlu2 %v10935_v14, %s7523_s20 }
 0xa01   : > { %5464 = vrot.lane.b32.xlu1 %v10937_v57, %s7525_s22  ;;  %6229 = vrot.lane.b32.xlu0 %v11014_v19, %s7529_s24 }
 0xa02   : > { %v5455_v21 = vpop.permute.xlu2 %5454  ;;  %v6026_v61 = vpop.permute.xlu1 %6025 }
 0xa03   : > { %v6472_v34 = vpop.f32.mrf.mxu1  ;;  %v5641_v26 = vpop.permute.xlu0 %5640 }
 0xa04   : > { %v6548_v52 = vmax.f32 %v6472_v34, 0.0  ;;  %5724 = vst.msk [vmem:[#allocation6 + $0x60] sm:$0xff] %vm3657_vm3, %v5641_v26 }
 0xa05   : > { %5917 = vst.msk [vmem:[#allocation6 + $0x60] sm:$0xff] %vm3851_vm4, %v5834_v43  ;;  %v11064_v43 = vld [vmem:[#allocation4 + $0x154] sm:$0xff] }
 0xa06   : > { %v6893_v13 = vpack.c.bf16 %v6548_v52, %v6547_v47  ;;  %6109 = vst.msk [vmem:[#allocation6 + $0x60] sm:$0xff] %vm4044_vm5, %v6026_v61 }
 0xa08   : > { %7449 = vmatmul.msk.bf16.gmra.mxu3 %vm396_vm12, %v6893_v13  ;;  %5466 = vrot.lane.b32.xlu2 %v10946_v7, %s7525_s22  ;;  %v11037_v7 = vld [vmem:[#allocation4 + $0x152] sm:$0xff] }
 0xa09   : > { %5658 = vrot.lane.b32.xlu1 %v10948_v59, %s7526_s19  ;;  %5274 = vrot.lane.b32.xlu0 %v10954_v3, %s7523_s20 }
 0xa0a   : > { %v5838_v14 = vpop.permute.xlu2 %5837  ;;  %v6220_v57 = vpop.permute.xlu1 %6219 }
 0xa0b   : > { %v5836_v4 = vpop.permute.xlu0 %5835 }
 0xa0c   : > { %5918 = vst.msk [vmem:[#allocation6 + $0x68] sm:$0xff] %vm3851_vm4, %v5836_v4 }
 0xa0d   : > { %6110 = vst.msk [vmem:[#allocation6 + $0x68] sm:$0xff] %vm4044_vm5, %v6028_v40 }
 0xa0e   : > { %6302 = vst.msk [vmem:[#allocation6 + $0x68] sm:$0xff] %vm4237_vm6, %v6220_v57 }
 0xa10   : > { %5849 = vrot.lane.b32.xlu2 %v11033_v16, %s7527_s21 }
 0xa11   : > { %6041 = vrot.lane.b32.xlu1 %v11037_v7, %s7528_s23  ;;  %5656 = vrot.lane.b32.xlu0 %v10967_v49, %s7526_s19 }
 0xa12   : > { %v6032_v59 = vpop.permute.xlu2 %6031  ;;  %v5453_v3 = vpop.permute.xlu1 %5452 }
 0xa13   : > { %5534 = vst.msk [vmem:[#allocation6 + $0x70] sm:$0xff] %vm3464_vm2, %v5453_v3  ;;  %v6218_v39 = vpop.permute.xlu0 %6217 }
 0xa14   : > { %6301 = vst.msk [vmem:[#allocation6 + $0x60] sm:$0xff] %vm4237_vm6, %v6218_v39 }
 0xa15   : > { %v6334_v24 = vld [vmem:[#allocation6 + $0x68] sm:$0xff] }
 0xa18   : > { %6043 = vrot.lane.b32.xlu2 %v11045_v45, %s7528_s23 }
 0xa19   : > { %6235 = vrot.lane.b32.xlu1 %v11049_v44, %s7529_s24  ;;  %5851 = vrot.lane.b32.xlu0 %v11051_v60, %s7527_s21 }
 0xa1a   : > { %v5265_v49 = vpop.permute.xlu2 %5264  ;;  %v5647_v29 = vpop.permute.xlu1 %5646 }
 0xa1b   : > { %5344 = vst.msk [vmem:[#allocation6 + $0x80] sm:$0xff] %vm3271_vm1, %v5265_v49  ;;  %v6475_v62 = vpop.f32.mrf.mxu1  ;;  %v5263_v27 = vpop.permute.xlu0 %5262  ;;  %v6333_v28 = vld [vmem:[#allocation6 + $0x60] sm:$0xff] }
 0xa1c   : > { %5343 = vst.msk [vmem:[#allocation6 + $0x78] sm:$0xff] %vm3271_vm1, %v5263_v27  ;;  %v6359_v33 = vpack.c.bf16 %v6334_v24, %v6333_v28  ;;  %v6549_v2 = vmax.f32 %v6475_v62, 0.0  ;;  %v11133_v27 = vld [vmem:[#allocation4 + $0x180] sm:$0xff]  ;;  %v11145_v24 = vld [vmem:[#allocation4 + $0x18a] sm:$0xff] }
 0xa1d   : > { %5535 = vst.msk [vmem:[#allocation6 + $0x78] sm:$0xff] %vm3464_vm2, %v5455_v21  ;;  %v11101_v21 = vld [vmem:[#allocation4 + $0x170] sm:$0xff]  ;;  %v11135_v28 = vld [vmem:[#allocation4 + $0x182] sm:$0xff] }
 0xa1e   : > { %5727 = vst.msk [vmem:[#allocation6 + $0x78] sm:$0xff] %vm3657_vm3, %v5647_v29  ;;  %7404 = vmatmul.msk.bf16.gmra.mxu1 %vm4354_vm7, %v6359_v33  ;;  %v11147_v33 = vld [vmem:[#allocation4 + $0x18c] sm:$0xff] }
 0xa20   : > { %5276 = vrot.lane.b32.xlu2 %v10983_v32, %s7523_s20 }
 0xa21   : > { %5468 = vrot.lane.b32.xlu1 %v10987_v55, %s7525_s22  ;;  %6233 = vrot.lane.b32.xlu0 %v11064_v43, %s7529_s24 }
 0xa22   : > { %v5459_v58 = vpop.permute.xlu2 %5458  ;;  %v6030_v63 = vpop.permute.xlu1 %6029 }
 0xa23   : > { %v6477_v40 = vpop.f32.mrf.mxu1  ;;  %v5645_v18 = vpop.permute.xlu0 %5644 }
 0xa24   : > { %v6550_v12 = vmax.f32 %v6477_v40, 0.0  ;;  %5726 = vst.msk [vmem:[#allocation6 + $0x70] sm:$0xff] %vm3657_vm3, %v5645_v18 }
 0xa25   : > { %5919 = vst.msk [vmem:[#allocation6 + $0x70] sm:$0xff] %vm3851_vm4, %v5838_v14  ;;  %v11114_v14 = vld [vmem:[#allocation4 + $0x16c] sm:$0xff] }
 0xa26   : > { %v6894_v41 = vpack.c.bf16 %v6550_v12, %v6549_v2  ;;  %6111 = vst.msk [vmem:[#allocation6 + $0x70] sm:$0xff] %vm4044_vm5, %v6030_v63 }
 0xa28   : > { %7450 = vmatmul.msk.bf16.gmra.mxu3 %vm396_vm12, %v6894_v41  ;;  %5470 = vrot.lane.b32.xlu2 %v10995_v25, %s7525_s22  ;;  %v11087_v25 = vld [vmem:[#allocation4 + $0x16a] sm:$0xff] }
 0xa29   : > { %5662 = vrot.lane.b32.xlu1 %v10999_v15, %s7526_s19  ;;  %5278 = vrot.lane.b32.xlu0 %v11001_v23, %s7523_s20 }
 0xa2a   : > { %v5842_v32 = vpop.permute.xlu2 %5841  ;;  %v6224_v55 = vpop.permute.xlu1 %6223 }
 0xa2b   : > { %v5840_v17 = vpop.permute.xlu0 %5839 }
 0xa2c   : > { %5920 = vst.msk [vmem:[#allocation6 + $0x78] sm:$0xff] %vm3851_vm4, %v5840_v17 }
 0xa2d   : > { %6112 = vst.msk [vmem:[#allocation6 + $0x78] sm:$0xff] %vm4044_vm5, %v6032_v59 }
 0xa2e   : > { %6304 = vst.msk [vmem:[#allocation6 + $0x78] sm:$0xff] %vm4237_vm6, %v6224_v55 }
 0xa30   : > { %5853 = vrot.lane.b32.xlu2 %v11083_v22, %s7527_s21 }
 0xa31   : > { %6045 = vrot.lane.b32.xlu1 %v11087_v25, %s7528_s23  ;;  %5660 = vrot.lane.b32.xlu0 %v11014_v19, %s7526_s19 }
 0xa32   : > { %v6036_v15 = vpop.permute.xlu2 %6035  ;;  %v5457_v23 = vpop.permute.xlu1 %5456 }
 0xa33   : > { %5536 = vst.msk [vmem:[#allocation6 + $0x80] sm:$0xff] %vm3464_vm2, %v5457_v23  ;;  %v6222_v54 = vpop.permute.xlu0 %6221 }
 0xa34   : > { %6303 = vst.msk [vmem:[#allocation6 + $0x70] sm:$0xff] %vm4237_vm6, %v6222_v54 }
 0xa35   : > { %v6336_v52 = vld [vmem:[#allocation6 + $0x78] sm:$0xff] }
 0xa38   : > { %6047 = vrot.lane.b32.xlu2 %v11095_v48, %s7528_s23 }
 0xa39   : > { %6239 = vrot.lane.b32.xlu1 %v11099_v10, %s7529_s24  ;;  %5855 = vrot.lane.b32.xlu0 %v11101_v21, %s7527_s21 }
 0xa3a   : > { %v5269_v19 = vpop.permute.xlu2 %5268  ;;  %v5651_v61 = vpop.permute.xlu1 %5650 }
 0xa3b   : > { %5346 = vst.msk [vmem:[#allocation6 + $0x90] sm:$0xff] %vm3271_vm1, %v5269_v19  ;;  %v6480_v34 = vpop.f32.mrf.mxu1  ;;  %v5267_v26 = vpop.permute.xlu0 %5266  ;;  %v6335_v47 = vld [vmem:[#allocation6 + $0x70] sm:$0xff] }
 0xa3c   : > { %5345 = vst.msk [vmem:[#allocation6 + $0x88] sm:$0xff] %vm3271_vm1, %v5267_v26  ;;  %v6360_v13 = vpack.c.bf16 %v6336_v52, %v6335_v47  ;;  %v6551_v39 = vmax.f32 %v6480_v34, 0.0  ;;  %v11185_v34 = vld [vmem:[%s11502_s8] ss:$0 sm:$0xff] }
 0xa3d   : > { %5537 = vst.msk [vmem:[#allocation6 + $0x88] sm:$0xff] %vm3464_vm2, %v5459_v58  ;;  %v11151_v58 = vld [vmem:[#allocation4 + $0x188] sm:$0xff] }
 0xa3e   : > { %5729 = vst.msk [vmem:[#allocation6 + $0x88] sm:$0xff] %vm3657_vm3, %v5651_v61  ;;  %7405 = vmatmul.msk.bf16.gmra.mxu1 %vm4354_vm7, %v6360_v13  ;;  %v11191_v13 = vld [vmem:[#allocation4 + $0x198] sm:$0xff] }
 0xa40   : > { %5280 = vrot.lane.b32.xlu2 %v11033_v16, %s7523_s20 }
 0xa41   : > { %5472 = vrot.lane.b32.xlu1 %v11037_v7, %s7525_s22  ;;  %6237 = vrot.lane.b32.xlu0 %v11114_v14, %s7529_s24 }
 0xa42   : > { %v5463_v57 = vpop.permute.xlu2 %5462  ;;  %v6034_v4 = vpop.permute.xlu1 %6033 }
 0xa43   : > { %v6482_v59 = vpop.f32.mrf.mxu1  ;;  %v5649_v3 = vpop.permute.xlu0 %5648 }
 0xa44   : > { %v6552_v49 = vmax.f32 %v6482_v59, 0.0  ;;  %5728 = vst.msk [vmem:[#allocation6 + $0x80] sm:$0xff] %vm3657_vm3, %v5649_v3 }
 0xa45   : > { %5921 = vst.msk [vmem:[#allocation6 + $0x80] sm:$0xff] %vm3851_vm4, %v5842_v32  ;;  %v11164_v32 = vld [vmem:[#allocation4 + $0x184] sm:$0xff] }
 0xa46   : > { %v6895_v29 = vpack.c.bf16 %v6552_v49, %v6551_v39  ;;  %6113 = vst.msk [vmem:[#allocation6 + $0x80] sm:$0xff] %vm4044_vm5, %v6034_v4  ;;  %v11664_v4 = vld [vmem:[#allocation13_spill] sm:$0xff] }
 0xa48   : > { %7451 = vmatmul.msk.bf16.gmra.mxu3 %vm396_vm12, %v6895_v29  ;;  %5474 = vrot.lane.b32.xlu2 %v11045_v45, %s7525_s22 }
 0xa49   : > { %5666 = vrot.lane.b32.xlu1 %v11049_v44, %s7526_s19  ;;  %5282 = vrot.lane.b32.xlu0 %v11051_v60, %s7523_s20 }
 0xa4a   : > { %v5846_v16 = vpop.permute.xlu2 %5845  ;;  %v6228_v7 = vpop.permute.xlu1 %6227 }
 0xa4b   : > { %v5844_v62 = vpop.permute.xlu0 %5843 }
 0xa4c   : > { %5922 = vst.msk [vmem:[#allocation6 + $0x88] sm:$0xff] %vm3851_vm4, %v5844_v62 }
 0xa4d   : > { %6114 = vst.msk [vmem:[#allocation6 + $0x88] sm:$0xff] %vm4044_vm5, %v6036_v15 }
 0xa4e   : > { %6306 = vst.msk [vmem:[#allocation6 + $0x88] sm:$0xff] %vm4237_vm6, %v6228_v7  ;;  %v11216_v7 = vld [vmem:[#allocation4 + $0x1a2] sm:$0xff] }
 0xa50   : > { %5857 = vrot.lane.b32.xlu2 %v11133_v27, %s7527_s21 }
 0xa51   : > { %5664 = vrot.lane.b32.xlu0 %v11064_v43, %s7526_s19  ;;  %6049 = vrot.lane.b32.xlu1 %v11135_v28, %s7528_s23 }
 0xa52   : > { %v6040_v45 = vpop.permute.xlu2 %6039  ;;  %v5461_v44 = vpop.permute.xlu1 %5460 }
 0xa53   : > { %5538 = vst.msk [vmem:[#allocation6 + $0x90] sm:$0xff] %vm3464_vm2, %v5461_v44  ;;  %v6226_v60 = vpop.permute.xlu0 %6225 }
 0xa54   : > { %6305 = vst.msk [vmem:[#allocation6 + $0x80] sm:$0xff] %vm4237_vm6, %v6226_v60 }
 0xa55   : > { %v6338_v2 = vld [vmem:[#allocation6 + $0x88] sm:$0xff] }
 0xa58   : > { %6051 = vrot.lane.b32.xlu2 %v11145_v24, %s7528_s23 }
 0xa59   : > { %6243 = vrot.lane.b32.xlu1 %v11147_v33, %s7529_s24  ;;  %5859 = vrot.lane.b32.xlu0 %v11151_v58, %s7527_s21 }
 0xa5a   : > { %v5273_v43 = vpop.permute.xlu2 %5272 }
 0xa5b   : > { %5348 = vst.msk [vmem:[#allocation6 + $0xa0] sm:$0xff] %vm3271_vm1, %v5273_v43  ;;  %v5655_v63 = vpop.permute.xlu1 %5654  ;;  %v6485_v40 = vpop.f32.mrf.mxu1  ;;  %v6337_v18 = vld [vmem:[#allocation6 + $0x80] sm:$0xff] }
 0xa5c   : > { %v5271_v12 = vpop.permute.xlu0 %5270  ;;  %v6361_v41 = vpack.c.bf16 %v6338_v2, %v6337_v18  ;;  %v6553_v23 = vmax.f32 %v6485_v40, 0.0 }
 0xa5d   : > { %5347 = vst.msk [vmem:[#allocation6 + $0x98] sm:$0xff] %vm3271_vm1, %v5271_v12 }
 0xa5e   : > { %5539 = vst.msk [vmem:[#allocation6 + $0x98] sm:$0xff] %vm3464_vm2, %v5463_v57  ;;  %7406 = vmatmul.msk.bf16.gmra.mxu1 %vm4354_vm7, %v6361_v41  ;;  %v6815_v57 = vadd.f32 %v10566_v56, %v10407_v36  ;;  %v11218_v36 = vld [vmem:[#allocation4 + $0x1a4] sm:$0xff]  ;;  %v11238_v41 = vld [vmem:[#allocation4 + $0x19c] sm:$0xff] }
 0xa5f   : > { %5731 = vst.msk [vmem:[#allocation6 + $0x98] sm:$0xff] %vm3657_vm3, %v5655_v63  ;;  %v11222_v56 = vld [vmem:[#allocation4 + $0x1a0] sm:$0xff] }
 0xa60   : > { %5284 = vrot.lane.b32.xlu2 %v11083_v22, %s7523_s20  ;;  %v6813_v22 = vadd.f32 %v10558_v11, %v10396_v46  ;;  %v11193_v11 = vld [vmem:[#allocation4 + $0x19a] sm:$0xff] }
 0xa61   : > { %5476 = vrot.lane.b32.xlu1 %v11087_v25, %s7525_s22  ;;  %6241 = vrot.lane.b32.xlu0 %v11164_v32, %s7529_s24 }
 0xa62   : > { %v5467_v55 = vpop.permute.xlu2 %5466 }
 0xa63   : > { %v6038_v17 = vpop.permute.xlu1 %6037  ;;  %v6487_v15 = vpop.f32.mrf.mxu1 }
 0xa64   : > { %v6554_v54 = vmax.f32 %v6487_v15, 0.0  ;;  %v5653_v19 = vpop.permute.xlu0 %5652 }
 0xa65   : > { %5730 = vst.msk [vmem:[#allocation6 + $0x90] sm:$0xff] %vm3657_vm3, %v5653_v19 }
 0xa66   : > { %v6896_v61 = vpack.c.bf16 %v6554_v54, %v6553_v23  ;;  %5923 = vst.msk [vmem:[#allocation6 + $0x90] sm:$0xff] %vm3851_vm4, %v5846_v16 }
 0xa67   : > { %6115 = vst.msk [vmem:[#allocation6 + $0x90] sm:$0xff] %vm4044_vm5, %v6038_v17 }
 0xa68   : > { %7452 = vmatmul.msk.bf16.gmra.mxu3 %vm396_vm12, %v6896_v61  ;;  %5478 = vrot.lane.b32.xlu2 %v11095_v48, %s7525_s22 }
 0xa69   : > { %5670 = vrot.lane.b32.xlu1 %v11099_v10, %s7526_s19  ;;  %5286 = vrot.lane.b32.xlu0 %v11101_v21, %s7523_s20 }
 0xa6a   : > { %v5850_v25 = vpop.permute.xlu2 %5849 }
 0xa6b   : > { %v6232_v26 = vpop.permute.xlu1 %6231  ;;  %v6970_v47 = vpop.f32.mrf.mxu3 }
 0xa6c   : > { %v5848_v52 = vpop.permute.xlu0 %5847  ;;  %v7050_v48 = vadd.f32 %v6970_v47, %v6813_v22 }
 0xa6d   : > { %5924 = vst.msk [vmem:[#allocation6 + $0x98] sm:$0xff] %vm3851_vm4, %v5848_v52  ;;  %v5773_v52 = vld [vmem:[#allocation4 + $0x1b0] sm:$0xff] }
 0xa6e   : > { %6116 = vst.msk [vmem:[#allocation6 + $0x98] sm:$0xff] %vm4044_vm5, %v6040_v45  ;;  %v7086_v21 = vadd.f32 %v11185_v34, %v7050_v48  ;;  %v11665_v45 = vld [vmem:[#allocation7_spill] sm:$0xff] }
 0xa6f   : > { %6308 = vst.msk [vmem:[#allocation6 + $0x98] sm:$0xff] %vm4237_vm6, %v6232_v26 }
 0xa70   : > { %v7118_v46 = vmax.f32 %v7086_v21, 0.0  ;;  %5861 = vrot.lane.b32.xlu2 %v11191_v13, %s7527_s21 }
 0xa71   : > { %5668 = vrot.lane.b32.xlu0 %v11114_v14, %s7526_s19  ;;  %6053 = vrot.lane.b32.xlu1 %v11193_v11, %s7528_s23 }
 0xa72   : > { %v7150_v59 = vadd.f32 %v7118_v46, %v11664_v4  ;;  %v6044_v3 = vpop.permute.xlu2 %6043 }
 0xa73   : > { %v5465_v39 = vpop.permute.xlu1 %5464  ;;  %v6972_v49 = vpop.f32.mrf.mxu3 }
 0xa74   : > { %7182 = vst.msk [vmem:[%s11202_s15] sm:$0xff] %vm396_vm12, %v7150_v59  ;;  %v6230_v29 = vpop.permute.xlu0 %6229  ;;  %v7051_v16 = vadd.f32 %v6972_v49, %v6815_v57  ;;  %v5774_v49 = vld [vmem:[#allocation4 + $0x1b8] sm:$0xff] }
 0xa75   : > { %5540 = vst.msk [vmem:[#allocation6 + $0xa0] sm:$0xff] %vm3464_vm2, %v5465_v39  ;;  %v6158_v39 = vld [vmem:[#allocation4 + $0x1bc] sm:$0xff] }
 0xa76   : > { %6307 = vst.msk [vmem:[#allocation6 + $0x90] sm:$0xff] %vm4237_vm6, %v6230_v29  ;;  %v7087_v14 = vadd.f32 %v11185_v34, %v7051_v16  ;;  %v6340_v2 = vld [vmem:[#allocation6 + $0x98] sm:$0xff] }
 0xa78   : > { %v7119_v62 = vmax.f32 %v7087_v14, 0.0  ;;  %6055 = vrot.lane.b32.xlu2 %v11216_v7, %s7528_s23 }
 0xa79   : > { %6247 = vrot.lane.b32.xlu1 %v11218_v36, %s7529_s24  ;;  %5863 = vrot.lane.b32.xlu0 %v11222_v56, %s7527_s21 }
 0xa7a   : > { %v7151_v44 = vadd.f32 %v7119_v62, %v11665_v45  ;;  %v5277_v60 = vpop.permute.xlu2 %5276 }
 0xa7b   : > { %5350 = vst.msk [vmem:[#allocation6 + $0xb0] sm:$0xff] %vm3271_vm1, %v5277_v60  ;;  %v5659_v43 = vpop.permute.xlu1 %5658  ;;  %v6490_v63 = vpop.f32.mrf.mxu1 }
 0xa7c   : > { %7183 = vst.msk [vmem:[%s11202_s15 + $0x8] sm:$0xff] %vm396_vm12, %v7151_v44  ;;  %v5275_v40 = vpop.permute.xlu0 %5274 }
 0xa7d   : > { %5349 = vst.msk [vmem:[#allocation6 + $0xa8] sm:$0xff] %vm3271_vm1, %v5275_v40  ;;  %v6339_v18 = vld [vmem:[#allocation6 + $0x90] sm:$0xff] }
 0xa7e   : > { %5541 = vst.msk [vmem:[#allocation6 + $0xa8] sm:$0xff] %vm3464_vm2, %v5467_v55  ;;  %v6362_v12 = vpack.c.bf16 %v6340_v2, %v6339_v18  ;;  %v6555_v55 = vmax.f32 %v6490_v63, 0.0  ;;  %v6157_v63 = vld [vmem:[#allocation4 + $0x1b4] sm:$0xff] }
 0xa7f   : > { %5733 = vst.msk [vmem:[#allocation6 + $0xa8] sm:$0xff] %vm3657_vm3, %v5659_v43 }
 0xa80   : > { %7407 = vmatmul.msk.bf16.gmra.mxu1 %vm4354_vm7, %v6362_v12  ;;  %5288 = vrot.lane.b32.xlu2 %v11133_v27, %s7523_s20  ;;  %v6818_v27 = vadd.f32 %v10573_v5, %v10419_v0  ;;  %v6820_v0 = vadd.f32 %v10587_v30, %v10430_v50  ;;  %v11666_v5 = vld [vmem:[#allocation10_spill] sm:$0xff]  ;;  %v11667_v30 = vld [vmem:[#allocation16_spill] sm:$0xff] }
 0xa81   : > { %5480 = vrot.lane.b32.xlu1 %v11135_v28, %s7525_s22  ;;  %6245 = vrot.lane.b32.xlu0 %v11238_v41, %s7529_s24 }
 0xa82   : > { %v5471_v17 = vpop.permute.xlu2 %5470 }
 0xa83   : > { %v6042_v15 = vpop.permute.xlu1 %6041  ;;  %v6492_v23 = vpop.f32.mrf.mxu1 }
 0xa84   : > { %v6556_v54 = vmax.f32 %v6492_v23, 0.0  ;;  %v5657_v19 = vpop.permute.xlu0 %5656 }
 0xa85   : > { %5732 = vst.msk [vmem:[#allocation6 + $0xa0] sm:$0xff] %vm3657_vm3, %v5657_v19 }
 0xa86   : > { %v6897_v61 = vpack.c.bf16 %v6556_v54, %v6555_v55  ;;  %5925 = vst.msk [vmem:[#allocation6 + $0xa0] sm:$0xff] %vm3851_vm4, %v5850_v25 }
 0xa87   : > { %6117 = vst.msk [vmem:[#allocation6 + $0xa0] sm:$0xff] %vm4044_vm5, %v6042_v15 }
 0xa88   : > { %7453 = vmatmul.msk.bf16.gmra.mxu3 %vm396_vm12, %v6897_v61  ;;  %5482 = vrot.lane.b32.xlu2 %v11145_v24, %s7525_s22 }
 0xa89   : > { %5674 = vrot.lane.b32.xlu1 %v11147_v33, %s7526_s19  ;;  %5290 = vrot.lane.b32.xlu0 %v11151_v58, %s7523_s20  ;;  %v5965_v33 = vld [vmem:[#allocation4 + $0x1b2] sm:$0xff] }
 0xa8a   : > { %v5854_v28 = vpop.permute.xlu2 %5853 }
 0xa8b   : > { %v6236_v22 = vpop.permute.xlu1 %6235  ;;  %v6975_v26 = vpop.f32.mrf.mxu3 }
 0xa8c   : > { %v5852_v25 = vpop.permute.xlu0 %5851  ;;  %v7052_v47 = vadd.f32 %v6975_v26, %v6818_v27  ;;  %v5776_v27 = vld [vmem:[#allocation4 + $0x1d0] sm:$0xff] }
 0xa8d   : > { %5926 = vst.msk [vmem:[#allocation6 + $0xa8] sm:$0xff] %vm3851_vm4, %v5852_v25 }
 0xa8e   : > { %6118 = vst.msk [vmem:[#allocation6 + $0xa8] sm:$0xff] %vm4044_vm5, %v6044_v3  ;;  %v7088_v24 = vadd.f32 %v11185_v34, %v7052_v47  ;;  %v5966_v3 = vld [vmem:[#allocation4 + $0x1ba] sm:$0xff] }
 0xa8f   : > { %6310 = vst.msk [vmem:[#allocation6 + $0xa8] sm:$0xff] %vm4237_vm6, %v6236_v22 }
 0xa90   : > { %v7120_v58 = vmax.f32 %v7088_v24, 0.0  ;;  %5865 = vrot.lane.b32.xlu2 %v5773_v52, %s7527_s21  ;;  %v5775_v52 = vld [vmem:[#allocation4 + $0x1c8] sm:$0xff] }
 0xa91   : > { %6057 = vrot.lane.b32.xlu1 %v5965_v33, %s7528_s23  ;;  %5672 = vrot.lane.b32.xlu0 %v11164_v32, %s7526_s19  ;;  %v6159_v24 = vld [vmem:[#allocation4 + $0x1cc] sm:$0xff] }
 0xa92   : > { %v7152_v48 = vadd.f32 %v7120_v58, %v11666_v5  ;;  %v6048_v21 = vpop.permute.xlu2 %6047 }
 0xa93   : > { %v5469_v46 = vpop.permute.xlu1 %5468  ;;  %v6977_v57 = vpop.f32.mrf.mxu3 }
 0xa94   : > { %7184 = vst.msk [vmem:[%s11202_s15 + $0x10] sm:$0xff] %vm396_vm12, %v7152_v48  ;;  %v6234_v4 = vpop.permute.xlu0 %6233  ;;  %v7053_v59 = vadd.f32 %v6977_v57, %v6820_v0  ;;  %v6160_v57 = vld [vmem:[#allocation4 + $0x1d4] sm:$0xff] }
 0xa95   : > { %5542 = vst.msk [vmem:[#allocation6 + $0xb0] sm:$0xff] %vm3464_vm2, %v5469_v46 }
 0xa96   : > { %6309 = vst.msk [vmem:[#allocation6 + $0xa0] sm:$0xff] %vm4237_vm6, %v6234_v4  ;;  %v7089_v32 = vadd.f32 %v11185_v34, %v7053_v59  ;;  %v6342_v60 = vld [vmem:[#allocation6 + $0xa8] sm:$0xff]  ;;  %v5968_v59 = vld [vmem:[#allocation4 + $0x1d2] sm:$0xff] }
 0xa98   : > { %v7121_v50 = vmax.f32 %v7089_v32, 0.0  ;;  %6059 = vrot.lane.b32.xlu2 %v5966_v3, %s7528_s23 }
 0xa99   : > { %6251 = vrot.lane.b32.xlu1 %v6158_v39, %s7529_s24  ;;  %5867 = vrot.lane.b32.xlu0 %v5774_v49, %s7527_s21 }
 0xa9a   : > { %v7153_v29 = vadd.f32 %v7121_v50, %v11667_v30  ;;  %v5281_v16 = vpop.permute.xlu2 %5280 }
 0xa9b   : > { %5352 = vst.msk [vmem:[#allocation6 + $0xc0] sm:$0xff] %vm3271_vm1, %v5281_v16  ;;  %v5663_v14 = vpop.permute.xlu1 %5662  ;;  %v6495_v62 = vpop.f32.mrf.mxu1  ;;  %v6828_v16 = vadd.f32 %v10625_v37, %v10479_v9 }
 0xa9c   : > { %7185 = vst.msk [vmem:[%s11202_s15 + $0x18] sm:$0xff] %vm396_vm12, %v7153_v29  ;;  %v5279_v45 = vpop.permute.xlu0 %5278  ;;  %v6557_v12 = vmax.f32 %v6495_v62, 0.0 }
 0xa9d   : > { %5351 = vst.msk [vmem:[#allocation6 + $0xb8] sm:$0xff] %vm3271_vm1, %v5279_v45  ;;  %v6341_v44 = vld [vmem:[#allocation6 + $0xa0] sm:$0xff] }
 0xa9e   : > { %5543 = vst.msk [vmem:[#allocation6 + $0xb8] sm:$0xff] %vm3464_vm2, %v5471_v17  ;;  %v6363_v43 = vpack.c.bf16 %v6342_v60, %v6341_v44 }
 0xa9f   : > { %5735 = vst.msk [vmem:[#allocation6 + $0xb8] sm:$0xff] %vm3657_vm3, %v5663_v14 }
 0xaa0   : > { %7408 = vmatmul.msk.bf16.gmra.mxu1 %vm4354_vm7, %v6363_v43  ;;  %5102 = vrot.lane.b32.xlu2 %v11099_v10, %s7521_s18  ;;  %v6823_v10 = vadd.f32 %v10600_v51, %v10444_v35  ;;  %v6825_v35 = vadd.f32 %v10611_v6, %v10455_v20  ;;  %v11668_v51 = vld [vmem:[#allocation8_spill] sm:$0xff] }
 0xaa1   : > { %6249 = vrot.lane.b32.xlu0 %v6157_v63, %s7529_s24  ;;  %5294 = vrot.lane.b32.xlu1 %v11222_v56, %s7523_s20  ;;  %v11669_v6 = vld [vmem:[#allocation12_spill] sm:$0xff] }
 0xaa2   : > { %v5475_v40 = vpop.permute.xlu2 %5474 }
 0xaa3   : > { %v6046_v18 = vpop.permute.xlu1 %6045  ;;  %v6497_v2 = vpop.f32.mrf.mxu1 }
 0xaa4   : > { %v6558_v15 = vmax.f32 %v6497_v2, 0.0  ;;  %v5661_v17 = vpop.permute.xlu0 %5660 }
 0xaa5   : > { %5734 = vst.msk [vmem:[#allocation6 + $0xb0] sm:$0xff] %vm3657_vm3, %v5661_v17 }
 0xaa6   : > { %v6898_v23 = vpack.c.bf16 %v6558_v15, %v6557_v12  ;;  %5927 = vst.msk [vmem:[#allocation6 + $0xb0] sm:$0xff] %vm3851_vm4, %v5854_v28 }
 0xaa7   : > { %6119 = vst.msk [vmem:[#allocation6 + $0xb0] sm:$0xff] %vm4044_vm5, %v6046_v18  ;;  %v11670_v18 = vld [vmem:[#allocation19_spill] sm:$0xff] }
 0xaa8   : > { %7454 = vmatmul.msk.bf16.gmra.mxu3 %vm396_vm12, %v6898_v23  ;;  %5484 = vrot.lane.b32.xlu2 %v11193_v11, %s7525_s22 }
 0xaa9   : > { %5292 = vrot.lane.b32.xlu0 %v11191_v13, %s7523_s20  ;;  %5676 = vrot.lane.b32.xlu1 %v11238_v41, %s7526_s19 }
 0xaaa   : > { %v5858_v56 = vpop.permute.xlu2 %5857 }
 0xaab   : > { %v6240_v55 = vpop.permute.xlu1 %6239  ;;  %v6980_v54 = vpop.f32.mrf.mxu3 }
 0xaac   : > { %v5856_v19 = vpop.permute.xlu0 %5855  ;;  %v7054_v61 = vadd.f32 %v6980_v54, %v6823_v10 }
 0xaad   : > { %5928 = vst.msk [vmem:[#allocation6 + $0xb8] sm:$0xff] %vm3851_vm4, %v5856_v19 }
 0xaae   : > { %6120 = vst.msk [vmem:[#allocation6 + $0xb8] sm:$0xff] %vm4044_vm5, %v6048_v21  ;;  %v7090_v11 = vadd.f32 %v11185_v34, %v7054_v61 }
 0xaaf   : > { %6312 = vst.msk [vmem:[#allocation6 + $0xb8] sm:$0xff] %vm4237_vm6, %v6240_v55 }
 0xab0   : > { %v7122_v13 = vmax.f32 %v7090_v11, 0.0  ;;  %5678 = vrot.lane.b32.xlu2 %v11218_v36, %s7526_s19  ;;  %v5967_v36 = vld [vmem:[#allocation4 + $0x1ca] sm:$0xff] }
 0xab1   : > { %5486 = vrot.lane.b32.xlu0 %v11216_v7, %s7525_s22  ;;  %5871 = vrot.lane.b32.xlu1 %v5776_v27, %s7527_s21 }
 0xab2   : > { %v7154_v41 = vadd.f32 %v7122_v13, %v11668_v51  ;;  %v6052_v28 = vpop.permute.xlu2 %6051 }
 0xab3   : > { %v5473_v22 = vpop.permute.xlu1 %5472  ;;  %v6982_v26 = vpop.f32.mrf.mxu3 }
 0xab4   : > { %7186 = vst.msk [vmem:[%s11202_s15 + $0x20] sm:$0xff] %vm396_vm12, %v7154_v41  ;;  %v6238_v25 = vpop.permute.xlu0 %6237  ;;  %v7055_v47 = vadd.f32 %v6982_v26, %v6825_v35  ;;  %v6832_v26 = vpop.f32.mrf.mxu2 }
 0xab5   : > { %5544 = vst.msk [vmem:[#allocation6 + $0xc0] sm:$0xff] %vm3464_vm2, %v5473_v22 }
 0xab6   : > { %6311 = vst.msk [vmem:[#allocation6 + $0xb0] sm:$0xff] %vm4237_vm6, %v6238_v25  ;;  %v7091_v7 = vadd.f32 %v11185_v34, %v7055_v47  ;;  %v6344_v46 = vld [vmem:[#allocation6 + $0xb8] sm:$0xff]  ;;  %v6692_v47 = vpop.f32.mrf.mxu0 }
 0xab8   : > { %v7123_v20 = vmax.f32 %v7091_v7, 0.0  ;;  %6061 = vrot.lane.b32.xlu2 %v5967_v36, %s7528_s23  ;;  %v6833_v36 = vadd.f32 %v6832_v26, %v6692_v47  ;;  %v11675_v26 = vld [vmem:[#allocation18_spill] sm:$0xff] }
 0xab9   : > { %5869 = vrot.lane.b32.xlu0 %v5775_v52, %s7527_s21  ;;  %6253 = vrot.lane.b32.xlu1 %v6159_v24, %s7529_s24 }
 0xaba   : > { %v7155_v33 = vadd.f32 %v7123_v20, %v11669_v6  ;;  %v5285_v58 = vpop.permute.xlu2 %5284 }
 0xabb   : > { %v5667_v0 = vpop.permute.xlu1 %5666  ;;  %v6500_v5 = vpop.f32.mrf.mxu1  ;;  %5354 = vst.msk [vmem:[#allocation6 + $0xd0] sm:$0xff] %vm3271_vm1, %v5285_v58 }
 0xabc   : > { %7187 = vst.msk [vmem:[%s11202_s15 + $0x28] sm:$0xff] %vm396_vm12, %v7155_v33  ;;  %v5283_v48 = vpop.permute.xlu0 %5282  ;;  %v6559_v49 = vmax.f32 %v6500_v5, 0.0  ;;  %v6834_v58 = vpop.f32.mrf.mxu2 }
 0xabd   : > { %5353 = vst.msk [vmem:[#allocation6 + $0xc8] sm:$0xff] %vm3271_vm1, %v5283_v48  ;;  %v6343_v21 = vld [vmem:[#allocation6 + $0xb0] sm:$0xff] }
 0xabe   : > { %5545 = vst.msk [vmem:[#allocation6 + $0xc8] sm:$0xff] %vm3464_vm2, %v5475_v40  ;;  %v6364_v4 = vpack.c.bf16 %v6344_v46, %v6343_v21  ;;  %v6830_v40 = vadd.f32 %v10645_v31, %v10499_v38  ;;  %v6694_v5 = vpop.f32.mrf.mxu0  ;;  %v11672_v21 = vld [vmem:[#allocation15_spill] sm:$0xff] }
 0xabf   : > { %5737 = vst.msk [vmem:[#allocation6 + $0xc8] sm:$0xff] %vm3657_vm3, %v5667_v0  ;;  %v6835_v48 = vadd.f32 %v6834_v58, %v6694_v5 }
 0xac0   : > { %7409 = vmatmul.msk.bf16.gmra.mxu1 %vm4354_vm7, %v6364_v4  ;;  %6255 = vrot.lane.b32.xlu2 %v6160_v57, %s7529_s24 }
 0xac1   : > { %6063 = vrot.lane.b32.xlu0 %v5968_v59, %s7528_s23 }
 0xac2   : > { %v5479_v3 = vpop.permute.xlu2 %5478 }
 0xac3   : > { %v6502_v32 = vpop.f32.mrf.mxu1  ;;  %v6050_v39 = vpop.permute.xlu1 %6049 }
 0xac4   : > { %v6560_v50 = vmax.f32 %v6502_v32, 0.0  ;;  %v5665_v30 = vpop.permute.xlu0 %5664 }
 0xac5   : > { %5736 = vst.msk [vmem:[#allocation6 + $0xc0] sm:$0xff] %vm3657_vm3, %v5665_v30 }
 0xac6   : > { %v6899_v29 = vpack.c.bf16 %v6560_v50, %v6559_v49  ;;  %5929 = vst.msk [vmem:[#allocation6 + $0xc0] sm:$0xff] %vm3851_vm4, %v5858_v56  ;;  %v11671_v56 = vld [vmem:[#allocation9_spill] sm:$0xff]  ;;  %v11673_v50 = vld [vmem:[#allocation22_spill] sm:$0xff] }
 0xac7   : > { %6121 = vst.msk [vmem:[#allocation6 + $0xc0] sm:$0xff] %vm4044_vm5, %v6050_v39 }
 0xac8   : > { %7455 = vmatmul.msk.bf16.gmra.mxu3 %vm396_vm12, %v6899_v29 }
 0xaca   : > { %v5862_v14 = vpop.permute.xlu2 %5861 }
 0xacb   : > { %v6244_v62 = vpop.permute.xlu1 %6243  ;;  %v6985_v45 = vpop.f32.mrf.mxu3 }
 0xacc   : > { %v5860_v44 = vpop.permute.xlu0 %5859  ;;  %v7056_v60 = vadd.f32 %v6985_v45, %v6828_v16 }
 0xacd   : > { %5930 = vst.msk [vmem:[#allocation6 + $0xc8] sm:$0xff] %vm3851_vm4, %v5860_v44 }
 0xace   : > { %6122 = vst.msk [vmem:[#allocation6 + $0xc8] sm:$0xff] %vm4044_vm5, %v6052_v28  ;;  %v7092_v43 = vadd.f32 %v11185_v34, %v7056_v60 }
 0xacf   : > { %6314 = vst.msk [vmem:[#allocation6 + $0xc8] sm:$0xff] %vm4237_vm6, %v6244_v62 }
 0xad0   : > { %v7124_v63 = vmax.f32 %v7092_v43, 0.0 }
 0xad2   : > { %v7156_v9 = vadd.f32 %v7124_v63, %v11670_v18  ;;  %v6056_v37 = vpop.permute.xlu2 %6055 }
 0xad3   : > { %v5477_v2 = vpop.permute.xlu1 %5476  ;;  %v6987_v12 = vpop.f32.mrf.mxu3 }
 0xad4   : > { %7188 = vst.msk [vmem:[%s11202_s15 + $0x30] sm:$0xff] %vm396_vm12, %v7156_v9  ;;  %v6242_v15 = vpop.permute.xlu0 %6241  ;;  %v7057_v17 = vadd.f32 %v6987_v12, %v6830_v40  ;;  %v6837_v40 = vpop.f32.mrf.mxu2 }
 0xad5   : > { %5546 = vst.msk [vmem:[#allocation6 + $0xd0] sm:$0xff] %vm3464_vm2, %v5477_v2  ;;  %v6697_v2 = vpop.f32.mrf.mxu0 }
 0xad6   : > { %6313 = vst.msk [vmem:[#allocation6 + $0xc0] sm:$0xff] %vm4237_vm6, %v6242_v15  ;;  %v7093_v23 = vadd.f32 %v11185_v34, %v7057_v17  ;;  %v6346_v11 = vld [vmem:[#allocation6 + $0xc8] sm:$0xff]  ;;  %v6838_v15 = vadd.f32 %v6837_v40, %v6697_v2 }
 0xad8   : > { %v7125_v10 = vmax.f32 %v7093_v23, 0.0 }
 0xada   : > { %v7157_v55 = vadd.f32 %v7125_v10, %v11671_v56  ;;  %v5289_v38 = vpop.permute.xlu2 %5288 }
 0xadb   : > { %v6505_v31 = vpop.f32.mrf.mxu1  ;;  %v5671_v54 = vpop.permute.xlu1 %5670  ;;  %5356 = vst.msk [vmem:[#allocation6 + $0xe0] sm:$0xff] %vm3271_vm1, %v5289_v38 }
 0xadc   : > { %7189 = vst.msk [vmem:[%s11202_s15 + $0x38] sm:$0xff] %vm396_vm12, %v7157_v55  ;;  %v5287_v19 = vpop.permute.xlu0 %5286  ;;  %v6561_v41 = vmax.f32 %v6505_v31, 0.0  ;;  %v6839_v38 = vpop.f32.mrf.mxu2 }
 0xadd   : > { %5355 = vst.msk [vmem:[#allocation6 + $0xd8] sm:$0xff] %vm3271_vm1, %v5287_v19  ;;  %v6345_v61 = vld [vmem:[#allocation6 + $0xc0] sm:$0xff] }
 0xade   : > { %5547 = vst.msk [vmem:[#allocation6 + $0xd8] sm:$0xff] %vm3464_vm2, %v5479_v3  ;;  %v6365_v27 = vpack.c.bf16 %v6346_v11, %v6345_v61  ;;  %v11674_v61 = vld [vmem:[#allocation11_spill] sm:$0xff] }
 0xadf   : > { %5739 = vst.msk [vmem:[#allocation6 + $0xd8] sm:$0xff] %vm3657_vm3, %v5671_v54  ;;  %v6699_v54 = vpop.f32.mrf.mxu0 }
 0xae0   : > { %7410 = vmatmul.msk.bf16.gmra.mxu1 %vm4354_vm7, %v6365_v27  ;;  %v6840_v19 = vadd.f32 %v6839_v38, %v6699_v54 }
 0xae2   : > { %v5483_v13 = vpop.permute.xlu2 %5482 }
 0xae3   : > { %v6507_v35 = vpop.f32.mrf.mxu1  ;;  %v6054_v51 = vpop.permute.xlu1 %6053 }
 0xae4   : > { %v6562_v28 = vmax.f32 %v6507_v35, 0.0  ;;  %v5669_v22 = vpop.permute.xlu0 %5668 }
 0xae5   : > { %5738 = vst.msk [vmem:[#allocation6 + $0xd0] sm:$0xff] %vm3657_vm3, %v5669_v22 }
 0xae6   : > { %v6900_v25 = vpack.c.bf16 %v6562_v28, %v6561_v41  ;;  %5931 = vst.msk [vmem:[#allocation6 + $0xd0] sm:$0xff] %vm3851_vm4, %v5862_v14 }
 0xae7   : > { %6123 = vst.msk [vmem:[#allocation6 + $0xd0] sm:$0xff] %vm4044_vm5, %v6054_v51 }
 0xae8   : > { %7456 = vmatmul.msk.bf16.gmra.mxu3 %vm396_vm12, %v6900_v25 }
 0xaea   : > { %v5866_v7 = vpop.permute.xlu2 %5865 }
 0xaeb   : > { %v6990_v52 = vpop.f32.mrf.mxu3  ;;  %v6248_v24 = vpop.permute.xlu1 %6247 }
 0xaec   : > { %v7058_v20 = vadd.f32 %v6990_v52, %v6833_v36  ;;  %v5864_v6 = vpop.permute.xlu0 %5863 }
 0xaed   : > { %5932 = vst.msk [vmem:[#allocation6 + $0xd8] sm:$0xff] %vm3851_vm4, %v5864_v6 }
 0xaee   : > { %v7094_v33 = vadd.f32 %v11185_v34, %v7058_v20  ;;  %6124 = vst.msk [vmem:[#allocation6 + $0xd8] sm:$0xff] %vm4044_vm5, %v6056_v37 }
 0xaef   : > { %6316 = vst.msk [vmem:[#allocation6 + $0xd8] sm:$0xff] %vm4237_vm6, %v6248_v24 }
 0xaf0   : > { %v7126_v0 = vmax.f32 %v7094_v33, 0.0 }
 0xaf2   : > { %v7158_v46 = vadd.f32 %v7126_v0, %v11672_v21  ;;  %v6060_v57 = vpop.permute.xlu2 %6059  ;;  %v6842_v0 = vpop.f32.mrf.mxu2 }
 0xaf3   : > { %v6992_v4 = vpop.f32.mrf.mxu3  ;;  %v5481_v59 = vpop.permute.xlu1 %5480 }
 0xaf4   : > { %7190 = vst.msk [vmem:[%s11202_s15 + $0x40] sm:$0xff] %vm396_vm12, %v7158_v46  ;;  %v7059_v3 = vadd.f32 %v6992_v4, %v6835_v48  ;;  %v6246_v32 = vpop.permute.xlu0 %6245  ;;  %v6702_v46 = vpop.f32.mrf.mxu0 }
 0xaf5   : > { %5548 = vst.msk [vmem:[#allocation6 + $0xe0] sm:$0xff] %vm3464_vm2, %v5481_v59  ;;  %v6843_v59 = vadd.f32 %v6842_v0, %v6702_v46 }
 0xaf6   : > { %v7095_v39 = vadd.f32 %v11185_v34, %v7059_v3  ;;  %6315 = vst.msk [vmem:[#allocation6 + $0xd0] sm:$0xff] %vm4237_vm6, %v6246_v32  ;;  %v6348_v44 = vld [vmem:[#allocation6 + $0xd8] sm:$0xff] }
 0xaf8   : > { %v7127_v49 = vmax.f32 %v7095_v39, 0.0 }
 0xafa   : > { %v7159_v30 = vadd.f32 %v7127_v49, %v11673_v50  ;;  %v5103_v29 = vpop.permute.xlu2 %5102 }
 0xafb   : > { %v5675_v16 = vpop.permute.xlu1 %5674  ;;  %5167 = vst.msk [vmem:[#allocation6 + $0xf8] sm:$0xff] %vm3078_vm0, %v5103_v29 }
 0xafc   : > { %7191 = vst.msk [vmem:[%s11202_s15 + $0x48] sm:$0xff] %vm396_vm12, %v7159_v30  ;;  %v5291_v14 = vpop.permute.xlu0 %5290  ;;  %v6844_v30 = vpop.f32.mrf.mxu2 }
 0xafd   : > { %v6510_v62 = vpop.f32.mrf.mxu1  ;;  %5357 = vst.msk [vmem:[#allocation6 + $0xe8] sm:$0xff] %vm3271_vm1, %v5291_v14  ;;  %v6347_v45 = vld [vmem:[#allocation6 + $0xd0] sm:$0xff] }
 0xafe   : > { %5549 = vst.msk [vmem:[#allocation6 + $0xe8] sm:$0xff] %vm3464_vm2, %v5483_v13  ;;  %v6366_v60 = vpack.c.bf16 %v6348_v44, %v6347_v45  ;;  %v6563_v9 = vmax.f32 %v6510_v62, 0.0  ;;  %v11676_v62 = vld [vmem:[#allocation25_spill] sm:$0xff] }
 0xaff   : > { %5741 = vst.msk [vmem:[#allocation6 + $0xe8] sm:$0xff] %vm3657_vm3, %v5675_v16  ;;  %v6704_v16 = vpop.f32.mrf.mxu0 }
 0xb00   : > { %7411 = vmatmul.msk.bf16.gmra.mxu1 %vm4354_vm7, %v6366_v60  ;;  %v6845_v14 = vadd.f32 %v6844_v30, %v6704_v16  ;;  %v11681_v16 = vld [vmem:[#allocation24_spill] sm:$0xff] }
 0xb02   : > { %v5485_v28 = vpop.permute.xlu2 %5484 }
 0xb03   : > { %v6058_v43 = vpop.permute.xlu1 %6057 }
 0xb04   : > { %v5673_v63 = vpop.permute.xlu0 %5672 }
 0xb05   : > { %v6512_v18 = vpop.f32.mrf.mxu1  ;;  %5740 = vst.msk [vmem:[#allocation6 + $0xe0] sm:$0xff] %vm3657_vm3, %v5673_v63 }
 0xb06   : > { %v6564_v37 = vmax.f32 %v6512_v18, 0.0  ;;  %5933 = vst.msk [vmem:[#allocation6 + $0xe0] sm:$0xff] %vm3851_vm4, %v5866_v7 }
 0xb07   : > { %6125 = vst.msk [vmem:[#allocation6 + $0xe0] sm:$0xff] %vm4044_vm5, %v6058_v43  ;;  %v6707_v38 = vpop.f32.mrf.mxu0 }
 0xb08   : > { %v6901_v12 = vpack.c.bf16 %v6564_v37, %v6563_v9  ;;  %v11677_v9 = vld [vmem:[#allocation14_spill] sm:$0xff] }
 0xb0a   : > { %7457 = vmatmul.msk.bf16.gmra.mxu3 %vm396_vm12, %v6901_v12  ;;  %v5679_v6 = vpop.permute.xlu2 %5678 }
 0xb0b   : > { %v6995_v17 = vpop.f32.mrf.mxu3  ;;  %v6252_v23 = vpop.permute.xlu1 %6251 }
 0xb0c   : > { %v7060_v10 = vadd.f32 %v6995_v17, %v6838_v15  ;;  %v5868_v56 = vpop.permute.xlu0 %5867 }
 0xb0d   : > { %5934 = vst.msk [vmem:[#allocation6 + $0xe8] sm:$0xff] %vm3851_vm4, %v5868_v56 }
 0xb0e   : > { %v7096_v55 = vadd.f32 %v11185_v34, %v7060_v10  ;;  %6126 = vst.msk [vmem:[#allocation6 + $0xe8] sm:$0xff] %vm4044_vm5, %v6060_v57 }
 0xb0f   : > { %6318 = vst.msk [vmem:[#allocation6 + $0xe8] sm:$0xff] %vm4237_vm6, %v6252_v23  ;;  %v6847_v23 = vpop.f32.mrf.mxu2 }
 0xb10   : > { %v7128_v31 = vmax.f32 %v7096_v55, 0.0  ;;  %v6848_v54 = vadd.f32 %v6847_v23, %v6707_v38 }
 0xb12   : > { %v7160_v11 = vadd.f32 %v7128_v31, %v11674_v61  ;;  %v6062_v4 = vpop.permute.xlu2 %6061 }
 0xb13   : > { %v6997_v27 = vpop.f32.mrf.mxu3  ;;  %v5295_v13 = vpop.permute.xlu1 %5294 }
 0xb14   : > { %7192 = vst.msk [vmem:[%s11202_s15 + $0x50] sm:$0xff] %vm396_vm12, %v7160_v11  ;;  %v7061_v35 = vadd.f32 %v6997_v27, %v6840_v19  ;;  %v6250_v51 = vpop.permute.xlu0 %6249 }
 0xb15   : > { %6317 = vst.msk [vmem:[#allocation6 + $0xe0] sm:$0xff] %vm4237_vm6, %v6250_v51 }
 0xb16   : > { %v7097_v41 = vadd.f32 %v11185_v34, %v7061_v35  ;;  %5359 = vst.msk [vmem:[#allocation6 + $0xf8] sm:$0xff] %vm3271_vm1, %v5295_v13  ;;  %v6350_v47 = vld [vmem:[#allocation6 + $0xe8] sm:$0xff]  ;;  %v6709_v35 = vpop.f32.mrf.mxu0 }
 0xb17   : > { %v6849_v27 = vpop.f32.mrf.mxu2 }
 0xb18   : > { %v7129_v22 = vmax.f32 %v7097_v41, 0.0  ;;  %v6850_v51 = vadd.f32 %v6849_v27, %v6709_v35  ;;  %v11678_v41 = vld [vmem:[#allocation21_spill] sm:$0xff] }
 0xb1a   : > { %v7161_v25 = vadd.f32 %v7129_v22, %v11675_v26  ;;  %v6256_v60 = vpop.permute.xlu2 %6255 }
 0xb1b   : > { %v5677_v36 = vpop.permute.xlu1 %5676 }
 0xb1c   : > { %7193 = vst.msk [vmem:[%s11202_s15 + $0x58] sm:$0xff] %vm396_vm12, %v7161_v25  ;;  %v5293_v7 = vpop.permute.xlu0 %5292  ;;  %v6349_v52 = vld [vmem:[#allocation6 + $0xe0] sm:$0xff] }
 0xb1d   : > { %v6515_v24 = vpop.f32.mrf.mxu1  ;;  %5358 = vst.msk [vmem:[#allocation6 + $0xf0] sm:$0xff] %vm3271_vm1, %v5293_v7  ;;  %v6367_v20 = vpack.c.bf16 %v6350_v47, %v6349_v52 }
 0xb1e   : > { %5550 = vst.msk [vmem:[#allocation6 + $0xf0] sm:$0xff] %vm3464_vm2, %v5485_v28  ;;  %v6565_v48 = vmax.f32 %v6515_v24, 0.0 }
 0xb1f   : > { %5742 = vst.msk [vmem:[#allocation6 + $0xf0] sm:$0xff] %vm3657_vm3, %v5677_v36  ;;  %7412 = vmatmul.msk.bf16.gmra.mxu1 %vm4354_vm7, %v6367_v20  ;;  %v11679_v36 = vld [vmem:[#allocation28_spill] sm:$0xff]  ;;  %v6852_v24 = vpop.f32.mrf.mxu2 }
 0xb23   : > { %v5872_v33 = vpop.permute.xlu1 %5871 }
 0xb24   : > { %v5487_v58 = vpop.permute.xlu0 %5486 }
 0xb25   : > { %v6517_v5 = vpop.f32.mrf.mxu1  ;;  %5551 = vst.msk [vmem:[#allocation6 + $0xf8] sm:$0xff] %vm3464_vm2, %v5487_v58  ;;  %v6712_v58 = vpop.f32.mrf.mxu0 }
 0xb26   : > { %v6566_v21 = vmax.f32 %v6517_v5, 0.0  ;;  %5743 = vst.msk [vmem:[#allocation6 + $0xf8] sm:$0xff] %vm3657_vm3, %v5679_v6  ;;  %v6853_v5 = vadd.f32 %v6852_v24, %v6712_v58 }
 0xb27   : > { %5936 = vst.msk [vmem:[#allocation6 + $0xf8] sm:$0xff] %vm3851_vm4, %v5872_v33 }
 0xb28   : > { %v6902_v57 = vpack.c.bf16 %v6566_v21, %v6565_v48 }
 0xb2a   : > { %7458 = vmatmul.msk.bf16.gmra.mxu3 %vm396_vm12, %v6902_v57  ;;  %v6854_v57 = vpop.f32.mrf.mxu2 }
 0xb2b   : > { %v7000_v3 = vpop.f32.mrf.mxu3  ;;  %v6254_v49 = vpop.permute.xlu1 %6253 }
 0xb2c   : > { %v7062_v32 = vadd.f32 %v7000_v3, %v6843_v59  ;;  %v5870_v39 = vpop.permute.xlu0 %5869 }
 0xb2d   : > { %5935 = vst.msk [vmem:[#allocation6 + $0xf0] sm:$0xff] %vm3851_vm4, %v5870_v39  ;;  %v6714_v59 = vpop.f32.mrf.mxu0 }
 0xb2e   : > { %v7098_v50 = vadd.f32 %v11185_v34, %v7062_v32  ;;  %6127 = vst.msk [vmem:[#allocation6 + $0xf0] sm:$0xff] %vm4044_vm5, %v6062_v4  ;;  %v6855_v3 = vadd.f32 %v6854_v57, %v6714_v59  ;;  %v11680_v32 = vld [vmem:[#allocation17_spill] sm:$0xff] }
 0xb2f   : > { %6319 = vst.msk [vmem:[#allocation6 + $0xf0] sm:$0xff] %vm4237_vm6, %v6254_v49 }
 0xb30   : > { %v7130_v29 = vmax.f32 %v7098_v50, 0.0 }
 0xb32   : > { %v7162_v45 = vadd.f32 %v7130_v29, %v11676_v62 }
 0xb33   : > { %v7002_v44 = vpop.f32.mrf.mxu3 }
 0xb34   : > { %7194 = vst.msk [vmem:[%s11202_s15 + $0x60] sm:$0xff] %vm396_vm12, %v7162_v45  ;;  %v7063_v43 = vadd.f32 %v7002_v44, %v6845_v14  ;;  %v6064_v63 = vpop.permute.xlu0 %6063 }
 0xb35   : > { %6128 = vst.msk [vmem:[#allocation6 + $0xf8] sm:$0xff] %vm4044_vm5, %v6064_v63 }
 0xb36   : > { %v7099_v40 = vadd.f32 %v11185_v34, %v7063_v43  ;;  %6320 = vst.msk [vmem:[#allocation6 + $0xf8] sm:$0xff] %vm4237_vm6, %v6256_v60  ;;  %v6351_v2 = vld [vmem:[#allocation6 + $0xf0] sm:$0xff]  ;;  %v6857_v43 = vpop.f32.mrf.mxu2 }
 0xb38   : > { %v7131_v18 = vmax.f32 %v7099_v40, 0.0  ;;  %v6717_v40 = vpop.f32.mrf.mxu0 }
 0xb3a   : > { %v7163_v37 = vadd.f32 %v7131_v18, %v11677_v9  ;;  %v6858_v18 = vadd.f32 %v6857_v43, %v6717_v40 }
 0xb3c   : > { %7195 = vst.msk [vmem:[%s11202_s15 + $0x68] sm:$0xff] %vm396_vm12, %v7163_v37 }
 0xb3d   : > { %v6520_v12 = vpop.f32.mrf.mxu1  ;;  %v6352_v15 = vld [vmem:[#allocation6 + $0xf8] sm:$0xff] }
 0xb3e   : > { %v6368_v17 = vpack.c.bf16 %v6352_v15, %v6351_v2  ;;  %v6567_v56 = vmax.f32 %v6520_v12, 0.0  ;;  %v6859_v12 = vpop.f32.mrf.mxu2 }
 0xb40   : > { %7413 = vmatmul.msk.bf16.gmra.mxu1 %vm4354_vm7, %v6368_v17  ;;  %v6719_v17 = vpop.f32.mrf.mxu0 }
 0xb41   : > { %v6860_v23 = vadd.f32 %v6859_v12, %v6719_v17 }
 0xb45   : > { %v6522_v10 = vpop.f32.mrf.mxu1 }
 0xb46   : > { %v6568_v55 = vmax.f32 %v6522_v10, 0.0  ;;  %v11682_v10 = vld [vmem:[#allocation20_spill] sm:$0xff] }
 0xb48   : > { %v6903_v31 = vpack.c.bf16 %v6568_v55, %v6567_v56 }
 0xb4a   : > { %7459 = vmatmul.msk.bf16.gmra.mxu3 %vm396_vm12, %v6903_v31 }
 0xb4b   : > { %v7005_v19 = vpop.f32.mrf.mxu3 }
 0xb4c   : > { %v7064_v61 = vadd.f32 %v7005_v19, %v6848_v54  ;;  %v11683_v19 = vld [vmem:[#allocation27_spill] sm:$0xff] }
 0xb4e   : > { %v7100_v11 = vadd.f32 %v11185_v34, %v7064_v61 }
 0xb50   : > { %v7132_v13 = vmax.f32 %v7100_v11, 0.0 }
 0xb52   : > { %v7164_v28 = vadd.f32 %v7132_v13, %v11678_v41 }
 0xb53   : > { %v7007_v22 = vpop.f32.mrf.mxu3 }
 0xb54   : > { %7196 = vst.msk [vmem:[%s11202_s15 + $0x70] sm:$0xff] %vm396_vm12, %v7164_v28  ;;  %v7065_v26 = vadd.f32 %v7007_v22, %v6850_v51  ;;  %v6862_v51 = vpop.f32.mrf.mxu2  ;;  %v6722_v28 = vpop.f32.mrf.mxu0 }
 0xb55   : > { %v6863_v22 = vadd.f32 %v6862_v51, %v6722_v28 }
 0xb56   : > { %v7101_v25 = vadd.f32 %v11185_v34, %v7065_v26 }
 0xb58   : > { %v7133_v47 = vmax.f32 %v7101_v25, 0.0 }
 0xb5a   : > { %v7165_v7 = vadd.f32 %v7133_v47, %v11679_v36 }
 0xb5c   : > { %7197 = vst.msk [vmem:[%s11202_s15 + $0x78] sm:$0xff] %vm396_vm12, %v7165_v7  ;;  %v6864_v36 = vpop.f32.mrf.mxu2 }
 0xb5d   : > { %v6525_v52 = vpop.f32.mrf.mxu1 }
 0xb5e   : > { %v6569_v6 = vmax.f32 %v6525_v52, 0.0  ;;  %v6724_v52 = vpop.f32.mrf.mxu0 }
 0xb5f   : > { %v6865_v24 = vadd.f32 %v6864_v36, %v6724_v52 }
 0xb65   : > { %v6527_v20 = vpop.f32.mrf.mxu1 }
 0xb66   : > { %v6570_v33 = vmax.f32 %v6527_v20, 0.0  ;;  %v11684_v20 = vld [vmem:[#allocation23_spill] sm:$0xff] }
 0xb68   : > { %v6904_v0 = vpack.c.bf16 %v6570_v33, %v6569_v6 }
 0xb6a   : > { %7460 = vmatmul.msk.bf16.gmra.mxu3 %vm396_vm12, %v6904_v0 }
 0xb6b   : > { %v7010_v48 = vpop.f32.mrf.mxu3 }
 0xb6c   : > { %v7066_v21 = vadd.f32 %v7010_v48, %v6853_v5  ;;  %v11685_v48 = vld [vmem:[#allocation26_spill] sm:$0xff] }
 0xb6e   : > { %v7102_v46 = vadd.f32 %v11185_v34, %v7066_v21 }
 0xb70   : > { %v7134_v4 = vmax.f32 %v7102_v46, 0.0 }
 0xb72   : > { %v7166_v39 = vadd.f32 %v7134_v4, %v11680_v32 }
 0xb73   : > { %v7012_v49 = vpop.f32.mrf.mxu3 }
 0xb74   : > { %7198 = vst.msk [vmem:[%s11202_s15 + $0x80] sm:$0xff] %vm396_vm12, %v7166_v39  ;;  %v7067_v50 = vadd.f32 %v7012_v49, %v6855_v3  ;;  %v6867_v3 = vpop.f32.mrf.mxu2  ;;  %v6727_v39 = vpop.f32.mrf.mxu0 }
 0xb75   : > { %v6868_v49 = vadd.f32 %v6867_v3, %v6727_v39 }
 0xb76   : > { %v7103_v30 = vadd.f32 %v11185_v34, %v7067_v50 }
 0xb78   : > { %v7135_v29 = vmax.f32 %v7103_v30, 0.0 }
 0xb7a   : > { %v7167_v14 = vadd.f32 %v7135_v29, %v11681_v16 }
 0xb7c   : > { %7199 = vst.msk [vmem:[%s11202_s15 + $0x88] sm:$0xff] %vm396_vm12, %v7167_v14  ;;  %v6869_v16 = vpop.f32.mrf.mxu2 }
 0xb7d   : > { %v6530_v62 = vpop.f32.mrf.mxu1 }
 0xb7e   : > { %v6571_v44 = vmax.f32 %v6530_v62, 0.0  ;;  %v6729_v62 = vpop.f32.mrf.mxu0 }
 0xb85   : > { %v6532_v45 = vpop.f32.mrf.mxu1 }
 0xb86   : > { %v6572_v60 = vmax.f32 %v6532_v45, 0.0  ;;  %v6870_v45 = vadd.f32 %v6869_v16, %v6729_v62  ;;  %v6732_v12 = vpop.f32.mrf.mxu0 }
 0xb88   : > { %v6905_v63 = vpack.c.bf16 %v6572_v60, %v6571_v44  ;;  %v11686_v44 = vld [vmem:[#allocation29_spill] sm:$0xff] }
 0xb8a   : > { %7461 = vmatmul.msk.bf16.gmra.mxu3 %vm396_vm12, %v6905_v63 }
 0xb8d   : > { %v7015_v9 = vpop.f32.mrf.mxu3 }
 0xb8e   : > { %v7068_v37 = vadd.f32 %v7015_v9, %v6858_v18  ;;  %v11687_v9 = vld [vmem:[#allocation30_spill] sm:$0xff] }
 0xb90   : > { %v7104_v2 = vadd.f32 %v11185_v34, %v7068_v37 }
 0xb92   : > { %v7136_v15 = vmax.f32 %v7104_v2, 0.0  ;;  %v6872_v2 = vpop.f32.mrf.mxu2 }
 0xb94   : > { %v7168_v56 = vadd.f32 %v7136_v15, %v11682_v10  ;;  %v6873_v15 = vadd.f32 %v6872_v2, %v6732_v12 }
 0xb95   : > { %v7017_v55 = vpop.f32.mrf.mxu3 }
 0xb96   : > { %7200 = vst.msk [vmem:[%s11202_s15 + $0x90] sm:$0xff] %vm396_vm12, %v7168_v56  ;;  %v7069_v38 = vadd.f32 %v7017_v55, %v6860_v23 }
 0xb98   : > { %v7105_v31 = vadd.f32 %v11185_v34, %v7069_v38  ;;  %v6734_v38 = vpop.f32.mrf.mxu0 }
 0xb9a   : > { %v7137_v54 = vmax.f32 %v7105_v31, 0.0  ;;  %v6874_v56 = vpop.f32.mrf.mxu2 }
 0xb9b   : > { %v6875_v31 = vadd.f32 %v6874_v56, %v6734_v38 }
 0xb9c   : > { %v7169_v61 = vadd.f32 %v7137_v54, %v11683_v19  ;;  %v6535_v11 = vpop.f32.mrf.mxu1  ;;  %v11688_v54 = vld [vmem:[#allocation32_spill] sm:$0xff] }
 0xb9d   : > { %v6573_v13 = vmax.f32 %v6535_v11, 0.0 }
 0xb9e   : > { %7201 = vst.msk [vmem:[%s11202_s15 + $0x98] sm:$0xff] %vm396_vm12, %v7169_v61 }
 0xba0   : > { %v6737_v28 = vpop.f32.mrf.mxu0 }
 0xba4   : > { %v6537_v27 = vpop.f32.mrf.mxu1 }
 0xba5   : > { %v6574_v35 = vmax.f32 %v6537_v27, 0.0 }
 0xba7   : > { %v6906_v41 = vpack.c.bf16 %v6574_v35, %v6573_v13  ;;  %v11689_v35 = vld [vmem:[#allocation34_spill] sm:$0xff] }
 0xba9   : > { %7462 = vmatmul.msk.bf16.gmra.mxu3 %vm396_vm12, %v6906_v41  ;;  %v6877_v41 = vpop.f32.mrf.mxu2 }
 0xbad   : > { %v7020_v26 = vpop.f32.mrf.mxu3 }
 0xbae   : > { %v7070_v25 = vadd.f32 %v7020_v26, %v6863_v22  ;;  %v6878_v22 = vadd.f32 %v6877_v41, %v6737_v28 }
 0xbb0   : > { %v7106_v47 = vadd.f32 %v11185_v34, %v7070_v25 }
 0xbb2   : > { %v7138_v7 = vmax.f32 %v7106_v47, 0.0  ;;  %v7508_v47 = vld [vmem:[%s11502_s8] ss:$0 sm:$0xff] }
 0xbb4   : > { %v7170_v6 = vadd.f32 %v7138_v7, %v11684_v20  ;;  %v6879_v7 = vpop.f32.mrf.mxu2  ;;  %v11690_v20 = vld [vmem:[#allocation35_spill] sm:$0xff] }
 0xbb5   : > { %v7022_v33 = vpop.f32.mrf.mxu3 }
 0xbb6   : > { %7202 = vst.msk [vmem:[%s11202_s15 + $0xa0] sm:$0xff] %vm396_vm12, %v7170_v6  ;;  %v7071_v58 = vadd.f32 %v7022_v33, %v6865_v24 }
 0xbb8   : > { %v7107_v0 = vadd.f32 %v11185_v34, %v7071_v58 }
 0xbba   : > { %v7139_v5 = vmax.f32 %v7107_v0, 0.0 }
 0xbbc   : > { %v7171_v21 = vadd.f32 %v7139_v5, %v11685_v48  ;;  %v11691_v48 = vld [vmem:[#allocation37_spill] sm:$0xff] }
 0xbbd   : > { %v6540_v46 = vpop.f32.mrf.mxu1 }
 0xbbe   : > { %7203 = vst.msk [vmem:[%s11202_s15 + $0xa8] sm:$0xff] %vm396_vm12, %v7171_v21  ;;  %v6575_v4 = vmax.f32 %v6540_v46, 0.0 }
 0xbc5   : > { %v6542_v57 = vpop.f32.mrf.mxu1 }
 0xbc6   : > { %v6576_v59 = vmax.f32 %v6542_v57, 0.0  ;;  %v6882_v57 = vpop.f32.mrf.mxu2 }
 0xbc8   : > { %v6907_v32 = vpack.c.bf16 %v6576_v59, %v6575_v4 }
 0xbca   : > { %7463 = vmatmul.msk.bf16.gmra.mxu3 %vm396_vm12, %v6907_v32 }
 0xbcd   : > { %v7025_v50 = vpop.f32.mrf.mxu3 }
 0xbce   : > { %v7072_v30 = vadd.f32 %v7025_v50, %v6868_v49  ;;  %v6884_v49 = vpop.f32.mrf.mxu2 }
 0xbd0   : > { %v7108_v29 = vadd.f32 %v11185_v34, %v7072_v30 }
 0xbd2   : > { %v7140_v14 = vmax.f32 %v7108_v29, 0.0 }
 0xbd4   : > { %v7172_v60 = vadd.f32 %v7140_v14, %v11686_v44 }
 0xbd5   : > { %v7027_v43 = vpop.f32.mrf.mxu3 }
 0xbd6   : > { %7204 = vst.msk [vmem:[%s11202_s15 + $0xb0] sm:$0xff] %vm396_vm12, %v7172_v60  ;;  %v7073_v63 = vadd.f32 %v7027_v43, %v6870_v45  ;;  %v6887_v43 = vpop.f32.mrf.mxu2 }
 0xbd8   : > { %v7109_v40 = vadd.f32 %v11185_v34, %v7073_v63 }
 0xbda   : > { %v7141_v18 = vmax.f32 %v7109_v40, 0.0 }
 0xbdc   : > { %v7173_v37 = vadd.f32 %v7141_v18, %v11687_v9 }
 0xbde   : > { %7205 = vst.msk [vmem:[%s11202_s15 + $0xb8] sm:$0xff] %vm396_vm12, %v7173_v37 }
 0xbed   : > { %v7030_v17 = vpop.f32.mrf.mxu3 }
 0xbee   : > { %v7074_v23 = vadd.f32 %v7030_v17, %v6873_v15 }
 0xbf0   : > { %v7110_v10 = vadd.f32 %v11185_v34, %v7074_v23 }
 0xbf2   : > { %v7142_v55 = vmax.f32 %v7110_v10, 0.0 }
 0xbf4   : > { %v7174_v19 = vadd.f32 %v7142_v55, %v11688_v54 }
 0xbf5   : > { %v7032_v61 = vpop.f32.mrf.mxu3 }
 0xbf6   : > { %7206 = vst.msk [vmem:[%s11202_s15 + $0xc0] sm:$0xff] %vm396_vm12, %v7174_v19  ;;  %v7075_v11 = vadd.f32 %v7032_v61, %v6875_v31 }
 0xbf8   : > { %v7111_v27 = vadd.f32 %v11185_v34, %v7075_v11  ;;  %v6739_v34 = vpop.f32.mrf.mxu0 }
 0xbf9   : > { %v6880_v24 = vadd.f32 %v6879_v7, %v6739_v34 }
 0xbfa   : > { %v7143_v13 = vmax.f32 %v7111_v27, 0.0 }
 0xbfc   : > { %v7175_v51 = vadd.f32 %v7143_v13, %v11689_v35 }
 0xbfe   : > { %7207 = vst.msk [vmem:[%s11202_s15 + $0xc8] sm:$0xff] %vm396_vm12, %v7175_v51 }
 0xc00   : > { %v6742_v46 = vpop.f32.mrf.mxu0 }
 0xc01   : > { %v6883_v4 = vadd.f32 %v6882_v57, %v6742_v46 }
 0xc08   : > { %v6744_v39 = vpop.f32.mrf.mxu0 }
 0xc09   : > { %v6885_v30 = vadd.f32 %v6884_v49, %v6744_v39 }
 0xc0d   : > { %v7035_v26 = vpop.f32.mrf.mxu3 }
 0xc0e   : > { %v7076_v25 = vadd.f32 %v7035_v26, %v6878_v22 }
 0xc10   : > { %v7112_v36 = vadd.f32 %v7508_v47, %v7076_v25  ;;  %v6747_v60 = vpop.f32.mrf.mxu0 }
 0xc11   : > { %v6888_v63 = vadd.f32 %v6887_v43, %v6747_v60 }
 0xc12   : > { %v7144_v52 = vmax.f32 %v7112_v36, 0.0 }
 0xc14   : > { %v7176_v6 = vadd.f32 %v7144_v52, %v11690_v20 }
 0xc15   : > { %v7037_v33 = vpop.f32.mrf.mxu3 }
 0xc16   : > { %7208 = vst.msk [vmem:[%s11202_s15 + $0xd0] sm:$0xff] %vm396_vm12, %v7176_v6  ;;  %v7077_v58 = vadd.f32 %v7037_v33, %v6880_v24 }
 0xc18   : > { %v7113_v0 = vadd.f32 %v7508_v47, %v7077_v58  ;;  %v6749_v37 = vpop.f32.mrf.mxu0 }
 0xc1a   : > { %v7145_v5 = vmax.f32 %v7113_v0, 0.0 }
 0xc1c   : > { %v7177_v21 = vadd.f32 %v7145_v5, %v11691_v48 }
 0xc1e   : > { %7209 = vst.msk [vmem:[%s11202_s15 + $0xd8] sm:$0xff] %vm396_vm12, %v7177_v21 }
 0xc2c   : > { %v7040_v59 = vpop.f32.mrf.mxu3 }
 0xc2d   : > { %v7078_v3 = vadd.f32 %v7040_v59, %v6883_v4 }
 0xc2f   : > { %v7114_v32 = vadd.f32 %v7508_v47, %v7078_v3 }
 0xc31   : > { %v7146_v50 = vmax.f32 %v7114_v32, 0.0 }
 0xc33   : > { %v7178_v29 = vadd.f32 %v7146_v50, %v9537_v1  ;;  %v6889_v1 = vpop.f32.mrf.mxu2 }
 0xc34   : > { %v7042_v16 = vpop.f32.mrf.mxu3  ;;  %v6890_v12 = vadd.f32 %v6889_v1, %v6749_v37 }
 0xc35   : > { %7210 = vst.msk [vmem:[%s11202_s15 + $0xe0] sm:$0xff] %vm396_vm12, %v7178_v29  ;;  %v7079_v14 = vadd.f32 %v7042_v16, %v6885_v30 }
 0xc37   : > { %v7115_v62 = vadd.f32 %v7508_v47, %v7079_v14 }
 0xc39   : > { %v7147_v45 = vmax.f32 %v7115_v62, 0.0 }
 0xc3b   : > { %v7179_v44 = vadd.f32 %v7147_v45, %v9550_v42 }
 0xc3d   : > { %7211 = vst.msk [vmem:[%s11202_s15 + $0xe8] sm:$0xff] %vm396_vm12, %v7179_v44 }
 0xc4d   : > { %v7045_v40 = vpop.f32.mrf.mxu3 }
 0xc4e   : > { %v7080_v18 = vadd.f32 %v7045_v40, %v6888_v63 }
 0xc50   : > { %v7116_v9 = vadd.f32 %v7508_v47, %v7080_v18 }
 0xc52   : > { %v7148_v2 = vmax.f32 %v7116_v9, 0.0 }
 0xc54   : > { %v7180_v15 = vadd.f32 %v7148_v2, %v9566_v53 }
 0xc55   : > { %v7047_v17 = vpop.f32.mrf.mxu3 }
 0xc56   : > { %7212 = vst.msk [vmem:[%s11202_s15 + $0xf0] sm:$0xff] %vm396_vm12, %v7180_v15  ;;  %v7081_v23 = vadd.f32 %v7047_v17, %v6890_v12 }
 0xc58   : > { %v7117_v42 = vadd.f32 %v7508_v47, %v7081_v23 }
 0xc5a   : > { %v7149_v10 = vmax.f32 %v7117_v42, 0.0 }
 0xc5c   : > { %v7181_v56 = vadd.f32 %v7149_v10, %v9580_v8 }
 0xc5e   : > { %7213 = vst.msk [vmem:[%s11202_s15 + $0xf8] sm:$0xff] %vm396_vm12, %v7181_v56 }
 0xc5f PF: > { %s19_s30 = sadd.s32 1, %s7515_s30  }
 0xc60   : > { %p16_p4 = scmp.ge.s32.totalorder %s19_s30, 4  }
 0xc62   :  { %18 = sbr.rel (!%p16_p4) target bundleno = 1 (0x1), region = 94 }

</bundles_post_ra>
